<compile_context>
chip_gen: v6e
topology: v6e:2x2x1
jax: 0.10.0
libtpu: 0.0.40
codegen_flags: <defaults>
</compile_context>

<pallas_src>
from functools import partial

import jax
import jax.numpy as jnp
from jax.experimental import pallas as pl
from jax.experimental.pallas import tpu as pltpu

EPS = 1e-5                       # PyTorch BatchNorm3d default
VMEM_LIMIT = 32 * 1024 * 1024    # safe scoped-VMEM limit on v5e / v6e / v7x


# ------------------------------------------------------------------ conv 3x3x3 kernel
def _make_conv_kernel(D, H, W, Cin, Cout, fuse_in, has_proj):
    """3x3x3 conv (pad=1, stride=1) over a full (D,H,W,Cin) volume resident in VMEM.

    Optionally fuses a per-channel affine + ReLU on the input (bn1 of the block) and a
    1x1x1 projection shortcut on the raw input.  Emits raw conv output (store dtype) and
    f32 per-sample sum / sum-of-squares for the two-pass training-mode BatchNorm.
    """
    HW = H * W

    def kernel(*refs):
        it = iter(refs)
        x_ref = next(it)
        w_ref = next(it)
        a_ref = c_ref = ws_ref = None
        if fuse_in:
            a_ref = next(it)
            c_ref = next(it)
        if has_proj:
            ws_ref = next(it)
        y_ref = next(it)
        s_ref = next(it)
        q_ref = next(it)
        if has_proj:
            sc_ref = next(it)
            ss_ref = next(it)
            qs_ref = next(it)
        xpad_ref = next(it)

        # ---- stage the (optionally bn+relu'd) input into a zero-halo VMEM pad --------
        # (replaces an HBM jnp.pad round-trip; bn1+ReLU fusion replaces a full-volume
        #  elementwise pallas_call)
        xin = x_ref[...]                                     # (D, H, W, Cin)
        if fuse_in:
            xin = jnp.maximum(xin.astype(jnp.float32) * a_ref[0] + c_ref[0], 0.0)
        xpad_ref[...] = jnp.zeros_like(xpad_ref)
        xpad_ref[1:D + 1, 1:H + 1, 1:W + 1, :] = xin.astype(xpad_ref.dtype)

        s_ref[...] = jnp.zeros_like(s_ref)
        q_ref[...] = jnp.zeros_like(q_ref)
        if has_proj:
            ss_ref[...] = jnp.zeros_like(ss_ref)
            qs_ref[...] = jnp.zeros_like(qs_ref)

        def depth_body(d, carry):
            acc = jnp.zeros((HW, Cout), jnp.float32)
            for kd in range(3):                              # static tap loops
                plane = xpad_ref[d + kd]                     # (H+2, W+2, Cin)
                for kh in range(3):
                    for kw in range(3):
                        patch = plane[kh:kh + H, kw:kw + W, :].reshape(HW, Cin)
                        acc = acc + jnp.dot(
                            patch, w_ref[kd * 9 + kh * 3 + kw],
                            preferred_element_type=jnp.float32)
                if has_proj and kd == 1:
                    # plane at kd==1 is exactly input depth d -> fuse 1x1x1 projection.
                    xc = plane[1:H + 1, 1:W + 1, :].reshape(HW, Cin)
                    scv = jnp.dot(xc, ws_ref[...], preferred_element_type=jnp.float32)
                    sc_ref[d] = scv.reshape(H, W, Cout).astype(sc_ref.dtype)
                    ss_ref[...] += jnp.sum(scv, axis=0, keepdims=True)
                    qs_ref[...] += jnp.sum(scv * scv, axis=0, keepdims=True)
            y_ref[d] = acc.reshape(H, W, Cout).astype(y_ref.dtype)
            s_ref[...] += jnp.sum(acc, axis=0, keepdims=True)
            q_ref[...] += jnp.sum(acc * acc, axis=0, keepdims=True)
            return carry

        jax.lax.fori_loop(0, D, depth_body, 0)

    return kernel


def _conv3x3x3(x, w_taps, in_affine=None, ws=None):
    """x: (N, D, H, W, Cin) store-dtype NDHWC.  w_taps: (27, Cin, Cout) in (kd,kh,kw) order.

    in_affine: optional (a, c) f32 per-channel vectors -> apply relu(x*a + c) to the input.
    ws: optional (Cin, Cout) fused 1x1x1 projection shortcut (applied to the raw input).
    Returns (y, sum, sumsq[, sc, sum_sc, sumsq_sc]).
    """
    N, D, H, W, Cin = x.shape
    Cout = w_taps.shape[-1]
    sdtype = x.dtype
    fuse_in = in_affine is not None
    has_proj = ws is not None

    vol_in = pl.BlockSpec((None, D, H, W, Cin), lambda n: (n, 0, 0, 0, 0))
    vol_out = pl.BlockSpec((None, D, H, W, Cout), lambda n: (n, 0, 0, 0, 0))
    stat = pl.BlockSpec((None, 1, Cout), lambda n: (n, 0, 0))
    vec_in = pl.BlockSpec((1, Cin), lambda n: (0, 0))
    # constant index maps -> weights stay resident, not re-fetched per step
    w_spec = pl.BlockSpec((27, Cin, Cout), lambda n: (0, 0, 0))
    ws_spec = pl.BlockSpec((Cin, Cout), lambda n: (0, 0))

    in_specs = [vol_in, w_spec]
    args = [x, w_taps]
    if fuse_in:
        a, c = in_affine
        in_specs += [vec_in, vec_in]
        args += [jnp.reshape(a, (1, Cin)).astype(jnp.float32),
                 jnp.reshape(c, (1, Cin)).astype(jnp.float32)]
    if has_proj:
        in_specs.append(ws_spec)
        args.append(ws)

    out_specs = [vol_out, stat, stat]
    out_shape = [jax.ShapeDtypeStruct((N, D, H, W, Cout), sdtype),
                 jax.ShapeDtypeStruct((N, 1, Cout), jnp.float32),
                 jax.ShapeDtypeStruct((N, 1, Cout), jnp.float32)]
    if has_proj:
        out_specs += [vol_out, stat, stat]
        out_shape += [jax.ShapeDtypeStruct((N, D, H, W, Cout), sdtype),
                      jax.ShapeDtypeStruct((N, 1, Cout), jnp.float32),
                      jax.ShapeDtypeStruct((N, 1, Cout), jnp.float32)]

    return pl.pallas_call(
        _make_conv_kernel(D, H, W, Cin, Cout, fuse_in, has_proj),
        grid=(N,),
        in_specs=in_specs,
        out_specs=out_specs,
        out_shape=out_shape,
        scratch_shapes=[pltpu.VMEM((D + 2, H + 2, W + 2, Cin), sdtype)],
        compiler_params=pltpu.CompilerParams(
            dimension_semantics=("parallel",),
            vmem_limit_bytes=VMEM_LIMIT),
    )(*args)


# ---------------------------------------------------- bn2 + shortcut-BN + add + ReLU
def _bn_add_relu_kernel(y_ref, r_ref, a_ref, c_ref, ar_ref, cr_ref, o_ref):
    main = y_ref[...].astype(jnp.float32) * a_ref[0] + c_ref[0]
    resid = r_ref[...].astype(jnp.float32) * ar_ref[0] + cr_ref[0]
    o_ref[...] = jnp.maximum(main + resid, 0.0)


def _bn_add_relu(y, resid, a, c, ar, cr):
    N, D, H, W, C = y.shape
    vol = lambda n: (n, 0, 0, 0, 0)
    vecmap = lambda n: (0, 0)
    vol_spec = pl.BlockSpec((None, D, H, W, C), vol)
    vec_spec = pl.BlockSpec((1, C), vecmap)
    vec = lambda v: jnp.reshape(v, (1, C)).astype(jnp.float32)
    return pl.pallas_call(
        _bn_add_relu_kernel,
        grid=(N,),
        in_specs=[vol_spec, vol_spec, vec_spec, vec_spec, vec_spec, vec_spec],
        out_specs=pl.BlockSpec((None, D, H, W, C), vol),
        out_shape=jax.ShapeDtypeStruct((N, D, H, W, C), jnp.float32),
        compiler_params=pltpu.CompilerParams(
            dimension_semantics=("parallel",),
            vmem_limit_bytes=VMEM_LIMIT),
    )(y, resid, vec(a), vec(c), vec(ar), vec(cr))


def _finalize_bn(psum, psumsq, gamma, beta, count):
    """Per-sample partial sums -> per-channel affine (a, c) of training-mode BatchNorm."""
    mean = jnp.sum(psum, axis=(0, 1)) / count
    # NOTE: E[x^2] - mean^2 in f32 (partial sums are f32); fine for normalized activations.
    var = jnp.sum(psumsq, axis=(0, 1)) / count - mean * mean
    a = gamma.astype(jnp.float32) * jax.lax.rsqrt(var + EPS)
    c = beta.astype(jnp.float32) - mean * a
    return a, c


# ------------------------------------------------------------------------ forward pass
@partial(jax.jit, static_argnames=("store_dtype",))
def basic_block_forward(x_ncdhw, params, store_dtype=jnp.bfloat16):
    """BasicBlock forward (stride=1, dropout=0.0, no pooling).  NCDHW f32 in / NCDHW f32 out.

    store_dtype controls the HBM-resident intermediates and the MXU operand dtype
    (bf16 by default); accumulation and BN statistics are always f32.
    """
    x = jnp.transpose(x_ncdhw, (0, 2, 3, 4, 1))            # NDHWC
    N, D, H, W, Cin = x.shape
    Cout = params['w1'].shape[-1]
    count = float(N * D * H * W)
    has_proj = 'ws' in params

    xs = x.astype(store_dtype)
    w1 = params['w1'].astype(store_dtype).reshape(27, Cin, Cout)
    w2 = params['w2'].astype(store_dtype).reshape(27, Cout, Cout)

    # conv1 (3x3x3, pad=1, no bias), projection shortcut fused when present
    if has_proj:
        ws = params['ws'].astype(store_dtype)
        y1, s1, q1, sc, ss, qs = _conv3x3x3(xs, w1, ws=ws)
    else:
        y1, s1, q1 = _conv3x3x3(xs, w1)

    # bn1 affine (training-mode batch stats); dropout=0.0 -> Identity
    a1, c1 = _finalize_bn(s1, q1, params['g1'], params['b1'], count)

    # conv2 with bn1 + ReLU fused into its input staging (no bn pass, no HBM pad)
    y2, s2, q2 = _conv3x3x3(y1, w2, in_affine=(a1, c1))
    a2, c2 = _finalize_bn(s2, q2, params['g2'], params['b2'], count)

    if has_proj:
        ar, cr = _finalize_bn(ss, qs, params['gs'], params['bs'], count)
        resid = sc
    else:
        ar = jnp.ones((Cout,), jnp.float32)                # identity shortcut
        cr = jnp.zeros((Cout,), jnp.float32)
        resid = xs

    # bn2 + shortcut-BN + residual add + ReLU, fused in one elementwise kernel
    out = _bn_add_relu(y2, resid, a2, c2, ar, cr)

    # TODO(synk): a following block should consume NDHWC directly and skip this transpose.
    return jnp.transpose(out, (0, 4, 1, 2, 3))             # back to NCDHW, f32


# -------------------------------------------------------------------------- reference
def reference_forward(x_ncdhw, params):
    """Pure-JAX f32 reference (lax conv + training-mode BN) for correctness checking."""
    x = jnp.transpose(x_ncdhw, (0, 2, 3, 4, 1)).astype(jnp.float32)

    def conv3(a, w):
        return jax.lax.conv_general_dilated(
            a, w, window_strides=(1, 1, 1), padding='SAME',
            dimension_numbers=('NDHWC', 'DHWIO', 'NDHWC'),
            precision=jax.lax.Precision.HIGHEST)

    def bn(a, g, b):
        mean = jnp.mean(a, axis=(0, 1, 2, 3))
        var = jnp.mean(jnp.square(a - mean), axis=(0, 1, 2, 3))
        return (a - mean) * jax.lax.rsqrt(var + EPS) * g + b

    out = jax.nn.relu(bn(conv3(x, params['w1']), params['g1'], params['b1']))
    out = bn(conv3(out, params['w2']), params['g2'], params['b2'])
    if 'ws' in params:
        iden = bn(jnp.einsum('ndhwc,co->ndhwo', x, params['ws'],
                             precision=jax.lax.Precision.HIGHEST),
                  params['gs'], params['bs'])
    else:
        iden = x
    return jnp.transpose(jax.nn.relu(out + iden), (0, 4, 1, 2, 3))


if __name__ == "__main__":
    key = jax.random.PRNGKey(0)

    def make_params(k, cin, cout, with_proj):
        ks = jax.random.split(k, 10)
        p = {
            'w1': 0.1 * jax.random.normal(ks[1], (3, 3, 3, cin, cout), jnp.float32),
            'g1': 1.0 + 0.1 * jax.random.normal(ks[2], (cout,), jnp.float32),
            'b1': 0.1 * jax.random.normal(ks[3], (cout,), jnp.float32),
            'w2': 0.1 * jax.random.normal(ks[4], (3, 3, 3, cout, cout), jnp.float32),
            'g2': 1.0 + 0.1 * jax.random.normal(ks[5], (cout,), jnp.float32),
            'b2': 0.1 * jax.random.normal(ks[6], (cout,), jnp.float32),
        }
        if with_proj:
            p['ws'] = 0.1 * jax.random.normal(ks[7], (cin, cout), jnp.float32)
            p['gs'] = 1.0 + 0.1 * jax.random.normal(ks[8], (cout,), jnp.float32)
            p['bs'] = 0.1 * jax.random.normal(ks[9], (cout,), jnp.float32)
        return p

    N, S = 2, 8
    cases = [
        (4, 8, True),    # in_planes != planes -> projection (1x1x1 conv + BN) shortcut
        (8, 8, False),   # in_planes == planes -> identity shortcut
    ]
    k_in, k_par = jax.random.split(key)
    kxs = jax.random.split(k_in, len(cases))
    kps = jax.random.split(k_par, len(cases))

    for (cin, cout, with_proj), kx, kp in zip(cases, kxs, kps):
        x = jax.random.normal(kx, (N, cin, S, S, S), jnp.float32)
        params = make_params(kp, cin, cout, with_proj)
        ref = jax.block_until_ready(reference_forward(x, params))

        # exact-algorithm check with f32 storage
        out32 = jax.block_until_ready(
            basic_block_forward(x, params, store_dtype=jnp.float32))
        assert out32.shape == (N, cout, S, S, S), out32.shape
        err32 = float(jnp.max(jnp.abs(out32 - ref)))
        assert err32 < 2e-3, f"f32 path max abs err {err32}"

        # production bf16-storage path (looser tolerance: bf16 intermediates/weights)
        outbf = jax.block_until_ready(
            basic_block_forward(x, params, store_dtype=jnp.bfloat16))
        assert outbf.shape == (N, cout, S, S, S), outbf.shape
        diff = jnp.abs(outbf.astype(jnp.float32) - ref)
        max_err = float(jnp.max(diff))
        mean_err = float(jnp.mean(diff))
        assert max_err < 1e-1 and mean_err < 1e-2, \
            f"bf16 path errs max={max_err} mean={mean_err}"

    print("KERNEL_OK")
</pallas_src>

<mosaic_0001>
module attributes {stable_mosaic.version = 11 : i64} {
  func.func @kernel(%arg0: i32, %arg1: memref<1x8x8x8x4xf32, #tpu.memory_space<vmem>>, %arg2: memref<27x4x8xf32, #tpu.memory_space<vmem>>, %arg3: memref<4x8xf32, #tpu.memory_space<vmem>>, %arg4: memref<1x8x8x8x8xf32, #tpu.memory_space<vmem>>, %arg5: memref<1x1x8xf32, #tpu.memory_space<vmem>>, %arg6: memref<1x1x8xf32, #tpu.memory_space<vmem>>, %arg7: memref<1x8x8x8x8xf32, #tpu.memory_space<vmem>>, %arg8: memref<1x1x8xf32, #tpu.memory_space<vmem>>, %arg9: memref<1x1x8xf32, #tpu.memory_space<vmem>>, %arg10: memref<10x10x10x4xf32, #tpu.memory_space<vmem>>) attributes {dimension_semantics = [#tpu.dimension_semantics<parallel>], iteration_bounds = array<i64: 2>, scalar_prefetch = 0 : i64, scratch_operands = 1 : i64, tpu.core_type = #tpu.core_type<tc>, window_params = [{transform_indices = @transform_0, window_bounds = array<i64: 1, 8, 8, 8, 4>}, {pipeline_mode = #tpu.pipeline_mode<synchronous>, transform_indices = @transform_1, window_bounds = array<i64: 27, 4, 8>}, {pipeline_mode = #tpu.pipeline_mode<synchronous>, transform_indices = @transform_2, window_bounds = array<i64: 4, 8>}, {transform_indices = @transform_3, window_bounds = array<i64: 1, 8, 8, 8, 8>}, {transform_indices = @transform_4, window_bounds = array<i64: 1, 1, 8>}, {transform_indices = @transform_5, window_bounds = array<i64: 1, 1, 8>}, {transform_indices = @transform_6, window_bounds = array<i64: 1, 8, 8, 8, 8>}, {transform_indices = @transform_7, window_bounds = array<i64: 1, 1, 8>}, {transform_indices = @transform_8, window_bounds = array<i64: 1, 1, 8>}]} {
    %c0 = arith.constant 0 : index
    %c0_0 = arith.constant 0 : index
    %c0_1 = arith.constant 0 : index
    %c0_2 = arith.constant 0 : index
    %c0_3 = arith.constant 0 : index
    %0 = vector.load %arg1[%c0, %c0_0, %c0_1, %c0_2, %c0_3] : memref<1x8x8x8x4xf32, #tpu.memory_space<vmem>>, vector<1x8x8x8x4xf32>
    %1 = vector.shape_cast %0 : vector<1x8x8x8x4xf32> to vector<8x8x8x4xf32>
    %cst = arith.constant 0.000000e+00 : f32
    %2 = vector.broadcast %cst : f32 to vector<10x10x10x4xf32>
    %c0_4 = arith.constant 0 : index
    %c0_5 = arith.constant 0 : index
    %c0_6 = arith.constant 0 : index
    %c0_7 = arith.constant 0 : index
    %3 = vector.load %arg10[%c0_4, %c0_5, %c0_6, %c0_7] : memref<10x10x10x4xf32, #tpu.memory_space<vmem>>, vector<10x10x10x4xf32>
    tpu.vector_store %arg10[%c0_4, %c0_5, %c0_6, %c0_7], %2 {strides = array<i32>} : memref<10x10x10x4xf32, #tpu.memory_space<vmem>>, vector<10x10x10x4xf32>,
    %c1 = arith.constant 1 : index
    %c1_8 = arith.constant 1 : index
    %c1_9 = arith.constant 1 : index
    %c0_10 = arith.constant 0 : index
    %4 = vector.load %arg10[%c1, %c1_8, %c1_9, %c0_10] : memref<10x10x10x4xf32, #tpu.memory_space<vmem>>, vector<8x8x8x4xf32>
    tpu.vector_store %arg10[%c1, %c1_8, %c1_9, %c0_10], %1 {strides = array<i32>} : memref<10x10x10x4xf32, #tpu.memory_space<vmem>>, vector<8x8x8x4xf32>,
    %cst_11 = arith.constant 0.000000e+00 : f32
    %5 = vector.broadcast %cst_11 : f32 to vector<1x8xf32>
    %c0_12 = arith.constant 0 : index
    %c0_13 = arith.constant 0 : index
    %c0_14 = arith.constant 0 : index
    %6 = vector.load %arg5[%c0_12, %c0_13, %c0_14] : memref<1x1x8xf32, #tpu.memory_space<vmem>>, vector<1x1x8xf32>
    %7 = vector.shape_cast %6 : vector<1x1x8xf32> to vector<1x8xf32>
    %8 = vector.shape_cast %5 : vector<1x8xf32> to vector<1x1x8xf32>
    tpu.vector_store %arg5[%c0_12, %c0_13, %c0_14], %8 {strides = array<i32>} : memref<1x1x8xf32, #tpu.memory_space<vmem>>, vector<1x1x8xf32>,
    %cst_15 = arith.constant 0.000000e+00 : f32
    %9 = vector.broadcast %cst_15 : f32 to vector<1x8xf32>
    %c0_16 = arith.constant 0 : index
    %c0_17 = arith.constant 0 : index
    %c0_18 = arith.constant 0 : index
    %10 = vector.load %arg6[%c0_16, %c0_17, %c0_18] : memref<1x1x8xf32, #tpu.memory_space<vmem>>, vector<1x1x8xf32>
    %11 = vector.shape_cast %10 : vector<1x1x8xf32> to vector<1x8xf32>
    %12 = vector.shape_cast %9 : vector<1x8xf32> to vector<1x1x8xf32>
    tpu.vector_store %arg6[%c0_16, %c0_17, %c0_18], %12 {strides = array<i32>} : memref<1x1x8xf32, #tpu.memory_space<vmem>>, vector<1x1x8xf32>,
    %cst_19 = arith.constant 0.000000e+00 : f32
    %13 = vector.broadcast %cst_19 : f32 to vector<1x8xf32>
    %c0_20 = arith.constant 0 : index
    %c0_21 = arith.constant 0 : index
    %c0_22 = arith.constant 0 : index
    %14 = vector.load %arg8[%c0_20, %c0_21, %c0_22] : memref<1x1x8xf32, #tpu.memory_space<vmem>>, vector<1x1x8xf32>
    %15 = vector.shape_cast %14 : vector<1x1x8xf32> to vector<1x8xf32>
    %16 = vector.shape_cast %13 : vector<1x8xf32> to vector<1x1x8xf32>
    tpu.vector_store %arg8[%c0_20, %c0_21, %c0_22], %16 {strides = array<i32>} : memref<1x1x8xf32, #tpu.memory_space<vmem>>, vector<1x1x8xf32>,
    %cst_23 = arith.constant 0.000000e+00 : f32
    %17 = vector.broadcast %cst_23 : f32 to vector<1x8xf32>
    %c0_24 = arith.constant 0 : index
    %c0_25 = arith.constant 0 : index
    %c0_26 = arith.constant 0 : index
    %18 = vector.load %arg9[%c0_24, %c0_25, %c0_26] : memref<1x1x8xf32, #tpu.memory_space<vmem>>, vector<1x1x8xf32>
    %19 = vector.shape_cast %18 : vector<1x1x8xf32> to vector<1x8xf32>
    %20 = vector.shape_cast %17 : vector<1x8xf32> to vector<1x1x8xf32>
    tpu.vector_store %arg9[%c0_24, %c0_25, %c0_26], %20 {strides = array<i32>} : memref<1x1x8xf32, #tpu.memory_space<vmem>>, vector<1x1x8xf32>,
    %c0_i32 = arith.constant 0 : i32
    %c8_i32 = arith.constant 8 : i32
    %21 = arith.addi %c0_i32, %c8_i32 : i32
    %c1_i32 = arith.constant 1 : i32
    scf.for %arg11 = %c0_i32 to %21 step %c1_i32  : i32 {
      %cst_28 = arith.constant 0.000000e+00 : f32
      %22 = vector.broadcast %cst_28 : f32 to vector<64x8xf32>
      %c0_i32_29 = arith.constant 0 : i32
      %23 = arith.addi %arg11, %c0_i32_29 : i32
      %24 = arith.index_cast %23 : i32 to index
      %c0_30 = arith.constant 0 : index
      %c0_31 = arith.constant 0 : index
      %c0_32 = arith.constant 0 : index
      %25 = vector.load %arg10[%24, %c0_30, %c0_31, %c0_32] : memref<10x10x10x4xf32, #tpu.memory_space<vmem>>, vector<1x10x10x4xf32>
      %26 = vector.shape_cast %25 : vector<1x10x10x4xf32> to vector<10x10x4xf32>
      %27 = vector.extract_strided_slice %26 {offsets = [0, 0, 0], sizes = [8, 8, 4], strides = [1, 1, 1]} : vector<10x10x4xf32> to vector<8x8x4xf32>
      %28 = vector.shape_cast %27 : vector<8x8x4xf32> to vector<64x4xf32>
      %c0_33 = arith.constant 0 : index
      %c0_34 = arith.constant 0 : index
      %c0_35 = arith.constant 0 : index
      %29 = vector.load %arg2[%c0_33, %c0_34, %c0_35] : memref<27x4x8xf32, #tpu.memory_space<vmem>>, vector<1x4x8xf32>
      %30 = vector.shape_cast %29 : vector<1x4x8xf32> to vector<4x8xf32>
      %cst_36 = arith.constant dense<0.000000e+00> : vector<64x8xf32>
      %31 = tpu.matmul %28, %30, %cst_36 {dimension_numbers = #tpu.dot_dimension_numbers<[1], [0], [0], [1], [0, 0, 1, 1], [], []>} : vector<64x4xf32>, vector<4x8xf32>, vector<64x8xf32> -> vector<64x8xf32>
      %32 = arith.addf %22, %31 : vector<64x8xf32>
      %33 = vector.extract_strided_slice %26 {offsets = [0, 1, 0], sizes = [8, 8, 4], strides = [1, 1, 1]} : vector<10x10x4xf32> to vector<8x8x4xf32>
      %34 = vector.shape_cast %33 : vector<8x8x4xf32> to vector<64x4xf32>
      %c1_37 = arith.constant 1 : index
      %c0_38 = arith.constant 0 : index
      %c0_39 = arith.constant 0 : index
      %35 = vector.load %arg2[%c1_37, %c0_38, %c0_39] : memref<27x4x8xf32, #tpu.memory_space<vmem>>, vector<1x4x8xf32>
      %36 = vector.shape_cast %35 : vector<1x4x8xf32> to vector<4x8xf32>
      %cst_40 = arith.constant dense<0.000000e+00> : vector<64x8xf32>
      %37 = tpu.matmul %34, %36, %cst_40 {dimension_numbers = #tpu.dot_dimension_numbers<[1], [0], [0], [1], [0, 0, 1, 1], [], []>} : vector<64x4xf32>, vector<4x8xf32>, vector<64x8xf32> -> vector<64x8xf32>
      %38 = arith.addf %32, %37 : vector<64x8xf32>
      %39 = vector.extract_strided_slice %26 {offsets = [0, 2, 0], sizes = [8, 8, 4], strides = [1, 1, 1]} : vector<10x10x4xf32> to vector<8x8x4xf32>
      %40 = vector.shape_cast %39 : vector<8x8x4xf32> to vector<64x4xf32>
      %c2 = arith.constant 2 : index
      %c0_41 = arith.constant 0 : index
      %c0_42 = arith.constant 0 : index
      %41 = vector.load %arg2[%c2, %c0_41, %c0_42] : memref<27x4x8xf32, #tpu.memory_space<vmem>>, vector<1x4x8xf32>
      %42 = vector.shape_cast %41 : vector<1x4x8xf32> to vector<4x8xf32>
      %cst_43 = arith.constant dense<0.000000e+00> : vector<64x8xf32>
      %43 = tpu.matmul %40, %42, %cst_43 {dimension_numbers = #tpu.dot_dimension_numbers<[1], [0], [0], [1], [0, 0, 1, 1], [], []>} : vector<64x4xf32>, vector<4x8xf32>, vector<64x8xf32> -> vector<64x8xf32>
      %44 = arith.addf %38, %43 : vector<64x8xf32>
      %45 = vector.extract_strided_slice %26 {offsets = [1, 0, 0], sizes = [8, 8, 4], strides = [1, 1, 1]} : vector<10x10x4xf32> to vector<8x8x4xf32>
      %46 = vector.shape_cast %45 : vector<8x8x4xf32> to vector<64x4xf32>
      %c3 = arith.constant 3 : index
      %c0_44 = arith.constant 0 : index
      %c0_45 = arith.constant 0 : index
      %47 = vector.load %arg2[%c3, %c0_44, %c0_45] : memref<27x4x8xf32, #tpu.memory_space<vmem>>, vector<1x4x8xf32>
      %48 = vector.shape_cast %47 : vector<1x4x8xf32> to vector<4x8xf32>
      %cst_46 = arith.constant dense<0.000000e+00> : vector<64x8xf32>
      %49 = tpu.matmul %46, %48, %cst_46 {dimension_numbers = #tpu.dot_dimension_numbers<[1], [0], [0], [1], [0, 0, 1, 1], [], []>} : vector<64x4xf32>, vector<4x8xf32>, vector<64x8xf32> -> vector<64x8xf32>
      %50 = arith.addf %44, %49 : vector<64x8xf32>
      %51 = vector.extract_strided_slice %26 {offsets = [1, 1, 0], sizes = [8, 8, 4], strides = [1, 1, 1]} : vector<10x10x4xf32> to vector<8x8x4xf32>
      %52 = vector.shape_cast %51 : vector<8x8x4xf32> to vector<64x4xf32>
      %c4 = arith.constant 4 : index
      %c0_47 = arith.constant 0 : index
      %c0_48 = arith.constant 0 : index
      %53 = vector.load %arg2[%c4, %c0_47, %c0_48] : memref<27x4x8xf32, #tpu.memory_space<vmem>>, vector<1x4x8xf32>
      %54 = vector.shape_cast %53 : vector<1x4x8xf32> to vector<4x8xf32>
      %cst_49 = arith.constant dense<0.000000e+00> : vector<64x8xf32>
      %55 = tpu.matmul %52, %54, %cst_49 {dimension_numbers = #tpu.dot_dimension_numbers<[1], [0], [0], [1], [0, 0, 1, 1], [], []>} : vector<64x4xf32>, vector<4x8xf32>, vector<64x8xf32> -> vector<64x8xf32>
      %56 = arith.addf %50, %55 : vector<64x8xf32>
      %57 = vector.extract_strided_slice %26 {offsets = [1, 2, 0], sizes = [8, 8, 4], strides = [1, 1, 1]} : vector<10x10x4xf32> to vector<8x8x4xf32>
      %58 = vector.shape_cast %57 : vector<8x8x4xf32> to vector<64x4xf32>
      %c5 = arith.constant 5 : index
      %c0_50 = arith.constant 0 : index
      %c0_51 = arith.constant 0 : index
      %59 = vector.load %arg2[%c5, %c0_50, %c0_51] : memref<27x4x8xf32, #tpu.memory_space<vmem>>, vector<1x4x8xf32>
      %60 = vector.shape_cast %59 : vector<1x4x8xf32> to vector<4x8xf32>
      %cst_52 = arith.constant dense<0.000000e+00> : vector<64x8xf32>
      %61 = tpu.matmul %58, %60, %cst_52 {dimension_numbers = #tpu.dot_dimension_numbers<[1], [0], [0], [1], [0, 0, 1, 1], [], []>} : vector<64x4xf32>, vector<4x8xf32>, vector<64x8xf32> -> vector<64x8xf32>
      %62 = arith.addf %56, %61 : vector<64x8xf32>
      %63 = vector.extract_strided_slice %26 {offsets = [2, 0, 0], sizes = [8, 8, 4], strides = [1, 1, 1]} : vector<10x10x4xf32> to vector<8x8x4xf32>
      %64 = vector.shape_cast %63 : vector<8x8x4xf32> to vector<64x4xf32>
      %c6 = arith.constant 6 : index
      %c0_53 = arith.constant 0 : index
      %c0_54 = arith.constant 0 : index
      %65 = vector.load %arg2[%c6, %c0_53, %c0_54] : memref<27x4x8xf32, #tpu.memory_space<vmem>>, vector<1x4x8xf32>
      %66 = vector.shape_cast %65 : vector<1x4x8xf32> to vector<4x8xf32>
      %cst_55 = arith.constant dense<0.000000e+00> : vector<64x8xf32>
      %67 = tpu.matmul %64, %66, %cst_55 {dimension_numbers = #tpu.dot_dimension_numbers<[1], [0], [0], [1], [0, 0, 1, 1], [], []>} : vector<64x4xf32>, vector<4x8xf32>, vector<64x8xf32> -> vector<64x8xf32>
      %68 = arith.addf %62, %67 : vector<64x8xf32>
      %69 = vector.extract_strided_slice %26 {offsets = [2, 1, 0], sizes = [8, 8, 4], strides = [1, 1, 1]} : vector<10x10x4xf32> to vector<8x8x4xf32>
      %70 = vector.shape_cast %69 : vector<8x8x4xf32> to vector<64x4xf32>
      %c7 = arith.constant 7 : index
      %c0_56 = arith.constant 0 : index
      %c0_57 = arith.constant 0 : index
      %71 = vector.load %arg2[%c7, %c0_56, %c0_57] : memref<27x4x8xf32, #tpu.memory_space<vmem>>, vector<1x4x8xf32>
      %72 = vector.shape_cast %71 : vector<1x4x8xf32> to vector<4x8xf32>
      %cst_58 = arith.constant dense<0.000000e+00> : vector<64x8xf32>
      %73 = tpu.matmul %70, %72, %cst_58 {dimension_numbers = #tpu.dot_dimension_numbers<[1], [0], [0], [1], [0, 0, 1, 1], [], []>} : vector<64x4xf32>, vector<4x8xf32>, vector<64x8xf32> -> vector<64x8xf32>
      %74 = arith.addf %68, %73 : vector<64x8xf32>
      %75 = vector.extract_strided_slice %26 {offsets = [2, 2, 0], sizes = [8, 8, 4], strides = [1, 1, 1]} : vector<10x10x4xf32> to vector<8x8x4xf32>
      %76 = vector.shape_cast %75 : vector<8x8x4xf32> to vector<64x4xf32>
      %c8 = arith.constant 8 : index
      %c0_59 = arith.constant 0 : index
      %c0_60 = arith.constant 0 : index
      %77 = vector.load %arg2[%c8, %c0_59, %c0_60] : memref<27x4x8xf32, #tpu.memory_space<vmem>>, vector<1x4x8xf32>
      %78 = vector.shape_cast %77 : vector<1x4x8xf32> to vector<4x8xf32>
      %cst_61 = arith.constant dense<0.000000e+00> : vector<64x8xf32>
      %79 = tpu.matmul %76, %78, %cst_61 {dimension_numbers = #tpu.dot_dimension_numbers<[1], [0], [0], [1], [0, 0, 1, 1], [], []>} : vector<64x4xf32>, vector<4x8xf32>, vector<64x8xf32> -> vector<64x8xf32>
      %80 = arith.addf %74, %79 : vector<64x8xf32>
      %c1_i32_62 = arith.constant 1 : i32
      %81 = arith.addi %arg11, %c1_i32_62 : i32
      %82 = arith.index_cast %81 : i32 to index
      %c0_63 = arith.constant 0 : index
      %c0_64 = arith.constant 0 : index
      %c0_65 = arith.constant 0 : index
      %83 = vector.load %arg10[%82, %c0_63, %c0_64, %c0_65] : memref<10x10x10x4xf32, #tpu.memory_space<vmem>>, vector<1x10x10x4xf32>
      %84 = vector.shape_cast %83 : vector<1x10x10x4xf32> to vector<10x10x4xf32>
      %85 = vector.extract_strided_slice %84 {offsets = [0, 0, 0], sizes = [8, 8, 4], strides = [1, 1, 1]} : vector<10x10x4xf32> to vector<8x8x4xf32>
      %86 = vector.shape_cast %85 : vector<8x8x4xf32> to vector<64x4xf32>
      %c9 = arith.constant 9 : index
      %c0_66 = arith.constant 0 : index
      %c0_67 = arith.constant 0 : index
      %87 = vector.load %arg2[%c9, %c0_66, %c0_67] : memref<27x4x8xf32, #tpu.memory_space<vmem>>, vector<1x4x8xf32>
      %88 = vector.shape_cast %87 : vector<1x4x8xf32> to vector<4x8xf32>
      %cst_68 = arith.constant dense<0.000000e+00> : vector<64x8xf32>
      %89 = tpu.matmul %86, %88, %cst_68 {dimension_numbers = #tpu.dot_dimension_numbers<[1], [0], [0], [1], [0, 0, 1, 1], [], []>} : vector<64x4xf32>, vector<4x8xf32>, vector<64x8xf32> -> vector<64x8xf32>
      %90 = arith.addf %80, %89 : vector<64x8xf32>
      %91 = vector.extract_strided_slice %84 {offsets = [0, 1, 0], sizes = [8, 8, 4], strides = [1, 1, 1]} : vector<10x10x4xf32> to vector<8x8x4xf32>
      %92 = vector.shape_cast %91 : vector<8x8x4xf32> to vector<64x4xf32>
      %c10 = arith.constant 10 : index
      %c0_69 = arith.constant 0 : index
      %c0_70 = arith.constant 0 : index
      %93 = vector.load %arg2[%c10, %c0_69, %c0_70] : memref<27x4x8xf32, #tpu.memory_space<vmem>>, vector<1x4x8xf32>
      %94 = vector.shape_cast %93 : vector<1x4x8xf32> to vector<4x8xf32>
      %cst_71 = arith.constant dense<0.000000e+00> : vector<64x8xf32>
      %95 = tpu.matmul %92, %94, %cst_71 {dimension_numbers = #tpu.dot_dimension_numbers<[1], [0], [0], [1], [0, 0, 1, 1], [], []>} : vector<64x4xf32>, vector<4x8xf32>, vector<64x8xf32> -> vector<64x8xf32>
      %96 = arith.addf %90, %95 : vector<64x8xf32>
      %97 = vector.extract_strided_slice %84 {offsets = [0, 2, 0], sizes = [8, 8, 4], strides = [1, 1, 1]} : vector<10x10x4xf32> to vector<8x8x4xf32>
      %98 = vector.shape_cast %97 : vector<8x8x4xf32> to vector<64x4xf32>
      %c11 = arith.constant 11 : index
      %c0_72 = arith.constant 0 : index
      %c0_73 = arith.constant 0 : index
      %99 = vector.load %arg2[%c11, %c0_72, %c0_73] : memref<27x4x8xf32, #tpu.memory_space<vmem>>, vector<1x4x8xf32>
      %100 = vector.shape_cast %99 : vector<1x4x8xf32> to vector<4x8xf32>
      %cst_74 = arith.constant dense<0.000000e+00> : vector<64x8xf32>
      %101 = tpu.matmul %98, %100, %cst_74 {dimension_numbers = #tpu.dot_dimension_numbers<[1], [0], [0], [1], [0, 0, 1, 1], [], []>} : vector<64x4xf32>, vector<4x8xf32>, vector<64x8xf32> -> vector<64x8xf32>
      %102 = arith.addf %96, %101 : vector<64x8xf32>
      %103 = vector.extract_strided_slice %84 {offsets = [1, 0, 0], sizes = [8, 8, 4], strides = [1, 1, 1]} : vector<10x10x4xf32> to vector<8x8x4xf32>
      %104 = vector.shape_cast %103 : vector<8x8x4xf32> to vector<64x4xf32>
      %c12 = arith.constant 12 : index
      %c0_75 = arith.constant 0 : index
      %c0_76 = arith.constant 0 : index
      %105 = vector.load %arg2[%c12, %c0_75, %c0_76] : memref<27x4x8xf32, #tpu.memory_space<vmem>>, vector<1x4x8xf32>
      %106 = vector.shape_cast %105 : vector<1x4x8xf32> to vector<4x8xf32>
      %cst_77 = arith.constant dense<0.000000e+00> : vector<64x8xf32>
      %107 = tpu.matmul %104, %106, %cst_77 {dimension_numbers = #tpu.dot_dimension_numbers<[1], [0], [0], [1], [0, 0, 1, 1], [], []>} : vector<64x4xf32>, vector<4x8xf32>, vector<64x8xf32> -> vector<64x8xf32>
      %108 = arith.addf %102, %107 : vector<64x8xf32>
      %109 = vector.extract_strided_slice %84 {offsets = [1, 1, 0], sizes = [8, 8, 4], strides = [1, 1, 1]} : vector<10x10x4xf32> to vector<8x8x4xf32>
      %110 = vector.shape_cast %109 : vector<8x8x4xf32> to vector<64x4xf32>
      %c13 = arith.constant 13 : index
      %c0_78 = arith.constant 0 : index
      %c0_79 = arith.constant 0 : index
      %111 = vector.load %arg2[%c13, %c0_78, %c0_79] : memref<27x4x8xf32, #tpu.memory_space<vmem>>, vector<1x4x8xf32>
      %112 = vector.shape_cast %111 : vector<1x4x8xf32> to vector<4x8xf32>
      %cst_80 = arith.constant dense<0.000000e+00> : vector<64x8xf32>
      %113 = tpu.matmul %110, %112, %cst_80 {dimension_numbers = #tpu.dot_dimension_numbers<[1], [0], [0], [1], [0, 0, 1, 1], [], []>} : vector<64x4xf32>, vector<4x8xf32>, vector<64x8xf32> -> vector<64x8xf32>
      %114 = arith.addf %108, %113 : vector<64x8xf32>
      %115 = vector.extract_strided_slice %84 {offsets = [1, 2, 0], sizes = [8, 8, 4], strides = [1, 1, 1]} : vector<10x10x4xf32> to vector<8x8x4xf32>
      %116 = vector.shape_cast %115 : vector<8x8x4xf32> to vector<64x4xf32>
      %c14 = arith.constant 14 : index
      %c0_81 = arith.constant 0 : index
      %c0_82 = arith.constant 0 : index
      %117 = vector.load %arg2[%c14, %c0_81, %c0_82] : memref<27x4x8xf32, #tpu.memory_space<vmem>>, vector<1x4x8xf32>
      %118 = vector.shape_cast %117 : vector<1x4x8xf32> to vector<4x8xf32>
      %cst_83 = arith.constant dense<0.000000e+00> : vector<64x8xf32>
      %119 = tpu.matmul %116, %118, %cst_83 {dimension_numbers = #tpu.dot_dimension_numbers<[1], [0], [0], [1], [0, 0, 1, 1], [], []>} : vector<64x4xf32>, vector<4x8xf32>, vector<64x8xf32> -> vector<64x8xf32>
      %120 = arith.addf %114, %119 : vector<64x8xf32>
      %121 = vector.extract_strided_slice %84 {offsets = [2, 0, 0], sizes = [8, 8, 4], strides = [1, 1, 1]} : vector<10x10x4xf32> to vector<8x8x4xf32>
      %122 = vector.shape_cast %121 : vector<8x8x4xf32> to vector<64x4xf32>
      %c15 = arith.constant 15 : index
      %c0_84 = arith.constant 0 : index
      %c0_85 = arith.constant 0 : index
      %123 = vector.load %arg2[%c15, %c0_84, %c0_85] : memref<27x4x8xf32, #tpu.memory_space<vmem>>, vector<1x4x8xf32>
      %124 = vector.shape_cast %123 : vector<1x4x8xf32> to vector<4x8xf32>
      %cst_86 = arith.constant dense<0.000000e+00> : vector<64x8xf32>
      %125 = tpu.matmul %122, %124, %cst_86 {dimension_numbers = #tpu.dot_dimension_numbers<[1], [0], [0], [1], [0, 0, 1, 1], [], []>} : vector<64x4xf32>, vector<4x8xf32>, vector<64x8xf32> -> vector<64x8xf32>
      %126 = arith.addf %120, %125 : vector<64x8xf32>
      %127 = vector.extract_strided_slice %84 {offsets = [2, 1, 0], sizes = [8, 8, 4], strides = [1, 1, 1]} : vector<10x10x4xf32> to vector<8x8x4xf32>
      %128 = vector.shape_cast %127 : vector<8x8x4xf32> to vector<64x4xf32>
      %c16 = arith.constant 16 : index
      %c0_87 = arith.constant 0 : index
      %c0_88 = arith.constant 0 : index
      %129 = vector.load %arg2[%c16, %c0_87, %c0_88] : memref<27x4x8xf32, #tpu.memory_space<vmem>>, vector<1x4x8xf32>
      %130 = vector.shape_cast %129 : vector<1x4x8xf32> to vector<4x8xf32>
      %cst_89 = arith.constant dense<0.000000e+00> : vector<64x8xf32>
      %131 = tpu.matmul %128, %130, %cst_89 {dimension_numbers = #tpu.dot_dimension_numbers<[1], [0], [0], [1], [0, 0, 1, 1], [], []>} : vector<64x4xf32>, vector<4x8xf32>, vector<64x8xf32> -> vector<64x8xf32>
      %132 = arith.addf %126, %131 : vector<64x8xf32>
      %133 = vector.extract_strided_slice %84 {offsets = [2, 2, 0], sizes = [8, 8, 4], strides = [1, 1, 1]} : vector<10x10x4xf32> to vector<8x8x4xf32>
      %134 = vector.shape_cast %133 : vector<8x8x4xf32> to vector<64x4xf32>
      %c17 = arith.constant 17 : index
      %c0_90 = arith.constant 0 : index
      %c0_91 = arith.constant 0 : index
      %135 = vector.load %arg2[%c17, %c0_90, %c0_91] : memref<27x4x8xf32, #tpu.memory_space<vmem>>, vector<1x4x8xf32>
      %136 = vector.shape_cast %135 : vector<1x4x8xf32> to vector<4x8xf32>
      %cst_92 = arith.constant dense<0.000000e+00> : vector<64x8xf32>
      %137 = tpu.matmul %134, %136, %cst_92 {dimension_numbers = #tpu.dot_dimension_numbers<[1], [0], [0], [1], [0, 0, 1, 1], [], []>} : vector<64x4xf32>, vector<4x8xf32>, vector<64x8xf32> -> vector<64x8xf32>
      %138 = arith.addf %132, %137 : vector<64x8xf32>
      %139 = vector.extract_strided_slice %84 {offsets = [1, 1, 0], sizes = [8, 8, 4], strides = [1, 1, 1]} : vector<10x10x4xf32> to vector<8x8x4xf32>
      %140 = vector.shape_cast %139 : vector<8x8x4xf32> to vector<64x4xf32>
      %c0_93 = arith.constant 0 : index
      %c0_94 = arith.constant 0 : index
      %141 = vector.load %arg3[%c0_93, %c0_94] : memref<4x8xf32, #tpu.memory_space<vmem>>, vector<4x8xf32>
      %cst_95 = arith.constant dense<0.000000e+00> : vector<64x8xf32>
      %142 = tpu.matmul %140, %141, %cst_95 {dimension_numbers = #tpu.dot_dimension_numbers<[1], [0], [0], [1], [0, 0, 1, 1], [], []>} : vector<64x4xf32>, vector<4x8xf32>, vector<64x8xf32> -> vector<64x8xf32>
      %143 = vector.shape_cast %142 : vector<64x8xf32> to vector<8x8x8xf32>
      %c0_96 = arith.constant 0 : index
      %144 = arith.index_cast %arg11 : i32 to index
      %c0_97 = arith.constant 0 : index
      %c0_98 = arith.constant 0 : index
      %c0_99 = arith.constant 0 : index
      %145 = vector.load %arg7[%c0_96, %144, %c0_97, %c0_98, %c0_99] : memref<1x8x8x8x8xf32, #tpu.memory_space<vmem>>, vector<1x1x8x8x8xf32>
      %146 = vector.shape_cast %145 : vector<1x1x8x8x8xf32> to vector<8x8x8xf32>
      %147 = vector.shape_cast %143 : vector<8x8x8xf32> to vector<1x1x8x8x8xf32>
      tpu.vector_store %arg7[%c0_96, %144, %c0_97, %c0_98, %c0_99], %147 {strides = array<i32>} : memref<1x8x8x8x8xf32, #tpu.memory_space<vmem>>, vector<1x1x8x8x8xf32>,
      %c0_100 = arith.constant 0 : index
      %c0_101 = arith.constant 0 : index
      %c0_102 = arith.constant 0 : index
      %148 = vector.load %arg8[%c0_100, %c0_101, %c0_102] : memref<1x1x8xf32, #tpu.memory_space<vmem>>, vector<1x1x8xf32>
      %149 = vector.shape_cast %148 : vector<1x1x8xf32> to vector<1x8xf32>
      %cst_103 = arith.constant dense<0.000000e+00> : vector<8xf32>
      %150 = vector.multi_reduction <add>, %142, %cst_103 [0] : vector<64x8xf32> to vector<8xf32>
      %151 = vector.shape_cast %150 : vector<8xf32> to vector<1x8xf32>
      %152 = arith.addf %149, %151 : vector<1x8xf32>
      %c0_104 = arith.constant 0 : index
      %c0_105 = arith.constant 0 : index
      %c0_106 = arith.constant 0 : index
      %153 = vector.load %arg8[%c0_104, %c0_105, %c0_106] : memref<1x1x8xf32, #tpu.memory_space<vmem>>, vector<1x1x8xf32>
      %154 = vector.shape_cast %153 : vector<1x1x8xf32> to vector<1x8xf32>
      %155 = vector.shape_cast %152 : vector<1x8xf32> to vector<1x1x8xf32>
      tpu.vector_store %arg8[%c0_104, %c0_105, %c0_106], %155 {strides = array<i32>} : memref<1x1x8xf32, #tpu.memory_space<vmem>>, vector<1x1x8xf32>,
      %c0_107 = arith.constant 0 : index
      %c0_108 = arith.constant 0 : index
      %c0_109 = arith.constant 0 : index
      %156 = vector.load %arg9[%c0_107, %c0_108, %c0_109] : memref<1x1x8xf32, #tpu.memory_space<vmem>>, vector<1x1x8xf32>
      %157 = vector.shape_cast %156 : vector<1x1x8xf32> to vector<1x8xf32>
      %158 = arith.mulf %142, %142 : vector<64x8xf32>
      %cst_110 = arith.constant dense<0.000000e+00> : vector<8xf32>
      %159 = vector.multi_reduction <add>, %158, %cst_110 [0] : vector<64x8xf32> to vector<8xf32>
      %160 = vector.shape_cast %159 : vector<8xf32> to vector<1x8xf32>
      %161 = arith.addf %157, %160 : vector<1x8xf32>
      %c0_111 = arith.constant 0 : index
      %c0_112 = arith.constant 0 : index
      %c0_113 = arith.constant 0 : index
      %162 = vector.load %arg9[%c0_111, %c0_112, %c0_113] : memref<1x1x8xf32, #tpu.memory_space<vmem>>, vector<1x1x8xf32>
      %163 = vector.shape_cast %162 : vector<1x1x8xf32> to vector<1x8xf32>
      %164 = vector.shape_cast %161 : vector<1x8xf32> to vector<1x1x8xf32>
      tpu.vector_store %arg9[%c0_111, %c0_112, %c0_113], %164 {strides = array<i32>} : memref<1x1x8xf32, #tpu.memory_space<vmem>>, vector<1x1x8xf32>,
      %c2_i32 = arith.constant 2 : i32
      %165 = arith.addi %arg11, %c2_i32 : i32
      %166 = arith.index_cast %165 : i32 to index
      %c0_114 = arith.constant 0 : index
      %c0_115 = arith.constant 0 : index
      %c0_116 = arith.constant 0 : index
      %167 = vector.load %arg10[%166, %c0_114, %c0_115, %c0_116] : memref<10x10x10x4xf32, #tpu.memory_space<vmem>>, vector<1x10x10x4xf32>
      %168 = vector.shape_cast %167 : vector<1x10x10x4xf32> to vector<10x10x4xf32>
      %169 = vector.extract_strided_slice %168 {offsets = [0, 0, 0], sizes = [8, 8, 4], strides = [1, 1, 1]} : vector<10x10x4xf32> to vector<8x8x4xf32>
      %170 = vector.shape_cast %169 : vector<8x8x4xf32> to vector<64x4xf32>
      %c18 = arith.constant 18 : index
      %c0_117 = arith.constant 0 : index
      %c0_118 = arith.constant 0 : index
      %171 = vector.load %arg2[%c18, %c0_117, %c0_118] : memref<27x4x8xf32, #tpu.memory_space<vmem>>, vector<1x4x8xf32>
      %172 = vector.shape_cast %171 : vector<1x4x8xf32> to vector<4x8xf32>
      %cst_119 = arith.constant dense<0.000000e+00> : vector<64x8xf32>
      %173 = tpu.matmul %170, %172, %cst_119 {dimension_numbers = #tpu.dot_dimension_numbers<[1], [0], [0], [1], [0, 0, 1, 1], [], []>} : vector<64x4xf32>, vector<4x8xf32>, vector<64x8xf32> -> vector<64x8xf32>
      %174 = arith.addf %138, %173 : vector<64x8xf32>
      %175 = vector.extract_strided_slice %168 {offsets = [0, 1, 0], sizes = [8, 8, 4], strides = [1, 1, 1]} : vector<10x10x4xf32> to vector<8x8x4xf32>
      %176 = vector.shape_cast %175 : vector<8x8x4xf32> to vector<64x4xf32>
      %c19 = arith.constant 19 : index
      %c0_120 = arith.constant 0 : index
      %c0_121 = arith.constant 0 : index
      %177 = vector.load %arg2[%c19, %c0_120, %c0_121] : memref<27x4x8xf32, #tpu.memory_space<vmem>>, vector<1x4x8xf32>
      %178 = vector.shape_cast %177 : vector<1x4x8xf32> to vector<4x8xf32>
      %cst_122 = arith.constant dense<0.000000e+00> : vector<64x8xf32>
      %179 = tpu.matmul %176, %178, %cst_122 {dimension_numbers = #tpu.dot_dimension_numbers<[1], [0], [0], [1], [0, 0, 1, 1], [], []>} : vector<64x4xf32>, vector<4x8xf32>, vector<64x8xf32> -> vector<64x8xf32>
      %180 = arith.addf %174, %179 : vector<64x8xf32>
      %181 = vector.extract_strided_slice %168 {offsets = [0, 2, 0], sizes = [8, 8, 4], strides = [1, 1, 1]} : vector<10x10x4xf32> to vector<8x8x4xf32>
      %182 = vector.shape_cast %181 : vector<8x8x4xf32> to vector<64x4xf32>
      %c20 = arith.constant 20 : index
      %c0_123 = arith.constant 0 : index
      %c0_124 = arith.constant 0 : index
      %183 = vector.load %arg2[%c20, %c0_123, %c0_124] : memref<27x4x8xf32, #tpu.memory_space<vmem>>, vector<1x4x8xf32>
      %184 = vector.shape_cast %183 : vector<1x4x8xf32> to vector<4x8xf32>
      %cst_125 = arith.constant dense<0.000000e+00> : vector<64x8xf32>
      %185 = tpu.matmul %182, %184, %cst_125 {dimension_numbers = #tpu.dot_dimension_numbers<[1], [0], [0], [1], [0, 0, 1, 1], [], []>} : vector<64x4xf32>, vector<4x8xf32>, vector<64x8xf32> -> vector<64x8xf32>
      %186 = arith.addf %180, %185 : vector<64x8xf32>
      %187 = vector.extract_strided_slice %168 {offsets = [1, 0, 0], sizes = [8, 8, 4], strides = [1, 1, 1]} : vector<10x10x4xf32> to vector<8x8x4xf32>
      %188 = vector.shape_cast %187 : vector<8x8x4xf32> to vector<64x4xf32>
      %c21 = arith.constant 21 : index
      %c0_126 = arith.constant 0 : index
      %c0_127 = arith.constant 0 : index
      %189 = vector.load %arg2[%c21, %c0_126, %c0_127] : memref<27x4x8xf32, #tpu.memory_space<vmem>>, vector<1x4x8xf32>
      %190 = vector.shape_cast %189 : vector<1x4x8xf32> to vector<4x8xf32>
      %cst_128 = arith.constant dense<0.000000e+00> : vector<64x8xf32>
      %191 = tpu.matmul %188, %190, %cst_128 {dimension_numbers = #tpu.dot_dimension_numbers<[1], [0], [0], [1], [0, 0, 1, 1], [], []>} : vector<64x4xf32>, vector<4x8xf32>, vector<64x8xf32> -> vector<64x8xf32>
      %192 = arith.addf %186, %191 : vector<64x8xf32>
      %193 = vector.extract_strided_slice %168 {offsets = [1, 1, 0], sizes = [8, 8, 4], strides = [1, 1, 1]} : vector<10x10x4xf32> to vector<8x8x4xf32>
      %194 = vector.shape_cast %193 : vector<8x8x4xf32> to vector<64x4xf32>
      %c22 = arith.constant 22 : index
      %c0_129 = arith.constant 0 : index
      %c0_130 = arith.constant 0 : index
      %195 = vector.load %arg2[%c22, %c0_129, %c0_130] : memref<27x4x8xf32, #tpu.memory_space<vmem>>, vector<1x4x8xf32>
      %196 = vector.shape_cast %195 : vector<1x4x8xf32> to vector<4x8xf32>
      %cst_131 = arith.constant dense<0.000000e+00> : vector<64x8xf32>
      %197 = tpu.matmul %194, %196, %cst_131 {dimension_numbers = #tpu.dot_dimension_numbers<[1], [0], [0], [1], [0, 0, 1, 1], [], []>} : vector<64x4xf32>, vector<4x8xf32>, vector<64x8xf32> -> vector<64x8xf32>
      %198 = arith.addf %192, %197 : vector<64x8xf32>
      %199 = vector.extract_strided_slice %168 {offsets = [1, 2, 0], sizes = [8, 8, 4], strides = [1, 1, 1]} : vector<10x10x4xf32> to vector<8x8x4xf32>
      %200 = vector.shape_cast %199 : vector<8x8x4xf32> to vector<64x4xf32>
      %c23 = arith.constant 23 : index
      %c0_132 = arith.constant 0 : index
      %c0_133 = arith.constant 0 : index
      %201 = vector.load %arg2[%c23, %c0_132, %c0_133] : memref<27x4x8xf32, #tpu.memory_space<vmem>>, vector<1x4x8xf32>
      %202 = vector.shape_cast %201 : vector<1x4x8xf32> to vector<4x8xf32>
      %cst_134 = arith.constant dense<0.000000e+00> : vector<64x8xf32>
      %203 = tpu.matmul %200, %202, %cst_134 {dimension_numbers = #tpu.dot_dimension_numbers<[1], [0], [0], [1], [0, 0, 1, 1], [], []>} : vector<64x4xf32>, vector<4x8xf32>, vector<64x8xf32> -> vector<64x8xf32>
      %204 = arith.addf %198, %203 : vector<64x8xf32>
      %205 = vector.extract_strided_slice %168 {offsets = [2, 0, 0], sizes = [8, 8, 4], strides = [1, 1, 1]} : vector<10x10x4xf32> to vector<8x8x4xf32>
      %206 = vector.shape_cast %205 : vector<8x8x4xf32> to vector<64x4xf32>
      %c24 = arith.constant 24 : index
      %c0_135 = arith.constant 0 : index
      %c0_136 = arith.constant 0 : index
      %207 = vector.load %arg2[%c24, %c0_135, %c0_136] : memref<27x4x8xf32, #tpu.memory_space<vmem>>, vector<1x4x8xf32>
      %208 = vector.shape_cast %207 : vector<1x4x8xf32> to vector<4x8xf32>
      %cst_137 = arith.constant dense<0.000000e+00> : vector<64x8xf32>
      %209 = tpu.matmul %206, %208, %cst_137 {dimension_numbers = #tpu.dot_dimension_numbers<[1], [0], [0], [1], [0, 0, 1, 1], [], []>} : vector<64x4xf32>, vector<4x8xf32>, vector<64x8xf32> -> vector<64x8xf32>
      %210 = arith.addf %204, %209 : vector<64x8xf32>
      %211 = vector.extract_strided_slice %168 {offsets = [2, 1, 0], sizes = [8, 8, 4], strides = [1, 1, 1]} : vector<10x10x4xf32> to vector<8x8x4xf32>
      %212 = vector.shape_cast %211 : vector<8x8x4xf32> to vector<64x4xf32>
      %c25 = arith.constant 25 : index
      %c0_138 = arith.constant 0 : index
      %c0_139 = arith.constant 0 : index
      %213 = vector.load %arg2[%c25, %c0_138, %c0_139] : memref<27x4x8xf32, #tpu.memory_space<vmem>>, vector<1x4x8xf32>
      %214 = vector.shape_cast %213 : vector<1x4x8xf32> to vector<4x8xf32>
      %cst_140 = arith.constant dense<0.000000e+00> : vector<64x8xf32>
      %215 = tpu.matmul %212, %214, %cst_140 {dimension_numbers = #tpu.dot_dimension_numbers<[1], [0], [0], [1], [0, 0, 1, 1], [], []>} : vector<64x4xf32>, vector<4x8xf32>, vector<64x8xf32> -> vector<64x8xf32>
      %216 = arith.addf %210, %215 : vector<64x8xf32>
      %217 = vector.extract_strided_slice %168 {offsets = [2, 2, 0], sizes = [8, 8, 4], strides = [1, 1, 1]} : vector<10x10x4xf32> to vector<8x8x4xf32>
      %218 = vector.shape_cast %217 : vector<8x8x4xf32> to vector<64x4xf32>
      %c26 = arith.constant 26 : index
      %c0_141 = arith.constant 0 : index
      %c0_142 = arith.constant 0 : index
      %219 = vector.load %arg2[%c26, %c0_141, %c0_142] : memref<27x4x8xf32, #tpu.memory_space<vmem>>, vector<1x4x8xf32>
      %220 = vector.shape_cast %219 : vector<1x4x8xf32> to vector<4x8xf32>
      %cst_143 = arith.constant dense<0.000000e+00> : vector<64x8xf32>
      %221 = tpu.matmul %218, %220, %cst_143 {dimension_numbers = #tpu.dot_dimension_numbers<[1], [0], [0], [1], [0, 0, 1, 1], [], []>} : vector<64x4xf32>, vector<4x8xf32>, vector<64x8xf32> -> vector<64x8xf32>
      %222 = arith.addf %216, %221 : vector<64x8xf32>
      %223 = vector.shape_cast %222 : vector<64x8xf32> to vector<8x8x8xf32>
      %c0_144 = arith.constant 0 : index
      %224 = arith.index_cast %arg11 : i32 to index
      %c0_145 = arith.constant 0 : index
      %c0_146 = arith.constant 0 : index
      %c0_147 = arith.constant 0 : index
      %225 = vector.load %arg4[%c0_144, %224, %c0_145, %c0_146, %c0_147] : memref<1x8x8x8x8xf32, #tpu.memory_space<vmem>>, vector<1x1x8x8x8xf32>
      %226 = vector.shape_cast %225 : vector<1x1x8x8x8xf32> to vector<8x8x8xf32>
      %227 = vector.shape_cast %223 : vector<8x8x8xf32> to vector<1x1x8x8x8xf32>
      tpu.vector_store %arg4[%c0_144, %224, %c0_145, %c0_146, %c0_147], %227 {strides = array<i32>} : memref<1x8x8x8x8xf32, #tpu.memory_space<vmem>>, vector<1x1x8x8x8xf32>,
      %c0_148 = arith.constant 0 : index
      %c0_149 = arith.constant 0 : index
      %c0_150 = arith.constant 0 : index
      %228 = vector.load %arg5[%c0_148, %c0_149, %c0_150] : memref<1x1x8xf32, #tpu.memory_space<vmem>>, vector<1x1x8xf32>
      %229 = vector.shape_cast %228 : vector<1x1x8xf32> to vector<1x8xf32>
      %cst_151 = arith.constant dense<0.000000e+00> : vector<8xf32>
      %230 = vector.multi_reduction <add>, %222, %cst_151 [0] : vector<64x8xf32> to vector<8xf32>
      %231 = vector.shape_cast %230 : vector<8xf32> to vector<1x8xf32>
      %232 = arith.addf %229, %231 : vector<1x8xf32>
      %c0_152 = arith.constant 0 : index
      %c0_153 = arith.constant 0 : index
      %c0_154 = arith.constant 0 : index
      %233 = vector.load %arg5[%c0_152, %c0_153, %c0_154] : memref<1x1x8xf32, #tpu.memory_space<vmem>>, vector<1x1x8xf32>
      %234 = vector.shape_cast %233 : vector<1x1x8xf32> to vector<1x8xf32>
      %235 = vector.shape_cast %232 : vector<1x8xf32> to vector<1x1x8xf32>
      tpu.vector_store %arg5[%c0_152, %c0_153, %c0_154], %235 {strides = array<i32>} : memref<1x1x8xf32, #tpu.memory_space<vmem>>, vector<1x1x8xf32>,
      %c0_155 = arith.constant 0 : index
      %c0_156 = arith.constant 0 : index
      %c0_157 = arith.constant 0 : index
      %236 = vector.load %arg6[%c0_155, %c0_156, %c0_157] : memref<1x1x8xf32, #tpu.memory_space<vmem>>, vector<1x1x8xf32>
      %237 = vector.shape_cast %236 : vector<1x1x8xf32> to vector<1x8xf32>
      %238 = arith.mulf %222, %222 : vector<64x8xf32>
      %cst_158 = arith.constant dense<0.000000e+00> : vector<8xf32>
      %239 = vector.multi_reduction <add>, %238, %cst_158 [0] : vector<64x8xf32> to vector<8xf32>
      %240 = vector.shape_cast %239 : vector<8xf32> to vector<1x8xf32>
      %241 = arith.addf %237, %240 : vector<1x8xf32>
      %c0_159 = arith.constant 0 : index
      %c0_160 = arith.constant 0 : index
      %c0_161 = arith.constant 0 : index
      %242 = vector.load %arg6[%c0_159, %c0_160, %c0_161] : memref<1x1x8xf32, #tpu.memory_space<vmem>>, vector<1x1x8xf32>
      %243 = vector.shape_cast %242 : vector<1x1x8xf32> to vector<1x8xf32>
      %244 = vector.shape_cast %241 : vector<1x8xf32> to vector<1x1x8xf32>
      tpu.vector_store %arg6[%c0_159, %c0_160, %c0_161], %244 {strides = array<i32>} : memref<1x1x8xf32, #tpu.memory_space<vmem>>, vector<1x1x8xf32>,
    }
    %c8_i32_27 = arith.constant 8 : i32
    return
  }
  func.func @transform_0(%arg0: i32) -> (i32, i32, i32, i32, i32) {
    %c0_i32 = arith.constant 0 : i32
    %c0_i32_0 = arith.constant 0 : i32
    %c0_i32_1 = arith.constant 0 : i32
    %c0_i32_2 = arith.constant 0 : i32
    %c0_i32_3 = arith.constant 0 : i32
    return %arg0, %c0_i32, %c0_i32_0, %c0_i32_1, %c0_i32_2 : i32, i32, i32, i32, i32
  }
  func.func @transform_1(%arg0: i32) -> (i32, i32, i32) {
    %c0_i32 = arith.constant 0 : i32
    %c0_i32_0 = arith.constant 0 : i32
    %c0_i32_1 = arith.constant 0 : i32
    %c0_i32_2 = arith.constant 0 : i32
    return %c0_i32, %c0_i32_0, %c0_i32_1 : i32, i32, i32
  }
  func.func @transform_2(%arg0: i32) -> (i32, i32) {
    %c0_i32 = arith.constant 0 : i32
    %c0_i32_0 = arith.constant 0 : i32
    %c0_i32_1 = arith.constant 0 : i32
    return %c0_i32, %c0_i32_0 : i32, i32
  }
  func.func @transform_3(%arg0: i32) -> (i32, i32, i32, i32, i32) {
    %c0_i32 = arith.constant 0 : i32
    %c0_i32_0 = arith.constant 0 : i32
    %c0_i32_1 = arith.constant 0 : i32
    %c0_i32_2 = arith.constant 0 : i32
    %c0_i32_3 = arith.constant 0 : i32
    return %arg0, %c0_i32, %c0_i32_0, %c0_i32_1, %c0_i32_2 : i32, i32, i32, i32, i32
  }
  func.func @transform_4(%arg0: i32) -> (i32, i32, i32) {
    %c0_i32 = arith.constant 0 : i32
    %c0_i32_0 = arith.constant 0 : i32
    %c0_i32_1 = arith.constant 0 : i32
    return %arg0, %c0_i32, %c0_i32_0 : i32, i32, i32
  }
  func.func @transform_5(%arg0: i32) -> (i32, i32, i32) {
    %c0_i32 = arith.constant 0 : i32
    %c0_i32_0 = arith.constant 0 : i32
    %c0_i32_1 = arith.constant 0 : i32
    return %arg0, %c0_i32, %c0_i32_0 : i32, i32, i32
  }
  func.func @transform_6(%arg0: i32) -> (i32, i32, i32, i32, i32) {
    %c0_i32 = arith.constant 0 : i32
    %c0_i32_0 = arith.constant 0 : i32
    %c0_i32_1 = arith.constant 0 : i32
    %c0_i32_2 = arith.constant 0 : i32
    %c0_i32_3 = arith.constant 0 : i32
    return %arg0, %c0_i32, %c0_i32_0, %c0_i32_1, %c0_i32_2 : i32, i32, i32, i32, i32
  }
  func.func @transform_7(%arg0: i32) -> (i32, i32, i32) {
    %c0_i32 = arith.constant 0 : i32
    %c0_i32_0 = arith.constant 0 : i32
    %c0_i32_1 = arith.constant 0 : i32
    return %arg0, %c0_i32, %c0_i32_0 : i32, i32, i32
  }
  func.func @transform_8(%arg0: i32) -> (i32, i32, i32) {
    %c0_i32 = arith.constant 0 : i32
    %c0_i32_0 = arith.constant 0 : i32
    %c0_i32_1 = arith.constant 0 : i32
    return %arg0, %c0_i32, %c0_i32_0 : i32, i32, i32
  }
}

module attributes {stable_mosaic.version = 11 : i64} {
  func.func @kernel(%arg0: i32, %arg1: memref<1x8x8x8x8xf32, #tpu.memory_space<vmem>>, %arg2: memref<27x8x8xf32, #tpu.memory_space<vmem>>, %arg3: memref<1x8xf32, #tpu.memory_space<vmem>>, %arg4: memref<1x8xf32, #tpu.memory_space<vmem>>, %arg5: memref<1x8x8x8x8xf32, #tpu.memory_space<vmem>>, %arg6: memref<1x1x8xf32, #tpu.memory_space<vmem>>, %arg7: memref<1x1x8xf32, #tpu.memory_space<vmem>>, %arg8: memref<10x10x10x8xf32, #tpu.memory_space<vmem>>) attributes {dimension_semantics = [#tpu.dimension_semantics<parallel>], iteration_bounds = array<i64: 2>, scalar_prefetch = 0 : i64, scratch_operands = 1 : i64, tpu.core_type = #tpu.core_type<tc>, window_params = [{transform_indices = @transform_0, window_bounds = array<i64: 1, 8, 8, 8, 8>}, {pipeline_mode = #tpu.pipeline_mode<synchronous>, transform_indices = @transform_1, window_bounds = array<i64: 27, 8, 8>}, {pipeline_mode = #tpu.pipeline_mode<synchronous>, transform_indices = @transform_2, window_bounds = array<i64: 1, 8>}, {pipeline_mode = #tpu.pipeline_mode<synchronous>, transform_indices = @transform_3, window_bounds = array<i64: 1, 8>}, {transform_indices = @transform_4, window_bounds = array<i64: 1, 8, 8, 8, 8>}, {transform_indices = @transform_5, window_bounds = array<i64: 1, 1, 8>}, {transform_indices = @transform_6, window_bounds = array<i64: 1, 1, 8>}]} {
    %c0 = arith.constant 0 : index
    %c0_0 = arith.constant 0 : index
    %c0_1 = arith.constant 0 : index
    %c0_2 = arith.constant 0 : index
    %c0_3 = arith.constant 0 : index
    %0 = vector.load %arg1[%c0, %c0_0, %c0_1, %c0_2, %c0_3] : memref<1x8x8x8x8xf32, #tpu.memory_space<vmem>>, vector<1x8x8x8x8xf32>
    %1 = vector.shape_cast %0 : vector<1x8x8x8x8xf32> to vector<8x8x8x8xf32>
    %c0_4 = arith.constant 0 : index
    %c0_5 = arith.constant 0 : index
    %2 = vector.load %arg3[%c0_4, %c0_5] : memref<1x8xf32, #tpu.memory_space<vmem>>, vector<1x8xf32>
    %3 = vector.shape_cast %2 : vector<1x8xf32> to vector<8xf32>
    %4 = vector.shape_cast %3 : vector<8xf32> to vector<1x1x1x8xf32>
    %5 = vector.broadcast %4 : vector<1x1x1x8xf32> to vector<8x8x8x8xf32>
    %6 = arith.mulf %1, %5 : vector<8x8x8x8xf32>
    %c0_6 = arith.constant 0 : index
    %c0_7 = arith.constant 0 : index
    %7 = vector.load %arg4[%c0_6, %c0_7] : memref<1x8xf32, #tpu.memory_space<vmem>>, vector<1x8xf32>
    %8 = vector.shape_cast %7 : vector<1x8xf32> to vector<8xf32>
    %9 = vector.shape_cast %8 : vector<8xf32> to vector<1x1x1x8xf32>
    %10 = vector.broadcast %9 : vector<1x1x1x8xf32> to vector<8x8x8x8xf32>
    %11 = arith.addf %6, %10 : vector<8x8x8x8xf32>
    %cst = arith.constant 0.000000e+00 : f32
    %12 = vector.broadcast %cst : f32 to vector<8x8x8x8xf32>
    %13 = arith.maximumf %11, %12 : vector<8x8x8x8xf32>
    %cst_8 = arith.constant 0.000000e+00 : f32
    %14 = vector.broadcast %cst_8 : f32 to vector<10x10x10x8xf32>
    %c0_9 = arith.constant 0 : index
    %c0_10 = arith.constant 0 : index
    %c0_11 = arith.constant 0 : index
    %c0_12 = arith.constant 0 : index
    %15 = vector.load %arg8[%c0_9, %c0_10, %c0_11, %c0_12] : memref<10x10x10x8xf32, #tpu.memory_space<vmem>>, vector<10x10x10x8xf32>
    tpu.vector_store %arg8[%c0_9, %c0_10, %c0_11, %c0_12], %14 {strides = array<i32>} : memref<10x10x10x8xf32, #tpu.memory_space<vmem>>, vector<10x10x10x8xf32>,
    %c1 = arith.constant 1 : index
    %c1_13 = arith.constant 1 : index
    %c1_14 = arith.constant 1 : index
    %c0_15 = arith.constant 0 : index
    %16 = vector.load %arg8[%c1, %c1_13, %c1_14, %c0_15] : memref<10x10x10x8xf32, #tpu.memory_space<vmem>>, vector<8x8x8x8xf32>
    tpu.vector_store %arg8[%c1, %c1_13, %c1_14, %c0_15], %13 {strides = array<i32>} : memref<10x10x10x8xf32, #tpu.memory_space<vmem>>, vector<8x8x8x8xf32>,
    %cst_16 = arith.constant 0.000000e+00 : f32
    %17 = vector.broadcast %cst_16 : f32 to vector<1x8xf32>
    %c0_17 = arith.constant 0 : index
    %c0_18 = arith.constant 0 : index
    %c0_19 = arith.constant 0 : index
    %18 = vector.load %arg6[%c0_17, %c0_18, %c0_19] : memref<1x1x8xf32, #tpu.memory_space<vmem>>, vector<1x1x8xf32>
    %19 = vector.shape_cast %18 : vector<1x1x8xf32> to vector<1x8xf32>
    %20 = vector.shape_cast %17 : vector<1x8xf32> to vector<1x1x8xf32>
    tpu.vector_store %arg6[%c0_17, %c0_18, %c0_19], %20 {strides = array<i32>} : memref<1x1x8xf32, #tpu.memory_space<vmem>>, vector<1x1x8xf32>,
    %cst_20 = arith.constant 0.000000e+00 : f32
    %21 = vector.broadcast %cst_20 : f32 to vector<1x8xf32>
    %c0_21 = arith.constant 0 : index
    %c0_22 = arith.constant 0 : index
    %c0_23 = arith.constant 0 : index
    %22 = vector.load %arg7[%c0_21, %c0_22, %c0_23] : memref<1x1x8xf32, #tpu.memory_space<vmem>>, vector<1x1x8xf32>
    %23 = vector.shape_cast %22 : vector<1x1x8xf32> to vector<1x8xf32>
    %24 = vector.shape_cast %21 : vector<1x8xf32> to vector<1x1x8xf32>
    tpu.vector_store %arg7[%c0_21, %c0_22, %c0_23], %24 {strides = array<i32>} : memref<1x1x8xf32, #tpu.memory_space<vmem>>, vector<1x1x8xf32>,
    %c0_i32 = arith.constant 0 : i32
    %c8_i32 = arith.constant 8 : i32
    %25 = arith.addi %c0_i32, %c8_i32 : i32
    %c1_i32 = arith.constant 1 : i32
    scf.for %arg9 = %c0_i32 to %25 step %c1_i32  : i32 {
      %cst_25 = arith.constant 0.000000e+00 : f32
      %26 = vector.broadcast %cst_25 : f32 to vector<64x8xf32>
      %c0_i32_26 = arith.constant 0 : i32
      %27 = arith.addi %arg9, %c0_i32_26 : i32
      %28 = arith.index_cast %27 : i32 to index
      %c0_27 = arith.constant 0 : index
      %c0_28 = arith.constant 0 : index
      %c0_29 = arith.constant 0 : index
      %29 = vector.load %arg8[%28, %c0_27, %c0_28, %c0_29] : memref<10x10x10x8xf32, #tpu.memory_space<vmem>>, vector<1x10x10x8xf32>
      %30 = vector.shape_cast %29 : vector<1x10x10x8xf32> to vector<10x10x8xf32>
      %31 = vector.extract_strided_slice %30 {offsets = [0, 0, 0], sizes = [8, 8, 8], strides = [1, 1, 1]} : vector<10x10x8xf32> to vector<8x8x8xf32>
      %32 = vector.shape_cast %31 : vector<8x8x8xf32> to vector<64x8xf32>
      %c0_30 = arith.constant 0 : index
      %c0_31 = arith.constant 0 : index
      %c0_32 = arith.constant 0 : index
      %33 = vector.load %arg2[%c0_30, %c0_31, %c0_32] : memref<27x8x8xf32, #tpu.memory_space<vmem>>, vector<1x8x8xf32>
      %34 = vector.shape_cast %33 : vector<1x8x8xf32> to vector<8x8xf32>
      %cst_33 = arith.constant dense<0.000000e+00> : vector<64x8xf32>
      %35 = tpu.matmul %32, %34, %cst_33 {dimension_numbers = #tpu.dot_dimension_numbers<[1], [0], [0], [1], [0, 0, 1, 1], [], []>} : vector<64x8xf32>, vector<8x8xf32>, vector<64x8xf32> -> vector<64x8xf32>
      %36 = arith.addf %26, %35 : vector<64x8xf32>
      %37 = vector.extract_strided_slice %30 {offsets = [0, 1, 0], sizes = [8, 8, 8], strides = [1, 1, 1]} : vector<10x10x8xf32> to vector<8x8x8xf32>
      %38 = vector.shape_cast %37 : vector<8x8x8xf32> to vector<64x8xf32>
      %c1_34 = arith.constant 1 : index
      %c0_35 = arith.constant 0 : index
      %c0_36 = arith.constant 0 : index
      %39 = vector.load %arg2[%c1_34, %c0_35, %c0_36] : memref<27x8x8xf32, #tpu.memory_space<vmem>>, vector<1x8x8xf32>
      %40 = vector.shape_cast %39 : vector<1x8x8xf32> to vector<8x8xf32>
      %cst_37 = arith.constant dense<0.000000e+00> : vector<64x8xf32>
      %41 = tpu.matmul %38, %40, %cst_37 {dimension_numbers = #tpu.dot_dimension_numbers<[1], [0], [0], [1], [0, 0, 1, 1], [], []>} : vector<64x8xf32>, vector<8x8xf32>, vector<64x8xf32> -> vector<64x8xf32>
      %42 = arith.addf %36, %41 : vector<64x8xf32>
      %43 = vector.extract_strided_slice %30 {offsets = [0, 2, 0], sizes = [8, 8, 8], strides = [1, 1, 1]} : vector<10x10x8xf32> to vector<8x8x8xf32>
      %44 = vector.shape_cast %43 : vector<8x8x8xf32> to vector<64x8xf32>
      %c2 = arith.constant 2 : index
      %c0_38 = arith.constant 0 : index
      %c0_39 = arith.constant 0 : index
      %45 = vector.load %arg2[%c2, %c0_38, %c0_39] : memref<27x8x8xf32, #tpu.memory_space<vmem>>, vector<1x8x8xf32>
      %46 = vector.shape_cast %45 : vector<1x8x8xf32> to vector<8x8xf32>
      %cst_40 = arith.constant dense<0.000000e+00> : vector<64x8xf32>
      %47 = tpu.matmul %44, %46, %cst_40 {dimension_numbers = #tpu.dot_dimension_numbers<[1], [0], [0], [1], [0, 0, 1, 1], [], []>} : vector<64x8xf32>, vector<8x8xf32>, vector<64x8xf32> -> vector<64x8xf32>
      %48 = arith.addf %42, %47 : vector<64x8xf32>
      %49 = vector.extract_strided_slice %30 {offsets = [1, 0, 0], sizes = [8, 8, 8], strides = [1, 1, 1]} : vector<10x10x8xf32> to vector<8x8x8xf32>
      %50 = vector.shape_cast %49 : vector<8x8x8xf32> to vector<64x8xf32>
      %c3 = arith.constant 3 : index
      %c0_41 = arith.constant 0 : index
      %c0_42 = arith.constant 0 : index
      %51 = vector.load %arg2[%c3, %c0_41, %c0_42] : memref<27x8x8xf32, #tpu.memory_space<vmem>>, vector<1x8x8xf32>
      %52 = vector.shape_cast %51 : vector<1x8x8xf32> to vector<8x8xf32>
      %cst_43 = arith.constant dense<0.000000e+00> : vector<64x8xf32>
      %53 = tpu.matmul %50, %52, %cst_43 {dimension_numbers = #tpu.dot_dimension_numbers<[1], [0], [0], [1], [0, 0, 1, 1], [], []>} : vector<64x8xf32>, vector<8x8xf32>, vector<64x8xf32> -> vector<64x8xf32>
      %54 = arith.addf %48, %53 : vector<64x8xf32>
      %55 = vector.extract_strided_slice %30 {offsets = [1, 1, 0], sizes = [8, 8, 8], strides = [1, 1, 1]} : vector<10x10x8xf32> to vector<8x8x8xf32>
      %56 = vector.shape_cast %55 : vector<8x8x8xf32> to vector<64x8xf32>
      %c4 = arith.constant 4 : index
      %c0_44 = arith.constant 0 : index
      %c0_45 = arith.constant 0 : index
      %57 = vector.load %arg2[%c4, %c0_44, %c0_45] : memref<27x8x8xf32, #tpu.memory_space<vmem>>, vector<1x8x8xf32>
      %58 = vector.shape_cast %57 : vector<1x8x8xf32> to vector<8x8xf32>
      %cst_46 = arith.constant dense<0.000000e+00> : vector<64x8xf32>
      %59 = tpu.matmul %56, %58, %cst_46 {dimension_numbers = #tpu.dot_dimension_numbers<[1], [0], [0], [1], [0, 0, 1, 1], [], []>} : vector<64x8xf32>, vector<8x8xf32>, vector<64x8xf32> -> vector<64x8xf32>
      %60 = arith.addf %54, %59 : vector<64x8xf32>
      %61 = vector.extract_strided_slice %30 {offsets = [1, 2, 0], sizes = [8, 8, 8], strides = [1, 1, 1]} : vector<10x10x8xf32> to vector<8x8x8xf32>
      %62 = vector.shape_cast %61 : vector<8x8x8xf32> to vector<64x8xf32>
      %c5 = arith.constant 5 : index
      %c0_47 = arith.constant 0 : index
      %c0_48 = arith.constant 0 : index
      %63 = vector.load %arg2[%c5, %c0_47, %c0_48] : memref<27x8x8xf32, #tpu.memory_space<vmem>>, vector<1x8x8xf32>
      %64 = vector.shape_cast %63 : vector<1x8x8xf32> to vector<8x8xf32>
      %cst_49 = arith.constant dense<0.000000e+00> : vector<64x8xf32>
      %65 = tpu.matmul %62, %64, %cst_49 {dimension_numbers = #tpu.dot_dimension_numbers<[1], [0], [0], [1], [0, 0, 1, 1], [], []>} : vector<64x8xf32>, vector<8x8xf32>, vector<64x8xf32> -> vector<64x8xf32>
      %66 = arith.addf %60, %65 : vector<64x8xf32>
      %67 = vector.extract_strided_slice %30 {offsets = [2, 0, 0], sizes = [8, 8, 8], strides = [1, 1, 1]} : vector<10x10x8xf32> to vector<8x8x8xf32>
      %68 = vector.shape_cast %67 : vector<8x8x8xf32> to vector<64x8xf32>
      %c6 = arith.constant 6 : index
      %c0_50 = arith.constant 0 : index
      %c0_51 = arith.constant 0 : index
      %69 = vector.load %arg2[%c6, %c0_50, %c0_51] : memref<27x8x8xf32, #tpu.memory_space<vmem>>, vector<1x8x8xf32>
      %70 = vector.shape_cast %69 : vector<1x8x8xf32> to vector<8x8xf32>
      %cst_52 = arith.constant dense<0.000000e+00> : vector<64x8xf32>
      %71 = tpu.matmul %68, %70, %cst_52 {dimension_numbers = #tpu.dot_dimension_numbers<[1], [0], [0], [1], [0, 0, 1, 1], [], []>} : vector<64x8xf32>, vector<8x8xf32>, vector<64x8xf32> -> vector<64x8xf32>
      %72 = arith.addf %66, %71 : vector<64x8xf32>
      %73 = vector.extract_strided_slice %30 {offsets = [2, 1, 0], sizes = [8, 8, 8], strides = [1, 1, 1]} : vector<10x10x8xf32> to vector<8x8x8xf32>
      %74 = vector.shape_cast %73 : vector<8x8x8xf32> to vector<64x8xf32>
      %c7 = arith.constant 7 : index
      %c0_53 = arith.constant 0 : index
      %c0_54 = arith.constant 0 : index
      %75 = vector.load %arg2[%c7, %c0_53, %c0_54] : memref<27x8x8xf32, #tpu.memory_space<vmem>>, vector<1x8x8xf32>
      %76 = vector.shape_cast %75 : vector<1x8x8xf32> to vector<8x8xf32>
      %cst_55 = arith.constant dense<0.000000e+00> : vector<64x8xf32>
      %77 = tpu.matmul %74, %76, %cst_55 {dimension_numbers = #tpu.dot_dimension_numbers<[1], [0], [0], [1], [0, 0, 1, 1], [], []>} : vector<64x8xf32>, vector<8x8xf32>, vector<64x8xf32> -> vector<64x8xf32>
      %78 = arith.addf %72, %77 : vector<64x8xf32>
      %79 = vector.extract_strided_slice %30 {offsets = [2, 2, 0], sizes = [8, 8, 8], strides = [1, 1, 1]} : vector<10x10x8xf32> to vector<8x8x8xf32>
      %80 = vector.shape_cast %79 : vector<8x8x8xf32> to vector<64x8xf32>
      %c8 = arith.constant 8 : index
      %c0_56 = arith.constant 0 : index
      %c0_57 = arith.constant 0 : index
      %81 = vector.load %arg2[%c8, %c0_56, %c0_57] : memref<27x8x8xf32, #tpu.memory_space<vmem>>, vector<1x8x8xf32>
      %82 = vector.shape_cast %81 : vector<1x8x8xf32> to vector<8x8xf32>
      %cst_58 = arith.constant dense<0.000000e+00> : vector<64x8xf32>
      %83 = tpu.matmul %80, %82, %cst_58 {dimension_numbers = #tpu.dot_dimension_numbers<[1], [0], [0], [1], [0, 0, 1, 1], [], []>} : vector<64x8xf32>, vector<8x8xf32>, vector<64x8xf32> -> vector<64x8xf32>
      %84 = arith.addf %78, %83 : vector<64x8xf32>
      %c1_i32_59 = arith.constant 1 : i32
      %85 = arith.addi %arg9, %c1_i32_59 : i32
      %86 = arith.index_cast %85 : i32 to index
      %c0_60 = arith.constant 0 : index
      %c0_61 = arith.constant 0 : index
      %c0_62 = arith.constant 0 : index
      %87 = vector.load %arg8[%86, %c0_60, %c0_61, %c0_62] : memref<10x10x10x8xf32, #tpu.memory_space<vmem>>, vector<1x10x10x8xf32>
      %88 = vector.shape_cast %87 : vector<1x10x10x8xf32> to vector<10x10x8xf32>
      %89 = vector.extract_strided_slice %88 {offsets = [0, 0, 0], sizes = [8, 8, 8], strides = [1, 1, 1]} : vector<10x10x8xf32> to vector<8x8x8xf32>
      %90 = vector.shape_cast %89 : vector<8x8x8xf32> to vector<64x8xf32>
      %c9 = arith.constant 9 : index
      %c0_63 = arith.constant 0 : index
      %c0_64 = arith.constant 0 : index
      %91 = vector.load %arg2[%c9, %c0_63, %c0_64] : memref<27x8x8xf32, #tpu.memory_space<vmem>>, vector<1x8x8xf32>
      %92 = vector.shape_cast %91 : vector<1x8x8xf32> to vector<8x8xf32>
      %cst_65 = arith.constant dense<0.000000e+00> : vector<64x8xf32>
      %93 = tpu.matmul %90, %92, %cst_65 {dimension_numbers = #tpu.dot_dimension_numbers<[1], [0], [0], [1], [0, 0, 1, 1], [], []>} : vector<64x8xf32>, vector<8x8xf32>, vector<64x8xf32> -> vector<64x8xf32>
      %94 = arith.addf %84, %93 : vector<64x8xf32>
      %95 = vector.extract_strided_slice %88 {offsets = [0, 1, 0], sizes = [8, 8, 8], strides = [1, 1, 1]} : vector<10x10x8xf32> to vector<8x8x8xf32>
      %96 = vector.shape_cast %95 : vector<8x8x8xf32> to vector<64x8xf32>
      %c10 = arith.constant 10 : index
      %c0_66 = arith.constant 0 : index
      %c0_67 = arith.constant 0 : index
      %97 = vector.load %arg2[%c10, %c0_66, %c0_67] : memref<27x8x8xf32, #tpu.memory_space<vmem>>, vector<1x8x8xf32>
      %98 = vector.shape_cast %97 : vector<1x8x8xf32> to vector<8x8xf32>
      %cst_68 = arith.constant dense<0.000000e+00> : vector<64x8xf32>
      %99 = tpu.matmul %96, %98, %cst_68 {dimension_numbers = #tpu.dot_dimension_numbers<[1], [0], [0], [1], [0, 0, 1, 1], [], []>} : vector<64x8xf32>, vector<8x8xf32>, vector<64x8xf32> -> vector<64x8xf32>
      %100 = arith.addf %94, %99 : vector<64x8xf32>
      %101 = vector.extract_strided_slice %88 {offsets = [0, 2, 0], sizes = [8, 8, 8], strides = [1, 1, 1]} : vector<10x10x8xf32> to vector<8x8x8xf32>
      %102 = vector.shape_cast %101 : vector<8x8x8xf32> to vector<64x8xf32>
      %c11 = arith.constant 11 : index
      %c0_69 = arith.constant 0 : index
      %c0_70 = arith.constant 0 : index
      %103 = vector.load %arg2[%c11, %c0_69, %c0_70] : memref<27x8x8xf32, #tpu.memory_space<vmem>>, vector<1x8x8xf32>
      %104 = vector.shape_cast %103 : vector<1x8x8xf32> to vector<8x8xf32>
      %cst_71 = arith.constant dense<0.000000e+00> : vector<64x8xf32>
      %105 = tpu.matmul %102, %104, %cst_71 {dimension_numbers = #tpu.dot_dimension_numbers<[1], [0], [0], [1], [0, 0, 1, 1], [], []>} : vector<64x8xf32>, vector<8x8xf32>, vector<64x8xf32> -> vector<64x8xf32>
      %106 = arith.addf %100, %105 : vector<64x8xf32>
      %107 = vector.extract_strided_slice %88 {offsets = [1, 0, 0], sizes = [8, 8, 8], strides = [1, 1, 1]} : vector<10x10x8xf32> to vector<8x8x8xf32>
      %108 = vector.shape_cast %107 : vector<8x8x8xf32> to vector<64x8xf32>
      %c12 = arith.constant 12 : index
      %c0_72 = arith.constant 0 : index
      %c0_73 = arith.constant 0 : index
      %109 = vector.load %arg2[%c12, %c0_72, %c0_73] : memref<27x8x8xf32, #tpu.memory_space<vmem>>, vector<1x8x8xf32>
      %110 = vector.shape_cast %109 : vector<1x8x8xf32> to vector<8x8xf32>
      %cst_74 = arith.constant dense<0.000000e+00> : vector<64x8xf32>
      %111 = tpu.matmul %108, %110, %cst_74 {dimension_numbers = #tpu.dot_dimension_numbers<[1], [0], [0], [1], [0, 0, 1, 1], [], []>} : vector<64x8xf32>, vector<8x8xf32>, vector<64x8xf32> -> vector<64x8xf32>
      %112 = arith.addf %106, %111 : vector<64x8xf32>
      %113 = vector.extract_strided_slice %88 {offsets = [1, 1, 0], sizes = [8, 8, 8], strides = [1, 1, 1]} : vector<10x10x8xf32> to vector<8x8x8xf32>
      %114 = vector.shape_cast %113 : vector<8x8x8xf32> to vector<64x8xf32>
      %c13 = arith.constant 13 : index
      %c0_75 = arith.constant 0 : index
      %c0_76 = arith.constant 0 : index
      %115 = vector.load %arg2[%c13, %c0_75, %c0_76] : memref<27x8x8xf32, #tpu.memory_space<vmem>>, vector<1x8x8xf32>
      %116 = vector.shape_cast %115 : vector<1x8x8xf32> to vector<8x8xf32>
      %cst_77 = arith.constant dense<0.000000e+00> : vector<64x8xf32>
      %117 = tpu.matmul %114, %116, %cst_77 {dimension_numbers = #tpu.dot_dimension_numbers<[1], [0], [0], [1], [0, 0, 1, 1], [], []>} : vector<64x8xf32>, vector<8x8xf32>, vector<64x8xf32> -> vector<64x8xf32>
      %118 = arith.addf %112, %117 : vector<64x8xf32>
      %119 = vector.extract_strided_slice %88 {offsets = [1, 2, 0], sizes = [8, 8, 8], strides = [1, 1, 1]} : vector<10x10x8xf32> to vector<8x8x8xf32>
      %120 = vector.shape_cast %119 : vector<8x8x8xf32> to vector<64x8xf32>
      %c14 = arith.constant 14 : index
      %c0_78 = arith.constant 0 : index
      %c0_79 = arith.constant 0 : index
      %121 = vector.load %arg2[%c14, %c0_78, %c0_79] : memref<27x8x8xf32, #tpu.memory_space<vmem>>, vector<1x8x8xf32>
      %122 = vector.shape_cast %121 : vector<1x8x8xf32> to vector<8x8xf32>
      %cst_80 = arith.constant dense<0.000000e+00> : vector<64x8xf32>
      %123 = tpu.matmul %120, %122, %cst_80 {dimension_numbers = #tpu.dot_dimension_numbers<[1], [0], [0], [1], [0, 0, 1, 1], [], []>} : vector<64x8xf32>, vector<8x8xf32>, vector<64x8xf32> -> vector<64x8xf32>
      %124 = arith.addf %118, %123 : vector<64x8xf32>
      %125 = vector.extract_strided_slice %88 {offsets = [2, 0, 0], sizes = [8, 8, 8], strides = [1, 1, 1]} : vector<10x10x8xf32> to vector<8x8x8xf32>
      %126 = vector.shape_cast %125 : vector<8x8x8xf32> to vector<64x8xf32>
      %c15 = arith.constant 15 : index
      %c0_81 = arith.constant 0 : index
      %c0_82 = arith.constant 0 : index
      %127 = vector.load %arg2[%c15, %c0_81, %c0_82] : memref<27x8x8xf32, #tpu.memory_space<vmem>>, vector<1x8x8xf32>
      %128 = vector.shape_cast %127 : vector<1x8x8xf32> to vector<8x8xf32>
      %cst_83 = arith.constant dense<0.000000e+00> : vector<64x8xf32>
      %129 = tpu.matmul %126, %128, %cst_83 {dimension_numbers = #tpu.dot_dimension_numbers<[1], [0], [0], [1], [0, 0, 1, 1], [], []>} : vector<64x8xf32>, vector<8x8xf32>, vector<64x8xf32> -> vector<64x8xf32>
      %130 = arith.addf %124, %129 : vector<64x8xf32>
      %131 = vector.extract_strided_slice %88 {offsets = [2, 1, 0], sizes = [8, 8, 8], strides = [1, 1, 1]} : vector<10x10x8xf32> to vector<8x8x8xf32>
      %132 = vector.shape_cast %131 : vector<8x8x8xf32> to vector<64x8xf32>
      %c16 = arith.constant 16 : index
      %c0_84 = arith.constant 0 : index
      %c0_85 = arith.constant 0 : index
      %133 = vector.load %arg2[%c16, %c0_84, %c0_85] : memref<27x8x8xf32, #tpu.memory_space<vmem>>, vector<1x8x8xf32>
      %134 = vector.shape_cast %133 : vector<1x8x8xf32> to vector<8x8xf32>
      %cst_86 = arith.constant dense<0.000000e+00> : vector<64x8xf32>
      %135 = tpu.matmul %132, %134, %cst_86 {dimension_numbers = #tpu.dot_dimension_numbers<[1], [0], [0], [1], [0, 0, 1, 1], [], []>} : vector<64x8xf32>, vector<8x8xf32>, vector<64x8xf32> -> vector<64x8xf32>
      %136 = arith.addf %130, %135 : vector<64x8xf32>
      %137 = vector.extract_strided_slice %88 {offsets = [2, 2, 0], sizes = [8, 8, 8], strides = [1, 1, 1]} : vector<10x10x8xf32> to vector<8x8x8xf32>
      %138 = vector.shape_cast %137 : vector<8x8x8xf32> to vector<64x8xf32>
      %c17 = arith.constant 17 : index
      %c0_87 = arith.constant 0 : index
      %c0_88 = arith.constant 0 : index
      %139 = vector.load %arg2[%c17, %c0_87, %c0_88] : memref<27x8x8xf32, #tpu.memory_space<vmem>>, vector<1x8x8xf32>
      %140 = vector.shape_cast %139 : vector<1x8x8xf32> to vector<8x8xf32>
      %cst_89 = arith.constant dense<0.000000e+00> : vector<64x8xf32>
      %141 = tpu.matmul %138, %140, %cst_89 {dimension_numbers = #tpu.dot_dimension_numbers<[1], [0], [0], [1], [0, 0, 1, 1], [], []>} : vector<64x8xf32>, vector<8x8xf32>, vector<64x8xf32> -> vector<64x8xf32>
      %142 = arith.addf %136, %141 : vector<64x8xf32>
      %c2_i32 = arith.constant 2 : i32
      %143 = arith.addi %arg9, %c2_i32 : i32
      %144 = arith.index_cast %143 : i32 to index
      %c0_90 = arith.constant 0 : index
      %c0_91 = arith.constant 0 : index
      %c0_92 = arith.constant 0 : index
      %145 = vector.load %arg8[%144, %c0_90, %c0_91, %c0_92] : memref<10x10x10x8xf32, #tpu.memory_space<vmem>>, vector<1x10x10x8xf32>
      %146 = vector.shape_cast %145 : vector<1x10x10x8xf32> to vector<10x10x8xf32>
      %147 = vector.extract_strided_slice %146 {offsets = [0, 0, 0], sizes = [8, 8, 8], strides = [1, 1, 1]} : vector<10x10x8xf32> to vector<8x8x8xf32>
      %148 = vector.shape_cast %147 : vector<8x8x8xf32> to vector<64x8xf32>
      %c18 = arith.constant 18 : index
      %c0_93 = arith.constant 0 : index
      %c0_94 = arith.constant 0 : index
      %149 = vector.load %arg2[%c18, %c0_93, %c0_94] : memref<27x8x8xf32, #tpu.memory_space<vmem>>, vector<1x8x8xf32>
      %150 = vector.shape_cast %149 : vector<1x8x8xf32> to vector<8x8xf32>
      %cst_95 = arith.constant dense<0.000000e+00> : vector<64x8xf32>
      %151 = tpu.matmul %148, %150, %cst_95 {dimension_numbers = #tpu.dot_dimension_numbers<[1], [0], [0], [1], [0, 0, 1, 1], [], []>} : vector<64x8xf32>, vector<8x8xf32>, vector<64x8xf32> -> vector<64x8xf32>
      %152 = arith.addf %142, %151 : vector<64x8xf32>
      %153 = vector.extract_strided_slice %146 {offsets = [0, 1, 0], sizes = [8, 8, 8], strides = [1, 1, 1]} : vector<10x10x8xf32> to vector<8x8x8xf32>
      %154 = vector.shape_cast %153 : vector<8x8x8xf32> to vector<64x8xf32>
      %c19 = arith.constant 19 : index
      %c0_96 = arith.constant 0 : index
      %c0_97 = arith.constant 0 : index
      %155 = vector.load %arg2[%c19, %c0_96, %c0_97] : memref<27x8x8xf32, #tpu.memory_space<vmem>>, vector<1x8x8xf32>
      %156 = vector.shape_cast %155 : vector<1x8x8xf32> to vector<8x8xf32>
      %cst_98 = arith.constant dense<0.000000e+00> : vector<64x8xf32>
      %157 = tpu.matmul %154, %156, %cst_98 {dimension_numbers = #tpu.dot_dimension_numbers<[1], [0], [0], [1], [0, 0, 1, 1], [], []>} : vector<64x8xf32>, vector<8x8xf32>, vector<64x8xf32> -> vector<64x8xf32>
      %158 = arith.addf %152, %157 : vector<64x8xf32>
      %159 = vector.extract_strided_slice %146 {offsets = [0, 2, 0], sizes = [8, 8, 8], strides = [1, 1, 1]} : vector<10x10x8xf32> to vector<8x8x8xf32>
      %160 = vector.shape_cast %159 : vector<8x8x8xf32> to vector<64x8xf32>
      %c20 = arith.constant 20 : index
      %c0_99 = arith.constant 0 : index
      %c0_100 = arith.constant 0 : index
      %161 = vector.load %arg2[%c20, %c0_99, %c0_100] : memref<27x8x8xf32, #tpu.memory_space<vmem>>, vector<1x8x8xf32>
      %162 = vector.shape_cast %161 : vector<1x8x8xf32> to vector<8x8xf32>
      %cst_101 = arith.constant dense<0.000000e+00> : vector<64x8xf32>
      %163 = tpu.matmul %160, %162, %cst_101 {dimension_numbers = #tpu.dot_dimension_numbers<[1], [0], [0], [1], [0, 0, 1, 1], [], []>} : vector<64x8xf32>, vector<8x8xf32>, vector<64x8xf32> -> vector<64x8xf32>
      %164 = arith.addf %158, %163 : vector<64x8xf32>
      %165 = vector.extract_strided_slice %146 {offsets = [1, 0, 0], sizes = [8, 8, 8], strides = [1, 1, 1]} : vector<10x10x8xf32> to vector<8x8x8xf32>
      %166 = vector.shape_cast %165 : vector<8x8x8xf32> to vector<64x8xf32>
      %c21 = arith.constant 21 : index
      %c0_102 = arith.constant 0 : index
      %c0_103 = arith.constant 0 : index
      %167 = vector.load %arg2[%c21, %c0_102, %c0_103] : memref<27x8x8xf32, #tpu.memory_space<vmem>>, vector<1x8x8xf32>
      %168 = vector.shape_cast %167 : vector<1x8x8xf32> to vector<8x8xf32>
      %cst_104 = arith.constant dense<0.000000e+00> : vector<64x8xf32>
      %169 = tpu.matmul %166, %168, %cst_104 {dimension_numbers = #tpu.dot_dimension_numbers<[1], [0], [0], [1], [0, 0, 1, 1], [], []>} : vector<64x8xf32>, vector<8x8xf32>, vector<64x8xf32> -> vector<64x8xf32>
      %170 = arith.addf %164, %169 : vector<64x8xf32>
      %171 = vector.extract_strided_slice %146 {offsets = [1, 1, 0], sizes = [8, 8, 8], strides = [1, 1, 1]} : vector<10x10x8xf32> to vector<8x8x8xf32>
      %172 = vector.shape_cast %171 : vector<8x8x8xf32> to vector<64x8xf32>
      %c22 = arith.constant 22 : index
      %c0_105 = arith.constant 0 : index
      %c0_106 = arith.constant 0 : index
      %173 = vector.load %arg2[%c22, %c0_105, %c0_106] : memref<27x8x8xf32, #tpu.memory_space<vmem>>, vector<1x8x8xf32>
      %174 = vector.shape_cast %173 : vector<1x8x8xf32> to vector<8x8xf32>
      %cst_107 = arith.constant dense<0.000000e+00> : vector<64x8xf32>
      %175 = tpu.matmul %172, %174, %cst_107 {dimension_numbers = #tpu.dot_dimension_numbers<[1], [0], [0], [1], [0, 0, 1, 1], [], []>} : vector<64x8xf32>, vector<8x8xf32>, vector<64x8xf32> -> vector<64x8xf32>
      %176 = arith.addf %170, %175 : vector<64x8xf32>
      %177 = vector.extract_strided_slice %146 {offsets = [1, 2, 0], sizes = [8, 8, 8], strides = [1, 1, 1]} : vector<10x10x8xf32> to vector<8x8x8xf32>
      %178 = vector.shape_cast %177 : vector<8x8x8xf32> to vector<64x8xf32>
      %c23 = arith.constant 23 : index
      %c0_108 = arith.constant 0 : index
      %c0_109 = arith.constant 0 : index
      %179 = vector.load %arg2[%c23, %c0_108, %c0_109] : memref<27x8x8xf32, #tpu.memory_space<vmem>>, vector<1x8x8xf32>
      %180 = vector.shape_cast %179 : vector<1x8x8xf32> to vector<8x8xf32>
      %cst_110 = arith.constant dense<0.000000e+00> : vector<64x8xf32>
      %181 = tpu.matmul %178, %180, %cst_110 {dimension_numbers = #tpu.dot_dimension_numbers<[1], [0], [0], [1], [0, 0, 1, 1], [], []>} : vector<64x8xf32>, vector<8x8xf32>, vector<64x8xf32> -> vector<64x8xf32>
      %182 = arith.addf %176, %181 : vector<64x8xf32>
      %183 = vector.extract_strided_slice %146 {offsets = [2, 0, 0], sizes = [8, 8, 8], strides = [1, 1, 1]} : vector<10x10x8xf32> to vector<8x8x8xf32>
      %184 = vector.shape_cast %183 : vector<8x8x8xf32> to vector<64x8xf32>
      %c24 = arith.constant 24 : index
      %c0_111 = arith.constant 0 : index
      %c0_112 = arith.constant 0 : index
      %185 = vector.load %arg2[%c24, %c0_111, %c0_112] : memref<27x8x8xf32, #tpu.memory_space<vmem>>, vector<1x8x8xf32>
      %186 = vector.shape_cast %185 : vector<1x8x8xf32> to vector<8x8xf32>
      %cst_113 = arith.constant dense<0.000000e+00> : vector<64x8xf32>
      %187 = tpu.matmul %184, %186, %cst_113 {dimension_numbers = #tpu.dot_dimension_numbers<[1], [0], [0], [1], [0, 0, 1, 1], [], []>} : vector<64x8xf32>, vector<8x8xf32>, vector<64x8xf32> -> vector<64x8xf32>
      %188 = arith.addf %182, %187 : vector<64x8xf32>
      %189 = vector.extract_strided_slice %146 {offsets = [2, 1, 0], sizes = [8, 8, 8], strides = [1, 1, 1]} : vector<10x10x8xf32> to vector<8x8x8xf32>
      %190 = vector.shape_cast %189 : vector<8x8x8xf32> to vector<64x8xf32>
      %c25 = arith.constant 25 : index
      %c0_114 = arith.constant 0 : index
      %c0_115 = arith.constant 0 : index
      %191 = vector.load %arg2[%c25, %c0_114, %c0_115] : memref<27x8x8xf32, #tpu.memory_space<vmem>>, vector<1x8x8xf32>
      %192 = vector.shape_cast %191 : vector<1x8x8xf32> to vector<8x8xf32>
      %cst_116 = arith.constant dense<0.000000e+00> : vector<64x8xf32>
      %193 = tpu.matmul %190, %192, %cst_116 {dimension_numbers = #tpu.dot_dimension_numbers<[1], [0], [0], [1], [0, 0, 1, 1], [], []>} : vector<64x8xf32>, vector<8x8xf32>, vector<64x8xf32> -> vector<64x8xf32>
      %194 = arith.addf %188, %193 : vector<64x8xf32>
      %195 = vector.extract_strided_slice %146 {offsets = [2, 2, 0], sizes = [8, 8, 8], strides = [1, 1, 1]} : vector<10x10x8xf32> to vector<8x8x8xf32>
      %196 = vector.shape_cast %195 : vector<8x8x8xf32> to vector<64x8xf32>
      %c26 = arith.constant 26 : index
      %c0_117 = arith.constant 0 : index
      %c0_118 = arith.constant 0 : index
      %197 = vector.load %arg2[%c26, %c0_117, %c0_118] : memref<27x8x8xf32, #tpu.memory_space<vmem>>, vector<1x8x8xf32>
      %198 = vector.shape_cast %197 : vector<1x8x8xf32> to vector<8x8xf32>
      %cst_119 = arith.constant dense<0.000000e+00> : vector<64x8xf32>
      %199 = tpu.matmul %196, %198, %cst_119 {dimension_numbers = #tpu.dot_dimension_numbers<[1], [0], [0], [1], [0, 0, 1, 1], [], []>} : vector<64x8xf32>, vector<8x8xf32>, vector<64x8xf32> -> vector<64x8xf32>
      %200 = arith.addf %194, %199 : vector<64x8xf32>
      %201 = vector.shape_cast %200 : vector<64x8xf32> to vector<8x8x8xf32>
      %c0_120 = arith.constant 0 : index
      %202 = arith.index_cast %arg9 : i32 to index
      %c0_121 = arith.constant 0 : index
      %c0_122 = arith.constant 0 : index
      %c0_123 = arith.constant 0 : index
      %203 = vector.load %arg5[%c0_120, %202, %c0_121, %c0_122, %c0_123] : memref<1x8x8x8x8xf32, #tpu.memory_space<vmem>>, vector<1x1x8x8x8xf32>
      %204 = vector.shape_cast %203 : vector<1x1x8x8x8xf32> to vector<8x8x8xf32>
      %205 = vector.shape_cast %201 : vector<8x8x8xf32> to vector<1x1x8x8x8xf32>
      tpu.vector_store %arg5[%c0_120, %202, %c0_121, %c0_122, %c0_123], %205 {strides = array<i32>} : memref<1x8x8x8x8xf32, #tpu.memory_space<vmem>>, vector<1x1x8x8x8xf32>,
      %c0_124 = arith.constant 0 : index
      %c0_125 = arith.constant 0 : index
      %c0_126 = arith.constant 0 : index
      %206 = vector.load %arg6[%c0_124, %c0_125, %c0_126] : memref<1x1x8xf32, #tpu.memory_space<vmem>>, vector<1x1x8xf32>
      %207 = vector.shape_cast %206 : vector<1x1x8xf32> to vector<1x8xf32>
      %cst_127 = arith.constant dense<0.000000e+00> : vector<8xf32>
      %208 = vector.multi_reduction <add>, %200, %cst_127 [0] : vector<64x8xf32> to vector<8xf32>
      %209 = vector.shape_cast %208 : vector<8xf32> to vector<1x8xf32>
      %210 = arith.addf %207, %209 : vector<1x8xf32>
      %c0_128 = arith.constant 0 : index
      %c0_129 = arith.constant 0 : index
      %c0_130 = arith.constant 0 : index
      %211 = vector.load %arg6[%c0_128, %c0_129, %c0_130] : memref<1x1x8xf32, #tpu.memory_space<vmem>>, vector<1x1x8xf32>
      %212 = vector.shape_cast %211 : vector<1x1x8xf32> to vector<1x8xf32>
      %213 = vector.shape_cast %210 : vector<1x8xf32> to vector<1x1x8xf32>
      tpu.vector_store %arg6[%c0_128, %c0_129, %c0_130], %213 {strides = array<i32>} : memref<1x1x8xf32, #tpu.memory_space<vmem>>, vector<1x1x8xf32>,
      %c0_131 = arith.constant 0 : index
      %c0_132 = arith.constant 0 : index
      %c0_133 = arith.constant 0 : index
      %214 = vector.load %arg7[%c0_131, %c0_132, %c0_133] : memref<1x1x8xf32, #tpu.memory_space<vmem>>, vector<1x1x8xf32>
      %215 = vector.shape_cast %214 : vector<1x1x8xf32> to vector<1x8xf32>
      %216 = arith.mulf %200, %200 : vector<64x8xf32>
      %cst_134 = arith.constant dense<0.000000e+00> : vector<8xf32>
      %217 = vector.multi_reduction <add>, %216, %cst_134 [0] : vector<64x8xf32> to vector<8xf32>
      %218 = vector.shape_cast %217 : vector<8xf32> to vector<1x8xf32>
      %219 = arith.addf %215, %218 : vector<1x8xf32>
      %c0_135 = arith.constant 0 : index
      %c0_136 = arith.constant 0 : index
      %c0_137 = arith.constant 0 : index
      %220 = vector.load %arg7[%c0_135, %c0_136, %c0_137] : memref<1x1x8xf32, #tpu.memory_space<vmem>>, vector<1x1x8xf32>
      %221 = vector.shape_cast %220 : vector<1x1x8xf32> to vector<1x8xf32>
      %222 = vector.shape_cast %219 : vector<1x8xf32> to vector<1x1x8xf32>
      tpu.vector_store %arg7[%c0_135, %c0_136, %c0_137], %222 {strides = array<i32>} : memref<1x1x8xf32, #tpu.memory_space<vmem>>, vector<1x1x8xf32>,
    }
    %c8_i32_24 = arith.constant 8 : i32
    return
  }
  func.func @transform_0(%arg0: i32) -> (i32, i32, i32, i32, i32) {
    %c0_i32 = arith.constant 0 : i32
    %c0_i32_0 = arith.constant 0 : i32
    %c0_i32_1 = arith.constant 0 : i32
    %c0_i32_2 = arith.constant 0 : i32
    %c0_i32_3 = arith.constant 0 : i32
    return %arg0, %c0_i32, %c0_i32_0, %c0_i32_1, %c0_i32_2 : i32, i32, i32, i32, i32
  }
  func.func @transform_1(%arg0: i32) -> (i32, i32, i32) {
    %c0_i32 = arith.constant 0 : i32
    %c0_i32_0 = arith.constant 0 : i32
    %c0_i32_1 = arith.constant 0 : i32
    %c0_i32_2 = arith.constant 0 : i32
    return %c0_i32, %c0_i32_0, %c0_i32_1 : i32, i32, i32
  }
  func.func @transform_2(%arg0: i32) -> (i32, i32) {
    %c0_i32 = arith.constant 0 : i32
    %c0_i32_0 = arith.constant 0 : i32
    %c0_i32_1 = arith.constant 0 : i32
    return %c0_i32, %c0_i32_0 : i32, i32
  }
  func.func @transform_3(%arg0: i32) -> (i32, i32) {
    %c0_i32 = arith.constant 0 : i32
    %c0_i32_0 = arith.constant 0 : i32
    %c0_i32_1 = arith.constant 0 : i32
    return %c0_i32, %c0_i32_0 : i32, i32
  }
  func.func @transform_4(%arg0: i32) -> (i32, i32, i32, i32, i32) {
    %c0_i32 = arith.constant 0 : i32
    %c0_i32_0 = arith.constant 0 : i32
    %c0_i32_1 = arith.constant 0 : i32
    %c0_i32_2 = arith.constant 0 : i32
    %c0_i32_3 = arith.constant 0 : i32
    return %arg0, %c0_i32, %c0_i32_0, %c0_i32_1, %c0_i32_2 : i32, i32, i32, i32, i32
  }
  func.func @transform_5(%arg0: i32) -> (i32, i32, i32) {
    %c0_i32 = arith.constant 0 : i32
    %c0_i32_0 = arith.constant 0 : i32
    %c0_i32_1 = arith.constant 0 : i32
    return %arg0, %c0_i32, %c0_i32_0 : i32, i32, i32
  }
  func.func @transform_6(%arg0: i32) -> (i32, i32, i32) {
    %c0_i32 = arith.constant 0 : i32
    %c0_i32_0 = arith.constant 0 : i32
    %c0_i32_1 = arith.constant 0 : i32
    return %arg0, %c0_i32, %c0_i32_0 : i32, i32, i32
  }
}

module attributes {stable_mosaic.version = 11 : i64} {
  func.func @_bn_add_relu_kernel(%arg0: i32, %arg1: memref<1x8x8x8x8xf32, #tpu.memory_space<vmem>>, %arg2: memref<1x8x8x8x8xf32, #tpu.memory_space<vmem>>, %arg3: memref<1x8xf32, #tpu.memory_space<vmem>>, %arg4: memref<1x8xf32, #tpu.memory_space<vmem>>, %arg5: memref<1x8xf32, #tpu.memory_space<vmem>>, %arg6: memref<1x8xf32, #tpu.memory_space<vmem>>, %arg7: memref<1x8x8x8x8xf32, #tpu.memory_space<vmem>>) attributes {dimension_semantics = [#tpu.dimension_semantics<parallel>], iteration_bounds = array<i64: 2>, scalar_prefetch = 0 : i64, scratch_operands = 0 : i64, tpu.core_type = #tpu.core_type<tc>, window_params = [{transform_indices = @transform_0, window_bounds = array<i64: 1, 8, 8, 8, 8>}, {transform_indices = @transform_1, window_bounds = array<i64: 1, 8, 8, 8, 8>}, {pipeline_mode = #tpu.pipeline_mode<synchronous>, transform_indices = @transform_2, window_bounds = array<i64: 1, 8>}, {pipeline_mode = #tpu.pipeline_mode<synchronous>, transform_indices = @transform_3, window_bounds = array<i64: 1, 8>}, {pipeline_mode = #tpu.pipeline_mode<synchronous>, transform_indices = @transform_4, window_bounds = array<i64: 1, 8>}, {pipeline_mode = #tpu.pipeline_mode<synchronous>, transform_indices = @transform_5, window_bounds = array<i64: 1, 8>}, {transform_indices = @transform_6, window_bounds = array<i64: 1, 8, 8, 8, 8>}]} {
    %c0 = arith.constant 0 : index
    %c0_0 = arith.constant 0 : index
    %c0_1 = arith.constant 0 : index
    %c0_2 = arith.constant 0 : index
    %c0_3 = arith.constant 0 : index
    %0 = vector.load %arg1[%c0, %c0_0, %c0_1, %c0_2, %c0_3] : memref<1x8x8x8x8xf32, #tpu.memory_space<vmem>>, vector<1x8x8x8x8xf32>
    %1 = vector.shape_cast %0 : vector<1x8x8x8x8xf32> to vector<8x8x8x8xf32>
    %c0_4 = arith.constant 0 : index
    %c0_5 = arith.constant 0 : index
    %2 = vector.load %arg3[%c0_4, %c0_5] : memref<1x8xf32, #tpu.memory_space<vmem>>, vector<1x8xf32>
    %3 = vector.shape_cast %2 : vector<1x8xf32> to vector<8xf32>
    %4 = vector.shape_cast %3 : vector<8xf32> to vector<1x1x1x8xf32>
    %5 = vector.broadcast %4 : vector<1x1x1x8xf32> to vector<8x8x8x8xf32>
    %6 = arith.mulf %1, %5 : vector<8x8x8x8xf32>
    %c0_6 = arith.constant 0 : index
    %c0_7 = arith.constant 0 : index
    %7 = vector.load %arg4[%c0_6, %c0_7] : memref<1x8xf32, #tpu.memory_space<vmem>>, vector<1x8xf32>
    %8 = vector.shape_cast %7 : vector<1x8xf32> to vector<8xf32>
    %9 = vector.shape_cast %8 : vector<8xf32> to vector<1x1x1x8xf32>
    %10 = vector.broadcast %9 : vector<1x1x1x8xf32> to vector<8x8x8x8xf32>
    %11 = arith.addf %6, %10 : vector<8x8x8x8xf32>
    %c0_8 = arith.constant 0 : index
    %c0_9 = arith.constant 0 : index
    %c0_10 = arith.constant 0 : index
    %c0_11 = arith.constant 0 : index
    %c0_12 = arith.constant 0 : index
    %12 = vector.load %arg2[%c0_8, %c0_9, %c0_10, %c0_11, %c0_12] : memref<1x8x8x8x8xf32, #tpu.memory_space<vmem>>, vector<1x8x8x8x8xf32>
    %13 = vector.shape_cast %12 : vector<1x8x8x8x8xf32> to vector<8x8x8x8xf32>
    %c0_13 = arith.constant 0 : index
    %c0_14 = arith.constant 0 : index
    %14 = vector.load %arg5[%c0_13, %c0_14] : memref<1x8xf32, #tpu.memory_space<vmem>>, vector<1x8xf32>
    %15 = vector.shape_cast %14 : vector<1x8xf32> to vector<8xf32>
    %16 = vector.shape_cast %15 : vector<8xf32> to vector<1x1x1x8xf32>
    %17 = vector.broadcast %16 : vector<1x1x1x8xf32> to vector<8x8x8x8xf32>
    %18 = arith.mulf %13, %17 : vector<8x8x8x8xf32>
    %c0_15 = arith.constant 0 : index
    %c0_16 = arith.constant 0 : index
    %19 = vector.load %arg6[%c0_15, %c0_16] : memref<1x8xf32, #tpu.memory_space<vmem>>, vector<1x8xf32>
    %20 = vector.shape_cast %19 : vector<1x8xf32> to vector<8xf32>
    %21 = vector.shape_cast %20 : vector<8xf32> to vector<1x1x1x8xf32>
    %22 = vector.broadcast %21 : vector<1x1x1x8xf32> to vector<8x8x8x8xf32>
    %23 = arith.addf %18, %22 : vector<8x8x8x8xf32>
    %24 = arith.addf %11, %23 : vector<8x8x8x8xf32>
    %cst = arith.constant 0.000000e+00 : f32
    %25 = vector.broadcast %cst : f32 to vector<8x8x8x8xf32>
    %26 = arith.maximumf %24, %25 : vector<8x8x8x8xf32>
    %c0_17 = arith.constant 0 : index
    %c0_18 = arith.constant 0 : index
    %c0_19 = arith.constant 0 : index
    %c0_20 = arith.constant 0 : index
    %c0_21 = arith.constant 0 : index
    %27 = vector.load %arg7[%c0_17, %c0_18, %c0_19, %c0_20, %c0_21] : memref<1x8x8x8x8xf32, #tpu.memory_space<vmem>>, vector<1x8x8x8x8xf32>
    %28 = vector.shape_cast %27 : vector<1x8x8x8x8xf32> to vector<8x8x8x8xf32>
    %29 = vector.shape_cast %26 : vector<8x8x8x8xf32> to vector<1x8x8x8x8xf32>
    tpu.vector_store %arg7[%c0_17, %c0_18, %c0_19, %c0_20, %c0_21], %29 {strides = array<i32>} : memref<1x8x8x8x8xf32, #tpu.memory_space<vmem>>, vector<1x8x8x8x8xf32>,
    return
  }
  func.func @transform_0(%arg0: i32) -> (i32, i32, i32, i32, i32) {
    %c0_i32 = arith.constant 0 : i32
    %c0_i32_0 = arith.constant 0 : i32
    %c0_i32_1 = arith.constant 0 : i32
    %c0_i32_2 = arith.constant 0 : i32
    %c0_i32_3 = arith.constant 0 : i32
    return %arg0, %c0_i32, %c0_i32_0, %c0_i32_1, %c0_i32_2 : i32, i32, i32, i32, i32
  }
  func.func @transform_1(%arg0: i32) -> (i32, i32, i32, i32, i32) {
    %c0_i32 = arith.constant 0 : i32
    %c0_i32_0 = arith.constant 0 : i32
    %c0_i32_1 = arith.constant 0 : i32
    %c0_i32_2 = arith.constant 0 : i32
    %c0_i32_3 = arith.constant 0 : i32
    return %arg0, %c0_i32, %c0_i32_0, %c0_i32_1, %c0_i32_2 : i32, i32, i32, i32, i32
  }
  func.func @transform_2(%arg0: i32) -> (i32, i32) {
    %c0_i32 = arith.constant 0 : i32
    %c0_i32_0 = arith.constant 0 : i32
    %c0_i32_1 = arith.constant 0 : i32
    return %c0_i32, %c0_i32_0 : i32, i32
  }
  func.func @transform_3(%arg0: i32) -> (i32, i32) {
    %c0_i32 = arith.constant 0 : i32
    %c0_i32_0 = arith.constant 0 : i32
    %c0_i32_1 = arith.constant 0 : i32
    return %c0_i32, %c0_i32_0 : i32, i32
  }
  func.func @transform_4(%arg0: i32) -> (i32, i32) {
    %c0_i32 = arith.constant 0 : i32
    %c0_i32_0 = arith.constant 0 : i32
    %c0_i32_1 = arith.constant 0 : i32
    return %c0_i32, %c0_i32_0 : i32, i32
  }
  func.func @transform_5(%arg0: i32) -> (i32, i32) {
    %c0_i32 = arith.constant 0 : i32
    %c0_i32_0 = arith.constant 0 : i32
    %c0_i32_1 = arith.constant 0 : i32
    return %c0_i32, %c0_i32_0 : i32, i32
  }
  func.func @transform_6(%arg0: i32) -> (i32, i32, i32, i32, i32) {
    %c0_i32 = arith.constant 0 : i32
    %c0_i32_0 = arith.constant 0 : i32
    %c0_i32_1 = arith.constant 0 : i32
    %c0_i32_2 = arith.constant 0 : i32
    %c0_i32_3 = arith.constant 0 : i32
    return %arg0, %c0_i32, %c0_i32_0, %c0_i32_1, %c0_i32_2 : i32, i32, i32, i32, i32
  }
}

</mosaic_0001>

<bundles_post_ra>
// kernel: basic_block_forward.5
= control target key start
LH: loop header
LB: loop body
LE: loop exit
PB: predicated region body
PF: predicated region fallthrough
CT: control target
= control target key end

     0   :  { %s1019_s21 = smov 0   ;;  %s1565_s0 = inlined_call_operand.vmem [shape: f32[2,8,8,8,8], index: 0, kind: input, shape index: {}]   ;;  %s1566_s1 = inlined_call_operand.vmem [shape: f32[2,8,8,8,8], index: 1, kind: input, shape index: {}]   ;;  %s1567_s2 = inlined_call_operand.vmem [shape: f32[1,8], index: 2, kind: input, shape index: {}]   ;;  %s1568_s3 = inlined_call_operand.vmem [shape: f32[1,8], index: 3, kind: input, shape index: {}]   ;;  %s1569_s4 = inlined_call_operand.vmem [shape: f32[1,8], index: 4, kind: input, shape index: {}]   ;;  %s1570_s5 = inlined_call_operand.vmem [shape: f32[1,8], index: 5, kind: input, shape index: {}]   ;;  %s1571_s6 = inlined_call_operand.vmem [shape: f32[2,8,8,8,8], index: 6, kind: output, shape index: {}]  }
   0x1 LB: > { %s944_s22 = sadd.s32 4294967295, %s982_s21   ;;  %p948_p0 = scmp.ge.s32.totalorder %s982_s21, 1  ;;  %s982_s21 = sphi %s1019_s21, %s16_s21  }
   0x2   : > { %p222_p1 = scmp.lt.s32.totalorder %s982_s21, 3 }
   0x4   : > { %p223_p2 = pnand %p948_p0, %p222_p1 }
   0x5   : > { %p257_p3 = scmp.lt.s32.totalorder (!%p223_p2), %s944_s22, 1 }
   0x6   : > { %226 = sbr.rel (%p223_p2) target bundleno = 117 (0x75), region = 44 }
   0xb   : > { %s1573_s22 = smov (!%p257_p3, %s944_s22), 1  ;;  %v1032_v0 = vld [vmem:[%s1567_s2] ss:$0 sm:$0xff]  ;;  %vm812_vm0 = vcmask 64512  }
   0xc   : > { %s1027_s23 = sshll.u32 %s1573_s22, 9  ;;  %v1037_v1 = vld [vmem:[%s1569_s4] ss:$0 sm:$0xff] }
   0xd   : > { %s1043_s30 = scalar_lea.vmem %s1565_s0, %s1027_s23  ;;  %s1049_s9 = scalar_lea.vmem %s1566_s1, %s1027_s23  ;;  %v1054_v2 = vld [vmem:[%s1568_s3] ss:$0 sm:$0xff] }
   0xe   : > { %v1059_v3 = vld [vmem:[%s1570_s5] ss:$0 sm:$0xff]  ;;  %v273_v6 = vld [vmem:[%s1043_s30 + $0x8] sm:$0xff]  ;;  %v274_v11 = vld [vmem:[%s1043_s30 + $0x10] sm:$0xff]  ;;  %s1094_s16 = scalar_lea.vmem %s1571_s6, %s1027_s23 }
   0xf   : > { %v272_v4 = vld [vmem:[%s1043_s30] sm:$0xff]  ;;  %v344_v9 = vmul.f32 %v1032_v0, %v273_v6  ;;  %v479_v10 = vld [vmem:[%s1049_s9 + $0x8] sm:$0xff]  ;;  %v480_v12 = vld [vmem:[%s1049_s9 + $0x10] sm:$0xff]  ;;  %v345_v14 = vmul.f32 %v1032_v0, %v274_v11 }
  0x10   : > { %v478_v5 = vld [vmem:[%s1049_s9] sm:$0xff]  ;;  %v343_v7 = vmul.f32 %v1032_v0, %v272_v4  ;;  %v550_v13 = vmul.f32 %v1037_v1, %v479_v10  ;;  %v551_v15 = vmul.f32 %v1037_v1, %v480_v12  ;;  %v275_v16 = vld [vmem:[%s1043_s30 + $0x18] sm:$0xff]  ;;  %v277_v24 = vld [vmem:[%s1043_s30 + $0x28] sm:$0xff] }
  0x11   : > { %v549_v8 = vmul.f32 %v1037_v1, %v478_v5  ;;  %v481_v17 = vld [vmem:[%s1049_s9 + $0x18] sm:$0xff]  ;;  %v276_v18 = vld [vmem:[%s1043_s30 + $0x20] sm:$0xff]  ;;  %v415_v21 = vadd.f32 %v1054_v2, %v344_v9  ;;  %v346_v22 = vmul.f32 %v1032_v0, %v275_v16  ;;  %v416_v26 = vadd.f32 %v1054_v2, %v345_v14  ;;  %v483_v29 = vld [vmem:[%s1049_s9 + $0x28] sm:$0xff] }
  0x12   : > { %v414_v19 = vadd.f32 %v1054_v2, %v343_v7  ;;  %v482_v23 = vld [vmem:[%s1049_s9 + $0x20] sm:$0xff]  ;;  %v621_v25 = vadd.f32 %v1059_v3, %v550_v13  ;;  %v622_v27 = vadd.f32 %v1059_v3, %v551_v15  ;;  %v552_v28 = vmul.f32 %v1037_v1, %v481_v17  ;;  %v278_v38 = vld [vmem:[%s1043_s30 + $0x30] sm:$0xff]  ;;  %v279_v44 = vld [vmem:[%s1043_s30 + $0x38] sm:$0xff] }
  0x13   : > { %v620_v20 = vadd.f32 %v1059_v3, %v549_v8  ;;  %v417_v31 = vadd.f32 %v1054_v2, %v346_v22  ;;  %v347_v32 = vmul.f32 %v1032_v0, %v276_v18  ;;  %v553_v33 = vmul.f32 %v1037_v1, %v482_v23  ;;  %v484_v39 = vld [vmem:[%s1049_s9 + $0x30] sm:$0xff]  ;;  %v485_v45 = vld [vmem:[%s1049_s9 + $0x38] sm:$0xff]  ;;  %v280_v46 = vld [vmem:[%s1043_s30 + $0x40] sm:$0xff] }
  0x14   : > { %v685_v34 = vadd.f32 %v621_v25, %v415_v21  ;;  %v686_v35 = vadd.f32 %v622_v27, %v416_v26  ;;  %v623_v36 = vadd.f32 %v1059_v3, %v552_v28  ;;  %v348_v37 = vmul.f32 %v1032_v0, %v277_v24  ;;  %v486_v55 = vld [vmem:[%s1049_s9 + $0x40] sm:$0xff]  ;;  %v281_v60 = vld [vmem:[%s1043_s30 + $0x48] sm:$0xff]  ;;  %v282_v6 = vld [vmem:[%s1043_s30 + $0x50] sm:$0xff] }
  0x15   : > { %v684_v30 = vadd.f32 %v620_v20, %v414_v19  ;;  %v418_v41 = vadd.f32 %v1054_v2, %v347_v32  ;;  %v624_v42 = vadd.f32 %v1059_v3, %v553_v33  ;;  %v554_v43 = vmul.f32 %v1037_v1, %v483_v29  ;;  %v487_v61 = vld [vmem:[%s1049_s9 + $0x48] sm:$0xff]  ;;  %v488_v7 = vld [vmem:[%s1049_s9 + $0x50] sm:$0xff]  ;;  %v283_v12 = vld [vmem:[%s1043_s30 + $0x58] sm:$0xff] }
  0x16   : > { %v749_v47 = vmax.f32 %v685_v34, 0.0  ;;  %v750_v48 = vmax.f32 %v686_v35, 0.0  ;;  %v687_v49 = vadd.f32 %v623_v36, %v417_v31  ;;  %v419_v50 = vadd.f32 %v1054_v2, %v348_v37  ;;  %v489_v21 = vld [vmem:[%s1049_s9 + $0x58] sm:$0xff]  ;;  %v284_v22 = vld [vmem:[%s1043_s30 + $0x60] sm:$0xff]  ;;  %v285_v28 = vld [vmem:[%s1043_s30 + $0x68] sm:$0xff] }
  0x17   : > { %v748_v40 = vmax.f32 %v684_v30, 0.0  ;;  %v688_v51 = vadd.f32 %v624_v42, %v418_v41  ;;  %v625_v52 = vadd.f32 %v1059_v3, %v554_v43  ;;  %v349_v53 = vmul.f32 %v1032_v0, %v278_v38  ;;  %v490_v27 = vld [vmem:[%s1049_s9 + $0x60] sm:$0xff]  ;;  %v491_v33 = vld [vmem:[%s1049_s9 + $0x68] sm:$0xff]  ;;  %v286_v38 = vld [vmem:[%s1043_s30 + $0x70] sm:$0xff] }
  0x18   : > { %v555_v54 = vmul.f32 %v1037_v1, %v484_v39  ;;  %814 = vst.msk [vmem:[%s1094_s16 + $0x8] sm:$0xff] %vm812_vm0, %v749_v47  ;;  %815 = vst.msk [vmem:[%s1094_s16 + $0x10] sm:$0xff] %vm812_vm0, %v750_v48  ;;  %v751_v56 = vmax.f32 %v687_v49, 0.0  ;;  %v350_v57 = vmul.f32 %v1032_v0, %v279_v44  ;;  %v556_v58 = vmul.f32 %v1037_v1, %v485_v45  ;;  %v492_v43 = vld [vmem:[%s1049_s9 + $0x70] sm:$0xff]  ;;  %v287_v44 = vld [vmem:[%s1043_s30 + $0x78] sm:$0xff] }
  0x19   : > { %813 = vst.msk [vmem:[%s1094_s16] sm:$0xff] %vm812_vm0, %v748_v40  ;;  %v351_v59 = vmul.f32 %v1032_v0, %v280_v46  ;;  %v752_v62 = vmax.f32 %v688_v51, 0.0  ;;  %v689_v63 = vadd.f32 %v625_v52, %v419_v50  ;;  %v420_v4 = vadd.f32 %v1054_v2, %v349_v53  ;;  %v493_v49 = vld [vmem:[%s1049_s9 + $0x78] sm:$0xff]  ;;  %v288_v50 = vld [vmem:[%s1043_s30 + $0x80] sm:$0xff] }
  0x1a   : > { %v626_v5 = vadd.f32 %v1059_v3, %v555_v54  ;;  %816 = vst.msk [vmem:[%s1094_s16 + $0x18] sm:$0xff] %vm812_vm0, %v751_v56  ;;  %v421_v8 = vadd.f32 %v1054_v2, %v350_v57  ;;  %v627_v9 = vadd.f32 %v1059_v3, %v556_v58  ;;  %v557_v11 = vmul.f32 %v1037_v1, %v486_v55 }
  0x1b   : > { %v422_v10 = vadd.f32 %v1054_v2, %v351_v59  ;;  %817 = vst.msk [vmem:[%s1094_s16 + $0x20] sm:$0xff] %vm812_vm0, %v752_v62  ;;  %v753_v13 = vmax.f32 %v689_v63, 0.0  ;;  %v352_v15 = vmul.f32 %v1032_v0, %v281_v60  ;;  %v558_v16 = vmul.f32 %v1037_v1, %v487_v61  ;;  %v494_v59 = vld [vmem:[%s1049_s9 + $0x80] sm:$0xff] }
  0x1c   : > { %v690_v14 = vadd.f32 %v626_v5, %v420_v4  ;;  %v691_v17 = vadd.f32 %v627_v9, %v421_v8  ;;  %v628_v18 = vadd.f32 %v1059_v3, %v557_v11  ;;  %v353_v19 = vmul.f32 %v1032_v0, %v282_v6  ;;  %v289_v4 = vld [vmem:[%s1043_s30 + $0x88] sm:$0xff]  ;;  %v496_v11 = vld [vmem:[%s1049_s9 + $0x90] sm:$0xff] }
  0x1d   : > { %v559_v20 = vmul.f32 %v1037_v1, %v488_v7  ;;  %818 = vst.msk [vmem:[%s1094_s16 + $0x28] sm:$0xff] %vm812_vm0, %v753_v13  ;;  %v423_v24 = vadd.f32 %v1054_v2, %v352_v15  ;;  %v629_v25 = vadd.f32 %v1059_v3, %v558_v16  ;;  %v354_v26 = vmul.f32 %v1032_v0, %v283_v12  ;;  %v495_v5 = vld [vmem:[%s1049_s9 + $0x88] sm:$0xff]  ;;  %v291_v16 = vld [vmem:[%s1043_s30 + $0x98] sm:$0xff] }
  0x1e   : > { %v754_v23 = vmax.f32 %v690_v14, 0.0  ;;  %v755_v29 = vmax.f32 %v691_v17, 0.0  ;;  %v692_v30 = vadd.f32 %v628_v18, %v422_v10  ;;  %v424_v31 = vadd.f32 %v1054_v2, %v353_v19  ;;  %v290_v10 = vld [vmem:[%s1043_s30 + $0x90] sm:$0xff] }
  0x1f   : > { %v630_v32 = vadd.f32 %v1059_v3, %v559_v20  ;;  %v693_v34 = vadd.f32 %v629_v25, %v423_v24  ;;  %v425_v35 = vadd.f32 %v1054_v2, %v354_v26  ;;  %v560_v36 = vmul.f32 %v1037_v1, %v489_v21  ;;  %v497_v25 = vld [vmem:[%s1049_s9 + $0x98] sm:$0xff]  ;;  %v292_v26 = vld [vmem:[%s1043_s30 + $0xa0] sm:$0xff] }
  0x20   : > { %819 = vst.msk [vmem:[%s1094_s16 + $0x30] sm:$0xff] %vm812_vm0, %v754_v23  ;;  %v355_v37 = vmul.f32 %v1032_v0, %v284_v22  ;;  %820 = vst.msk [vmem:[%s1094_s16 + $0x38] sm:$0xff] %vm812_vm0, %v755_v29  ;;  %v756_v39 = vmax.f32 %v692_v30, 0.0  ;;  %v561_v41 = vmul.f32 %v1037_v1, %v490_v27  ;;  %v356_v42 = vmul.f32 %v1032_v0, %v285_v28 }
  0x21   : > { %v694_v40 = vadd.f32 %v630_v32, %v424_v31  ;;  %v757_v45 = vmax.f32 %v693_v34, 0.0  ;;  %v631_v46 = vadd.f32 %v1059_v3, %v560_v36  ;;  %v562_v48 = vmul.f32 %v1037_v1, %v491_v33  ;;  %v498_v31 = vld [vmem:[%s1049_s9 + $0xa0] sm:$0xff]  ;;  %v293_v32 = vld [vmem:[%s1043_s30 + $0xa8] sm:$0xff] }
  0x22   : > { %v426_v47 = vadd.f32 %v1054_v2, %v355_v37  ;;  %821 = vst.msk [vmem:[%s1094_s16 + $0x40] sm:$0xff] %vm812_vm0, %v756_v39  ;;  %v632_v52 = vadd.f32 %v1059_v3, %v561_v41  ;;  %v427_v53 = vadd.f32 %v1054_v2, %v356_v42  ;;  %v357_v54 = vmul.f32 %v1032_v0, %v286_v38  ;;  %v499_v37 = vld [vmem:[%s1049_s9 + $0xa8] sm:$0xff]  ;;  %v294_v42 = vld [vmem:[%s1043_s30 + $0xb0] sm:$0xff] }
  0x23   : > { %v758_v51 = vmax.f32 %v694_v40, 0.0  ;;  %822 = vst.msk [vmem:[%s1094_s16 + $0x48] sm:$0xff] %vm812_vm0, %v757_v45  ;;  %v695_v55 = vadd.f32 %v631_v46, %v425_v35  ;;  %v633_v56 = vadd.f32 %v1059_v3, %v562_v48  ;;  %v563_v57 = vmul.f32 %v1037_v1, %v492_v43  ;;  %v295_v48 = vld [vmem:[%s1043_s30 + $0xb8] sm:$0xff] }
  0x24   : > { %v358_v58 = vmul.f32 %v1032_v0, %v287_v44  ;;  %v696_v60 = vadd.f32 %v632_v52, %v426_v47  ;;  %v428_v61 = vadd.f32 %v1054_v2, %v357_v54  ;;  %v564_v62 = vmul.f32 %v1037_v1, %v493_v49  ;;  %v500_v47 = vld [vmem:[%s1049_s9 + $0xb0] sm:$0xff]  ;;  %v296_v54 = vld [vmem:[%s1043_s30 + $0xc0] sm:$0xff] }
  0x25   : > { %823 = vst.msk [vmem:[%s1094_s16 + $0x50] sm:$0xff] %vm812_vm0, %v758_v51  ;;  %v359_v63 = vmul.f32 %v1032_v0, %v288_v50  ;;  %v759_v6 = vmax.f32 %v695_v55, 0.0  ;;  %v697_v7 = vadd.f32 %v633_v56, %v427_v53  ;;  %v634_v8 = vadd.f32 %v1059_v3, %v563_v57  ;;  %v501_v53 = vld [vmem:[%s1049_s9 + $0xb8] sm:$0xff] }
  0x26   : > { %v429_v9 = vadd.f32 %v1054_v2, %v358_v58  ;;  %v760_v12 = vmax.f32 %v696_v60, 0.0  ;;  %v635_v13 = vadd.f32 %v1059_v3, %v564_v62  ;;  %v565_v15 = vmul.f32 %v1037_v1, %v494_v59 }
  0x27   : > { %v430_v14 = vadd.f32 %v1054_v2, %v359_v63  ;;  %824 = vst.msk [vmem:[%s1094_s16 + $0x58] sm:$0xff] %vm812_vm0, %v759_v6  ;;  %v761_v17 = vmax.f32 %v697_v7, 0.0  ;;  %v698_v18 = vadd.f32 %v634_v8, %v428_v61  ;;  %v360_v19 = vmul.f32 %v1032_v0, %v289_v4  ;;  %v502_v63 = vld [vmem:[%s1049_s9 + $0xc0] sm:$0xff]  ;;  %v297_v8 = vld [vmem:[%s1043_s30 + $0xc8] sm:$0xff] }
  0x28   : > { %v566_v20 = vmul.f32 %v1037_v1, %v495_v5  ;;  %825 = vst.msk [vmem:[%s1094_s16 + $0x60] sm:$0xff] %vm812_vm0, %v760_v12  ;;  %v699_v21 = vadd.f32 %v635_v13, %v429_v9  ;;  %v636_v22 = vadd.f32 %v1059_v3, %v565_v15  ;;  %v361_v23 = vmul.f32 %v1032_v0, %v290_v10  ;;  %v503_v9 = vld [vmem:[%s1049_s9 + $0xc8] sm:$0xff]  ;;  %v504_v15 = vld [vmem:[%s1049_s9 + $0xd0] sm:$0xff] }
  0x29   : > { %v567_v24 = vmul.f32 %v1037_v1, %v496_v11  ;;  %826 = vst.msk [vmem:[%s1094_s16 + $0x68] sm:$0xff] %vm812_vm0, %v761_v17  ;;  %v762_v27 = vmax.f32 %v698_v18, 0.0  ;;  %v431_v28 = vadd.f32 %v1054_v2, %v360_v19  ;;  %v362_v30 = vmul.f32 %v1032_v0, %v291_v16 }
  0x2a   : > { %v637_v29 = vadd.f32 %v1059_v3, %v566_v20  ;;  %v763_v33 = vmax.f32 %v699_v21, 0.0  ;;  %v700_v34 = vadd.f32 %v636_v22, %v430_v14  ;;  %v432_v35 = vadd.f32 %v1054_v2, %v361_v23  ;;  %v298_v14 = vld [vmem:[%s1043_s30 + $0xd0] sm:$0xff]  ;;  %v299_v20 = vld [vmem:[%s1043_s30 + $0xd8] sm:$0xff] }
  0x2b   : > { %v638_v36 = vadd.f32 %v1059_v3, %v567_v24  ;;  %827 = vst.msk [vmem:[%s1094_s16 + $0x70] sm:$0xff] %vm812_vm0, %v762_v27  ;;  %v433_v39 = vadd.f32 %v1054_v2, %v362_v30  ;;  %v568_v40 = vmul.f32 %v1037_v1, %v497_v25  ;;  %v363_v41 = vmul.f32 %v1032_v0, %v292_v26  ;;  %v300_v30 = vld [vmem:[%s1043_s30 + $0xe0] sm:$0xff] }
  0x2c   : > { %v701_v38 = vadd.f32 %v637_v29, %v431_v28  ;;  %828 = vst.msk [vmem:[%s1094_s16 + $0x78] sm:$0xff] %vm812_vm0, %v763_v33  ;;  %v764_v43 = vmax.f32 %v700_v34, 0.0  ;;  %v569_v45 = vmul.f32 %v1037_v1, %v498_v31  ;;  %v364_v46 = vmul.f32 %v1032_v0, %v293_v32  ;;  %v505_v29 = vld [vmem:[%s1049_s9 + $0xd8] sm:$0xff] }
  0x2d   : > { %v702_v44 = vadd.f32 %v638_v36, %v432_v35  ;;  %v639_v50 = vadd.f32 %v1059_v3, %v568_v40  ;;  %v434_v51 = vadd.f32 %v1054_v2, %v363_v41  ;;  %v570_v52 = vmul.f32 %v1037_v1, %v499_v37  ;;  %v506_v35 = vld [vmem:[%s1049_s9 + $0xe0] sm:$0xff]  ;;  %v301_v36 = vld [vmem:[%s1043_s30 + $0xe8] sm:$0xff] }
  0x2e   : > { %v765_v49 = vmax.f32 %v701_v38, 0.0  ;;  %829 = vst.msk [vmem:[%s1094_s16 + $0x80] sm:$0xff] %vm812_vm0, %v764_v43  ;;  %v640_v56 = vadd.f32 %v1059_v3, %v569_v45  ;;  %v435_v57 = vadd.f32 %v1054_v2, %v364_v46  ;;  %v365_v58 = vmul.f32 %v1032_v0, %v294_v42  ;;  %v507_v41 = vld [vmem:[%s1049_s9 + $0xe8] sm:$0xff]  ;;  %v302_v46 = vld [vmem:[%s1043_s30 + $0xf0] sm:$0xff] }
  0x2f   : > { %v766_v55 = vmax.f32 %v702_v44, 0.0  ;;  %v703_v59 = vadd.f32 %v639_v50, %v433_v39  ;;  %v641_v60 = vadd.f32 %v1059_v3, %v570_v52  ;;  %v571_v61 = vmul.f32 %v1037_v1, %v500_v47  ;;  %v303_v52 = vld [vmem:[%s1043_s30 + $0xf8] sm:$0xff] }
  0x30   : > { %830 = vst.msk [vmem:[%s1094_s16 + $0x88] sm:$0xff] %vm812_vm0, %v765_v49  ;;  %v366_v62 = vmul.f32 %v1032_v0, %v295_v48  ;;  %v704_v4 = vadd.f32 %v640_v56, %v434_v51  ;;  %v436_v5 = vadd.f32 %v1054_v2, %v365_v58  ;;  %v572_v6 = vmul.f32 %v1037_v1, %v501_v53  ;;  %v508_v51 = vld [vmem:[%s1049_s9 + $0xf0] sm:$0xff]  ;;  %v304_v58 = vld [vmem:[%s1043_s30 + $0x100] sm:$0xff] }
  0x31   : > { %831 = vst.msk [vmem:[%s1094_s16 + $0x90] sm:$0xff] %vm812_vm0, %v766_v55  ;;  %v367_v7 = vmul.f32 %v1032_v0, %v296_v54  ;;  %v767_v10 = vmax.f32 %v703_v59, 0.0  ;;  %v705_v11 = vadd.f32 %v641_v60, %v435_v57  ;;  %v642_v12 = vadd.f32 %v1059_v3, %v571_v61  ;;  %v509_v57 = vld [vmem:[%s1049_s9 + $0xf8] sm:$0xff] }
  0x32   : > { %v437_v13 = vadd.f32 %v1054_v2, %v366_v62  ;;  %v768_v16 = vmax.f32 %v704_v4, 0.0  ;;  %v643_v17 = vadd.f32 %v1059_v3, %v572_v6  ;;  %v573_v19 = vmul.f32 %v1037_v1, %v502_v63 }
  0x33   : > { %v438_v18 = vadd.f32 %v1054_v2, %v367_v7  ;;  %832 = vst.msk [vmem:[%s1094_s16 + $0x98] sm:$0xff] %vm812_vm0, %v767_v10  ;;  %v769_v21 = vmax.f32 %v705_v11, 0.0  ;;  %v706_v22 = vadd.f32 %v642_v12, %v436_v5  ;;  %v368_v23 = vmul.f32 %v1032_v0, %v297_v8  ;;  %v510_v7 = vld [vmem:[%s1049_s9 + $0x100] sm:$0xff]  ;;  %v305_v12 = vld [vmem:[%s1043_s30 + $0x108] sm:$0xff] }
  0x34   : > { %v574_v24 = vmul.f32 %v1037_v1, %v503_v9  ;;  %833 = vst.msk [vmem:[%s1094_s16 + $0xa0] sm:$0xff] %vm812_vm0, %v768_v16  ;;  %v707_v25 = vadd.f32 %v643_v17, %v437_v13  ;;  %v644_v26 = vadd.f32 %v1059_v3, %v573_v19  ;;  %v369_v27 = vmul.f32 %v1032_v0, %v298_v14  ;;  %v511_v13 = vld [vmem:[%s1049_s9 + $0x108] sm:$0xff]  ;;  %v512_v19 = vld [vmem:[%s1049_s9 + $0x110] sm:$0xff] }
  0x35   : > { %v575_v28 = vmul.f32 %v1037_v1, %v504_v15  ;;  %834 = vst.msk [vmem:[%s1094_s16 + $0xa8] sm:$0xff] %vm812_vm0, %v769_v21  ;;  %v770_v31 = vmax.f32 %v706_v22, 0.0  ;;  %v439_v32 = vadd.f32 %v1054_v2, %v368_v23  ;;  %v370_v34 = vmul.f32 %v1032_v0, %v299_v20 }
  0x36   : > { %v645_v33 = vadd.f32 %v1059_v3, %v574_v24  ;;  %v771_v37 = vmax.f32 %v707_v25, 0.0  ;;  %v708_v38 = vadd.f32 %v644_v26, %v438_v18  ;;  %v440_v39 = vadd.f32 %v1054_v2, %v369_v27  ;;  %v306_v18 = vld [vmem:[%s1043_s30 + $0x110] sm:$0xff]  ;;  %v307_v24 = vld [vmem:[%s1043_s30 + $0x118] sm:$0xff] }
  0x37   : > { %v646_v40 = vadd.f32 %v1059_v3, %v575_v28  ;;  %835 = vst.msk [vmem:[%s1094_s16 + $0xb0] sm:$0xff] %vm812_vm0, %v770_v31  ;;  %v441_v43 = vadd.f32 %v1054_v2, %v370_v34  ;;  %v576_v44 = vmul.f32 %v1037_v1, %v505_v29  ;;  %v371_v45 = vmul.f32 %v1032_v0, %v300_v30  ;;  %v308_v34 = vld [vmem:[%s1043_s30 + $0x120] sm:$0xff] }
  0x38   : > { %v709_v42 = vadd.f32 %v645_v33, %v439_v32  ;;  %836 = vst.msk [vmem:[%s1094_s16 + $0xb8] sm:$0xff] %vm812_vm0, %v771_v37  ;;  %v772_v47 = vmax.f32 %v708_v38, 0.0  ;;  %v577_v49 = vmul.f32 %v1037_v1, %v506_v35  ;;  %v372_v50 = vmul.f32 %v1032_v0, %v301_v36  ;;  %v513_v33 = vld [vmem:[%s1049_s9 + $0x118] sm:$0xff] }
  0x39   : > { %v710_v48 = vadd.f32 %v646_v40, %v440_v39  ;;  %v647_v54 = vadd.f32 %v1059_v3, %v576_v44  ;;  %v442_v55 = vadd.f32 %v1054_v2, %v371_v45  ;;  %v578_v56 = vmul.f32 %v1037_v1, %v507_v41  ;;  %v514_v39 = vld [vmem:[%s1049_s9 + $0x120] sm:$0xff]  ;;  %v309_v40 = vld [vmem:[%s1043_s30 + $0x128] sm:$0xff] }
  0x3a   : > { %v773_v53 = vmax.f32 %v709_v42, 0.0  ;;  %837 = vst.msk [vmem:[%s1094_s16 + $0xc0] sm:$0xff] %vm812_vm0, %v772_v47  ;;  %v648_v60 = vadd.f32 %v1059_v3, %v577_v49  ;;  %v443_v61 = vadd.f32 %v1054_v2, %v372_v50  ;;  %v373_v62 = vmul.f32 %v1032_v0, %v302_v46  ;;  %v515_v45 = vld [vmem:[%s1049_s9 + $0x128] sm:$0xff]  ;;  %v310_v50 = vld [vmem:[%s1043_s30 + $0x130] sm:$0xff] }
  0x3b   : > { %v774_v59 = vmax.f32 %v710_v48, 0.0  ;;  %v711_v63 = vadd.f32 %v647_v54, %v441_v43  ;;  %v649_v4 = vadd.f32 %v1059_v3, %v578_v56  ;;  %v579_v5 = vmul.f32 %v1037_v1, %v508_v51  ;;  %v311_v56 = vld [vmem:[%s1043_s30 + $0x138] sm:$0xff] }
  0x3c   : > { %838 = vst.msk [vmem:[%s1094_s16 + $0xc8] sm:$0xff] %vm812_vm0, %v773_v53  ;;  %v374_v6 = vmul.f32 %v1032_v0, %v303_v52  ;;  %v712_v8 = vadd.f32 %v648_v60, %v442_v55  ;;  %v444_v9 = vadd.f32 %v1054_v2, %v373_v62  ;;  %v580_v10 = vmul.f32 %v1037_v1, %v509_v57  ;;  %v516_v55 = vld [vmem:[%s1049_s9 + $0x130] sm:$0xff]  ;;  %v312_v62 = vld [vmem:[%s1043_s30 + $0x140] sm:$0xff] }
  0x3d   : > { %839 = vst.msk [vmem:[%s1094_s16 + $0xd0] sm:$0xff] %vm812_vm0, %v774_v59  ;;  %v375_v11 = vmul.f32 %v1032_v0, %v304_v58  ;;  %v775_v14 = vmax.f32 %v711_v63, 0.0  ;;  %v713_v15 = vadd.f32 %v649_v4, %v443_v61  ;;  %v650_v16 = vadd.f32 %v1059_v3, %v579_v5  ;;  %v517_v61 = vld [vmem:[%s1049_s9 + $0x138] sm:$0xff] }
  0x3e   : > { %v445_v17 = vadd.f32 %v1054_v2, %v374_v6  ;;  %v776_v20 = vmax.f32 %v712_v8, 0.0  ;;  %v651_v21 = vadd.f32 %v1059_v3, %v580_v10  ;;  %v581_v23 = vmul.f32 %v1037_v1, %v510_v7 }
  0x3f   : > { %v446_v22 = vadd.f32 %v1054_v2, %v375_v11  ;;  %840 = vst.msk [vmem:[%s1094_s16 + $0xd8] sm:$0xff] %vm812_vm0, %v775_v14  ;;  %v777_v25 = vmax.f32 %v713_v15, 0.0  ;;  %v714_v26 = vadd.f32 %v650_v16, %v444_v9  ;;  %v376_v27 = vmul.f32 %v1032_v0, %v305_v12  ;;  %v518_v11 = vld [vmem:[%s1049_s9 + $0x140] sm:$0xff]  ;;  %v313_v16 = vld [vmem:[%s1043_s30 + $0x148] sm:$0xff] }
  0x40   : > { %v582_v28 = vmul.f32 %v1037_v1, %v511_v13  ;;  %841 = vst.msk [vmem:[%s1094_s16 + $0xe0] sm:$0xff] %vm812_vm0, %v776_v20  ;;  %v715_v29 = vadd.f32 %v651_v21, %v445_v17  ;;  %v652_v30 = vadd.f32 %v1059_v3, %v581_v23  ;;  %v377_v31 = vmul.f32 %v1032_v0, %v306_v18  ;;  %v519_v17 = vld [vmem:[%s1049_s9 + $0x148] sm:$0xff]  ;;  %v520_v23 = vld [vmem:[%s1049_s9 + $0x150] sm:$0xff] }
  0x41   : > { %v583_v32 = vmul.f32 %v1037_v1, %v512_v19  ;;  %842 = vst.msk [vmem:[%s1094_s16 + $0xe8] sm:$0xff] %vm812_vm0, %v777_v25  ;;  %v778_v35 = vmax.f32 %v714_v26, 0.0  ;;  %v447_v36 = vadd.f32 %v1054_v2, %v376_v27  ;;  %v378_v38 = vmul.f32 %v1032_v0, %v307_v24 }
  0x42   : > { %v653_v37 = vadd.f32 %v1059_v3, %v582_v28  ;;  %v779_v41 = vmax.f32 %v715_v29, 0.0  ;;  %v716_v42 = vadd.f32 %v652_v30, %v446_v22  ;;  %v448_v43 = vadd.f32 %v1054_v2, %v377_v31  ;;  %v314_v22 = vld [vmem:[%s1043_s30 + $0x150] sm:$0xff]  ;;  %v315_v28 = vld [vmem:[%s1043_s30 + $0x158] sm:$0xff] }
  0x43   : > { %v654_v44 = vadd.f32 %v1059_v3, %v583_v32  ;;  %843 = vst.msk [vmem:[%s1094_s16 + $0xf0] sm:$0xff] %vm812_vm0, %v778_v35  ;;  %v449_v47 = vadd.f32 %v1054_v2, %v378_v38  ;;  %v584_v48 = vmul.f32 %v1037_v1, %v513_v33  ;;  %v379_v49 = vmul.f32 %v1032_v0, %v308_v34  ;;  %v316_v38 = vld [vmem:[%s1043_s30 + $0x160] sm:$0xff] }
  0x44   : > { %v717_v46 = vadd.f32 %v653_v37, %v447_v36  ;;  %844 = vst.msk [vmem:[%s1094_s16 + $0xf8] sm:$0xff] %vm812_vm0, %v779_v41  ;;  %v780_v51 = vmax.f32 %v716_v42, 0.0  ;;  %v585_v53 = vmul.f32 %v1037_v1, %v514_v39  ;;  %v380_v54 = vmul.f32 %v1032_v0, %v309_v40  ;;  %v521_v37 = vld [vmem:[%s1049_s9 + $0x158] sm:$0xff] }
  0x45   : > { %v718_v52 = vadd.f32 %v654_v44, %v448_v43  ;;  %v655_v58 = vadd.f32 %v1059_v3, %v584_v48  ;;  %v450_v59 = vadd.f32 %v1054_v2, %v379_v49  ;;  %v586_v60 = vmul.f32 %v1037_v1, %v515_v45  ;;  %v522_v43 = vld [vmem:[%s1049_s9 + $0x160] sm:$0xff]  ;;  %v317_v44 = vld [vmem:[%s1043_s30 + $0x168] sm:$0xff] }
  0x46   : > { %v781_v57 = vmax.f32 %v717_v46, 0.0  ;;  %845 = vst.msk [vmem:[%s1094_s16 + $0x100] sm:$0xff] %vm812_vm0, %v780_v51  ;;  %v656_v4 = vadd.f32 %v1059_v3, %v585_v53  ;;  %v451_v5 = vadd.f32 %v1054_v2, %v380_v54  ;;  %v381_v6 = vmul.f32 %v1032_v0, %v310_v50  ;;  %v523_v49 = vld [vmem:[%s1049_s9 + $0x168] sm:$0xff]  ;;  %v318_v54 = vld [vmem:[%s1043_s30 + $0x170] sm:$0xff] }
  0x47   : > { %v782_v63 = vmax.f32 %v718_v52, 0.0  ;;  %v719_v7 = vadd.f32 %v655_v58, %v449_v47  ;;  %v657_v8 = vadd.f32 %v1059_v3, %v586_v60  ;;  %v587_v9 = vmul.f32 %v1037_v1, %v516_v55  ;;  %v319_v60 = vld [vmem:[%s1043_s30 + $0x178] sm:$0xff] }
  0x48   : > { %846 = vst.msk [vmem:[%s1094_s16 + $0x108] sm:$0xff] %vm812_vm0, %v781_v57  ;;  %v382_v10 = vmul.f32 %v1032_v0, %v311_v56  ;;  %v720_v12 = vadd.f32 %v656_v4, %v450_v59  ;;  %v452_v13 = vadd.f32 %v1054_v2, %v381_v6  ;;  %v588_v14 = vmul.f32 %v1037_v1, %v517_v61  ;;  %v524_v59 = vld [vmem:[%s1049_s9 + $0x170] sm:$0xff]  ;;  %v320_v6 = vld [vmem:[%s1043_s30 + $0x180] sm:$0xff] }
  0x49   : > { %847 = vst.msk [vmem:[%s1094_s16 + $0x110] sm:$0xff] %vm812_vm0, %v782_v63  ;;  %v383_v15 = vmul.f32 %v1032_v0, %v312_v62  ;;  %v783_v18 = vmax.f32 %v719_v7, 0.0  ;;  %v721_v19 = vadd.f32 %v657_v8, %v451_v5  ;;  %v658_v20 = vadd.f32 %v1059_v3, %v587_v9  ;;  %v525_v5 = vld [vmem:[%s1049_s9 + $0x178] sm:$0xff] }
  0x4a   : > { %v453_v21 = vadd.f32 %v1054_v2, %v382_v10  ;;  %v784_v24 = vmax.f32 %v720_v12, 0.0  ;;  %v659_v25 = vadd.f32 %v1059_v3, %v588_v14  ;;  %v589_v27 = vmul.f32 %v1037_v1, %v518_v11 }
  0x4b   : > { %v454_v26 = vadd.f32 %v1054_v2, %v383_v15  ;;  %848 = vst.msk [vmem:[%s1094_s16 + $0x118] sm:$0xff] %vm812_vm0, %v783_v18  ;;  %v785_v29 = vmax.f32 %v721_v19, 0.0  ;;  %v722_v30 = vadd.f32 %v658_v20, %v452_v13  ;;  %v384_v31 = vmul.f32 %v1032_v0, %v313_v16  ;;  %v526_v15 = vld [vmem:[%s1049_s9 + $0x180] sm:$0xff]  ;;  %v321_v20 = vld [vmem:[%s1043_s30 + $0x188] sm:$0xff] }
  0x4c   : > { %v590_v32 = vmul.f32 %v1037_v1, %v519_v17  ;;  %849 = vst.msk [vmem:[%s1094_s16 + $0x120] sm:$0xff] %vm812_vm0, %v784_v24  ;;  %v723_v33 = vadd.f32 %v659_v25, %v453_v21  ;;  %v660_v34 = vadd.f32 %v1059_v3, %v589_v27  ;;  %v385_v35 = vmul.f32 %v1032_v0, %v314_v22  ;;  %v527_v21 = vld [vmem:[%s1049_s9 + $0x188] sm:$0xff]  ;;  %v528_v27 = vld [vmem:[%s1049_s9 + $0x190] sm:$0xff] }
  0x4d   : > { %v591_v36 = vmul.f32 %v1037_v1, %v520_v23  ;;  %850 = vst.msk [vmem:[%s1094_s16 + $0x128] sm:$0xff] %vm812_vm0, %v785_v29  ;;  %v786_v39 = vmax.f32 %v722_v30, 0.0  ;;  %v455_v40 = vadd.f32 %v1054_v2, %v384_v31  ;;  %v386_v42 = vmul.f32 %v1032_v0, %v315_v28 }
  0x4e   : > { %v661_v41 = vadd.f32 %v1059_v3, %v590_v32  ;;  %v787_v45 = vmax.f32 %v723_v33, 0.0  ;;  %v724_v46 = vadd.f32 %v660_v34, %v454_v26  ;;  %v456_v47 = vadd.f32 %v1054_v2, %v385_v35  ;;  %v322_v26 = vld [vmem:[%s1043_s30 + $0x190] sm:$0xff]  ;;  %v323_v32 = vld [vmem:[%s1043_s30 + $0x198] sm:$0xff] }
  0x4f   : > { %v662_v48 = vadd.f32 %v1059_v3, %v591_v36  ;;  %851 = vst.msk [vmem:[%s1094_s16 + $0x130] sm:$0xff] %vm812_vm0, %v786_v39  ;;  %v457_v51 = vadd.f32 %v1054_v2, %v386_v42  ;;  %v592_v52 = vmul.f32 %v1037_v1, %v521_v37  ;;  %v387_v53 = vmul.f32 %v1032_v0, %v316_v38  ;;  %v324_v42 = vld [vmem:[%s1043_s30 + $0x1a0] sm:$0xff] }
  0x50   : > { %v725_v50 = vadd.f32 %v661_v41, %v455_v40  ;;  %852 = vst.msk [vmem:[%s1094_s16 + $0x138] sm:$0xff] %vm812_vm0, %v787_v45  ;;  %v788_v55 = vmax.f32 %v724_v46, 0.0  ;;  %v593_v57 = vmul.f32 %v1037_v1, %v522_v43  ;;  %v388_v58 = vmul.f32 %v1032_v0, %v317_v44  ;;  %v529_v41 = vld [vmem:[%s1049_s9 + $0x198] sm:$0xff] }
  0x51   : > { %v726_v56 = vadd.f32 %v662_v48, %v456_v47  ;;  %v663_v62 = vadd.f32 %v1059_v3, %v592_v52  ;;  %v458_v63 = vadd.f32 %v1054_v2, %v387_v53  ;;  %v594_v4 = vmul.f32 %v1037_v1, %v523_v49  ;;  %v530_v47 = vld [vmem:[%s1049_s9 + $0x1a0] sm:$0xff]  ;;  %v325_v48 = vld [vmem:[%s1043_s30 + $0x1a8] sm:$0xff] }
  0x52   : > { %v789_v61 = vmax.f32 %v725_v50, 0.0  ;;  %853 = vst.msk [vmem:[%s1094_s16 + $0x140] sm:$0xff] %vm812_vm0, %v788_v55  ;;  %v664_v8 = vadd.f32 %v1059_v3, %v593_v57  ;;  %v459_v9 = vadd.f32 %v1054_v2, %v388_v58  ;;  %v389_v10 = vmul.f32 %v1032_v0, %v318_v54  ;;  %v531_v53 = vld [vmem:[%s1049_s9 + $0x1a8] sm:$0xff]  ;;  %v326_v58 = vld [vmem:[%s1043_s30 + $0x1b0] sm:$0xff] }
  0x53   : > { %v790_v7 = vmax.f32 %v726_v56, 0.0  ;;  %v727_v11 = vadd.f32 %v663_v62, %v457_v51  ;;  %v665_v12 = vadd.f32 %v1059_v3, %v594_v4  ;;  %v595_v13 = vmul.f32 %v1037_v1, %v524_v59  ;;  %v327_v4 = vld [vmem:[%s1043_s30 + $0x1b8] sm:$0xff] }
  0x54   : > { %854 = vst.msk [vmem:[%s1094_s16 + $0x148] sm:$0xff] %vm812_vm0, %v789_v61  ;;  %v390_v14 = vmul.f32 %v1032_v0, %v319_v60  ;;  %v728_v16 = vadd.f32 %v664_v8, %v458_v63  ;;  %v460_v17 = vadd.f32 %v1054_v2, %v389_v10  ;;  %v596_v18 = vmul.f32 %v1037_v1, %v525_v5  ;;  %v532_v63 = vld [vmem:[%s1049_s9 + $0x1b0] sm:$0xff]  ;;  %v328_v10 = vld [vmem:[%s1043_s30 + $0x1c0] sm:$0xff] }
  0x55   : > { %855 = vst.msk [vmem:[%s1094_s16 + $0x150] sm:$0xff] %vm812_vm0, %v790_v7  ;;  %v391_v19 = vmul.f32 %v1032_v0, %v320_v6  ;;  %v791_v22 = vmax.f32 %v727_v11, 0.0  ;;  %v729_v23 = vadd.f32 %v665_v12, %v459_v9  ;;  %v666_v24 = vadd.f32 %v1059_v3, %v595_v13  ;;  %v533_v9 = vld [vmem:[%s1049_s9 + $0x1b8] sm:$0xff] }
  0x56   : > { %v461_v25 = vadd.f32 %v1054_v2, %v390_v14  ;;  %v792_v28 = vmax.f32 %v728_v16, 0.0  ;;  %v667_v29 = vadd.f32 %v1059_v3, %v596_v18  ;;  %v597_v31 = vmul.f32 %v1037_v1, %v526_v15 }
  0x57   : > { %v462_v30 = vadd.f32 %v1054_v2, %v391_v19  ;;  %856 = vst.msk [vmem:[%s1094_s16 + $0x158] sm:$0xff] %vm812_vm0, %v791_v22  ;;  %v793_v33 = vmax.f32 %v729_v23, 0.0  ;;  %v730_v34 = vadd.f32 %v666_v24, %v460_v17  ;;  %v392_v35 = vmul.f32 %v1032_v0, %v321_v20  ;;  %v534_v19 = vld [vmem:[%s1049_s9 + $0x1c0] sm:$0xff]  ;;  %v329_v24 = vld [vmem:[%s1043_s30 + $0x1c8] sm:$0xff] }
  0x58   : > { %v598_v36 = vmul.f32 %v1037_v1, %v527_v21  ;;  %857 = vst.msk [vmem:[%s1094_s16 + $0x160] sm:$0xff] %vm812_vm0, %v792_v28  ;;  %v731_v37 = vadd.f32 %v667_v29, %v461_v25  ;;  %v668_v38 = vadd.f32 %v1059_v3, %v597_v31  ;;  %v393_v39 = vmul.f32 %v1032_v0, %v322_v26  ;;  %v535_v25 = vld [vmem:[%s1049_s9 + $0x1c8] sm:$0xff]  ;;  %v536_v31 = vld [vmem:[%s1049_s9 + $0x1d0] sm:$0xff] }
  0x59   : > { %v599_v40 = vmul.f32 %v1037_v1, %v528_v27  ;;  %858 = vst.msk [vmem:[%s1094_s16 + $0x168] sm:$0xff] %vm812_vm0, %v793_v33  ;;  %v794_v43 = vmax.f32 %v730_v34, 0.0  ;;  %v463_v44 = vadd.f32 %v1054_v2, %v392_v35  ;;  %v394_v46 = vmul.f32 %v1032_v0, %v323_v32 }
  0x5a   : > { %v669_v45 = vadd.f32 %v1059_v3, %v598_v36  ;;  %v795_v49 = vmax.f32 %v731_v37, 0.0  ;;  %v732_v50 = vadd.f32 %v668_v38, %v462_v30  ;;  %v464_v51 = vadd.f32 %v1054_v2, %v393_v39  ;;  %v330_v30 = vld [vmem:[%s1043_s30 + $0x1d0] sm:$0xff]  ;;  %v972_v38 = vld [vmem:[%s1567_s2] ss:$0 sm:$0xff] }
  0x5b   : > { %v670_v52 = vadd.f32 %v1059_v3, %v599_v40  ;;  %859 = vst.msk [vmem:[%s1094_s16 + $0x170] sm:$0xff] %vm812_vm0, %v794_v43  ;;  %v465_v55 = vadd.f32 %v1054_v2, %v394_v46  ;;  %v600_v56 = vmul.f32 %v1037_v1, %v529_v41  ;;  %v395_v57 = vmul.f32 %v1032_v0, %v324_v42  ;;  %v974_v40 = vld [vmem:[%s1570_s5] ss:$0 sm:$0xff] }
  0x5c   : > { %v733_v54 = vadd.f32 %v669_v45, %v463_v44  ;;  %860 = vst.msk [vmem:[%s1094_s16 + $0x178] sm:$0xff] %vm812_vm0, %v795_v49  ;;  %v796_v59 = vmax.f32 %v732_v50, 0.0  ;;  %v601_v61 = vmul.f32 %v1037_v1, %v530_v47  ;;  %v396_v62 = vmul.f32 %v1032_v0, %v325_v48  ;;  %v537_v44 = vld [vmem:[%s1049_s9 + $0x1d8] sm:$0xff]  ;;  %v332_v45 = vld [vmem:[%s1043_s30 + $0x1e0] sm:$0xff] }
  0x5d   : > { %v734_v60 = vadd.f32 %v670_v52, %v464_v51  ;;  %v671_v6 = vadd.f32 %v1059_v3, %v600_v56  ;;  %v466_v7 = vadd.f32 %v1054_v2, %v395_v57  ;;  %v602_v8 = vmul.f32 %v1037_v1, %v531_v53  ;;  %v975_v47 = vld [vmem:[%s1568_s3] ss:$0 sm:$0xff]  ;;  %v333_v52 = vld [vmem:[%s1043_s30 + $0x1e8] sm:$0xff] }
  0x5e   : > { %v797_v5 = vmax.f32 %v733_v54, 0.0  ;;  %861 = vst.msk [vmem:[%s1094_s16 + $0x180] sm:$0xff] %vm812_vm0, %v796_v59  ;;  %v672_v12 = vadd.f32 %v1059_v3, %v601_v61  ;;  %v467_v13 = vadd.f32 %v1054_v2, %v396_v62  ;;  %v397_v14 = vmul.f32 %v1032_v0, %v326_v58  ;;  %v538_v51 = vld [vmem:[%s1049_s9 + $0x1e0] sm:$0xff]  ;;  %v539_v57 = vld [vmem:[%s1049_s9 + $0x1e8] sm:$0xff]  ;;  %v334_v62 = vld [vmem:[%s1043_s30 + $0x1f0] sm:$0xff] }
  0x5f   : > { %v798_v11 = vmax.f32 %v734_v60, 0.0  ;;  %v735_v15 = vadd.f32 %v671_v6, %v465_v55  ;;  %v673_v16 = vadd.f32 %v1059_v3, %v602_v8  ;;  %v603_v17 = vmul.f32 %v1037_v1, %v532_v63  ;;  %v335_v8 = vld [vmem:[%s1043_s30 + $0x1f8] sm:$0xff] }
  0x60   : > { %862 = vst.msk [vmem:[%s1094_s16 + $0x188] sm:$0xff] %vm812_vm0, %v797_v5  ;;  %v398_v18 = vmul.f32 %v1032_v0, %v327_v4  ;;  %v736_v20 = vadd.f32 %v672_v12, %v466_v7  ;;  %v468_v21 = vadd.f32 %v1054_v2, %v397_v14  ;;  %v604_v22 = vmul.f32 %v1037_v1, %v533_v9  ;;  %v540_v7 = vld [vmem:[%s1049_s9 + $0x1f0] sm:$0xff] }
  0x61   : > { %863 = vst.msk [vmem:[%s1094_s16 + $0x190] sm:$0xff] %vm812_vm0, %v798_v11  ;;  %v399_v23 = vmul.f32 %v1032_v0, %v328_v10  ;;  %v799_v26 = vmax.f32 %v735_v15, 0.0  ;;  %v737_v27 = vadd.f32 %v673_v16, %v467_v13  ;;  %v674_v28 = vadd.f32 %v1059_v3, %v603_v17  ;;  %v331_v0 = vld [vmem:[%s1043_s30 + $0x1d8] sm:$0xff] }
  0x62   : > { %v469_v29 = vadd.f32 %v1054_v2, %v398_v18  ;;  %v800_v32 = vmax.f32 %v736_v20, 0.0  ;;  %v675_v33 = vadd.f32 %v1059_v3, %v604_v22  ;;  %v605_v35 = vmul.f32 %v1037_v1, %v534_v19  ;;  %v973_v3 = vld [vmem:[%s1569_s4] ss:$0 sm:$0xff]  ;;  %v541_v13 = vld [vmem:[%s1049_s9 + $0x1f8] sm:$0xff] }
  0x63   : > { %v470_v34 = vadd.f32 %v1054_v2, %v399_v23  ;;  %864 = vst.msk [vmem:[%s1094_s16 + $0x198] sm:$0xff] %vm812_vm0, %v799_v26  ;;  %v801_v36 = vmax.f32 %v737_v27, 0.0  ;;  %v738_v37 = vadd.f32 %v674_v28, %v468_v21  ;;  %v400_v39 = vmul.f32 %v972_v38, %v329_v24 }
  0x64   : > { %v606_v2 = vmul.f32 %v973_v3, %v535_v25  ;;  %865 = vst.msk [vmem:[%s1094_s16 + $0x1a0] sm:$0xff] %vm812_vm0, %v800_v32  ;;  %v739_v1 = vadd.f32 %v675_v33, %v469_v29  ;;  %v676_v41 = vadd.f32 %v974_v40, %v605_v35  ;;  %v401_v42 = vmul.f32 %v972_v38, %v330_v30 }
  0x65   : > { %v607_v43 = vmul.f32 %v973_v3, %v536_v31  ;;  %866 = vst.msk [vmem:[%s1094_s16 + $0x1a8] sm:$0xff] %vm812_vm0, %v801_v36  ;;  %v802_v46 = vmax.f32 %v738_v37, 0.0  ;;  %v471_v48 = vadd.f32 %v975_v47, %v400_v39  ;;  %v402_v50 = vmul.f32 %v972_v38, %v331_v0 }
  0x66   : > { %v677_v49 = vadd.f32 %v974_v40, %v606_v2  ;;  %v803_v53 = vmax.f32 %v739_v1, 0.0  ;;  %v740_v54 = vadd.f32 %v676_v41, %v470_v34  ;;  %v472_v55 = vadd.f32 %v975_v47, %v401_v42 }
  0x67   : > { %v678_v56 = vadd.f32 %v974_v40, %v607_v43  ;;  %867 = vst.msk [vmem:[%s1094_s16 + $0x1b0] sm:$0xff] %vm812_vm0, %v802_v46  ;;  %v473_v59 = vadd.f32 %v975_v47, %v402_v50  ;;  %v608_v60 = vmul.f32 %v973_v3, %v537_v44  ;;  %v403_v61 = vmul.f32 %v972_v38, %v332_v45 }
  0x68   : > { %v741_v58 = vadd.f32 %v677_v49, %v471_v48  ;;  %868 = vst.msk [vmem:[%s1094_s16 + $0x1b8] sm:$0xff] %vm812_vm0, %v803_v53  ;;  %v804_v63 = vmax.f32 %v740_v54, 0.0  ;;  %v609_v5 = vmul.f32 %v973_v3, %v538_v51  ;;  %v404_v6 = vmul.f32 %v972_v38, %v333_v52 }
  0x69   : > { %v742_v4 = vadd.f32 %v678_v56, %v472_v55  ;;  %v679_v10 = vadd.f32 %v974_v40, %v608_v60  ;;  %v474_v11 = vadd.f32 %v975_v47, %v403_v61  ;;  %v610_v12 = vmul.f32 %v973_v3, %v539_v57 }
  0x6a   : > { %v805_v9 = vmax.f32 %v741_v58, 0.0  ;;  %869 = vst.msk [vmem:[%s1094_s16 + $0x1c0] sm:$0xff] %vm812_vm0, %v804_v63  ;;  %v680_v15 = vadd.f32 %v974_v40, %v609_v5  ;;  %v475_v16 = vadd.f32 %v975_v47, %v404_v6  ;;  %v405_v17 = vmul.f32 %v972_v38, %v334_v62 }
  0x6b   : > { %v806_v14 = vmax.f32 %v742_v4, 0.0  ;;  %v743_v18 = vadd.f32 %v679_v10, %v473_v59  ;;  %v681_v19 = vadd.f32 %v974_v40, %v610_v12  ;;  %v611_v20 = vmul.f32 %v973_v3, %v540_v7 }
  0x6c   : > { %870 = vst.msk [vmem:[%s1094_s16 + $0x1c8] sm:$0xff] %vm812_vm0, %v805_v9  ;;  %v406_v21 = vmul.f32 %v972_v38, %v335_v8  ;;  %v744_v22 = vadd.f32 %v680_v15, %v474_v11  ;;  %v476_v23 = vadd.f32 %v975_v47, %v405_v17  ;;  %v612_v24 = vmul.f32 %v973_v3, %v541_v13 }
  0x6d   : > { %871 = vst.msk [vmem:[%s1094_s16 + $0x1d0] sm:$0xff] %vm812_vm0, %v806_v14  ;;  %v807_v25 = vmax.f32 %v743_v18, 0.0  ;;  %v745_v26 = vadd.f32 %v681_v19, %v475_v16  ;;  %v682_v27 = vadd.f32 %v974_v40, %v611_v20 }
  0x6e   : > { %v477_v28 = vadd.f32 %v975_v47, %v406_v21  ;;  %v808_v29 = vmax.f32 %v744_v22, 0.0  ;;  %v683_v30 = vadd.f32 %v974_v40, %v612_v24 }
  0x6f   : > { %872 = vst.msk [vmem:[%s1094_s16 + $0x1d8] sm:$0xff] %vm812_vm0, %v807_v25  ;;  %v809_v31 = vmax.f32 %v745_v26, 0.0  ;;  %v746_v32 = vadd.f32 %v682_v27, %v476_v23 }
  0x70   : > { %873 = vst.msk [vmem:[%s1094_s16 + $0x1e0] sm:$0xff] %vm812_vm0, %v808_v29  ;;  %v747_v33 = vadd.f32 %v683_v30, %v477_v28 }
  0x71   : > { %874 = vst.msk [vmem:[%s1094_s16 + $0x1e8] sm:$0xff] %vm812_vm0, %v809_v31  ;;  %v810_v34 = vmax.f32 %v746_v32, 0.0 }
  0x72   : > { %v811_v35 = vmax.f32 %v747_v33, 0.0 }
  0x73   : > { %875 = vst.msk [vmem:[%s1094_s16 + $0x1f0] sm:$0xff] %vm812_vm0, %v810_v34 }
  0x74   : > { %876 = vst.msk [vmem:[%s1094_s16 + $0x1f8] sm:$0xff] %vm812_vm0, %v811_v35 }
  0x75 PF: > { %s16_s21 = sadd.s32 1, %s982_s21  }
  0x76   : > { %p13_p4 = scmp.ge.s32.totalorder %s16_s21, 4  }
  0x78   :  { %15 = sbr.rel (!%p13_p4) target bundleno = 1 (0x1), region = 77 }

// kernel: basic_block_forward.4
= control target key start
LH: loop header
LB: loop body
LE: loop exit
PB: predicated region body
PF: predicated region fallthrough
CT: control target
= control target key end

     0   :  { %s5569_s21 = smov 0   ;;  %s7324_s0 = inlined_call_operand.vmem [shape: f32[2,8,8,8,8], index: 0, kind: input, shape index: {}]   ;;  %s7325_s1 = inlined_call_operand.vmem [shape: f32[27,8,8], index: 1, kind: input, shape index: {}]   ;;  %s7326_s2 = inlined_call_operand.vmem [shape: f32[1,8], index: 2, kind: input, shape index: {}]   ;;  %s7327_s3 = inlined_call_operand.vmem [shape: f32[1,8], index: 3, kind: input, shape index: {}]   ;;  %s7328_s4 = inlined_call_operand.vmem [shape: f32[2,8,8,8,8], index: 4, kind: output, shape index: {0}]   ;;  %s7329_s5 = inlined_call_operand.vmem [shape: f32[2,1,8], index: 5, kind: output, shape index: {1}]   ;;  %s7330_s6 = inlined_call_operand.vmem [shape: f32[2,1,8], index: 6, kind: output, shape index: {2}]  }
   0x1 LB: > { %s4579_s22 = sadd.s32 4294967295, %s5527_s21   ;;  %p4583_p0 = scmp.ge.s32.totalorder %s5527_s21, 1  ;;  %s5527_s21 = sphi %s5569_s21, %s17_s21  }
   0x2   : > { %p217_p1 = scmp.lt.s32.totalorder %s5527_s21, 3 }
   0x4   : > { %p218_p2 = pnand %p4583_p0, %p217_p1 }
   0x5   : > { %p5579_p3 = scmp.lt.s32.totalorder (!%p218_p2), %s4579_s22, 1  ;;  %s6279_s17 = smov (!%p218_p2), 0  }
   0x6   : > { %221 = sbr.rel (%p218_p2) target bundleno = 594 (0x252), region = 36 }
   0xb   : > { %vm539_vm0 = vcmask 64512   ;;  %vm541_vm1 = vcmask 58368   ;;  %v5533_v0 = vmov 0.0   ;;  %s7353_s22 = smov (!%p5579_p3, %s4579_s22), 1  ;;  %vm806_vm2 = vcmask 57344  }
   0xc   : > { %563 = vst.msk [vmem:[#allocation2 + $0xb0] sm:$0xff] %vm539_vm0, %v5533_v0  ;;  %540 = vst.msk [vmem:[#allocation2] sm:$0xff] %vm539_vm0, %v5533_v0  ;;  %s4875_s24 = sshll.u32 %s7353_s22, 9  ;;  %v5990_v1 = vld [vmem:[%s7326_s2] ss:$0 sm:$0xff]  ;;  %s5995_s29 = scalar_lea.vmem %s7329_s5, %s7353_s22 }
   0xd   : > { %543 = vst.msk [vmem:[#allocation2 + $0x10] sm:$0xff] %vm539_vm0, %v5533_v0  ;;  %545 = vst.msk [vmem:[#allocation2 + $0x20] sm:$0xff] %vm539_vm0, %v5533_v0  ;;  %s6000_s8 = scalar_lea.vmem %s7324_s0, %s4875_s24  ;;  %s6005_s11 = scalar_lea.vmem %s7328_s4, %s4875_s24  ;;  %v6010_v2 = vld [vmem:[%s7327_s3] ss:$0 sm:$0xff] }
   0xe   : > { %547 = vst.msk [vmem:[#allocation2 + $0x30] sm:$0xff] %vm539_vm0, %v5533_v0  ;;  %549 = vst.msk [vmem:[#allocation2 + $0x40] sm:$0xff] %vm539_vm0, %v5533_v0  ;;  %v269_v3 = vld [vmem:[%s6000_s8] sm:$0xff]  ;;  %v270_v4 = vld [vmem:[%s6000_s8 + $0x8] sm:$0xff]  ;;  %s6021_s16 = scalar_lea.vmem %s7330_s6, %s7353_s22 }
   0xf   : > { %551 = vst.msk [vmem:[#allocation2 + $0x50] sm:$0xff] %vm539_vm0, %v5533_v0  ;;  %553 = vst.msk [vmem:[#allocation2 + $0x60] sm:$0xff] %vm539_vm0, %v5533_v0  ;;  %v271_v5 = vld [vmem:[%s6000_s8 + $0x10] sm:$0xff]  ;;  %v340_v6 = vmul.f32 %v5990_v1, %v269_v3  ;;  %v341_v7 = vmul.f32 %v5990_v1, %v270_v4  ;;  %v272_v9 = vld [vmem:[%s6000_s8 + $0x18] sm:$0xff] }
  0x10   : > { %555 = vst.msk [vmem:[#allocation2 + $0x70] sm:$0xff] %vm539_vm0, %v5533_v0  ;;  %557 = vst.msk [vmem:[#allocation2 + $0x80] sm:$0xff] %vm539_vm0, %v5533_v0  ;;  %v342_v8 = vmul.f32 %v5990_v1, %v271_v5  ;;  %v273_v10 = vld [vmem:[%s6000_s8 + $0x20] sm:$0xff]  ;;  %v274_v11 = vld [vmem:[%s6000_s8 + $0x28] sm:$0xff]  ;;  %v343_v12 = vmul.f32 %v5990_v1, %v272_v9 }
  0x11   : > { %559 = vst.msk [vmem:[#allocation2 + $0x90] sm:$0xff] %vm539_vm0, %v5533_v0  ;;  %561 = vst.msk [vmem:[#allocation2 + $0xa0] sm:$0xff] %vm539_vm0, %v5533_v0  ;;  %v344_v13 = vmul.f32 %v5990_v1, %v273_v10  ;;  %v345_v14 = vmul.f32 %v5990_v1, %v274_v11  ;;  %v275_v15 = vld [vmem:[%s6000_s8 + $0x30] sm:$0xff]  ;;  %v276_v16 = vld [vmem:[%s6000_s8 + $0x38] sm:$0xff]  ;;  %v411_v17 = vadd.f32 %v6010_v2, %v340_v6 }
  0x12   : > { %565 = vst.msk [vmem:[#allocation2 + $0xc0] sm:$0xff] %vm539_vm0, %v5533_v0  ;;  %567 = vst.msk [vmem:[#allocation2 + $0xd0] sm:$0xff] %vm539_vm0, %v5533_v0  ;;  %v412_v18 = vadd.f32 %v6010_v2, %v341_v7  ;;  %v413_v19 = vadd.f32 %v6010_v2, %v342_v8  ;;  %v346_v20 = vmul.f32 %v5990_v1, %v275_v15  ;;  %v277_v25 = vld [vmem:[%s6000_s8 + $0x40] sm:$0xff]  ;;  %v278_v26 = vld [vmem:[%s6000_s8 + $0x48] sm:$0xff] }
  0x13   : > { %569 = vst.msk [vmem:[#allocation2 + $0xe0] sm:$0xff] %vm539_vm0, %v5533_v0  ;;  %571 = vst.msk [vmem:[#allocation2 + $0xf0] sm:$0xff] %vm539_vm0, %v5533_v0  ;;  %v414_v21 = vadd.f32 %v6010_v2, %v343_v12  ;;  %v415_v22 = vadd.f32 %v6010_v2, %v344_v13  ;;  %v416_v23 = vadd.f32 %v6010_v2, %v345_v14  ;;  %v279_v27 = vld [vmem:[%s6000_s8 + $0x50] sm:$0xff]  ;;  %v475_v28 = vmax.f32 %v411_v17, 0.0  ;;  %v280_v32 = vld [vmem:[%s6000_s8 + $0x58] sm:$0xff] }
  0x14   : > { %573 = vst.msk [vmem:[#allocation2 + $0x100] sm:$0xff] %vm539_vm0, %v5533_v0  ;;  %575 = vst.msk [vmem:[#allocation2 + $0x110] sm:$0xff] %vm539_vm0, %v5533_v0  ;;  %v347_v24 = vmul.f32 %v5990_v1, %v276_v16  ;;  %v476_v29 = vmax.f32 %v412_v18, 0.0  ;;  %v477_v30 = vmax.f32 %v413_v19, 0.0  ;;  %v417_v31 = vadd.f32 %v6010_v2, %v346_v20  ;;  %v281_v33 = vld [vmem:[%s6000_s8 + $0x60] sm:$0xff]  ;;  %v282_v34 = vld [vmem:[%s6000_s8 + $0x68] sm:$0xff] }
  0x15   : > { %577 = vst.msk [vmem:[#allocation2 + $0x120] sm:$0xff] %vm539_vm0, %v5533_v0  ;;  %579 = vst.msk [vmem:[#allocation2 + $0x130] sm:$0xff] %vm539_vm0, %v5533_v0  ;;  %v478_v35 = vmax.f32 %v414_v21, 0.0  ;;  %v479_v36 = vmax.f32 %v415_v22, 0.0  ;;  %v480_v37 = vmax.f32 %v416_v23, 0.0  ;;  %v283_v39 = vld [vmem:[%s6000_s8 + $0x70] sm:$0xff]  ;;  %v348_v41 = vmul.f32 %v5990_v1, %v277_v25 }
  0x16   : > { %581 = vst.msk [vmem:[#allocation2 + $0x140] sm:$0xff] %vm539_vm0, %v5533_v0  ;;  %583 = vst.msk [vmem:[#allocation2 + $0x150] sm:$0xff] %vm539_vm0, %v5533_v0  ;;  %v418_v38 = vadd.f32 %v6010_v2, %v347_v24  ;;  %v481_v40 = vmax.f32 %v417_v31, 0.0  ;;  %v349_v42 = vmul.f32 %v5990_v1, %v278_v26  ;;  %v350_v43 = vmul.f32 %v5990_v1, %v279_v27  ;;  %v284_v44 = vld [vmem:[%s6000_s8 + $0x78] sm:$0xff]  ;;  %v285_v57 = vld [vmem:[%s6000_s8 + $0x80] sm:$0xff] }
  0x17   : > { %585 = vst.msk [vmem:[#allocation2 + $0x160] sm:$0xff] %vm539_vm0, %v5533_v0  ;;  %587 = vst.msk [vmem:[#allocation2 + $0x170] sm:$0xff] %vm539_vm0, %v5533_v0  ;;  %v351_v46 = vmul.f32 %v5990_v1, %v280_v32  ;;  %v352_v47 = vmul.f32 %v5990_v1, %v281_v33  ;;  %v353_v48 = vmul.f32 %v5990_v1, %v282_v34  ;;  %v286_v58 = vld [vmem:[%s6000_s8 + $0x88] sm:$0xff]  ;;  %v287_v59 = vld [vmem:[%s6000_s8 + $0x90] sm:$0xff] }
  0x18   : > { %589 = vst.msk [vmem:[#allocation2 + $0x180] sm:$0xff] %vm539_vm0, %v5533_v0  ;;  %591 = vst.msk [vmem:[#allocation2 + $0x190] sm:$0xff] %vm539_vm0, %v5533_v0  ;;  %v482_v45 = vmax.f32 %v418_v38, 0.0  ;;  %v419_v49 = vadd.f32 %v6010_v2, %v348_v41  ;;  %v420_v50 = vadd.f32 %v6010_v2, %v349_v42  ;;  %v421_v51 = vadd.f32 %v6010_v2, %v350_v43  ;;  %v289_v3 = vld [vmem:[%s6000_s8 + $0xa0] sm:$0xff]  ;;  %v290_v4 = vld [vmem:[%s6000_s8 + $0xa8] sm:$0xff] }
  0x19   : > { %593 = vst.msk [vmem:[#allocation2 + $0x1a0] sm:$0xff] %vm539_vm0, %v5533_v0  ;;  %595 = vst.msk [vmem:[#allocation2 + $0x1b0] sm:$0xff] %vm539_vm0, %v5533_v0  ;;  %v354_v52 = vmul.f32 %v5990_v1, %v283_v39  ;;  %v422_v53 = vadd.f32 %v6010_v2, %v351_v46  ;;  %v423_v54 = vadd.f32 %v6010_v2, %v352_v47  ;;  %v291_v9 = vld [vmem:[%s6000_s8 + $0xb0] sm:$0xff]  ;;  %v292_v14 = vld [vmem:[%s6000_s8 + $0xb8] sm:$0xff] }
  0x1a   : > { %597 = vst.msk [vmem:[#allocation2 + $0x1c0] sm:$0xff] %vm539_vm0, %v5533_v0  ;;  %599 = vst.msk [vmem:[#allocation2 + $0x1d0] sm:$0xff] %vm539_vm0, %v5533_v0  ;;  %v424_v55 = vadd.f32 %v6010_v2, %v353_v48  ;;  %v355_v56 = vmul.f32 %v5990_v1, %v284_v44  ;;  %v483_v60 = vmax.f32 %v419_v49, 0.0  ;;  %v484_v61 = vmax.f32 %v420_v50, 0.0  ;;  %v293_v27 = vld [vmem:[%s6000_s8 + $0xc0] sm:$0xff]  ;;  %v296_v34 = vld [vmem:[%s6000_s8 + $0xd8] sm:$0xff] }
  0x1b   : > { %601 = vst.msk [vmem:[#allocation2 + $0x1e0] sm:$0xff] %vm539_vm0, %v5533_v0  ;;  %603 = vst.msk [vmem:[#allocation2 + $0x1f0] sm:$0xff] %vm539_vm0, %v5533_v0  ;;  %v485_v62 = vmax.f32 %v421_v51, 0.0  ;;  %v425_v63 = vadd.f32 %v6010_v2, %v354_v52  ;;  %v486_v5 = vmax.f32 %v422_v53, 0.0  ;;  %v487_v6 = vmax.f32 %v423_v54, 0.0  ;;  %v299_v41 = vld [vmem:[%s6000_s8 + $0xf0] sm:$0xff] }
  0x1c   : > { %605 = vst.msk [vmem:[#allocation2 + $0x200] sm:$0xff] %vm539_vm0, %v5533_v0  ;;  %607 = vst.msk [vmem:[#allocation2 + $0x210] sm:$0xff] %vm539_vm0, %v5533_v0  ;;  %v488_v7 = vmax.f32 %v424_v55, 0.0  ;;  %v426_v8 = vadd.f32 %v6010_v2, %v355_v56  ;;  %v356_v11 = vmul.f32 %v5990_v1, %v285_v57  ;;  %v357_v12 = vmul.f32 %v5990_v1, %v286_v58  ;;  %v300_v46 = vld [vmem:[%s6000_s8 + $0xf8] sm:$0xff] }
  0x1d   : > { %609 = vst.msk [vmem:[#allocation2 + $0x220] sm:$0xff] %vm539_vm0, %v5533_v0  ;;  %611 = vst.msk [vmem:[#allocation2 + $0x230] sm:$0xff] %vm539_vm0, %v5533_v0  ;;  %v489_v10 = vmax.f32 %v425_v63, 0.0  ;;  %v358_v13 = vmul.f32 %v5990_v1, %v287_v59  ;;  %v360_v17 = vmul.f32 %v5990_v1, %v289_v3  ;;  %v361_v18 = vmul.f32 %v5990_v1, %v290_v4  ;;  %v301_v59 = vld [vmem:[%s6000_s8 + $0x100] sm:$0xff]  ;;  %v304_v4 = vld [vmem:[%s6000_s8 + $0x118] sm:$0xff] }
  0x1e   : > { %613 = vst.msk [vmem:[#allocation2 + $0x240] sm:$0xff] %vm539_vm0, %v5533_v0  ;;  %615 = vst.msk [vmem:[#allocation2 + $0x250] sm:$0xff] %vm539_vm0, %v5533_v0  ;;  %v490_v15 = vmax.f32 %v426_v8, 0.0  ;;  %v427_v19 = vadd.f32 %v6010_v2, %v356_v11  ;;  %v428_v20 = vadd.f32 %v6010_v2, %v357_v12  ;;  %v362_v22 = vmul.f32 %v5990_v1, %v291_v9  ;;  %v307_v11 = vld [vmem:[%s6000_s8 + $0x130] sm:$0xff] }
  0x1f   : > { %617 = vst.msk [vmem:[#allocation2 + $0x260] sm:$0xff] %vm539_vm0, %v5533_v0  ;;  %619 = vst.msk [vmem:[#allocation2 + $0x270] sm:$0xff] %vm539_vm0, %v5533_v0  ;;  %v429_v21 = vadd.f32 %v6010_v2, %v358_v13  ;;  %v431_v24 = vadd.f32 %v6010_v2, %v360_v17  ;;  %v432_v25 = vadd.f32 %v6010_v2, %v361_v18 }
  0x20   : > { %621 = vst.msk [vmem:[#allocation2 + $0x280] sm:$0xff] %vm539_vm0, %v5533_v0  ;;  %623 = vst.msk [vmem:[#allocation2 + $0x290] sm:$0xff] %vm539_vm0, %v5533_v0  ;;  %v363_v26 = vmul.f32 %v5990_v1, %v292_v14  ;;  %v492_v31 = vmax.f32 %v428_v20, 0.0  ;;  %v433_v33 = vadd.f32 %v6010_v2, %v362_v22  ;;  %v364_v43 = vmul.f32 %v5990_v1, %v293_v27 }
  0x21   : > { %625 = vst.msk [vmem:[#allocation2 + $0x2a0] sm:$0xff] %vm539_vm0, %v5533_v0  ;;  %627 = vst.msk [vmem:[#allocation2 + $0x2b0] sm:$0xff] %vm539_vm0, %v5533_v0  ;;  %v493_v32 = vmax.f32 %v429_v21, 0.0  ;;  %v495_v38 = vmax.f32 %v431_v24, 0.0  ;;  %v496_v39 = vmax.f32 %v432_v25, 0.0  ;;  %v367_v48 = vmul.f32 %v5990_v1, %v296_v34 }
  0x22   : > { %629 = vst.msk [vmem:[#allocation2 + $0x2c0] sm:$0xff] %vm539_vm0, %v5533_v0  ;;  %631 = vst.msk [vmem:[#allocation2 + $0x2d0] sm:$0xff] %vm539_vm0, %v5533_v0  ;;  %v497_v42 = vmax.f32 %v433_v33, 0.0  ;;  %v435_v51 = vadd.f32 %v6010_v2, %v364_v43  ;;  %v370_v54 = vmul.f32 %v5990_v1, %v299_v41  ;;  %v371_v58 = vmul.f32 %v5990_v1, %v300_v46  ;;  %v315_v43 = vld [vmem:[%s6000_s8 + $0x170] sm:$0xff] }
  0x23   : > { %633 = vst.msk [vmem:[#allocation2 + $0x2e0] sm:$0xff] %vm539_vm0, %v5533_v0  ;;  %635 = vst.msk [vmem:[#allocation2 + $0x2f0] sm:$0xff] %vm539_vm0, %v5533_v0  ;;  %v438_v55 = vadd.f32 %v6010_v2, %v367_v48  ;;  %v372_v13 = vmul.f32 %v5990_v1, %v301_v59  ;;  %v375_v18 = vmul.f32 %v5990_v1, %v304_v4  ;;  %v316_v48 = vld [vmem:[%s6000_s8 + $0x178] sm:$0xff] }
  0x24   : > { %637 = vst.msk [vmem:[#allocation2 + $0x300] sm:$0xff] %vm539_vm0, %v5533_v0  ;;  %639 = vst.msk [vmem:[#allocation2 + $0x310] sm:$0xff] %vm539_vm0, %v5533_v0  ;;  %v441_v3 = vadd.f32 %v6010_v2, %v370_v54  ;;  %v378_v24 = vmul.f32 %v5990_v1, %v307_v11 }
  0x25   : > { %641 = vst.msk [vmem:[#allocation2 + $0x320] sm:$0xff] %vm539_vm0, %v5533_v0  ;;  %643 = vst.msk [vmem:[#allocation2 + $0x330] sm:$0xff] %vm539_vm0, %v5533_v0  ;;  %v443_v21 = vadd.f32 %v6010_v2, %v372_v13  ;;  %v446_v25 = vadd.f32 %v6010_v2, %v375_v18  ;;  %v323_v13 = vld [vmem:[%s6000_s8 + $0x1b0] sm:$0xff]  ;;  %v324_v18 = vld [vmem:[%s6000_s8 + $0x1b8] sm:$0xff] }
  0x26   : > { %645 = vst.msk [vmem:[#allocation2 + $0x340] sm:$0xff] %vm539_vm0, %v5533_v0  ;;  %647 = vst.msk [vmem:[#allocation2 + $0x350] sm:$0xff] %vm539_vm0, %v5533_v0  ;;  %v505_v12 = vmax.f32 %v441_v3, 0.0 }
  0x27   : > { %649 = vst.msk [vmem:[#allocation2 + $0x360] sm:$0xff] %vm539_vm0, %v5533_v0  ;;  %651 = vst.msk [vmem:[#allocation2 + $0x370] sm:$0xff] %vm539_vm0, %v5533_v0 }
  0x28   : > { %653 = vst.msk [vmem:[#allocation2 + $0x380] sm:$0xff] %vm539_vm0, %v5533_v0  ;;  %655 = vst.msk [vmem:[#allocation2 + $0x390] sm:$0xff] %vm539_vm0, %v5533_v0 }
  0x29   : > { %657 = vst.msk [vmem:[#allocation2 + $0x3a0] sm:$0xff] %vm539_vm0, %v5533_v0  ;;  %659 = vst.msk [vmem:[#allocation2 + $0x3b0] sm:$0xff] %vm539_vm0, %v5533_v0 }
  0x2a   : > { %661 = vst.msk [vmem:[#allocation2 + $0x3c0] sm:$0xff] %vm539_vm0, %v5533_v0  ;;  %663 = vst.msk [vmem:[#allocation2 + $0x3d0] sm:$0xff] %vm539_vm0, %v5533_v0 }
  0x2b   : > { %665 = vst.msk [vmem:[#allocation2 + $0x3e0] sm:$0xff] %vm539_vm0, %v5533_v0  ;;  %667 = vst.msk [vmem:[#allocation2 + $0x3f0] sm:$0xff] %vm539_vm0, %v5533_v0 }
  0x2c   : > { %669 = vst.msk [vmem:[#allocation2 + $0x400] sm:$0xff] %vm539_vm0, %v5533_v0  ;;  %671 = vst.msk [vmem:[#allocation2 + $0x410] sm:$0xff] %vm539_vm0, %v5533_v0 }
  0x2d   : > { %673 = vst.msk [vmem:[#allocation2 + $0x420] sm:$0xff] %vm539_vm0, %v5533_v0  ;;  %675 = vst.msk [vmem:[#allocation2 + $0x430] sm:$0xff] %vm539_vm0, %v5533_v0 }
  0x2e   : > { %677 = vst.msk [vmem:[#allocation2 + $0x440] sm:$0xff] %vm539_vm0, %v5533_v0  ;;  %679 = vst.msk [vmem:[#allocation2 + $0x450] sm:$0xff] %vm539_vm0, %v5533_v0 }
  0x2f   : > { %681 = vst.msk [vmem:[#allocation2 + $0x460] sm:$0xff] %vm539_vm0, %v5533_v0  ;;  %683 = vst.msk [vmem:[#allocation2 + $0x470] sm:$0xff] %vm539_vm0, %v5533_v0 }
  0x30   : > { %685 = vst.msk [vmem:[#allocation2 + $0x480] sm:$0xff] %vm539_vm0, %v5533_v0  ;;  %687 = vst.msk [vmem:[#allocation2 + $0x490] sm:$0xff] %vm539_vm0, %v5533_v0 }
  0x31   : > { %689 = vst.msk [vmem:[#allocation2 + $0x4a0] sm:$0xff] %vm539_vm0, %v5533_v0  ;;  %691 = vst.msk [vmem:[#allocation2 + $0x4b0] sm:$0xff] %vm539_vm0, %v5533_v0 }
  0x32   : > { %693 = vst.msk [vmem:[#allocation2 + $0x4c0] sm:$0xff] %vm539_vm0, %v5533_v0  ;;  %695 = vst.msk [vmem:[#allocation2 + $0x4d0] sm:$0xff] %vm539_vm0, %v5533_v0 }
  0x33   : > { %697 = vst.msk [vmem:[#allocation2 + $0x4e0] sm:$0xff] %vm539_vm0, %v5533_v0  ;;  %699 = vst.msk [vmem:[#allocation2 + $0x4f0] sm:$0xff] %vm539_vm0, %v5533_v0 }
  0x34   : > { %701 = vst.msk [vmem:[#allocation2 + $0x500] sm:$0xff] %vm539_vm0, %v5533_v0  ;;  %703 = vst.msk [vmem:[#allocation2 + $0x510] sm:$0xff] %vm539_vm0, %v5533_v0 }
  0x35   : > { %705 = vst.msk [vmem:[#allocation2 + $0x520] sm:$0xff] %vm539_vm0, %v5533_v0  ;;  %707 = vst.msk [vmem:[#allocation2 + $0x530] sm:$0xff] %vm539_vm0, %v5533_v0 }
  0x36   : > { %709 = vst.msk [vmem:[#allocation2 + $0x540] sm:$0xff] %vm539_vm0, %v5533_v0  ;;  %711 = vst.msk [vmem:[#allocation2 + $0x550] sm:$0xff] %vm539_vm0, %v5533_v0 }
  0x37   : > { %713 = vst.msk [vmem:[#allocation2 + $0x560] sm:$0xff] %vm539_vm0, %v5533_v0  ;;  %715 = vst.msk [vmem:[#allocation2 + $0x570] sm:$0xff] %vm539_vm0, %v5533_v0 }
  0x38   : > { %717 = vst.msk [vmem:[#allocation2 + $0x580] sm:$0xff] %vm539_vm0, %v5533_v0  ;;  %719 = vst.msk [vmem:[#allocation2 + $0x590] sm:$0xff] %vm539_vm0, %v5533_v0 }
  0x39   : > { %721 = vst.msk [vmem:[#allocation2 + $0x5a0] sm:$0xff] %vm539_vm0, %v5533_v0  ;;  %723 = vst.msk [vmem:[#allocation2 + $0x5b0] sm:$0xff] %vm539_vm0, %v5533_v0 }
  0x3a   : > { %725 = vst.msk [vmem:[#allocation2 + $0x5c0] sm:$0xff] %vm539_vm0, %v5533_v0  ;;  %727 = vst.msk [vmem:[#allocation2 + $0x5d0] sm:$0xff] %vm539_vm0, %v5533_v0 }
  0x3b   : > { %729 = vst.msk [vmem:[#allocation2 + $0x5e0] sm:$0xff] %vm539_vm0, %v5533_v0  ;;  %731 = vst.msk [vmem:[#allocation2 + $0x5f0] sm:$0xff] %vm539_vm0, %v5533_v0 }
  0x3c   : > { %733 = vst.msk [vmem:[#allocation2 + $0x600] sm:$0xff] %vm539_vm0, %v5533_v0  ;;  %735 = vst.msk [vmem:[#allocation2 + $0x610] sm:$0xff] %vm539_vm0, %v5533_v0 }
  0x3d   : > { %737 = vst.msk [vmem:[#allocation2 + $0x620] sm:$0xff] %vm539_vm0, %v5533_v0  ;;  %739 = vst.msk [vmem:[#allocation2 + $0x630] sm:$0xff] %vm539_vm0, %v5533_v0 }
  0x3e   : > { %564 = vst.msk [vmem:[#allocation2 + $0xb8] sm:$0x3] %vm541_vm1, %v5533_v0  ;;  %542 = vst.msk [vmem:[#allocation2 + $0x8] sm:$0x3] %vm541_vm1, %v5533_v0 }
  0x3f   : > { %544 = vst.msk [vmem:[#allocation2 + $0x18] sm:$0x3] %vm541_vm1, %v5533_v0  ;;  %546 = vst.msk [vmem:[#allocation2 + $0x28] sm:$0x3] %vm541_vm1, %v5533_v0 }
  0x40   : > { %548 = vst.msk [vmem:[#allocation2 + $0x38] sm:$0x3] %vm541_vm1, %v5533_v0  ;;  %550 = vst.msk [vmem:[#allocation2 + $0x48] sm:$0x3] %vm541_vm1, %v5533_v0 }
  0x41   : > { %552 = vst.msk [vmem:[#allocation2 + $0x58] sm:$0x3] %vm541_vm1, %v5533_v0  ;;  %554 = vst.msk [vmem:[#allocation2 + $0x68] sm:$0x3] %vm541_vm1, %v5533_v0 }
  0x42   : > { %556 = vst.msk [vmem:[#allocation2 + $0x78] sm:$0x3] %vm541_vm1, %v5533_v0  ;;  %558 = vst.msk [vmem:[#allocation2 + $0x88] sm:$0x3] %vm541_vm1, %v5533_v0 }
  0x43   : > { %560 = vst.msk [vmem:[#allocation2 + $0x98] sm:$0x3] %vm541_vm1, %v5533_v0  ;;  %562 = vst.msk [vmem:[#allocation2 + $0xa8] sm:$0x3] %vm541_vm1, %v5533_v0 }
  0x44   : > { %566 = vst.msk [vmem:[#allocation2 + $0xc8] sm:$0x3] %vm541_vm1, %v5533_v0  ;;  %568 = vst.msk [vmem:[#allocation2 + $0xd8] sm:$0x3] %vm541_vm1, %v5533_v0 }
  0x45   : > { %570 = vst.msk [vmem:[#allocation2 + $0xe8] sm:$0x3] %vm541_vm1, %v5533_v0  ;;  %572 = vst.msk [vmem:[#allocation2 + $0xf8] sm:$0x3] %vm541_vm1, %v5533_v0 }
  0x46   : > { %574 = vst.msk [vmem:[#allocation2 + $0x108] sm:$0x3] %vm541_vm1, %v5533_v0  ;;  %576 = vst.msk [vmem:[#allocation2 + $0x118] sm:$0x3] %vm541_vm1, %v5533_v0 }
  0x47   : > { %578 = vst.msk [vmem:[#allocation2 + $0x128] sm:$0x3] %vm541_vm1, %v5533_v0  ;;  %580 = vst.msk [vmem:[#allocation2 + $0x138] sm:$0x3] %vm541_vm1, %v5533_v0 }
  0x48   : > { %582 = vst.msk [vmem:[#allocation2 + $0x148] sm:$0x3] %vm541_vm1, %v5533_v0  ;;  %584 = vst.msk [vmem:[#allocation2 + $0x158] sm:$0x3] %vm541_vm1, %v5533_v0 }
  0x49   : > { %586 = vst.msk [vmem:[#allocation2 + $0x168] sm:$0x3] %vm541_vm1, %v5533_v0  ;;  %588 = vst.msk [vmem:[#allocation2 + $0x178] sm:$0x3] %vm541_vm1, %v5533_v0 }
  0x4a   : > { %590 = vst.msk [vmem:[#allocation2 + $0x188] sm:$0x3] %vm541_vm1, %v5533_v0  ;;  %592 = vst.msk [vmem:[#allocation2 + $0x198] sm:$0x3] %vm541_vm1, %v5533_v0 }
  0x4b   : > { %594 = vst.msk [vmem:[#allocation2 + $0x1a8] sm:$0x3] %vm541_vm1, %v5533_v0  ;;  %596 = vst.msk [vmem:[#allocation2 + $0x1b8] sm:$0x3] %vm541_vm1, %v5533_v0 }
  0x4c   : > { %598 = vst.msk [vmem:[#allocation2 + $0x1c8] sm:$0x3] %vm541_vm1, %v5533_v0  ;;  %600 = vst.msk [vmem:[#allocation2 + $0x1d8] sm:$0x3] %vm541_vm1, %v5533_v0 }
  0x4d   : > { %602 = vst.msk [vmem:[#allocation2 + $0x1e8] sm:$0x3] %vm541_vm1, %v5533_v0  ;;  %604 = vst.msk [vmem:[#allocation2 + $0x1f8] sm:$0x3] %vm541_vm1, %v5533_v0 }
  0x4e   : > { %606 = vst.msk [vmem:[#allocation2 + $0x208] sm:$0x3] %vm541_vm1, %v5533_v0  ;;  %608 = vst.msk [vmem:[#allocation2 + $0x218] sm:$0x3] %vm541_vm1, %v5533_v0 }
  0x4f   : > { %610 = vst.msk [vmem:[#allocation2 + $0x228] sm:$0x3] %vm541_vm1, %v5533_v0  ;;  %612 = vst.msk [vmem:[#allocation2 + $0x238] sm:$0x3] %vm541_vm1, %v5533_v0 }
  0x50   : > { %614 = vst.msk [vmem:[#allocation2 + $0x248] sm:$0x3] %vm541_vm1, %v5533_v0  ;;  %616 = vst.msk [vmem:[#allocation2 + $0x258] sm:$0x3] %vm541_vm1, %v5533_v0 }
  0x51   : > { %618 = vst.msk [vmem:[#allocation2 + $0x268] sm:$0x3] %vm541_vm1, %v5533_v0  ;;  %620 = vst.msk [vmem:[#allocation2 + $0x278] sm:$0x3] %vm541_vm1, %v5533_v0 }
  0x52   : > { %622 = vst.msk [vmem:[#allocation2 + $0x288] sm:$0x3] %vm541_vm1, %v5533_v0  ;;  %624 = vst.msk [vmem:[#allocation2 + $0x298] sm:$0x3] %vm541_vm1, %v5533_v0 }
  0x53   : > { %626 = vst.msk [vmem:[#allocation2 + $0x2a8] sm:$0x3] %vm541_vm1, %v5533_v0  ;;  %628 = vst.msk [vmem:[#allocation2 + $0x2b8] sm:$0x3] %vm541_vm1, %v5533_v0 }
  0x54   : > { %630 = vst.msk [vmem:[#allocation2 + $0x2c8] sm:$0x3] %vm541_vm1, %v5533_v0  ;;  %632 = vst.msk [vmem:[#allocation2 + $0x2d8] sm:$0x3] %vm541_vm1, %v5533_v0 }
  0x55   : > { %634 = vst.msk [vmem:[#allocation2 + $0x2e8] sm:$0x3] %vm541_vm1, %v5533_v0  ;;  %636 = vst.msk [vmem:[#allocation2 + $0x2f8] sm:$0x3] %vm541_vm1, %v5533_v0 }
  0x56   : > { %638 = vst.msk [vmem:[#allocation2 + $0x308] sm:$0x3] %vm541_vm1, %v5533_v0  ;;  %640 = vst.msk [vmem:[#allocation2 + $0x318] sm:$0x3] %vm541_vm1, %v5533_v0 }
  0x57   : > { %642 = vst.msk [vmem:[#allocation2 + $0x328] sm:$0x3] %vm541_vm1, %v5533_v0  ;;  %644 = vst.msk [vmem:[#allocation2 + $0x338] sm:$0x3] %vm541_vm1, %v5533_v0 }
  0x58   : > { %646 = vst.msk [vmem:[#allocation2 + $0x348] sm:$0x3] %vm541_vm1, %v5533_v0  ;;  %648 = vst.msk [vmem:[#allocation2 + $0x358] sm:$0x3] %vm541_vm1, %v5533_v0 }
  0x59   : > { %650 = vst.msk [vmem:[#allocation2 + $0x368] sm:$0x3] %vm541_vm1, %v5533_v0  ;;  %652 = vst.msk [vmem:[#allocation2 + $0x378] sm:$0x3] %vm541_vm1, %v5533_v0 }
  0x5a   : > { %654 = vst.msk [vmem:[#allocation2 + $0x388] sm:$0x3] %vm541_vm1, %v5533_v0  ;;  %656 = vst.msk [vmem:[#allocation2 + $0x398] sm:$0x3] %vm541_vm1, %v5533_v0 }
  0x5b   : > { %658 = vst.msk [vmem:[#allocation2 + $0x3a8] sm:$0x3] %vm541_vm1, %v5533_v0  ;;  %660 = vst.msk [vmem:[#allocation2 + $0x3b8] sm:$0x3] %vm541_vm1, %v5533_v0 }
  0x5c   : > { %662 = vst.msk [vmem:[#allocation2 + $0x3c8] sm:$0x3] %vm541_vm1, %v5533_v0  ;;  %664 = vst.msk [vmem:[#allocation2 + $0x3d8] sm:$0x3] %vm541_vm1, %v5533_v0 }
  0x5d   : > { %666 = vst.msk [vmem:[#allocation2 + $0x3e8] sm:$0x3] %vm541_vm1, %v5533_v0  ;;  %668 = vst.msk [vmem:[#allocation2 + $0x3f8] sm:$0x3] %vm541_vm1, %v5533_v0 }
  0x5e   : > { %670 = vst.msk [vmem:[#allocation2 + $0x408] sm:$0x3] %vm541_vm1, %v5533_v0  ;;  %672 = vst.msk [vmem:[#allocation2 + $0x418] sm:$0x3] %vm541_vm1, %v5533_v0 }
  0x5f   : > { %674 = vst.msk [vmem:[#allocation2 + $0x428] sm:$0x3] %vm541_vm1, %v5533_v0  ;;  %676 = vst.msk [vmem:[#allocation2 + $0x438] sm:$0x3] %vm541_vm1, %v5533_v0 }
  0x60   : > { %678 = vst.msk [vmem:[#allocation2 + $0x448] sm:$0x3] %vm541_vm1, %v5533_v0  ;;  %680 = vst.msk [vmem:[#allocation2 + $0x458] sm:$0x3] %vm541_vm1, %v5533_v0 }
  0x61   : > { %682 = vst.msk [vmem:[#allocation2 + $0x468] sm:$0x3] %vm541_vm1, %v5533_v0  ;;  %684 = vst.msk [vmem:[#allocation2 + $0x478] sm:$0x3] %vm541_vm1, %v5533_v0 }
  0x62   : > { %686 = vst.msk [vmem:[#allocation2 + $0x488] sm:$0x3] %vm541_vm1, %v5533_v0  ;;  %688 = vst.msk [vmem:[#allocation2 + $0x498] sm:$0x3] %vm541_vm1, %v5533_v0 }
  0x63   : > { %690 = vst.msk [vmem:[#allocation2 + $0x4a8] sm:$0x3] %vm541_vm1, %v5533_v0  ;;  %692 = vst.msk [vmem:[#allocation2 + $0x4b8] sm:$0x3] %vm541_vm1, %v5533_v0 }
  0x64   : > { %694 = vst.msk [vmem:[#allocation2 + $0x4c8] sm:$0x3] %vm541_vm1, %v5533_v0  ;;  %696 = vst.msk [vmem:[#allocation2 + $0x4d8] sm:$0x3] %vm541_vm1, %v5533_v0 }
  0x65   : > { %698 = vst.msk [vmem:[#allocation2 + $0x4e8] sm:$0x3] %vm541_vm1, %v5533_v0  ;;  %700 = vst.msk [vmem:[#allocation2 + $0x4f8] sm:$0x3] %vm541_vm1, %v5533_v0 }
  0x66   : > { %702 = vst.msk [vmem:[#allocation2 + $0x508] sm:$0x3] %vm541_vm1, %v5533_v0  ;;  %704 = vst.msk [vmem:[#allocation2 + $0x518] sm:$0x3] %vm541_vm1, %v5533_v0 }
  0x67   : > { %706 = vst.msk [vmem:[#allocation2 + $0x528] sm:$0x3] %vm541_vm1, %v5533_v0  ;;  %708 = vst.msk [vmem:[#allocation2 + $0x538] sm:$0x3] %vm541_vm1, %v5533_v0 }
  0x68   : > { %710 = vst.msk [vmem:[#allocation2 + $0x548] sm:$0x3] %vm541_vm1, %v5533_v0  ;;  %712 = vst.msk [vmem:[#allocation2 + $0x558] sm:$0x3] %vm541_vm1, %v5533_v0 }
  0x69   : > { %714 = vst.msk [vmem:[#allocation2 + $0x568] sm:$0x3] %vm541_vm1, %v5533_v0  ;;  %716 = vst.msk [vmem:[#allocation2 + $0x578] sm:$0x3] %vm541_vm1, %v5533_v0 }
  0x6a   : > { %718 = vst.msk [vmem:[#allocation2 + $0x588] sm:$0x3] %vm541_vm1, %v5533_v0  ;;  %720 = vst.msk [vmem:[#allocation2 + $0x598] sm:$0x3] %vm541_vm1, %v5533_v0 }
  0x6b   : > { %722 = vst.msk [vmem:[#allocation2 + $0x5a8] sm:$0x3] %vm541_vm1, %v5533_v0  ;;  %724 = vst.msk [vmem:[#allocation2 + $0x5b8] sm:$0x3] %vm541_vm1, %v5533_v0 }
  0x6c   : > { %726 = vst.msk [vmem:[#allocation2 + $0x5c8] sm:$0x3] %vm541_vm1, %v5533_v0  ;;  %728 = vst.msk [vmem:[#allocation2 + $0x5d8] sm:$0x3] %vm541_vm1, %v5533_v0 }
  0x6d   : > { %730 = vst.msk [vmem:[#allocation2 + $0x5e8] sm:$0x3] %vm541_vm1, %v5533_v0  ;;  %732 = vst.msk [vmem:[#allocation2 + $0x5f8] sm:$0x3] %vm541_vm1, %v5533_v0 }
  0x6e   : > { %734 = vst.msk [vmem:[#allocation2 + $0x608] sm:$0x3] %vm541_vm1, %v5533_v0  ;;  %736 = vst.msk [vmem:[#allocation2 + $0x618] sm:$0x3] %vm541_vm1, %v5533_v0 }
  0x6f   : > { %738 = vst.msk [vmem:[#allocation2 + $0x628] sm:$0x3] %vm541_vm1, %v5533_v0  ;;  %740 = vst.msk [vmem:[#allocation2 + $0x638] sm:$0x3] %vm541_vm1, %v5533_v0 }
  0x70   : > { %807 = vst.msk [vmem:[%s5995_s29] sm:$0x1] %vm806_vm2, %v5533_v0  ;;  %808 = vst.msk [vmem:[%s6021_s16] sm:$0x1] %vm806_vm2, %v5533_v0  ;;  %v288_v0 = vld [vmem:[%s6000_s8 + $0x98] sm:$0xff] }
  0x71   : > { %742 = vst.msk [vmem:[#allocation2 + $0xb1] sm:$0xff] %vm539_vm0, %v475_v28  ;;  %743 = vst.msk [vmem:[#allocation2 + $0xc1] sm:$0xff] %vm539_vm0, %v476_v29  ;;  %v359_v16 = vmul.f32 %v5990_v1, %v288_v0  ;;  %v294_v28 = vld [vmem:[%s6000_s8 + $0xc8] sm:$0xff]  ;;  %v295_v29 = vld [vmem:[%s6000_s8 + $0xd0] sm:$0xff] }
  0x72   : > { %744 = vst.msk [vmem:[#allocation2 + $0xd1] sm:$0xff] %vm539_vm0, %v477_v30  ;;  %745 = vst.msk [vmem:[#allocation2 + $0xe1] sm:$0xff] %vm539_vm0, %v478_v35  ;;  %v491_v30 = vmax.f32 %v427_v19, 0.0  ;;  %v297_v35 = vld [vmem:[%s6000_s8 + $0xe0] sm:$0xff]  ;;  %v365_v44 = vmul.f32 %v5990_v1, %v294_v28 }
  0x73   : > { %746 = vst.msk [vmem:[#allocation2 + $0xf1] sm:$0xff] %vm539_vm0, %v479_v36  ;;  %747 = vst.msk [vmem:[#allocation2 + $0x101] sm:$0xff] %vm539_vm0, %v480_v37  ;;  %v430_v23 = vadd.f32 %v6010_v2, %v359_v16  ;;  %v298_v36 = vld [vmem:[%s6000_s8 + $0xe8] sm:$0xff]  ;;  %v368_v49 = vmul.f32 %v5990_v1, %v297_v35  ;;  %v308_v16 = vld [vmem:[%s6000_s8 + $0x138] sm:$0xff]  ;;  %v449_v35 = vadd.f32 %v6010_v2, %v378_v24 }
  0x74   : > { %748 = vst.msk [vmem:[#allocation2 + $0x111] sm:$0xff] %vm539_vm0, %v481_v40  ;;  %749 = vst.msk [vmem:[#allocation2 + $0x121] sm:$0xff] %vm539_vm0, %v482_v45  ;;  %v434_v40 = vadd.f32 %v6010_v2, %v363_v26  ;;  %v366_v45 = vmul.f32 %v5990_v1, %v295_v29  ;;  %v369_v50 = vmul.f32 %v5990_v1, %v298_v36  ;;  %v309_v29 = vld [vmem:[%s6000_s8 + $0x140] sm:$0xff]  ;;  %v312_v36 = vld [vmem:[%s6000_s8 + $0x158] sm:$0xff] }
  0x75   : > { %750 = vst.msk [vmem:[#allocation2 + $0x151] sm:$0xff] %vm539_vm0, %v483_v60  ;;  %751 = vst.msk [vmem:[#allocation2 + $0x161] sm:$0xff] %vm539_vm0, %v484_v61  ;;  %v494_v37 = vmax.f32 %v430_v23, 0.0  ;;  %v436_v52 = vadd.f32 %v6010_v2, %v365_v44  ;;  %v439_v56 = vadd.f32 %v6010_v2, %v368_v49  ;;  %v302_v60 = vld [vmem:[%s6000_s8 + $0x108] sm:$0xff]  ;;  %v303_v61 = vld [vmem:[%s6000_s8 + $0x110] sm:$0xff]  ;;  %v379_v28 = vmul.f32 %v5990_v1, %v308_v16 }
  0x76   : > { %752 = vst.msk [vmem:[#allocation2 + $0x171] sm:$0xff] %vm539_vm0, %v485_v62  ;;  %753 = vst.msk [vmem:[#allocation2 + $0x181] sm:$0xff] %vm539_vm0, %v486_v5  ;;  %v498_v47 = vmax.f32 %v434_v40, 0.0  ;;  %v437_v53 = vadd.f32 %v6010_v2, %v366_v45  ;;  %v440_v57 = vadd.f32 %v6010_v2, %v369_v50  ;;  %v499_v62 = vmax.f32 %v435_v51, 0.0  ;;  %v305_v5 = vld [vmem:[%s6000_s8 + $0x120] sm:$0xff] }
  0x77   : > { %754 = vst.msk [vmem:[#allocation2 + $0x191] sm:$0xff] %vm539_vm0, %v487_v6  ;;  %755 = vst.msk [vmem:[#allocation2 + $0x1a1] sm:$0xff] %vm539_vm0, %v488_v7  ;;  %v500_v63 = vmax.f32 %v436_v52, 0.0  ;;  %v306_v6 = vld [vmem:[%s6000_s8 + $0x128] sm:$0xff]  ;;  %v502_v7 = vmax.f32 %v438_v55, 0.0  ;;  %v503_v8 = vmax.f32 %v439_v56, 0.0  ;;  %v373_v14 = vmul.f32 %v5990_v1, %v302_v60 }
  0x78   : > { %756 = vst.msk [vmem:[#allocation2 + $0x1b1] sm:$0xff] %vm539_vm0, %v489_v10  ;;  %757 = vst.msk [vmem:[#allocation2 + $0x1c1] sm:$0xff] %vm539_vm0, %v490_v15  ;;  %v501_v0 = vmax.f32 %v437_v53, 0.0  ;;  %v504_v9 = vmax.f32 %v440_v57, 0.0  ;;  %v442_v10 = vadd.f32 %v6010_v2, %v371_v58  ;;  %v374_v15 = vmul.f32 %v5990_v1, %v303_v61  ;;  %v317_v61 = vld [vmem:[%s6000_s8 + $0x180] sm:$0xff] }
  0x79   : > { %758 = vst.msk [vmem:[#allocation2 + $0x1f1] sm:$0xff] %vm539_vm0, %v491_v30  ;;  %759 = vst.msk [vmem:[#allocation2 + $0x201] sm:$0xff] %vm539_vm0, %v492_v31  ;;  %v376_v19 = vmul.f32 %v5990_v1, %v305_v5  ;;  %v377_v20 = vmul.f32 %v5990_v1, %v306_v6  ;;  %v444_v22 = vadd.f32 %v6010_v2, %v373_v14  ;;  %v310_v30 = vld [vmem:[%s6000_s8 + $0x148] sm:$0xff]  ;;  %v311_v31 = vld [vmem:[%s6000_s8 + $0x150] sm:$0xff]  ;;  %v513_v44 = vmax.f32 %v449_v35, 0.0 }
  0x7a   : > { %760 = vst.msk [vmem:[#allocation2 + $0x211] sm:$0xff] %vm539_vm0, %v493_v32  ;;  %761 = vst.msk [vmem:[#allocation2 + $0x221] sm:$0xff] %vm539_vm0, %v494_v37  ;;  %v506_v17 = vmax.f32 %v442_v10, 0.0  ;;  %v445_v23 = vadd.f32 %v6010_v2, %v374_v15  ;;  %v507_v32 = vmax.f32 %v443_v21, 0.0  ;;  %v313_v37 = vld [vmem:[%s6000_s8 + $0x160] sm:$0xff]  ;;  %v380_v45 = vmul.f32 %v5990_v1, %v309_v29  ;;  %v320_v6 = vld [vmem:[%s6000_s8 + $0x198] sm:$0xff] }
  0x7b   : > { %762 = vst.msk [vmem:[#allocation2 + $0x231] sm:$0xff] %vm539_vm0, %v495_v38  ;;  %763 = vst.msk [vmem:[#allocation2 + $0x241] sm:$0xff] %vm539_vm0, %v496_v39  ;;  %v447_v26 = vadd.f32 %v6010_v2, %v376_v19  ;;  %v448_v27 = vadd.f32 %v6010_v2, %v377_v20  ;;  %v508_v33 = vmax.f32 %v444_v22, 0.0  ;;  %v314_v38 = vld [vmem:[%s6000_s8 + $0x168] sm:$0xff]  ;;  %v510_v39 = vmax.f32 %v446_v25, 0.0 }
  0x7c   : > { %764 = vst.msk [vmem:[#allocation2 + $0x251] sm:$0xff] %vm539_vm0, %v497_v42  ;;  %765 = vst.msk [vmem:[#allocation2 + $0x261] sm:$0xff] %vm539_vm0, %v498_v47  ;;  %v509_v34 = vmax.f32 %v445_v23, 0.0  ;;  %v450_v42 = vadd.f32 %v6010_v2, %v379_v28  ;;  %v381_v46 = vmul.f32 %v5990_v1, %v310_v30  ;;  %v382_v47 = vmul.f32 %v5990_v1, %v311_v31  ;;  %v325_v31 = vld [vmem:[%s6000_s8 + $0x1c0] sm:$0xff] }
  0x7d   : > { %766 = vst.msk [vmem:[#allocation2 + $0x291] sm:$0xff] %vm539_vm0, %v499_v62  ;;  %767 = vst.msk [vmem:[#allocation2 + $0x2a1] sm:$0xff] %vm539_vm0, %v500_v63  ;;  %v511_v40 = vmax.f32 %v447_v26, 0.0  ;;  %v512_v41 = vmax.f32 %v448_v27, 0.0  ;;  %v383_v50 = vmul.f32 %v5990_v1, %v312_v36  ;;  %v384_v51 = vmul.f32 %v5990_v1, %v313_v37  ;;  %v318_v62 = vld [vmem:[%s6000_s8 + $0x188] sm:$0xff]  ;;  %v319_v63 = vld [vmem:[%s6000_s8 + $0x190] sm:$0xff] }
  0x7e   : > { %768 = vst.msk [vmem:[#allocation2 + $0x2b1] sm:$0xff] %vm539_vm0, %v501_v0  ;;  %769 = vst.msk [vmem:[#allocation2 + $0x2c1] sm:$0xff] %vm539_vm0, %v502_v7  ;;  %v514_v49 = vmax.f32 %v450_v42, 0.0  ;;  %v385_v52 = vmul.f32 %v5990_v1, %v314_v38  ;;  %v451_v53 = vadd.f32 %v6010_v2, %v380_v45  ;;  %v452_v54 = vadd.f32 %v6010_v2, %v381_v46  ;;  %v321_v7 = vld [vmem:[%s6000_s8 + $0x1a0] sm:$0xff]  ;;  %v328_v38 = vld [vmem:[%s6000_s8 + $0x1d8] sm:$0xff] }
  0x7f   : > { %770 = vst.msk [vmem:[#allocation2 + $0x2d1] sm:$0xff] %vm539_vm0, %v503_v8  ;;  %771 = vst.msk [vmem:[#allocation2 + $0x2e1] sm:$0xff] %vm539_vm0, %v504_v9  ;;  %v453_v55 = vadd.f32 %v6010_v2, %v382_v47  ;;  %v386_v56 = vmul.f32 %v5990_v1, %v315_v43  ;;  %v454_v57 = vadd.f32 %v6010_v2, %v383_v50  ;;  %v322_v8 = vld [vmem:[%s6000_s8 + $0x1a8] sm:$0xff]  ;;  %v331_v45 = vld [vmem:[%s6000_s8 + $0x1f0] sm:$0xff] }
  0x80   : > { %772 = vst.msk [vmem:[#allocation2 + $0x2f1] sm:$0xff] %vm539_vm0, %v505_v12  ;;  %773 = vst.msk [vmem:[#allocation2 + $0x301] sm:$0xff] %vm539_vm0, %v506_v17  ;;  %v455_v58 = vadd.f32 %v6010_v2, %v384_v51  ;;  %v456_v59 = vadd.f32 %v6010_v2, %v385_v52  ;;  %v387_v60 = vmul.f32 %v5990_v1, %v316_v48  ;;  %v515_v0 = vmax.f32 %v451_v53, 0.0  ;;  %v332_v50 = vld [vmem:[%s6000_s8 + $0x1f8] sm:$0xff] }
  0x81   : > { %774 = vst.msk [vmem:[#allocation2 + $0x331] sm:$0xff] %vm539_vm0, %v507_v32  ;;  %775 = vst.msk [vmem:[#allocation2 + $0x341] sm:$0xff] %vm539_vm0, %v508_v33  ;;  %v516_v3 = vmax.f32 %v452_v54, 0.0  ;;  %v517_v4 = vmax.f32 %v453_v55, 0.0  ;;  %v457_v5 = vadd.f32 %v6010_v2, %v386_v56  ;;  %v518_v9 = vmax.f32 %v454_v57, 0.0  ;;  %v326_v32 = vld [vmem:[%s6000_s8 + $0x1c8] sm:$0xff] }
  0x82   : > { %776 = vst.msk [vmem:[#allocation2 + $0x351] sm:$0xff] %vm539_vm0, %v509_v34  ;;  %777 = vst.msk [vmem:[#allocation2 + $0x361] sm:$0xff] %vm539_vm0, %v510_v39  ;;  %v519_v10 = vmax.f32 %v455_v58, 0.0  ;;  %v520_v11 = vmax.f32 %v456_v59, 0.0  ;;  %v458_v12 = vadd.f32 %v6010_v2, %v387_v60  ;;  %v388_v15 = vmul.f32 %v5990_v1, %v317_v61  ;;  %v327_v33 = vld [vmem:[%s6000_s8 + $0x1d0] sm:$0xff]  ;;  %v329_v39 = vld [vmem:[%s6000_s8 + $0x1e0] sm:$0xff] }
  0x83   : > { %778 = vst.msk [vmem:[#allocation2 + $0x371] sm:$0xff] %vm539_vm0, %v511_v40  ;;  %779 = vst.msk [vmem:[#allocation2 + $0x381] sm:$0xff] %vm539_vm0, %v512_v41  ;;  %v521_v14 = vmax.f32 %v457_v5, 0.0  ;;  %v389_v16 = vmul.f32 %v5990_v1, %v318_v62  ;;  %v390_v17 = vmul.f32 %v5990_v1, %v319_v63  ;;  %v391_v20 = vmul.f32 %v5990_v1, %v320_v6  ;;  %v330_v40 = vld [vmem:[%s6000_s8 + $0x1e8] sm:$0xff] }
  0x84   : > { %780 = vst.msk [vmem:[#allocation2 + $0x391] sm:$0xff] %vm539_vm0, %v513_v44  ;;  %781 = vst.msk [vmem:[#allocation2 + $0x3a1] sm:$0xff] %vm539_vm0, %v514_v49  ;;  %v522_v19 = vmax.f32 %v458_v12, 0.0  ;;  %v392_v21 = vmul.f32 %v5990_v1, %v321_v7  ;;  %v393_v22 = vmul.f32 %v5990_v1, %v322_v8  ;;  %v459_v23 = vadd.f32 %v6010_v2, %v388_v15 }
  0x85   : > { %782 = vst.msk [vmem:[#allocation2 + $0x3d1] sm:$0xff] %vm539_vm0, %v515_v0  ;;  %783 = vst.msk [vmem:[#allocation2 + $0x3e1] sm:$0xff] %vm539_vm0, %v516_v3  ;;  %v460_v24 = vadd.f32 %v6010_v2, %v389_v16  ;;  %v461_v25 = vadd.f32 %v6010_v2, %v390_v17  ;;  %v394_v26 = vmul.f32 %v5990_v1, %v323_v13 }
  0x86   : > { %784 = vst.msk [vmem:[#allocation2 + $0x3f1] sm:$0xff] %vm539_vm0, %v517_v4  ;;  %785 = vst.msk [vmem:[#allocation2 + $0x401] sm:$0xff] %vm539_vm0, %v518_v9  ;;  %v462_v27 = vadd.f32 %v6010_v2, %v391_v20  ;;  %v463_v28 = vadd.f32 %v6010_v2, %v392_v21  ;;  %v464_v29 = vadd.f32 %v6010_v2, %v393_v22  ;;  %v523_v34 = vmax.f32 %v459_v23, 0.0 }
  0x87   : > { %786 = vst.msk [vmem:[#allocation2 + $0x411] sm:$0xff] %vm539_vm0, %v519_v10  ;;  %787 = vst.msk [vmem:[#allocation2 + $0x421] sm:$0xff] %vm539_vm0, %v520_v11  ;;  %v395_v30 = vmul.f32 %v5990_v1, %v324_v18  ;;  %v524_v35 = vmax.f32 %v460_v24, 0.0  ;;  %v525_v36 = vmax.f32 %v461_v25, 0.0  ;;  %v465_v37 = vadd.f32 %v6010_v2, %v394_v26 }
  0x88   : > { %788 = vst.msk [vmem:[#allocation2 + $0x431] sm:$0xff] %vm539_vm0, %v521_v14  ;;  %789 = vst.msk [vmem:[#allocation2 + $0x441] sm:$0xff] %vm539_vm0, %v522_v19  ;;  %v526_v41 = vmax.f32 %v462_v27, 0.0  ;;  %v527_v42 = vmax.f32 %v463_v28, 0.0  ;;  %v528_v43 = vmax.f32 %v464_v29, 0.0  ;;  %v396_v47 = vmul.f32 %v5990_v1, %v325_v31 }
  0x89   : > { %v466_v44 = vadd.f32 %v6010_v2, %v395_v30  ;;  %790 = vst.msk [vmem:[#allocation2 + $0x471] sm:$0xff] %vm539_vm0, %v523_v34  ;;  %791 = vst.msk [vmem:[#allocation2 + $0x481] sm:$0xff] %vm539_vm0, %v524_v35  ;;  %v529_v46 = vmax.f32 %v465_v37, 0.0  ;;  %v397_v48 = vmul.f32 %v5990_v1, %v326_v32  ;;  %v398_v49 = vmul.f32 %v5990_v1, %v327_v33 }
  0x8a   : > { %792 = vst.msk [vmem:[#allocation2 + $0x491] sm:$0xff] %vm539_vm0, %v525_v36  ;;  %793 = vst.msk [vmem:[#allocation2 + $0x4a1] sm:$0xff] %vm539_vm0, %v526_v41  ;;  %v399_v52 = vmul.f32 %v5990_v1, %v328_v38  ;;  %v400_v53 = vmul.f32 %v5990_v1, %v329_v39  ;;  %v401_v54 = vmul.f32 %v5990_v1, %v330_v40 }
  0x8b   : > { %794 = vst.msk [vmem:[#allocation2 + $0x4b1] sm:$0xff] %vm539_vm0, %v527_v42  ;;  %795 = vst.msk [vmem:[#allocation2 + $0x4c1] sm:$0xff] %vm539_vm0, %v528_v43  ;;  %v530_v51 = vmax.f32 %v466_v44, 0.0  ;;  %v467_v55 = vadd.f32 %v6010_v2, %v396_v47  ;;  %v468_v56 = vadd.f32 %v6010_v2, %v397_v48  ;;  %v469_v57 = vadd.f32 %v6010_v2, %v398_v49 }
  0x8c   : > { %796 = vst.msk [vmem:[#allocation2 + $0x4d1] sm:$0xff] %vm539_vm0, %v529_v46  ;;  %v402_v58 = vmul.f32 %v5990_v1, %v331_v45  ;;  %v470_v59 = vadd.f32 %v6010_v2, %v399_v52  ;;  %v471_v60 = vadd.f32 %v6010_v2, %v400_v53  ;;  %v472_v61 = vadd.f32 %v6010_v2, %v401_v54 }
  0x8d   : > { %797 = vst.msk [vmem:[#allocation2 + $0x4e1] sm:$0xff] %vm539_vm0, %v530_v51  ;;  %v403_v62 = vmul.f32 %v5990_v1, %v332_v50  ;;  %v531_v63 = vmax.f32 %v467_v55, 0.0  ;;  %v532_v0 = vmax.f32 %v468_v56, 0.0  ;;  %v533_v3 = vmax.f32 %v469_v57, 0.0 }
  0x8e   : > { %v473_v4 = vadd.f32 %v6010_v2, %v402_v58  ;;  %v534_v5 = vmax.f32 %v470_v59, 0.0  ;;  %v535_v6 = vmax.f32 %v471_v60, 0.0  ;;  %v536_v7 = vmax.f32 %v472_v61, 0.0 }
  0x8f   : > { %v474_v8 = vadd.f32 %v6010_v2, %v403_v62  ;;  %798 = vst.msk [vmem:[#allocation2 + $0x511] sm:$0xff] %vm539_vm0, %v531_v63  ;;  %799 = vst.msk [vmem:[#allocation2 + $0x521] sm:$0xff] %vm539_vm0, %v532_v0 }
  0x90   : > { %800 = vst.msk [vmem:[#allocation2 + $0x531] sm:$0xff] %vm539_vm0, %v533_v3  ;;  %v537_v9 = vmax.f32 %v473_v4, 0.0  ;;  %801 = vst.msk [vmem:[#allocation2 + $0x541] sm:$0xff] %vm539_vm0, %v534_v5 }
  0x91   : > { %802 = vst.msk [vmem:[#allocation2 + $0x551] sm:$0xff] %vm539_vm0, %v535_v6  ;;  %803 = vst.msk [vmem:[#allocation2 + $0x561] sm:$0xff] %vm539_vm0, %v536_v7  ;;  %v538_v1 = vmax.f32 %v474_v8, 0.0 }
  0x92   : > { %804 = vst.msk [vmem:[#allocation2 + $0x571] sm:$0xff] %vm539_vm0, %v537_v9 }
  0x93   : > { %805 = vst.msk [vmem:[#allocation2 + $0x581] sm:$0xff] %vm539_vm0, %v538_v1 }
  0x94 LB: >> { %v4590_v2 = vld [vmem:[%s7325_s1 + $0x8] sm:$0xff]  ;;  %v837_v10 = vld [vmem:[%s7325_s1] sm:$0xff]  ;;  %v4607_v11 = vld [vmem:[%s7325_s1 + $0x10] sm:$0xff]  ;;  %s815_s25 = smul.u32 160, %s5531_s17  ;;  %vm854_vm3 = vcmask 1046528   ;;  %vm1123_vm4 = vcmask 1045504   ;;  %s5531_s17 = sphi %s6279_s17, %s814_s17  }
  0x95   : >> { %5498 = vmatprep.subr.mxu1 %v4590_v2  ;;  %5120 = vmatprep.subr.mxu0 %v4590_v2  ;;  %v4616_v36 = vld [vmem:[%s7325_s1 + $0x18] sm:$0xff]  ;;  %v4625_v53 = vld [vmem:[%s7325_s1 + $0x20] sm:$0xff]  ;;  %v4634_v5 = vld [vmem:[%s7325_s1 + $0x28] sm:$0xff] }
  0x96   : >> { %5499 = vmatpush3.msra.mxu1 %v4590_v2  ;;  %5121 = vmatpush3.msra.mxu0 %v4590_v2  ;;  %s6294_s26 = scalar_lea.vmem [#allocation2], %s815_s25  ;;  %v4643_v9 = vld [vmem:[%s7325_s1 + $0x30] sm:$0xff] }
  0x97   : >> { %5134 = vmatprep.subr.mxu1 %v837_v10  ;;  %5148 = vmatprep.subr.mxu0 %v4607_v11 }
  0x9a   : >> { %v6297_v12 = vld [vmem:[%s6294_s26] sm:$0xff]  ;;  %v818_v13 = vld [vmem:[%s6294_s26 + $0x8] sm:$0x3]  ;;  %v6309_v19 = vld [vmem:[%s6294_s26 + $0x10] sm:$0xff] }
  0x9b   : >> { %v6301_v14 = vld [vmem:[%s6294_s26 + $0x40] sm:$0xff]  ;;  %v855_v15 = vrot.slane %v6297_v12, 1  ;;  %v856_v16 = vrot.slane %v818_v13, 1  ;;  %v6305_v17 = vld [vmem:[%s6294_s26 + $0x48] sm:$0x3]  ;;  %v858_v22 = vrot.slane %v6309_v19, 1 }
  0x9c   : >> { %v867_v18 = vrot.slane %v6301_v14, 1  ;;  %v868_v20 = vrot.slane %v6305_v17, 1  ;;  %v820_v21 = vld [vmem:[%s6294_s26 + $0x18] sm:$0x3]  ;;  %v6315_v23 = vld [vmem:[%s6294_s26 + $0x50] sm:$0xff]  ;;  %v6318_v24 = vld [vmem:[%s6294_s26 + $0x20] sm:$0xff] }
  0x9d   : >> { %v857_v25 = vsel %vm854_vm3, %v855_v15, %v856_v16  ;;  %v859_v26 = vrot.slane %v820_v21, 1  ;;  %v1128_v27 = vrot.slane %v820_v21, 2  ;;  %v6322_v28 = vld [vmem:[%s6294_s26 + $0x58] sm:$0x3]  ;;  %v870_v29 = vrot.slane %v6315_v23, 1  ;;  %v6326_v30 = vld [vmem:[%s6294_s26 + $0x60] sm:$0xff] }
  0x9e   : >> { %5122 = vmatprep.mubr.msk.f32.mxu0 %vm539_vm0, %v857_v25  ;;  %v6330_v31 = vsel %vm854_vm3, %v867_v18, %v868_v20  ;;  %v871_v32 = vrot.slane %v6322_v28, 1  ;;  %v822_v33 = vld [vmem:[%s6294_s26 + $0x28] sm:$0x3]  ;;  %v861_v34 = vrot.slane %v6318_v24, 1  ;;  %v873_v39 = vrot.slane %v6326_v30, 1  ;;  %v6349_v41 = vld [vmem:[%s6294_s26 + $0x30] sm:$0xff] }
  0x9f   : >> { %v6336_v35 = vld [vmem:[%s6294_s26 + $0x68] sm:$0x3]  ;;  %5128 = vmatprep.mubr.msk.f32.mxu1 %vm539_vm0, %v6330_v31  ;;  %v6344_v37 = vsel %vm854_vm3, %v858_v22, %v859_v26  ;;  %v862_v38 = vrot.slane %v822_v33, 1  ;;  %v824_v42 = vld [vmem:[%s6294_s26 + $0x38] sm:$0x3]  ;;  %v864_v44 = vrot.slane %v6349_v41, 1 }
  0xa0   : >> { %v874_v40 = vrot.slane %v6336_v35, 1  ;;  %5123 = vmatmul.mubr.msk.f32.vlgmr.msra.gmra.mxu0 %vm539_vm0, %v6344_v37  ;;  %v6355_v43 = vsel %vm854_vm3, %v870_v29, %v871_v32  ;;  %v865_v45 = vrot.slane %v824_v42, 1  ;;  %v6359_v46 = vld [vmem:[%s6294_s26 + $0x70] sm:$0xff]  ;;  %v832_v47 = vld [vmem:[%s6294_s26 + $0x78] sm:$0x3]  ;;  %v1124_v48 = vrot.slane %v6297_v12, 2 }
  0xa1   : >> { %5129 = vmatmul.mubr.msk.f32.vlgmr.msra.gmra.mxu1 %vm539_vm0, %v6355_v43  ;;  %5149 = vmatpush3.msra.mxu0 %v4607_v11  ;;  %v6366_v49 = vsel %vm854_vm3, %v861_v34, %v862_v38  ;;  %v876_v51 = vrot.slane %v6359_v46, 1  ;;  %v877_v52 = vrot.slane %v832_v47, 1  ;;  %v1125_v55 = vrot.slane %v818_v13, 2  ;;  %v4661_v18 = vld [vmem:[%s7325_s1 + $0x40] sm:$0xff]  ;;  %v834_v20 = vld [vmem:[%s6294_s26 + $0x88] sm:$0x3] }
  0xa2   : >> { %v6369_v50 = vsel %vm854_vm3, %v873_v39, %v874_v40  ;;  %5135 = vmatpush3.msra.mxu1 %v837_v10  ;;  %5125 = vmatprep.mubr.msk.f32.mxu0 %vm539_vm0, %v6366_v49  ;;  %v6378_v54 = vsel %vm854_vm3, %v864_v44, %v865_v45  ;;  %v1127_v56 = vrot.slane %v6309_v19, 2  ;;  %v1130_v59 = vrot.slane %v6318_v24, 2  ;;  %v4690_v26 = vld [vmem:[%s7325_s1 + $0x48] sm:$0xff]  ;;  %v4708_v29 = vld [vmem:[%s7325_s1 + $0x58] sm:$0xff]  ;;  %v6587_v45 = vld [vmem:[%s6294_s26 + $0xc0] sm:$0xff] }
  0xa3   : >> { %5131 = vmatprep.mubr.msk.f32.mxu1 %vm539_vm0, %v6369_v50  ;;  %v6384_v57 = vsel %vm854_vm3, %v876_v51, %v877_v52  ;;  %5162 = vmatprep.subr.mxu1 %v4616_v36  ;;  %v1126_v58 = vsel %vm1123_vm4, %v1124_v48, %v1125_v55  ;;  %v1131_v60 = vrot.slane %v822_v33, 2  ;;  %v1133_v62 = vrot.slane %v6349_v41, 2  ;;  %v836_v32 = vld [vmem:[%s6294_s26 + $0x98] sm:$0x3]  ;;  %v6557_v33 = vld [vmem:[%s6294_s26 + $0xa0] sm:$0xff] }
  0xa4   : >> { %5126 = vmatmul.mubr.msk.f32.gmra.mxu0 %vm539_vm0, %v6378_v54  ;;  %5176 = vmatprep.subr.mxu0 %v4625_v53  ;;  %v6394_v61 = vsel %vm1123_vm4, %v1127_v56, %v1128_v27  ;;  %v1134_v63 = vrot.slane %v824_v42, 2  ;;  %v1136_v0 = vrot.slane %v6301_v14, 2  ;;  %v1137_v3 = vrot.slane %v6305_v17, 2  ;;  %v4652_v17 = vld [vmem:[%s7325_s1 + $0x38] sm:$0xff]  ;;  %v4699_v27 = vld [vmem:[%s7325_s1 + $0x50] sm:$0xff]  ;;  %v6603_v51 = vld [vmem:[%s6294_s26 + $0xe0] sm:$0xff] }
  0xa5   : >> { %5132 = vmatmul.mubr.msk.f32.gmra.mxu1 %vm539_vm0, %v6384_v57  ;;  %5150 = vmatprep.mubr.msk.f32.mxu0 %vm539_vm0, %v1126_v58  ;;  %v6404_v4 = vsel %vm1123_vm4, %v1130_v59, %v1131_v60  ;;  %v1139_v7 = vrot.slane %v6315_v23, 2  ;;  %v1140_v8 = vrot.slane %v6322_v28, 2  ;;  %v1142_v2 = vrot.slane %v6326_v30, 2  ;;  %v6560_v34 = vld [vmem:[%s6294_s26 + $0xa8] sm:$0x3]  ;;  %v6623_v60 = vld [vmem:[%s6294_s26 + $0xf0] sm:$0xff] }
  0xa6   : >> { %5136 = vmatprep.mubr.msk.f32.mxu1 %vm539_vm0, %v6297_v12  ;;  %v6412_v6 = vsel %vm1123_vm4, %v1133_v62, %v1134_v63  ;;  %v6422_v1 = vsel %vm1123_vm4, %v1136_v0, %v1137_v3  ;;  %v1143_v10 = vrot.slane %v6336_v35, 2  ;;  %v1145_v12 = vrot.slane %v6359_v46, 2  ;;  %v6606_v52 = vld [vmem:[%s6294_s26 + $0xe8] sm:$0x3]  ;;  %v6629_v62 = vld [vmem:[%s6294_s26 + $0x100] sm:$0xff] }
  0xa7   : >> { %v6435_v11 = vsel %vm1123_vm4, %v1139_v7, %v1140_v8  ;;  %v1146_v13 = vrot.slane %v832_v47, 2  ;;  %v1399_v22 = vrot.slane %v834_v20, 1  ;;  %v1519_v28 = vrot.slane %v834_v20, 2  ;;  %v6632_v63 = vld [vmem:[%s6294_s26 + $0x108] sm:$0x3]  ;;  %v4735_v7 = vld [vmem:[%s7325_s1 + $0x70] sm:$0xff] }
  0xa8   : >> { %5151 = vmatmul.mubr.msk.f32.vlgmr.msra.gmra.mxu0 %vm539_vm0, %v6394_v61  ;;  %v6441_v15 = vsel %vm1123_vm4, %v1142_v2, %v1143_v10  ;;  %v1758_v38 = vrot.slane %v836_v32, 1  ;;  %v2167_v39 = vrot.slane %v6557_v33, 1  ;;  %v2168_v40 = vrot.slane %v6560_v34, 1  ;;  %v4726_v3 = vld [vmem:[%s7325_s1 + $0x68] sm:$0xff]  ;;  %v6660_v2 = vld [vmem:[%s6294_s26 + $0x110] sm:$0xff] }
  0xa9   : >> { %5137 = vmatmul.mubr.msk.f32.vlgmr.msra.gmra.mxu1 %vm539_vm0, %v6309_v19  ;;  %5177 = vmatpush3.msra.mxu0 %v4625_v53  ;;  %v6450_v16 = vsel %vm1123_vm4, %v1145_v12, %v1146_v13  ;;  %v2173_v53 = vrot.slane %v6587_v45, 1  ;;  %v2179_v58 = vrot.slane %v6603_v51, 1  ;;  %v2180_v59 = vrot.slane %v6606_v52, 1  ;;  %v6663_v10 = vld [vmem:[%s6294_s26 + $0x118] sm:$0x3] }
  0xaa   : >> { %5163 = vmatpush3.msra.mxu1 %v4616_v36  ;;  %5139 = vmatprep.mubr.msk.f32.mxu1 %vm539_vm0, %v6318_v24  ;;  %v6569_v36 = vld [vmem:[%s6294_s26 + $0xb0] sm:$0xff]  ;;  %v2169_v48 = vsel %vm854_vm3, %v2167_v39, %v2168_v40  ;;  %v2188_v12 = vrot.slane %v6660_v2, 1  ;;  %v2189_v13 = vrot.slane %v6663_v10, 1  ;;  %v2344_v39 = vrot.slane %v6663_v10, 2 }
  0xab   : >> { %5153 = vmatprep.mubr.msk.f32.mxu0 %vm539_vm0, %v6404_v4  ;;  %5190 = vmatprep.subr.mxu1 %v4634_v5  ;;  %v6655_v8 = vsel %vm854_vm3, %v2179_v58, %v2180_v59  ;;  %v4771_v59 = vld [vmem:[%s6294_s26 + $0x140] sm:$0xff] }
  0xac   : >> { %5154 = vmatmul.mubr.msk.f32.gmra.mxu0 %vm539_vm0, %v6412_v6  ;;  %5204 = vmatprep.subr.mxu0 %v4643_v9  ;;  %v3365_v10 = vrot.slane %v4771_v59, 1 }
  0xad   : >> { %5140 = vmatmul.mubr.msk.f32.gmra.mxu1 %vm539_vm0, %v6349_v41  ;;  %5156 = vmatprep.mubr.msk.f32.mxu0 %vm539_vm0, %v6422_v1 }
  0xae   : >> { %5142 = vmatprep.mubr.msk.f32.mxu1 %vm539_vm0, %v6301_v14 }
  0xb0   : >> { %5157 = vmatmul.mubr.msk.f32.gmra.mxu0 %vm539_vm0, %v6435_v11 }
  0xb1   : >> { %5143 = vmatmul.mubr.msk.f32.gmra.mxu1 %vm539_vm0, %v6315_v23  ;;  %5159 = vmatprep.mubr.msk.f32.mxu0 %vm539_vm0, %v6441_v15 }
  0xb2   : >> { %5145 = vmatprep.mubr.msk.f32.mxu1 %vm539_vm0, %v6326_v30 }
  0xb4   : >> { %5160 = vmatmul.mubr.msk.f32.gmra.mxu0 %vm539_vm0, %v6450_v16 }
  0xb5   : >> { %5146 = vmatmul.mubr.msk.f32.gmra.mxu1 %vm539_vm0, %v6359_v46  ;;  %5178 = vmatprep.mubr.msk.f32.mxu0 %vm539_vm0, %v6344_v37 }
  0xb6   : >> { %5164 = vmatprep.mubr.msk.f32.mxu1 %vm539_vm0, %v6309_v19  ;;  %v833_v19 = vld [vmem:[%s6294_s26 + $0x80] sm:$0xff] }
  0xb7   : >> { %v1398_v21 = vrot.slane %v833_v19, 1 }
  0xb8   : >> { %5179 = vmatmul.mubr.msk.f32.vlgmr.msra.gmra.mxu0 %vm539_vm0, %v6366_v49 }
  0xb9   : >> { %5165 = vmatmul.mubr.msk.f32.vlgmr.msra.gmra.mxu1 %vm539_vm0, %v6318_v24  ;;  %5205 = vmatpush3.msra.mxu0 %v4643_v9  ;;  %v6493_v25 = vsel %vm854_vm3, %v1398_v21, %v1399_v22  ;;  %v2185_v9 = vrot.slane %v6629_v62, 1  ;;  %v2328_v22 = vrot.slane %v6587_v45, 2 }
  0xba   : >> { %5191 = vmatpush3.msra.mxu1 %v4634_v5  ;;  %5167 = vmatprep.mubr.msk.f32.mxu1 %vm539_vm0, %v6349_v41  ;;  %v2182_v5 = vrot.slane %v6623_v60, 1 }
  0xbb   : >> { %5181 = vmatprep.mubr.msk.f32.mxu0 %vm539_vm0, %v6378_v54  ;;  %5218 = vmatprep.subr.mxu1 %v4652_v17 }
  0xbc   : >> { %5182 = vmatmul.mubr.msk.f32.gmra.mxu0 %vm539_vm0, %v6330_v31  ;;  %5232 = vmatprep.subr.mxu0 %v4661_v18 }
  0xbd   : >> { %5168 = vmatmul.mubr.msk.f32.gmra.mxu1 %vm539_vm0, %v6301_v14  ;;  %5184 = vmatprep.mubr.msk.f32.mxu0 %vm539_vm0, %v6355_v43 }
  0xbe   : >> { %5170 = vmatprep.mubr.msk.f32.mxu1 %vm539_vm0, %v6315_v23 }
  0xc0   : >> { %5185 = vmatmul.mubr.msk.f32.gmra.mxu0 %vm539_vm0, %v6369_v50 }
  0xc1   : >> { %5171 = vmatmul.mubr.msk.f32.gmra.mxu1 %vm539_vm0, %v6326_v30  ;;  %5187 = vmatprep.mubr.msk.f32.mxu0 %vm539_vm0, %v6384_v57 }
  0xc2   : >> { %5173 = vmatprep.mubr.msk.f32.mxu1 %vm539_vm0, %v6359_v46 }
  0xc4   : >> { %5188 = vmatmul.mubr.msk.f32.gmra.mxu0 %vm539_vm0, %v6493_v25 }
  0xc5   : >> { %5174 = vmatmul.mubr.msk.f32.gmra.mxu1 %vm539_vm0, %v833_v19  ;;  %5206 = vmatprep.mubr.msk.f32.mxu0 %vm539_vm0, %v6318_v24  ;;  %v1518_v24 = vrot.slane %v833_v19, 2 }
  0xc6   : >> { %5192 = vmatprep.mubr.msk.f32.mxu1 %vm539_vm0, %v6394_v61  ;;  %v6626_v61 = vld [vmem:[%s6294_s26 + $0xf8] sm:$0x3] }
  0xc8   : >> { %5207 = vmatmul.mubr.msk.f32.vlgmr.msra.gmra.mxu0 %vm539_vm0, %v6349_v41  ;;  %v6576_v41 = vld [vmem:[%s6294_s26 + $0xb8] sm:$0x3] }
  0xc9   : >> { %5193 = vmatmul.mubr.msk.f32.vlgmr.msra.gmra.mxu1 %vm539_vm0, %v6404_v4  ;;  %5233 = vmatpush3.msra.mxu0 %v4661_v18  ;;  %v2171_v44 = vrot.slane %v6576_v41, 1  ;;  %v6692_v18 = vsel %vm854_vm3, %v2188_v12, %v2189_v13  ;;  %v2326_v20 = vrot.slane %v6576_v41, 2  ;;  %v4686_v41 = vld [vmem:[%s6294_s26 + $0x120] sm:$0xff]  ;;  %v4776_v12 = vld [vmem:[%s6294_s26 + $0x168] sm:$0x3] }
  0xca   : >> { %5219 = vmatpush3.msra.mxu1 %v4652_v17  ;;  %5195 = vmatprep.mubr.msk.f32.mxu1 %vm539_vm0, %v6412_v6  ;;  %v2323_v17 = vrot.slane %v6560_v34, 2  ;;  %v2338_v34 = vrot.slane %v6626_v61, 2 }
  0xcb   : >> { %5209 = vmatprep.mubr.msk.f32.mxu0 %vm539_vm0, %v6301_v14  ;;  %5246 = vmatprep.subr.mxu1 %v4690_v26  ;;  %v835_v14 = vld [vmem:[%s6294_s26 + $0x90] sm:$0xff] }
  0xcc   : >> { %5210 = vmatmul.mubr.msk.f32.gmra.mxu0 %vm539_vm0, %v6315_v23  ;;  %5260 = vmatprep.subr.mxu0 %v4699_v27  ;;  %v1520_v23 = vsel %vm1123_vm4, %v1518_v24, %v1519_v28  ;;  %v1877_v35 = vrot.slane %v835_v14, 2  ;;  %v1757_v37 = vrot.slane %v835_v14, 1 }
  0xcd   : >> { %5196 = vmatmul.mubr.msk.f32.gmra.mxu1 %vm539_vm0, %v6422_v1  ;;  %5212 = vmatprep.mubr.msk.f32.mxu0 %vm539_vm0, %v6326_v30  ;;  %v4717_v30 = vld [vmem:[%s7325_s1 + $0x60] sm:$0xff] }
  0xce   : >> { %5198 = vmatprep.mubr.msk.f32.mxu1 %vm539_vm0, %v6435_v11  ;;  %v1759_v47 = vsel %vm854_vm3, %v1757_v37, %v1758_v38  ;;  %v2343_v38 = vrot.slane %v6660_v2, 2 }
  0xd0   : >> { %5213 = vmatmul.mubr.msk.f32.gmra.mxu0 %vm539_vm0, %v6359_v46  ;;  %v6590_v46 = vld [vmem:[%s6294_s26 + $0xc8] sm:$0x3] }
  0xd1   : >> { %5199 = vmatmul.mubr.msk.f32.gmra.mxu1 %vm539_vm0, %v6441_v15  ;;  %5215 = vmatprep.mubr.msk.f32.mxu0 %vm539_vm0, %v833_v19  ;;  %v2325_v19 = vrot.slane %v6569_v36, 2 }
  0xd2   : >> { %5201 = vmatprep.mubr.msk.f32.mxu1 %vm539_vm0, %v6450_v16 }
  0xd4   : >> { %5216 = vmatmul.mubr.msk.f32.gmra.mxu0 %vm539_vm0, %v835_v14  ;;  %v2334_v14 = vrot.slane %v6603_v51, 2 }
  0xd5   : >> { %5202 = vmatmul.mubr.msk.f32.gmra.mxu1 %vm539_vm0, %v1520_v23  ;;  %5234 = vmatprep.mubr.msk.f32.mxu0 %vm539_vm0, %v6404_v4 }
  0xd6   : >> { %5220 = vmatprep.mubr.msk.f32.mxu1 %vm539_vm0, %v6366_v49  ;;  %v6597_v49 = vld [vmem:[%s6294_s26 + $0xd0] sm:$0xff] }
  0xd7   : >> { %v2176_v56 = vrot.slane %v6597_v49, 1 }
  0xd8   : >> { %5235 = vmatmul.mubr.msk.f32.vlgmr.msra.gmra.mxu0 %vm539_vm0, %v6412_v6  ;;  %v2183_v6 = vrot.slane %v6626_v61, 1  ;;  %v6858_v61 = vld [vmem:[%s6294_s26 + $0x160] sm:$0xff] }
  0xd9   : >> { %5221 = vmatmul.mubr.msk.f32.vlgmr.msra.gmra.mxu1 %vm539_vm0, %v6378_v54  ;;  %5261 = vmatpush3.msra.mxu0 %v4699_v27  ;;  %v2174_v54 = vrot.slane %v6590_v46, 1  ;;  %v2331_v27 = vrot.slane %v6597_v49, 2 }
  0xda   : >> { %5247 = vmatpush3.msra.mxu1 %v4690_v26  ;;  %5223 = vmatprep.mubr.msk.f32.mxu1 %vm539_vm0, %v6330_v31  ;;  %v1878_v31 = vrot.slane %v836_v32, 2  ;;  %v2327_v26 = vsel %vm1123_vm4, %v2325_v19, %v2326_v20 }
  0xdb   : >> { %5237 = vmatprep.mubr.msk.f32.mxu0 %vm539_vm0, %v6422_v1  ;;  %5274 = vmatprep.subr.mxu1 %v4708_v29  ;;  %v6637_v0 = vsel %vm854_vm3, %v2173_v53, %v2174_v54  ;;  %v2186_v1 = vrot.slane %v6632_v63, 1 }
  0xdc   : >> { %5238 = vmatmul.mubr.msk.f32.gmra.mxu0 %vm539_vm0, %v6435_v11  ;;  %5288 = vmatprep.subr.mxu0 %v4717_v30  ;;  %v1879_v42 = vsel %vm1123_vm4, %v1877_v35, %v1878_v31  ;;  %v6674_v11 = vsel %vm854_vm3, %v2182_v5, %v2183_v6  ;;  %v2340_v31 = vrot.slane %v6629_v62, 2  ;;  %v6889_v5 = vld [vmem:[%s6294_s26 + $0x190] sm:$0xff]  ;;  %v6892_v6 = vld [vmem:[%s6294_s26 + $0x1a0] sm:$0xff] }
  0xdd   : >> { %5224 = vmatmul.mubr.msk.f32.gmra.mxu1 %vm539_vm0, %v6355_v43  ;;  %5240 = vmatprep.mubr.msk.f32.mxu0 %vm539_vm0, %v6441_v15  ;;  %v2170_v43 = vrot.slane %v6569_v36, 1  ;;  %v6681_v15 = vsel %vm854_vm3, %v2185_v9, %v2186_v1 }
  0xde   : >> { %5226 = vmatprep.mubr.msk.f32.mxu1 %vm539_vm0, %v6369_v50  ;;  %v6600_v50 = vld [vmem:[%s6294_s26 + $0xd8] sm:$0x3] }
  0xdf   : >> { %v6614_v55 = vsel %vm854_vm3, %v2170_v43, %v2171_v44  ;;  %v2332_v24 = vrot.slane %v6600_v50, 2  ;;  %v4762_v43 = vld [vmem:[%s7325_s1 + $0x88] sm:$0xff]  ;;  %v4791_v44 = vld [vmem:[%s7325_s1 + $0x90] sm:$0xff] }
  0xe0   : >> { %5241 = vmatmul.mubr.msk.f32.gmra.mxu0 %vm539_vm0, %v6450_v16  ;;  %v2322_v16 = vrot.slane %v6557_v33, 2 }
  0xe1   : >> { %5227 = vmatmul.mubr.msk.f32.gmra.mxu1 %vm539_vm0, %v6384_v57  ;;  %5243 = vmatprep.mubr.msk.f32.mxu0 %vm539_vm0, %v1520_v23  ;;  %v2177_v57 = vrot.slane %v6600_v50, 1  ;;  %v2335_v23 = vrot.slane %v6606_v52, 2  ;;  %v6728_v32 = vsel %vm1123_vm4, %v2331_v27, %v2332_v24  ;;  %v2596_v50 = vrot.slane %v4686_v41, 1  ;;  %v4780_v27 = vld [vmem:[%s6294_s26 + $0x188] sm:$0x3] }
  0xe2   : >> { %5229 = vmatprep.mubr.msk.f32.mxu1 %vm539_vm0, %v6493_v25  ;;  %v2324_v21 = vsel %vm1123_vm4, %v2322_v16, %v2323_v17  ;;  %v2329_v25 = vrot.slane %v6590_v46, 2  ;;  %v4687_v46 = vld [vmem:[%s6294_s26 + $0x128] sm:$0x3]  ;;  %v4778_v17 = vld [vmem:[%s6294_s26 + $0x178] sm:$0x3]  ;;  %v3526_v24 = vrot.slane %v6858_v61, 2 }
  0xe3   : >> { %v6645_v4 = vsel %vm854_vm3, %v2176_v56, %v2177_v57  ;;  %v6735_v35 = vsel %vm1123_vm4, %v2334_v14, %v2335_v23  ;;  %v2597_v52 = vrot.slane %v4687_v46, 1  ;;  %v4809_v56 = vld [vmem:[%s7325_s1 + $0xa0] sm:$0xff]  ;;  %v4689_v57 = vld [vmem:[%s6294_s26 + $0x138] sm:$0x3]  ;;  %v3375_v23 = vrot.slane %v4778_v17, 1 }
  0xe4   : >> { %5244 = vmatmul.mubr.msk.f32.gmra.mxu0 %vm539_vm0, %v1879_v42  ;;  %v6712_v28 = vsel %vm1123_vm4, %v2328_v22, %v2329_v25  ;;  %v6765_v42 = vsel %vm1123_vm4, %v2343_v38, %v2344_v39  ;;  %v3076_v9 = vrot.slane %v4689_v57, 2  ;;  %v3371_v25 = vrot.slane %v6858_v61, 1  ;;  %v4784_v39 = vld [vmem:[%s6294_s26 + $0x1a8] sm:$0x3] }
  0xe5   : >> { %5230 = vmatmul.mubr.msk.f32.gmra.mxu1 %vm539_vm0, %v1759_v47  ;;  %5262 = vmatprep.mubr.msk.f32.mxu0 %vm539_vm0, %v2169_v48  ;;  %v2716_v47 = vrot.slane %v4686_v41, 2  ;;  %v2717_v48 = vrot.slane %v4687_v46, 2  ;;  %v2598_v54 = vsel %vm854_vm3, %v2596_v50, %v2597_v52  ;;  %v3378_v38 = vrot.slane %v4780_v27, 1 }
  0xe6   : >> { %5248 = vmatprep.mubr.msk.f32.mxu1 %vm539_vm0, %v6557_v33  ;;  %v2337_v33 = vrot.slane %v6623_v60, 2  ;;  %v3535_v46 = vrot.slane %v6889_v5, 2 }
  0xe7   : >> { %v6803_v53 = vsel %vm1123_vm4, %v2716_v47, %v2717_v48  ;;  %v4845_v48 = vld [vmem:[%s7325_s1 + $0xc0] sm:$0xff] }
  0xe8   : >> { %5263 = vmatmul.mubr.msk.f32.vlgmr.msra.gmra.mxu0 %vm539_vm0, %v6614_v55  ;;  %v6748_v37 = vsel %vm1123_vm4, %v2337_v33, %v2338_v34 }
  0xe9   : >> { %5249 = vmatmul.mubr.msk.f32.vlgmr.msra.gmra.mxu1 %vm539_vm0, %v6569_v36  ;;  %5289 = vmatpush3.msra.mxu0 %v4717_v30  ;;  %v4753_v30 = vld [vmem:[%s7325_s1 + $0x80] sm:$0xff] }
  0xea   : >> { %5275 = vmatpush3.msra.mxu1 %v4708_v29  ;;  %5251 = vmatprep.mubr.msk.f32.mxu1 %vm539_vm0, %v6587_v45  ;;  %v4744_v29 = vld [vmem:[%s7325_s1 + $0x78] sm:$0xff] }
  0xeb   : >> { %5265 = vmatprep.mubr.msk.f32.mxu0 %vm539_vm0, %v6637_v0  ;;  %5302 = vmatprep.subr.mxu1 %v4726_v3 }
  0xec   : >> { %5266 = vmatmul.mubr.msk.f32.gmra.mxu0 %vm539_vm0, %v6645_v4  ;;  %5316 = vmatprep.subr.mxu0 %v4735_v7 }
  0xed   : >> { %5252 = vmatmul.mubr.msk.f32.gmra.mxu1 %vm539_vm0, %v6597_v49  ;;  %5268 = vmatprep.mubr.msk.f32.mxu0 %vm539_vm0, %v6655_v8 }
  0xee   : >> { %5254 = vmatprep.mubr.msk.f32.mxu1 %vm539_vm0, %v6603_v51 }
  0xf0   : >> { %5269 = vmatmul.mubr.msk.f32.gmra.mxu0 %vm539_vm0, %v6674_v11 }
  0xf1   : >> { %5255 = vmatmul.mubr.msk.f32.gmra.mxu1 %vm539_vm0, %v6623_v60  ;;  %5271 = vmatprep.mubr.msk.f32.mxu0 %vm539_vm0, %v6681_v15 }
  0xf2   : >> { %5257 = vmatprep.mubr.msk.f32.mxu1 %vm539_vm0, %v6629_v62 }
  0xf4   : >> { %5272 = vmatmul.mubr.msk.f32.gmra.mxu0 %vm539_vm0, %v6692_v18 }
  0xf5   : >> { %5258 = vmatmul.mubr.msk.f32.gmra.mxu1 %vm539_vm0, %v6660_v2  ;;  %5290 = vmatprep.mubr.msk.f32.mxu0 %vm539_vm0, %v6569_v36  ;;  %v2341_v36 = vrot.slane %v6632_v63, 2  ;;  %v6868_v63 = vld [vmem:[%s6294_s26 + $0x170] sm:$0xff] }
  0xf6   : >> { %5276 = vmatprep.mubr.msk.f32.mxu1 %vm539_vm0, %v2324_v21  ;;  %v3374_v14 = vrot.slane %v6868_v63, 1 }
  0xf7   : >> { %v6753_v40 = vsel %vm1123_vm4, %v2340_v31, %v2341_v36  ;;  %v4782_v31 = vld [vmem:[%s6294_s26 + $0x198] sm:$0x3] }
  0xf8   : >> { %5291 = vmatmul.mubr.msk.f32.vlgmr.msra.gmra.mxu0 %vm539_vm0, %v6587_v45  ;;  %v3536_v47 = vrot.slane %v4782_v31, 2  ;;  %v3381_v52 = vrot.slane %v4782_v31, 1 }
  0xf9   : >> { %5277 = vmatmul.mubr.msk.f32.vlgmr.msra.gmra.mxu1 %vm539_vm0, %v2327_v26  ;;  %5317 = vmatpush3.msra.mxu0 %v4735_v7 }
  0xfa   : >> { %5303 = vmatpush3.msra.mxu1 %v4726_v3  ;;  %5279 = vmatprep.mubr.msk.f32.mxu1 %vm539_vm0, %v6712_v28  ;;  %v6876_v3 = vld [vmem:[%s6294_s26 + $0x180] sm:$0xff] }
  0xfb   : >> { %5293 = vmatprep.mubr.msk.f32.mxu0 %vm539_vm0, %v6597_v49  ;;  %5330 = vmatprep.subr.mxu1 %v4744_v29  ;;  %v3532_v34 = vrot.slane %v6876_v3, 2 }
  0xfc   : >> { %5294 = vmatmul.mubr.msk.f32.gmra.mxu0 %vm539_vm0, %v6603_v51  ;;  %5344 = vmatprep.subr.mxu0 %v4753_v30 }
  0xfd   : >> { %5280 = vmatmul.mubr.msk.f32.gmra.mxu1 %vm539_vm0, %v6728_v32  ;;  %5296 = vmatprep.mubr.msk.f32.mxu0 %vm539_vm0, %v6623_v60 }
  0xfe   : >> { %5282 = vmatprep.mubr.msk.f32.mxu1 %vm539_vm0, %v6735_v35 }
 0x100   : >> { %5297 = vmatmul.mubr.msk.f32.gmra.mxu0 %vm539_vm0, %v6629_v62 }
 0x101   : >> { %5283 = vmatmul.mubr.msk.f32.gmra.mxu1 %vm539_vm0, %v6748_v37  ;;  %5299 = vmatprep.mubr.msk.f32.mxu0 %vm539_vm0, %v6660_v2 }
 0x102   : >> { %5285 = vmatprep.mubr.msk.f32.mxu1 %vm539_vm0, %v6753_v40 }
 0x104   : >> { %5300 = vmatmul.mubr.msk.f32.gmra.mxu0 %vm539_vm0, %v4686_v41 }
 0x105   : >> { %5286 = vmatmul.mubr.msk.f32.gmra.mxu1 %vm539_vm0, %v6765_v42  ;;  %5318 = vmatprep.mubr.msk.f32.mxu0 %vm539_vm0, %v2327_v26  ;;  %v3372_v26 = vrot.slane %v4776_v12, 1 }
 0x106   : >> { %5304 = vmatprep.mubr.msk.f32.mxu1 %vm539_vm0, %v6614_v55  ;;  %v4800_v55 = vld [vmem:[%s7325_s1 + $0x98] sm:$0xff] }
 0x107   : >> { %v6932_v36 = vsel %vm854_vm3, %v3371_v25, %v3372_v26 }
 0x108   : >> { %5319 = vmatmul.mubr.msk.f32.vlgmr.msra.gmra.mxu0 %vm539_vm0, %v6712_v28 }
 0x109   : >> { %5305 = vmatmul.mubr.msk.f32.vlgmr.msra.gmra.mxu1 %vm539_vm0, %v6637_v0  ;;  %5345 = vmatpush3.msra.mxu0 %v4753_v30  ;;  %v3529_v30 = vrot.slane %v6868_v63, 2 }
 0x10a   : >> { %5331 = vmatpush3.msra.mxu1 %v4744_v29  ;;  %5307 = vmatprep.mubr.msk.f32.mxu1 %vm539_vm0, %v6645_v4 }
 0x10b   : >> { %5321 = vmatprep.mubr.msk.f32.mxu0 %vm539_vm0, %v6728_v32  ;;  %5358 = vmatprep.subr.mxu1 %v4762_v43 }
 0x10c   : >> { %5322 = vmatmul.mubr.msk.f32.gmra.mxu0 %vm539_vm0, %v6735_v35  ;;  %5372 = vmatprep.subr.mxu0 %v4791_v44 }
 0x10d   : >> { %5308 = vmatmul.mubr.msk.f32.gmra.mxu1 %vm539_vm0, %v6655_v8  ;;  %5324 = vmatprep.mubr.msk.f32.mxu0 %vm539_vm0, %v6748_v37 }
 0x10e   : >> { %5310 = vmatprep.mubr.msk.f32.mxu1 %vm539_vm0, %v6674_v11 }
 0x110   : >> { %5325 = vmatmul.mubr.msk.f32.gmra.mxu0 %vm539_vm0, %v6753_v40 }
 0x111   : >> { %5311 = vmatmul.mubr.msk.f32.gmra.mxu1 %vm539_vm0, %v6681_v15  ;;  %5327 = vmatprep.mubr.msk.f32.mxu0 %vm539_vm0, %v6765_v42 }
 0x112   : >> { %5313 = vmatprep.mubr.msk.f32.mxu1 %vm539_vm0, %v6692_v18 }
 0x114   : >> { %5328 = vmatmul.mubr.msk.f32.gmra.mxu0 %vm539_vm0, %v6803_v53 }
 0x115   : >> { %5314 = vmatmul.mubr.msk.f32.gmra.mxu1 %vm539_vm0, %v2598_v54  ;;  %5346 = vmatprep.mubr.msk.f32.mxu0 %vm539_vm0, %v6637_v0  ;;  %v4827_v0 = vld [vmem:[%s7325_s1 + $0xb0] sm:$0xff] }
 0x116   : >> { %5332 = vmatprep.mubr.msk.f32.mxu1 %vm539_vm0, %v6587_v45  ;;  %v4688_v45 = vld [vmem:[%s6294_s26 + $0x130] sm:$0xff] }
 0x117   : >> { %v3075_v7 = vrot.slane %v4688_v45, 2 }
 0x118   : >> { %5347 = vmatmul.mubr.msk.f32.vlgmr.msra.gmra.mxu0 %vm539_vm0, %v6645_v4  ;;  %v4772_v4 = vld [vmem:[%s6294_s26 + $0x148] sm:$0x3] }
 0x119   : >> { %5333 = vmatmul.mubr.msk.f32.vlgmr.msra.gmra.mxu1 %vm539_vm0, %v6597_v49  ;;  %5373 = vmatpush3.msra.mxu0 %v4791_v44  ;;  %v2955_v49 = vrot.slane %v4688_v45, 1  ;;  %v3521_v1 = vrot.slane %v4772_v4, 2  ;;  %v3077_v19 = vsel %vm1123_vm4, %v3075_v7, %v3076_v9  ;;  %v3380_v44 = vrot.slane %v6889_v5, 1 }
 0x11a   : >> { %5359 = vmatpush3.msra.mxu1 %v4762_v43  ;;  %5335 = vmatprep.mubr.msk.f32.mxu1 %vm539_vm0, %v6603_v51  ;;  %v2956_v51 = vrot.slane %v4689_v57, 1  ;;  %v3384_v57 = vrot.slane %v4784_v39, 1 }
 0x11b   : >> { %5349 = vmatprep.mubr.msk.f32.mxu0 %vm539_vm0, %v6655_v8  ;;  %5386 = vmatprep.subr.mxu1 %v4800_v55  ;;  %v3520_v8 = vrot.slane %v4771_v59, 2 }
 0x11c   : >> { %5350 = vmatmul.mubr.msk.f32.gmra.mxu0 %vm539_vm0, %v6674_v11  ;;  %5400 = vmatprep.subr.mxu0 %v4809_v56  ;;  %v2957_v58 = vsel %vm854_vm3, %v2955_v49, %v2956_v51  ;;  %v3366_v11 = vrot.slane %v4772_v4, 1  ;;  %v6977_v49 = vsel %vm1123_vm4, %v3535_v46, %v3536_v47 }
 0x11d   : >> { %5336 = vmatmul.mubr.msk.f32.gmra.mxu1 %vm539_vm0, %v6623_v60  ;;  %5352 = vmatprep.mubr.msk.f32.mxu0 %vm539_vm0, %v6681_v15  ;;  %v6851_v60 = vld [vmem:[%s6294_s26 + $0x150] sm:$0xff]  ;;  %v3522_v20 = vsel %vm1123_vm4, %v3520_v8, %v3521_v1  ;;  %v4854_v1 = vld [vmem:[%s7325_s1 + $0xc8] sm:$0xff] }
 0x11e   : >> { %5338 = vmatprep.mubr.msk.f32.mxu1 %vm539_vm0, %v6629_v62  ;;  %v6863_v62 = vld [vmem:[%s7325_s1 + $0xa8] sm:$0xff]  ;;  %v3523_v13 = vrot.slane %v6851_v60, 2  ;;  %v6906_v15 = vld [vmem:[%s6294_s26 + $0x1b0] sm:$0xff]  ;;  %v3367_v22 = vsel %vm854_vm3, %v3365_v10, %v3366_v11 }
 0x11f   : >> { %v3541_v51 = vrot.slane %v6906_v15, 2  ;;  %v4788_v10 = vld [vmem:[%s6294_s26 + $0x1c8] sm:$0x3] }
 0x120   : >> { %5353 = vmatmul.mubr.msk.f32.gmra.mxu0 %vm539_vm0, %v6692_v18  ;;  %v3368_v18 = vrot.slane %v6851_v60, 1 }
 0x121   : >> { %5339 = vmatmul.mubr.msk.f32.gmra.mxu1 %vm539_vm0, %v6660_v2  ;;  %5355 = vmatprep.mubr.msk.f32.mxu0 %vm539_vm0, %v2598_v54  ;;  %v4774_v2 = vld [vmem:[%s6294_s26 + $0x158] sm:$0x3]  ;;  %v3539_v54 = vrot.slane %v4784_v39, 2 }
 0x122   : >> { %5341 = vmatprep.mubr.msk.f32.mxu1 %vm539_vm0, %v4686_v41  ;;  %v3524_v16 = vrot.slane %v4774_v2, 2  ;;  %v3369_v21 = vrot.slane %v4774_v2, 1  ;;  %v6942_v41 = vsel %vm854_vm3, %v3374_v14, %v3375_v23  ;;  %v4863_v2 = vld [vmem:[%s7325_s1 + $0xd0] sm:$0xff] }
 0x124   : >> { %5356 = vmatmul.mubr.msk.f32.gmra.mxu0 %vm539_vm0, %v2957_v58  ;;  %v6924_v29 = vsel %vm1123_vm4, %v3523_v13, %v3524_v16  ;;  %v3370_v33 = vsel %vm854_vm3, %v3368_v18, %v3369_v21 }
 0x125   : >> { %5342 = vmatmul.mubr.msk.f32.gmra.mxu1 %vm539_vm0, %v4688_v45  ;;  %5374 = vmatprep.mubr.msk.f32.mxu0 %vm539_vm0, %v4771_v59  ;;  %v3383_v45 = vrot.slane %v6892_v6, 1  ;;  %v6983_v59 = vsel %vm854_vm3, %v3380_v44, %v3381_v52 }
 0x126   : >> { %5360 = vmatprep.mubr.msk.f32.mxu1 %vm539_vm0, %v6712_v28  ;;  %v3527_v28 = vrot.slane %v4776_v12, 2  ;;  %v3795_v12 = vrot.slane %v4788_v10, 1 }
 0x127   : >> { %v6990_v7 = vsel %vm854_vm3, %v3383_v45, %v3384_v57 }
 0x128   : >> { %5375 = vmatmul.mubr.msk.f32.vlgmr.msra.gmra.mxu0 %vm539_vm0, %v6851_v60 }
 0x129   : >> { %5361 = vmatmul.mubr.msk.f32.vlgmr.msra.gmra.mxu1 %vm539_vm0, %v6728_v32  ;;  %5401 = vmatpush3.msra.mxu0 %v4809_v56  ;;  %v3530_v32 = vrot.slane %v4778_v17, 2 }
 0x12a   : >> { %5387 = vmatpush3.msra.mxu1 %v4800_v55  ;;  %5363 = vmatprep.mubr.msk.f32.mxu1 %vm539_vm0, %v6735_v35  ;;  %v3533_v35 = vrot.slane %v4780_v27, 2  ;;  %v4786_v55 = vld [vmem:[%s6294_s26 + $0x1b8] sm:$0x3] }
 0x12b   : >> { %5377 = vmatprep.mubr.msk.f32.mxu0 %vm539_vm0, %v6858_v61  ;;  %5414 = vmatprep.subr.mxu1 %v6863_v62  ;;  %v6949_v43 = vsel %vm1123_vm4, %v3529_v30, %v3530_v32  ;;  %v3542_v58 = vrot.slane %v4786_v55, 2  ;;  %v3387_v4 = vrot.slane %v4786_v55, 1 }
 0x12c   : >> { %5378 = vmatmul.mubr.msk.f32.gmra.mxu0 %vm539_vm0, %v6868_v63  ;;  %5428 = vmatprep.subr.mxu0 %v4827_v0  ;;  %v6960_v50 = vsel %vm1123_vm4, %v3532_v34, %v3533_v35 }
 0x12d   : >> { %5364 = vmatmul.mubr.msk.f32.gmra.mxu1 %vm539_vm0, %v6748_v37  ;;  %5380 = vmatprep.mubr.msk.f32.mxu0 %vm539_vm0, %v6876_v3  ;;  %v3377_v37 = vrot.slane %v6876_v3, 1  ;;  %v6999_v8 = vsel %vm1123_vm4, %v3541_v51, %v3542_v58 }
 0x12e   : >> { %5366 = vmatprep.mubr.msk.f32.mxu1 %vm539_vm0, %v6753_v40  ;;  %v6939_v40 = vsel %vm1123_vm4, %v3526_v24, %v3527_v28  ;;  %v4790_v24 = vld [vmem:[%s6294_s26 + $0x1d8] sm:$0x3] }
 0x12f   : >> { %v6967_v56 = vsel %vm854_vm3, %v3377_v37, %v3378_v38  ;;  %v4154_v37 = vrot.slane %v4790_v24, 1 }
 0x130   : >> { %5381 = vmatmul.mubr.msk.f32.gmra.mxu0 %vm539_vm0, %v6889_v5 }
 0x131   : >> { %5367 = vmatmul.mubr.msk.f32.gmra.mxu1 %vm539_vm0, %v6765_v42  ;;  %5383 = vmatprep.mubr.msk.f32.mxu0 %vm539_vm0, %v6892_v6  ;;  %v4836_v42 = vld [vmem:[%s7325_s1 + $0xb8] sm:$0xff] }
 0x132   : >> { %5369 = vmatprep.mubr.msk.f32.mxu1 %vm539_vm0, %v6803_v53  ;;  %v3538_v53 = vrot.slane %v6892_v6, 2 }
 0x134   : >> { %5384 = vmatmul.mubr.msk.f32.gmra.mxu0 %vm539_vm0, %v6906_v15 }
 0x135   : >> { %5370 = vmatmul.mubr.msk.f32.gmra.mxu1 %vm539_vm0, %v3077_v19  ;;  %5402 = vmatprep.mubr.msk.f32.mxu0 %vm539_vm0, %v3522_v20 }
 0x136   : >> { %5388 = vmatprep.mubr.msk.f32.mxu1 %vm539_vm0, %v3367_v22 }
 0x138   : >> { %5403 = vmatmul.mubr.msk.f32.vlgmr.msra.gmra.mxu0 %vm539_vm0, %v6924_v29 }
 0x139   : >> { %5389 = vmatmul.mubr.msk.f32.vlgmr.msra.gmra.mxu1 %vm539_vm0, %v3370_v33  ;;  %5429 = vmatpush3.msra.mxu0 %v4827_v0  ;;  %v3386_v0 = vrot.slane %v6906_v15, 1 }
 0x13a   : >> { %5415 = vmatpush3.msra.mxu1 %v6863_v62  ;;  %5391 = vmatprep.mubr.msk.f32.mxu1 %vm539_vm0, %v6932_v36  ;;  %v6986_v62 = vsel %vm1123_vm4, %v3538_v53, %v3539_v54 }
 0x13b   : >> { %5405 = vmatprep.mubr.msk.f32.mxu0 %vm539_vm0, %v6939_v40  ;;  %5442 = vmatprep.subr.mxu1 %v4836_v42  ;;  %v7004_v9 = vsel %vm854_vm3, %v3386_v0, %v3387_v4 }
 0x13c   : >> { %5406 = vmatmul.mubr.msk.f32.gmra.mxu0 %vm539_vm0, %v6949_v43  ;;  %5456 = vmatprep.subr.mxu0 %v4845_v48 }
 0x13d   : >> { %5392 = vmatmul.mubr.msk.f32.gmra.mxu1 %vm539_vm0, %v6942_v41  ;;  %5408 = vmatprep.mubr.msk.f32.mxu0 %vm539_vm0, %v6960_v50 }
 0x13e   : >> { %5394 = vmatprep.mubr.msk.f32.mxu1 %vm539_vm0, %v6967_v56 }
 0x140   : >> { %5409 = vmatmul.mubr.msk.f32.gmra.mxu0 %vm539_vm0, %v6977_v49 }
 0x141   : >> { %5395 = vmatmul.mubr.msk.f32.gmra.mxu1 %vm539_vm0, %v6983_v59  ;;  %5411 = vmatprep.mubr.msk.f32.mxu0 %vm539_vm0, %v6986_v62 }
 0x142   : >> { %5397 = vmatprep.mubr.msk.f32.mxu1 %vm539_vm0, %v6990_v7 }
 0x144   : >> { %5412 = vmatmul.mubr.msk.f32.gmra.mxu0 %vm539_vm0, %v6999_v8 }
 0x145   : >> { %5398 = vmatmul.mubr.msk.f32.gmra.mxu1 %vm539_vm0, %v7004_v9  ;;  %5430 = vmatprep.mubr.msk.f32.mxu0 %vm539_vm0, %v3370_v33  ;;  %v4274_v33 = vrot.slane %v4790_v24, 2 }
 0x146   : >> { %5416 = vmatprep.mubr.msk.f32.mxu1 %vm539_vm0, %v6851_v60  ;;  %v4787_v60 = vld [vmem:[%s6294_s26 + $0x1c0] sm:$0xff] }
 0x147   : >> { %v3794_v11 = vrot.slane %v4787_v60, 1 }
 0x148   : >> { %5431 = vmatmul.mubr.msk.f32.vlgmr.msra.gmra.mxu0 %vm539_vm0, %v6932_v36 }
 0x149   : >> { %5417 = vmatmul.mubr.msk.f32.vlgmr.msra.gmra.mxu1 %vm539_vm0, %v6858_v61  ;;  %5457 = vmatpush3.msra.mxu0 %v4845_v48  ;;  %v7044_v13 = vsel %vm854_vm3, %v3794_v11, %v3795_v12 }
 0x14a   : >> { %5443 = vmatpush3.msra.mxu1 %v4836_v42  ;;  %5419 = vmatprep.mubr.msk.f32.mxu1 %vm539_vm0, %v6868_v63 }
 0x14b   : >> { %5433 = vmatprep.mubr.msk.f32.mxu0 %vm539_vm0, %v6942_v41  ;;  %5470 = vmatprep.subr.mxu1 %v4854_v1 }
 0x14c   : >> { %5434 = vmatmul.mubr.msk.f32.gmra.mxu0 %vm539_vm0, %v6967_v56  ;;  %5484 = vmatprep.subr.mxu0 %v4863_v2 }
 0x14d   : >> { %5420 = vmatmul.mubr.msk.f32.gmra.mxu1 %vm539_vm0, %v6876_v3  ;;  %5436 = vmatprep.mubr.msk.f32.mxu0 %vm539_vm0, %v6983_v59 }
 0x14e   : >> { %5422 = vmatprep.mubr.msk.f32.mxu1 %vm539_vm0, %v6889_v5 }
 0x150   : >> { %5437 = vmatmul.mubr.msk.f32.gmra.mxu0 %vm539_vm0, %v6990_v7 }
 0x151   : >> { %5423 = vmatmul.mubr.msk.f32.gmra.mxu1 %vm539_vm0, %v6892_v6  ;;  %5439 = vmatprep.mubr.msk.f32.mxu0 %vm539_vm0, %v7004_v9 }
 0x152   : >> { %5425 = vmatprep.mubr.msk.f32.mxu1 %vm539_vm0, %v6906_v15 }
 0x154   : >> { %5440 = vmatmul.mubr.msk.f32.gmra.mxu0 %vm539_vm0, %v7044_v13 }
 0x155   : >> { %5426 = vmatmul.mubr.msk.f32.gmra.mxu1 %vm539_vm0, %v4787_v60  ;;  %5458 = vmatprep.mubr.msk.f32.mxu0 %vm539_vm0, %v6858_v61  ;;  %v3914_v61 = vrot.slane %v4787_v60, 2 }
 0x156   : >> { %5444 = vmatprep.mubr.msk.f32.mxu1 %vm539_vm0, %v6924_v29 }
 0x158   : >> { %5459 = vmatmul.mubr.msk.f32.vlgmr.msra.gmra.mxu0 %vm539_vm0, %v6868_v63  ;;  %v3915_v63 = vrot.slane %v4788_v10, 2 }
 0x159   : >> { %5445 = vmatmul.mubr.msk.f32.vlgmr.msra.gmra.mxu1 %vm539_vm0, %v6939_v40  ;;  %5485 = vmatpush3.msra.mxu0 %v4863_v2 }
 0x15a   : >> { %5471 = vmatpush3.msra.mxu1 %v4854_v1  ;;  %5447 = vmatprep.mubr.msk.f32.mxu1 %vm539_vm0, %v6949_v43 }
 0x15b   : >> { %5461 = vmatprep.mubr.msk.f32.mxu0 %vm539_vm0, %v6876_v3  ;;  %v4789_v3 = vld [vmem:[%s6294_s26 + $0x1d0] sm:$0xff]  ;;  %s4872_s26 = sshll.u32 %s5531_s17, 6  ;;  %s814_s17 = sadd.s32 1, %s5531_s17  }
 0x15c   : >> { %5462 = vmatmul.mubr.msk.f32.gmra.mxu0 %vm539_vm0, %v6889_v5  ;;  %v4273_v30 = vrot.slane %v4789_v3, 2  ;;  %v4153_v34 = vrot.slane %v4789_v3, 1  ;;  %s7270_s19 = scalar_lea.vmem %s6005_s11, %s4872_s26  ;;  %p811_p4 = scmp.ge.s32.totalorder %s814_s17, 8  }
 0x15d   : >> { %5448 = vmatmul.mubr.msk.f32.gmra.mxu1 %vm539_vm0, %v6960_v50  ;;  %5464 = vmatprep.mubr.msk.f32.mxu0 %vm539_vm0, %v6892_v6  ;;  %v3916_v6 = vsel %vm1123_vm4, %v3914_v61, %v3915_v63 }
 0x15e   : >> { %5450 = vmatprep.mubr.msk.f32.mxu1 %vm539_vm0, %v6977_v49  ;;  %v4155_v48 = vsel %vm854_vm3, %v4153_v34, %v4154_v37 }
 0x160   : >> { %v5124_v16 = vpop.f32.mrf.mxu0  ;;  %5465 = vmatmul.mubr.msk.f32.gmra.mxu0 %vm539_vm0, %v6906_v15 }
 0x161   : >> { %v5130_v17 = vpop.f32.mrf.mxu1  ;;  %5451 = vmatmul.mubr.msk.f32.gmra.mxu1 %vm539_vm0, %v6986_v62  ;;  %5467 = vmatprep.mubr.msk.f32.mxu0 %vm539_vm0, %v4787_v60 }
 0x162   : >> { %v963_v5 = vpop.f32.mrf.mxu0  ;;  %5453 = vmatprep.mubr.msk.f32.mxu1 %vm539_vm0, %v6999_v8 }
 0x163   : >> { %v983_v18 = vpop.f32.mrf.mxu1 }
 0x164   : >> { %v5127_v19 = vpop.f32.mrf.mxu0  ;;  %5468 = vmatmul.mubr.msk.f32.gmra.mxu0 %vm539_vm0, %v4789_v3 }
 0x165   : >> { %v5133_v20 = vpop.f32.mrf.mxu1  ;;  %5454 = vmatmul.mubr.msk.f32.gmra.mxu1 %vm539_vm0, %v3916_v6  ;;  %5486 = vmatprep.mubr.msk.f32.mxu0 %vm539_vm0, %v6939_v40 }
 0x166   : >> { %v973_v15 = vpop.f32.mrf.mxu0  ;;  %5472 = vmatprep.mubr.msk.f32.mxu1 %vm539_vm0, %v6932_v36 }
 0x167   : >> { %v993_v21 = vpop.f32.mrf.mxu1 }
 0x168   : >> { %v5152_v22 = vpop.f32.mrf.mxu0  ;;  %5487 = vmatmul.mubr.msk.f32.vlgmr.msra.gmra.mxu0 %vm539_vm0, %v6949_v43  ;;  %v4275_v43 = vsel %vm1123_vm4, %v4273_v30, %v4274_v33 }
 0x169   : >> { %v5138_v25 = vpop.f32.mrf.mxu1  ;;  %5473 = vmatmul.mubr.msk.f32.vlgmr.msra.gmra.mxu1 %vm539_vm0, %v6942_v41  ;;  %5489 = vmatprep.mubr.msk.f32.mxu0 %vm539_vm0, %v6960_v50 }
 0x16a   : >> { %v1090_v26 = vadd.f32 %v5138_v25, %v5124_v16  ;;  %v1232_v27 = vpop.f32.mrf.mxu0  ;;  %5475 = vmatprep.mubr.msk.f32.mxu1 %vm539_vm0, %v6967_v56 }
 0x16b   : >> { %v1084_v28 = vpop.f32.mrf.mxu1 }
 0x16c   : >> { %v1272_v14 = vadd.f32 %v5152_v22, %v1090_v26  ;;  %v1085_v23 = vadd.f32 %v1084_v28, %v963_v5  ;;  %v5155_v29 = vpop.f32.mrf.mxu0  ;;  %5490 = vmatmul.mubr.msk.f32.gmra.mxu0 %vm539_vm0, %v6977_v49 }
 0x16d   : >> { %v5141_v32 = vpop.f32.mrf.mxu1  ;;  %5476 = vmatmul.mubr.msk.f32.gmra.mxu1 %vm539_vm0, %v6983_v59  ;;  %5492 = vmatprep.mubr.msk.f32.mxu0 %vm539_vm0, %v6986_v62 }
 0x16e   : >> { %v1271_v35 = vadd.f32 %v1232_v27, %v1085_v23  ;;  %v1100_v31 = vadd.f32 %v5141_v32, %v5127_v19  ;;  %v1242_v36 = vpop.f32.mrf.mxu0  ;;  %5478 = vmatprep.mubr.msk.f32.mxu1 %vm539_vm0, %v6990_v7 }
 0x16f   : >> { %v1094_v38 = vpop.f32.mrf.mxu1 }
 0x170   : >> { %v1274_v39 = vadd.f32 %v5155_v29, %v1100_v31  ;;  %v1095_v40 = vadd.f32 %v1094_v38, %v973_v15  ;;  %v5158_v41 = vpop.f32.mrf.mxu0  ;;  %5493 = vmatmul.mubr.msk.f32.gmra.mxu0 %vm539_vm0, %v6999_v8 }
 0x171   : >> { %v5144_v42 = vpop.f32.mrf.mxu1  ;;  %5479 = vmatmul.mubr.msk.f32.gmra.mxu1 %vm539_vm0, %v7004_v9  ;;  %5495 = vmatprep.mubr.msk.f32.mxu0 %vm539_vm0, %v3916_v6 }
 0x172   : >> { %v1273_v44 = vadd.f32 %v1242_v36, %v1095_v40  ;;  %v1110_v46 = vadd.f32 %v5144_v42, %v5130_v17  ;;  %v1252_v47 = vpop.f32.mrf.mxu0  ;;  %5481 = vmatprep.mubr.msk.f32.mxu1 %vm539_vm0, %v7044_v13 }
 0x173   : >> { %v1104_v50 = vpop.f32.mrf.mxu1 }
 0x174   : >> { %v1276_v52 = vadd.f32 %v5158_v41, %v1110_v46  ;;  %v1105_v53 = vadd.f32 %v1104_v50, %v983_v18  ;;  %v5161_v54 = vpop.f32.mrf.mxu0  ;;  %5496 = vmatmul.mubr.msk.f32.gmra.mxu0 %vm539_vm0, %v4275_v43 }
 0x175   : >> { %v5147_v55 = vpop.f32.mrf.mxu1  ;;  %5482 = vmatmul.mubr.msk.f32.gmra.mxu1 %vm539_vm0, %v4155_v48 }
 0x176   : >> { %v1275_v56 = vadd.f32 %v1252_v47, %v1105_v53  ;;  %v1120_v45 = vadd.f32 %v5147_v55, %v5133_v20  ;;  %v1262_v57 = vpop.f32.mrf.mxu0 }
 0x177   : >> { %v1114_v49 = vpop.f32.mrf.mxu1 }
 0x178   : >> { %v1278_v51 = vadd.f32 %v5161_v54, %v1120_v45  ;;  %v1115_v58 = vadd.f32 %v1114_v49, %v993_v21  ;;  %v5180_v59 = vpop.f32.mrf.mxu0 }
 0x179   : >> { %v5166_v62 = vpop.f32.mrf.mxu1 }
 0x17a   : >> { %v1277_v0 = vadd.f32 %v1262_v57, %v1115_v58  ;;  %v1390_v4 = vadd.f32 %v5166_v62, %v1272_v14  ;;  %v1471_v7 = vpop.f32.mrf.mxu0 }
 0x17b   : >> { %v1350_v8 = vpop.f32.mrf.mxu1 }
 0x17c   : >> { %v1511_v9 = vadd.f32 %v5180_v59, %v1390_v4  ;;  %v1389_v1 = vadd.f32 %v1350_v8, %v1271_v35  ;;  %v5183_v2 = vpop.f32.mrf.mxu0 }
 0x17d   : >> { %v5169_v60 = vpop.f32.mrf.mxu1 }
 0x17e   : >> { %v1510_v10 = vadd.f32 %v1471_v7, %v1389_v1  ;;  %v1392_v11 = vadd.f32 %v5169_v60, %v1274_v39  ;;  %v1481_v12 = vpop.f32.mrf.mxu0 }
 0x17f   : >> { %v1360_v13 = vpop.f32.mrf.mxu1 }
 0x180   : >> { %v1513_v61 = vadd.f32 %v5183_v2, %v1392_v11  ;;  %v1391_v63 = vadd.f32 %v1360_v13, %v1273_v44  ;;  %v5186_v16 = vpop.f32.mrf.mxu0 }
 0x181   : >> { %v5172_v17 = vpop.f32.mrf.mxu1 }
 0x182   : >> { %v1512_v3 = vadd.f32 %v1481_v12, %v1391_v63  ;;  %v1394_v5 = vadd.f32 %v5172_v17, %v1276_v52  ;;  %v1491_v6 = vpop.f32.mrf.mxu0 }
 0x183   : >> { %v1370_v18 = vpop.f32.mrf.mxu1 }
 0x184   : >> { %v1515_v19 = vadd.f32 %v5186_v16, %v1394_v5  ;;  %v1393_v20 = vadd.f32 %v1370_v18, %v1275_v56  ;;  %v5189_v15 = vpop.f32.mrf.mxu0 }
 0x185   : >> { %v5175_v21 = vpop.f32.mrf.mxu1 }
 0x186   : >> { %v1514_v22 = vadd.f32 %v1491_v6, %v1393_v20  ;;  %v1396_v25 = vadd.f32 %v5175_v21, %v1278_v51  ;;  %v1501_v26 = vpop.f32.mrf.mxu0 }
 0x187   : >> { %v1380_v27 = vpop.f32.mrf.mxu1 }
 0x188   : >> { %v1517_v24 = vadd.f32 %v5189_v15, %v1396_v25  ;;  %v1395_v28 = vadd.f32 %v1380_v27, %v1277_v0  ;;  %v5208_v14 = vpop.f32.mrf.mxu0 }
 0x189   : >> { %v5194_v23 = vpop.f32.mrf.mxu1 }
 0x18a   : >> { %v1516_v29 = vadd.f32 %v1501_v26, %v1395_v28  ;;  %v1631_v30 = vadd.f32 %v5194_v23, %v1511_v9  ;;  %v1709_v32 = vpop.f32.mrf.mxu0 }
 0x18b   : >> { %v1591_v33 = vpop.f32.mrf.mxu1 }
 0x18c   : >> { %v1749_v34 = vadd.f32 %v5208_v14, %v1631_v30  ;;  %v1630_v35 = vadd.f32 %v1591_v33, %v1510_v10  ;;  %v5211_v31 = vpop.f32.mrf.mxu0 }
 0x18d   : >> { %v5197_v36 = vpop.f32.mrf.mxu1 }
 0x18e   : >> { %v1748_v37 = vadd.f32 %v1709_v32, %v1630_v35  ;;  %v1633_v38 = vadd.f32 %v5197_v36, %v1513_v61  ;;  %v1719_v39 = vpop.f32.mrf.mxu0 }
 0x18f   : >> { %v1601_v40 = vpop.f32.mrf.mxu1 }
 0x190   : >> { %v1751_v41 = vadd.f32 %v5211_v31, %v1633_v38  ;;  %v1632_v42 = vadd.f32 %v1601_v40, %v1512_v3  ;;  %v5214_v43 = vpop.f32.mrf.mxu0 }
 0x191   : >> { %v5200_v44 = vpop.f32.mrf.mxu1 }
 0x192   : >> { %v1750_v46 = vadd.f32 %v1719_v39, %v1632_v42  ;;  %v1635_v47 = vadd.f32 %v5200_v44, %v1515_v19  ;;  %v1729_v48 = vpop.f32.mrf.mxu0 }
 0x193   : >> { %v1611_v50 = vpop.f32.mrf.mxu1 }
 0x194   : >> { %v1753_v52 = vadd.f32 %v5214_v43, %v1635_v47  ;;  %v1634_v53 = vadd.f32 %v1611_v50, %v1514_v22  ;;  %v5217_v54 = vpop.f32.mrf.mxu0 }
 0x195   : >> { %v5203_v55 = vpop.f32.mrf.mxu1 }
 0x196   : >> { %v1752_v56 = vadd.f32 %v1729_v48, %v1634_v53  ;;  %v1637_v45 = vadd.f32 %v5203_v55, %v1517_v24  ;;  %v1739_v57 = vpop.f32.mrf.mxu0 }
 0x197   : >> { %v1621_v49 = vpop.f32.mrf.mxu1 }
 0x198   : >> { %v1755_v51 = vadd.f32 %v5217_v54, %v1637_v45  ;;  %v1636_v58 = vadd.f32 %v1621_v49, %v1516_v29  ;;  %v5236_v59 = vpop.f32.mrf.mxu0 }
 0x199   : >> { %v5222_v62 = vpop.f32.mrf.mxu1 }
 0x19a   : >> { %v1754_v0 = vadd.f32 %v1739_v57, %v1636_v58  ;;  %v1870_v4 = vadd.f32 %v5222_v62, %v1749_v34  ;;  %v1950_v7 = vpop.f32.mrf.mxu0 }
 0x19b   : >> { %v1830_v8 = vpop.f32.mrf.mxu1 }
 0x19c   : >> { %v1990_v9 = vadd.f32 %v5236_v59, %v1870_v4  ;;  %v1869_v1 = vadd.f32 %v1830_v8, %v1748_v37  ;;  %v5239_v2 = vpop.f32.mrf.mxu0 }
 0x19d   : >> { %v5225_v60 = vpop.f32.mrf.mxu1 }
 0x19e   : >> { %v1989_v10 = vadd.f32 %v1950_v7, %v1869_v1  ;;  %v1872_v11 = vadd.f32 %v5225_v60, %v1751_v41  ;;  %v1960_v12 = vpop.f32.mrf.mxu0 }
 0x19f   : >> { %v1840_v13 = vpop.f32.mrf.mxu1 }
 0x1a0   : >> { %v1992_v61 = vadd.f32 %v5239_v2, %v1872_v11  ;;  %v1871_v63 = vadd.f32 %v1840_v13, %v1750_v46  ;;  %v5242_v16 = vpop.f32.mrf.mxu0 }
 0x1a1   : >> { %v5228_v17 = vpop.f32.mrf.mxu1 }
 0x1a2   : >> { %v1991_v3 = vadd.f32 %v1960_v12, %v1871_v63  ;;  %v1874_v5 = vadd.f32 %v5228_v17, %v1753_v52  ;;  %v1970_v6 = vpop.f32.mrf.mxu0 }
 0x1a3   : >> { %v1850_v18 = vpop.f32.mrf.mxu1 }
 0x1a4   : >> { %v1994_v19 = vadd.f32 %v5242_v16, %v1874_v5  ;;  %v1873_v20 = vadd.f32 %v1850_v18, %v1752_v56  ;;  %v5245_v15 = vpop.f32.mrf.mxu0 }
 0x1a5   : >> { %v5231_v21 = vpop.f32.mrf.mxu1 }
 0x1a6   : >> { %v1993_v22 = vadd.f32 %v1970_v6, %v1873_v20  ;;  %v1876_v25 = vadd.f32 %v5231_v21, %v1755_v51  ;;  %v1980_v26 = vpop.f32.mrf.mxu0 }
 0x1a7   : >> { %v1860_v27 = vpop.f32.mrf.mxu1 }
 0x1a8   : >> { %v1996_v24 = vadd.f32 %v5245_v15, %v1876_v25  ;;  %v1875_v28 = vadd.f32 %v1860_v27, %v1754_v0  ;;  %v5264_v14 = vpop.f32.mrf.mxu0 }
 0x1a9   : >> { %v5250_v23 = vpop.f32.mrf.mxu1 }
 0x1aa   : >> { %v1995_v29 = vadd.f32 %v1980_v26, %v1875_v28  ;;  %v2152_v30 = vadd.f32 %v5250_v23, %v1990_v9  ;;  %v2275_v32 = vpop.f32.mrf.mxu0 }
 0x1ab   : >> { %v2112_v33 = vpop.f32.mrf.mxu1 }
 0x1ac   : >> { %v2315_v34 = vadd.f32 %v5264_v14, %v2152_v30  ;;  %v2151_v35 = vadd.f32 %v2112_v33, %v1989_v10  ;;  %v5267_v31 = vpop.f32.mrf.mxu0 }
 0x1ad   : >> { %v5253_v36 = vpop.f32.mrf.mxu1 }
 0x1ae   : >> { %v2314_v37 = vadd.f32 %v2275_v32, %v2151_v35  ;;  %v2154_v38 = vadd.f32 %v5253_v36, %v1992_v61  ;;  %v2285_v39 = vpop.f32.mrf.mxu0 }
 0x1af   : >> { %v2122_v40 = vpop.f32.mrf.mxu1 }
 0x1b0   : >> { %v2317_v41 = vadd.f32 %v5267_v31, %v2154_v38  ;;  %v2153_v42 = vadd.f32 %v2122_v40, %v1991_v3  ;;  %v5270_v43 = vpop.f32.mrf.mxu0 }
 0x1b1   : >> { %v5256_v44 = vpop.f32.mrf.mxu1 }
 0x1b2   : >> { %v2316_v46 = vadd.f32 %v2285_v39, %v2153_v42  ;;  %v2156_v47 = vadd.f32 %v5256_v44, %v1994_v19  ;;  %v2295_v48 = vpop.f32.mrf.mxu0 }
 0x1b3   : >> { %v2132_v50 = vpop.f32.mrf.mxu1 }
 0x1b4   : >> { %v2319_v52 = vadd.f32 %v5270_v43, %v2156_v47  ;;  %v2155_v53 = vadd.f32 %v2132_v50, %v1993_v22  ;;  %v5273_v54 = vpop.f32.mrf.mxu0 }
 0x1b5   : >> { %v5259_v55 = vpop.f32.mrf.mxu1 }
 0x1b6   : >> { %v2318_v56 = vadd.f32 %v2295_v48, %v2155_v53  ;;  %v2158_v45 = vadd.f32 %v5259_v55, %v1996_v24  ;;  %v2305_v57 = vpop.f32.mrf.mxu0 }
 0x1b7   : >> { %v2142_v49 = vpop.f32.mrf.mxu1 }
 0x1b8   : >> { %v2321_v51 = vadd.f32 %v5273_v54, %v2158_v45  ;;  %v2157_v58 = vadd.f32 %v2142_v49, %v1995_v29  ;;  %v5292_v59 = vpop.f32.mrf.mxu0 }
 0x1b9   : >> { %v5278_v62 = vpop.f32.mrf.mxu1 }
 0x1ba   : >> { %v2320_v0 = vadd.f32 %v2305_v57, %v2157_v58  ;;  %v2470_v4 = vadd.f32 %v5278_v62, %v2315_v34  ;;  %v2548_v7 = vpop.f32.mrf.mxu0 }
 0x1bb   : >> { %v2430_v8 = vpop.f32.mrf.mxu1 }
 0x1bc   : >> { %v2588_v9 = vadd.f32 %v5292_v59, %v2470_v4  ;;  %v2469_v1 = vadd.f32 %v2430_v8, %v2314_v37  ;;  %v5295_v2 = vpop.f32.mrf.mxu0 }
 0x1bd   : >> { %v5281_v60 = vpop.f32.mrf.mxu1 }
 0x1be   : >> { %v2587_v10 = vadd.f32 %v2548_v7, %v2469_v1  ;;  %v2472_v11 = vadd.f32 %v5281_v60, %v2317_v41  ;;  %v2558_v12 = vpop.f32.mrf.mxu0 }
 0x1bf   : >> { %v2440_v13 = vpop.f32.mrf.mxu1 }
 0x1c0   : >> { %v2590_v61 = vadd.f32 %v5295_v2, %v2472_v11  ;;  %v2471_v63 = vadd.f32 %v2440_v13, %v2316_v46  ;;  %v5298_v16 = vpop.f32.mrf.mxu0 }
 0x1c1   : >> { %v5284_v17 = vpop.f32.mrf.mxu1 }
 0x1c2   : >> { %v2589_v3 = vadd.f32 %v2558_v12, %v2471_v63  ;;  %v2474_v5 = vadd.f32 %v5284_v17, %v2319_v52  ;;  %v2568_v6 = vpop.f32.mrf.mxu0 }
 0x1c3   : >> { %v2450_v18 = vpop.f32.mrf.mxu1 }
 0x1c4   : >> { %v2592_v19 = vadd.f32 %v5298_v16, %v2474_v5  ;;  %v2473_v20 = vadd.f32 %v2450_v18, %v2318_v56  ;;  %v5301_v15 = vpop.f32.mrf.mxu0 }
 0x1c5   : >> { %v5287_v21 = vpop.f32.mrf.mxu1 }
 0x1c6   : >> { %v2591_v22 = vadd.f32 %v2568_v6, %v2473_v20  ;;  %v2476_v25 = vadd.f32 %v5287_v21, %v2321_v51  ;;  %v2578_v26 = vpop.f32.mrf.mxu0 }
 0x1c7   : >> { %v2460_v27 = vpop.f32.mrf.mxu1 }
 0x1c8   : >> { %v2594_v24 = vadd.f32 %v5301_v15, %v2476_v25  ;;  %v2475_v28 = vadd.f32 %v2460_v27, %v2320_v0  ;;  %v5320_v14 = vpop.f32.mrf.mxu0 }
 0x1c9   : >> { %v5306_v23 = vpop.f32.mrf.mxu1 }
 0x1ca   : >> { %v2593_v29 = vadd.f32 %v2578_v26, %v2475_v28  ;;  %v2709_v30 = vadd.f32 %v5306_v23, %v2588_v9  ;;  %v2789_v32 = vpop.f32.mrf.mxu0 }
 0x1cb   : >> { %v2669_v33 = vpop.f32.mrf.mxu1 }
 0x1cc   : >> { %v7114_v34 = vadd.f32 %v5320_v14, %v2709_v30  ;;  %v2708_v35 = vadd.f32 %v2669_v33, %v2587_v10  ;;  %v5323_v31 = vpop.f32.mrf.mxu0 }
 0x1cd   : >> { %v5309_v36 = vpop.f32.mrf.mxu1 }
 0x1ce   : >> { %v7116_v37 = vadd.f32 %v2789_v32, %v2708_v35  ;;  %v2711_v38 = vadd.f32 %v5309_v36, %v2590_v61  ;;  %v2799_v39 = vpop.f32.mrf.mxu0 }
 0x1cf   : >> { %v2679_v40 = vpop.f32.mrf.mxu1 }
 0x1d0   : >> { %v7118_v41 = vadd.f32 %v5323_v31, %v2711_v38  ;;  %v2710_v42 = vadd.f32 %v2679_v40, %v2589_v3  ;;  %v5326_v43 = vpop.f32.mrf.mxu0 }
 0x1d1   : >> { %v5312_v44 = vpop.f32.mrf.mxu1 }
 0x1d2   : >> { %v7120_v46 = vadd.f32 %v2799_v39, %v2710_v42  ;;  %v2713_v47 = vadd.f32 %v5312_v44, %v2592_v19  ;;  %v2809_v48 = vpop.f32.mrf.mxu0 }
 0x1d3   : >> { %v2689_v50 = vpop.f32.mrf.mxu1 }
 0x1d4   : >> { %v7122_v52 = vadd.f32 %v5326_v43, %v2713_v47  ;;  %v2712_v53 = vadd.f32 %v2689_v50, %v2591_v22  ;;  %v5329_v54 = vpop.f32.mrf.mxu0 }
 0x1d5   : >> { %v5315_v55 = vpop.f32.mrf.mxu1 }
 0x1d6   : >> { %v7124_v56 = vadd.f32 %v2809_v48, %v2712_v53  ;;  %v2715_v45 = vadd.f32 %v5315_v55, %v2594_v24  ;;  %v2819_v57 = vpop.f32.mrf.mxu0 }
 0x1d7   : >> { %v2699_v49 = vpop.f32.mrf.mxu1 }
 0x1d8   : >> { %v7126_v51 = vadd.f32 %v5329_v54, %v2715_v45  ;;  %v2714_v58 = vadd.f32 %v2699_v49, %v2593_v29  ;;  %v5348_v59 = vpop.f32.mrf.mxu0 }
 0x1d9   : >> { %v5334_v62 = vpop.f32.mrf.mxu1 }
 0x1da   : >> { %v7128_v0 = vadd.f32 %v2819_v57, %v2714_v58  ;;  %v3028_v4 = vpop.f32.mrf.mxu0  ;;  %v2947_v45 = vadd.f32 %v5334_v62, %v7114_v34 }
 0x1db   : >> { %v2907_v7 = vpop.f32.mrf.mxu1 }
 0x1dc   : >> { %v7130_v8 = vpop.f32.mrf.mxu0  ;;  %v2946_v58 = vadd.f32 %v2907_v7, %v7116_v37 }
 0x1dd   : >> { %v5337_v9 = vpop.f32.mrf.mxu1 }
 0x1de   : >> { %v7132_v1 = vpop.f32.mrf.mxu0 }
 0x1df   : >> { %v2917_v2 = vpop.f32.mrf.mxu1 }
 0x1e0   : >> { %v7134_v60 = vpop.f32.mrf.mxu0  ;;  %v2948_v34 = vadd.f32 %v2917_v2, %v7120_v46 }
 0x1e1   : >> { %v5340_v10 = vpop.f32.mrf.mxu1 }
 0x1e2   : >> { %v7136_v11 = vpop.f32.mrf.mxu0  ;;  %v2951_v62 = vadd.f32 %v5340_v10, %v7122_v52 }
 0x1e3   : >> { %v2927_v12 = vpop.f32.mrf.mxu1 }
 0x1e4   : >> { %v7138_v13 = vpop.f32.mrf.mxu0  ;;  %v3072_v46 = vadd.f32 %v7134_v60, %v2951_v62 }
 0x1e5   : >> { %v7140_v61 = vpop.f32.mrf.mxu1 }
 0x1e6   : >> { %v7142_v63 = vpop.f32.mrf.mxu0 }
 0x1e7   : >> { %v7144_v16 = vpop.f32.mrf.mxu1 }
 0x1e8   : >> { %v5376_v17 = vpop.f32.mrf.mxu0 }
 0x1e9   : >> { %v5362_v3 = vpop.f32.mrf.mxu1 }
 0x1ea   : >> { %v3310_v5 = vpop.f32.mrf.mxu0 }
 0x1eb   : >> { %v3148_v6 = vpop.f32.mrf.mxu1 }
 0x1ec   : >> { %v7146_v18 = vpop.f32.mrf.mxu0 }
 0x1ed   : >> { %v5365_v19 = vpop.f32.mrf.mxu1 }
 0x1ee   : >> { %v7148_v20 = vpop.f32.mrf.mxu0 }
 0x1ef   : >> { %v3158_v15 = vpop.f32.mrf.mxu1 }
 0x1f0   : >> { %v7150_v21 = vpop.f32.mrf.mxu0 }
 0x1f1   : >> { %v5368_v22 = vpop.f32.mrf.mxu1 }
 0x1f2   : >> { %v7152_v25 = vpop.f32.mrf.mxu0 }
 0x1f3   : >> { %v7154_v26 = vpop.f32.mrf.mxu1 }
 0x1f4   : >> { %v7156_v27 = vpop.f32.mrf.mxu0 }
 0x1f5   : >> { %v7158_v24 = vpop.f32.mrf.mxu1 }
 0x1f6   : >> { %v7160_v28 = vpop.f32.mrf.mxu0 }
 0x1f7   : >> { %7332 = vst [vmem:[#allocation3_spill] sm:$0xff] %v7160_v28  ;;  %v7162_v14 = vpop.f32.mrf.mxu1 }
 0x1f8   : >> { %v5404_v23 = vpop.f32.mrf.mxu0 }
 0x1f9   : >> { %v5390_v29 = vpop.f32.mrf.mxu1 }
 0x1fa   : >> { %v7164_v30 = vpop.f32.mrf.mxu0 }
 0x1fb   : >> { %v3473_v32 = vpop.f32.mrf.mxu1 }
 0x1fc   : >> { %v7166_v33 = vpop.f32.mrf.mxu0 }
 0x1fd   : >> { %v5393_v35 = vpop.f32.mrf.mxu1 }
 0x1fe   : >> { %v7168_v31 = vpop.f32.mrf.mxu0 }
 0x1ff   : >> { %7333 = vst [vmem:[#allocation4_spill] sm:$0xff] %v7168_v31  ;;  %v7170_v36 = vpop.f32.mrf.mxu1 }
 0x200   : >> { %v7172_v38 = vpop.f32.mrf.mxu0 }
 0x201   : >> { %7334 = vst [vmem:[#allocation5_spill] sm:$0xff] %v7172_v38  ;;  %v7174_v39 = vpop.f32.mrf.mxu1 }
 0x202   : >> { %v7176_v40 = vpop.f32.mrf.mxu0 }
 0x203   : >> { %7335 = vst [vmem:[#allocation6_spill] sm:$0xff] %v7176_v40  ;;  %v7178_v42 = vpop.f32.mrf.mxu1 }
 0x204   : >> { %v7180_v43 = vpop.f32.mrf.mxu0 }
 0x205   : >> { %7336 = vst [vmem:[#allocation7_spill] sm:$0xff] %v7180_v43  ;;  %v7182_v44 = vpop.f32.mrf.mxu1 }
 0x206   : >> { %7337 = vst [vmem:[#allocation8_spill] sm:$0xff] %v7182_v44  ;;  %v7184_v47 = vpop.f32.mrf.mxu0 }
 0x207   : >> { %7338 = vst [vmem:[#allocation9_spill] sm:$0xff] %v7184_v47  ;;  %v7186_v48 = vpop.f32.mrf.mxu1  ;;  %v3068_v47 = vadd.f32 %v5348_v59, %v2947_v45 }
 0x208   : >> { %7339 = vst [vmem:[#allocation10_spill] sm:$0xff] %v7186_v48  ;;  %v7188_v50 = vpop.f32.mrf.mxu0  ;;  %v2949_v48 = vadd.f32 %v5337_v9, %v7118_v41  ;;  %v2950_v9 = vadd.f32 %v2927_v12, %v7124_v56 }
 0x209   : >> { %v5418_v53 = vpop.f32.mrf.mxu1  ;;  %v3188_v38 = vadd.f32 %v5362_v3, %v3068_v47  ;;  %v3069_v47 = vadd.f32 %v7132_v1, %v2948_v34  ;;  %v2952_v1 = vadd.f32 %v7144_v16, %v7128_v0 }
 0x20a   : >> { %v7190_v54 = vpop.f32.mrf.mxu0  ;;  %v3070_v7 = vadd.f32 %v7130_v8, %v2949_v48  ;;  %v3071_v56 = vadd.f32 %v7136_v11, %v2950_v9 }
 0x20b   : >> { %7340 = vst [vmem:[#allocation11_spill] sm:$0xff] %v7190_v54  ;;  %v3746_v55 = vpop.f32.mrf.mxu1  ;;  %v3067_v54 = vadd.f32 %v3028_v4, %v2946_v58  ;;  %v3350_v45 = vadd.f32 %v5376_v17, %v3188_v38  ;;  %v3189_v48 = vadd.f32 %v3158_v15, %v3069_v47  ;;  %v3073_v0 = vadd.f32 %v7142_v63, %v2952_v1 }
 0x20c   : >> { %v7193_v57 = vpop.f32.mrf.mxu0  ;;  %v3190_v4 = vadd.f32 %v5365_v19, %v3070_v7 }
 0x20d   : >> { %v5421_v49 = vpop.f32.mrf.mxu1  ;;  %v3513_v10 = vadd.f32 %v5390_v29, %v3350_v45  ;;  %v7343_v45 = vld [vmem:[#allocation5_spill] sm:$0xff] }
 0x20e   : >> { %v7196_v43 = vpop.f32.mrf.mxu0  ;;  %v3352_v12 = vadd.f32 %v7146_v18, %v3190_v4 }
 0x20f   : >> { %7341 = vst [vmem:[#allocation12_spill] sm:$0xff] %v7196_v43  ;;  %v7198_v40 = vpop.f32.mrf.mxu1  ;;  %v3187_v43 = vadd.f32 %v3148_v6, %v3067_v54  ;;  %v2953_v6 = vadd.f32 %v7140_v61, %v7126_v51  ;;  %v3192_v54 = vadd.f32 %v5368_v22, %v3072_v46  ;;  %v3668_v29 = vadd.f32 %v5404_v23, %v3513_v10 }
 0x210   : >> { %v7201_v44 = vpop.f32.mrf.mxu0  ;;  %v3515_v38 = vadd.f32 %v5393_v35, %v3352_v12  ;;  %v3351_v61 = vadd.f32 %v7148_v20, %v3189_v48 }
 0x211   : >> { %v7203_v28 = vpop.f32.mrf.mxu1  ;;  %v3349_v2 = vadd.f32 %v3310_v5, %v3187_v43  ;;  %v3191_v5 = vadd.f32 %v7154_v26, %v3071_v56  ;;  %v3074_v51 = vadd.f32 %v7138_v13, %v2953_v6  ;;  %v3354_v15 = vadd.f32 %v7150_v21, %v3192_v54  ;;  %v7347_v6 = vld [vmem:[#allocation6_spill] sm:$0xff] }
 0x212   : >> { %v7205_v31 = vpop.f32.mrf.mxu0  ;;  %v3786_v22 = vadd.f32 %v5418_v53, %v3668_v29  ;;  %v3514_v26 = vadd.f32 %v7170_v36, %v3351_v61  ;;  %v3670_v20 = vadd.f32 %v7166_v33, %v3515_v38  ;;  %v7344_v33 = vld [vmem:[#allocation11_spill] sm:$0xff] }
 0x213   : >> { %v7209_v37 = vpop.f32.mrf.mxu1  ;;  %v3512_v17 = vadd.f32 %v3473_v32, %v3349_v2  ;;  %v3194_v16 = vadd.f32 %v7158_v24, %v3074_v51  ;;  %v3517_v23 = vadd.f32 %v7174_v39, %v3354_v15  ;;  %v3353_v13 = vadd.f32 %v7152_v25, %v3191_v5  ;;  %v7342_v39 = vld [vmem:[#allocation4_spill] sm:$0xff] }
 0x214   : >> { %v7212_v59 = vpop.f32.mrf.mxu0  ;;  %v3907_v63 = vadd.f32 %v7188_v50, %v3786_v22  ;;  %v3788_v7 = vadd.f32 %v5421_v49, %v3670_v20  ;;  %v3669_v9 = vadd.f32 %v7342_v39, %v3514_v26  ;;  %v7346_v2 = vld [vmem:[#allocation8_spill] sm:$0xff] }
 0x215   : >> { %v7214_v41 = vpop.f32.mrf.mxu1  ;;  %v3667_v18 = vadd.f32 %v7164_v30, %v3512_v17  ;;  %v3193_v30 = vadd.f32 %v7162_v14, %v3073_v0  ;;  %v3516_v62 = vadd.f32 %v7178_v42, %v3353_v13  ;;  %v3356_v36 = vadd.f32 %v7156_v27, %v3194_v16  ;;  %v7345_v14 = vld [vmem:[#allocation3_spill] sm:$0xff]  ;;  %v7351_v16 = vld [vmem:[#allocation9_spill] sm:$0xff] }
 0x216   : >> { %v7217_v3 = vpop.f32.mrf.mxu0  ;;  %v3672_v25 = vadd.f32 %v7343_v45, %v3517_v23  ;;  %v3787_v49 = vadd.f32 %v7198_v40, %v3669_v9  ;;  %v3909_v54 = vadd.f32 %v7193_v57, %v3788_v7  ;;  %v7349_v40 = vld [vmem:[#allocation7_spill] sm:$0xff]  ;;  %v7350_v61 = vld [vmem:[#allocation12_spill] sm:$0xff] }
 0x217   : >> { %v7221_v52 = vpop.f32.mrf.mxu1  ;;  %v3785_v21 = vadd.f32 %v3746_v55, %v3667_v18  ;;  %v3355_v42 = vadd.f32 %v7345_v14, %v3193_v30  ;;  %v3519_v50 = vadd.f32 %v7346_v2, %v3356_v36  ;;  %v3671_v48 = vadd.f32 %v7347_v6, %v3516_v62 }
 0x218   : >> { %v5460_v8 = vpop.f32.mrf.mxu0  ;;  %v3790_v10 = vadd.f32 %v7203_v28, %v3672_v25  ;;  %v3908_v15 = vadd.f32 %v7350_v61, %v3787_v49 }
 0x219   : >> { %v5446_v58 = vpop.f32.mrf.mxu1  ;;  %v3906_v55 = vadd.f32 %v7344_v33, %v3785_v21  ;;  %v3789_v5 = vadd.f32 %v7209_v37, %v3671_v48  ;;  %v3674_v28 = vadd.f32 %v7349_v40, %v3519_v50 }
 0x21a   : >> { %v4105_v19 = vpop.f32.mrf.mxu0  ;;  %v4027_v47 = vadd.f32 %v5446_v58, %v3907_v63  ;;  %v7348_v58 = vld [vmem:[#allocation10_spill] sm:$0xff]  ;;  %v3911_v18 = vadd.f32 %v7201_v44, %v3790_v10 }
 0x21b   : >> { %v3987_v60 = vpop.f32.mrf.mxu1  ;;  %v3518_v17 = vadd.f32 %v7348_v58, %v3355_v42  ;;  %v3792_v23 = vadd.f32 %v7214_v41, %v3674_v28 }
 0x21c   : >> { %v5463_v43 = vpop.f32.mrf.mxu0  ;;  %v4026_v56 = vadd.f32 %v3987_v60, %v3906_v55  ;;  %v4145_v29 = vadd.f32 %v5460_v8, %v4027_v47 }
 0x21d   : >> { %v5449_v11 = vpop.f32.mrf.mxu1  ;;  %v3673_v26 = vadd.f32 %v7351_v16, %v3518_v17  ;;  %v3913_v36 = vadd.f32 %v7212_v59, %v3792_v23 }
 0x21e   : >> { %v7234_v32 = vpop.f32.mrf.mxu0  ;;  %v4029_v38 = vadd.f32 %v5449_v11, %v3909_v54  ;;  %v4144_v60 = vadd.f32 %v4105_v19, %v4026_v56  ;;  %v3910_v11 = vadd.f32 %v7205_v31, %v3789_v5 }
 0x21f   : >> { %v3997_v35 = vpop.f32.mrf.mxu1  ;;  %v3791_v19 = vadd.f32 %v7221_v52, %v3673_v26 }
 0x220   : >> { %v5466_v34 = vpop.f32.mrf.mxu0  ;;  %v4028_v37 = vadd.f32 %v3997_v35, %v3908_v15  ;;  %v4147_v20 = vadd.f32 %v5463_v43, %v4029_v38 }
 0x221   : >> { %v5452_v53 = vpop.f32.mrf.mxu1  ;;  %v3912_v33 = vadd.f32 %v7217_v3, %v3791_v19 }
 0x222   : >> { %v7245_v24 = vpop.f32.mrf.mxu0  ;;  %v4031_v13 = vadd.f32 %v5452_v53, %v3911_v18  ;;  %v4146_v39 = vadd.f32 %v7234_v32, %v4028_v37 }
 0x223   : >> { %v4007_v4 = vpop.f32.mrf.mxu1 }
 0x224   : >> { %v7251_v46 = vpop.f32.mrf.mxu0  ;;  %v4030_v63 = vadd.f32 %v4007_v4, %v3910_v11  ;;  %v4149_v31 = vadd.f32 %v5466_v34, %v4031_v13 }
 0x225   : >> { %v5455_v27 = vpop.f32.mrf.mxu1 }
 0x226   : >> { %v7259_v12 = vpop.f32.mrf.mxu0  ;;  %v4033_v55 = vadd.f32 %v5455_v27, %v3913_v36  ;;  %v4148_v32 = vadd.f32 %v7245_v24, %v4030_v63 }
 0x227   : >> { %v4017_v1 = vpop.f32.mrf.mxu1 }
 0x228   : >> { %v5488_v51 = vpop.f32.mrf.mxu0  ;;  %v4032_v49 = vadd.f32 %v4017_v1, %v3912_v33  ;;  %v4151_v56 = vadd.f32 %v7251_v46, %v4033_v55 }
 0x229   : >> { %v5474_v57 = vpop.f32.mrf.mxu1 }
 0x22a   : >> { %v4266_v22 = vadd.f32 %v5474_v57, %v4145_v29  ;;  %v4346_v0 = vpop.f32.mrf.mxu0  ;;  %v4150_v38 = vadd.f32 %v7259_v12, %v4032_v49 }
 0x22b   : >> { %v4226_v8 = vpop.f32.mrf.mxu1 }
 0x22c   : >> { %v4386_v21 = vadd.f32 %v5488_v51, %v4266_v22  ;;  %v4265_v44 = vadd.f32 %v4226_v8, %v4144_v60  ;;  %v5491_v30 = vpop.f32.mrf.mxu0 }
 0x22d   : >> { %v5477_v62 = vpop.f32.mrf.mxu1 }
 0x22e   : >> { %4396 = vst.msk [vmem:[%s7270_s19 + $0x8] sm:$0xff] %vm539_vm0, %v4386_v21  ;;  %v4429_v41 = vmul.f32 %v4386_v21, %v4386_v21  ;;  %v4385_v35 = vadd.f32 %v4346_v0, %v4265_v44  ;;  %v4268_v53 = vadd.f32 %v5477_v62, %v4147_v20  ;;  %v4356_v7 = vpop.f32.mrf.mxu0  ;;  %v4405_v9 = vsel %vm539_vm0, %v4386_v21, 0.0 }
 0x22f   : >> { %v4236_v43 = vpop.f32.mrf.mxu1 }
 0x230   : >> { %4395 = vst.msk [vmem:[%s7270_s19] sm:$0xff] %vm539_vm0, %v4385_v35  ;;  %v4404_v52 = vsel %vm539_vm0, %v4385_v35, 0.0  ;;  %v4428_v45 = vmul.f32 %v4385_v35, %v4385_v35  ;;  %v4388_v25 = vadd.f32 %v5491_v30, %v4268_v53  ;;  %v5494_v4 = vpop.f32.mrf.mxu0  ;;  %v4267_v14 = vadd.f32 %v4236_v43, %v4146_v39 }
 0x231   : >> { %v4406_v47 = vadd.f32 %v4405_v9, %v4404_v52  ;;  %v5480_v59 = vpop.f32.mrf.mxu1  ;;  %v4437_v34 = vsel %vm539_vm0, %v4429_v41, 0.0 }
 0x232   : >> { %v4436_v42 = vsel %vm539_vm0, %v4428_v45, 0.0  ;;  %4398 = vst.msk [vmem:[%s7270_s19 + $0x18] sm:$0xff] %vm539_vm0, %v4388_v25  ;;  %v4270_v2 = vadd.f32 %v5480_v59, %v4149_v31  ;;  %v4366_v50 = vpop.f32.mrf.mxu0  ;;  %v4387_v6 = vadd.f32 %v4356_v7, %v4267_v14  ;;  %v4431_v27 = vmul.f32 %v4388_v25, %v4388_v25 }
 0x233   : >> { %v4438_v10 = vadd.f32 %v4437_v34, %v4436_v42  ;;  %v4246_v3 = vpop.f32.mrf.mxu1  ;;  %v4409_v51 = vsel %vm539_vm0, %v4388_v25, 0.0 }
 0x234   : >> { %v4390_v48 = vadd.f32 %v5494_v4, %v4270_v2  ;;  %v4269_v54 = vadd.f32 %v4246_v3, %v4148_v32  ;;  %4397 = vst.msk [vmem:[%s7270_s19 + $0x10] sm:$0xff] %vm539_vm0, %v4387_v6  ;;  %v4407_v24 = vsel %vm539_vm0, %v4387_v6, 0.0  ;;  %v4430_v58 = vmul.f32 %v4387_v6, %v4387_v6  ;;  %v5497_v1 = vpop.f32.mrf.mxu0  ;;  %v4427_v32 = vld [vmem:[%s6021_s16] sm:$0x1] }
 0x235   : >> { %v5483_v17 = vpop.f32.mrf.mxu1  ;;  %v4408_v5 = vadd.f32 %v4407_v24, %v4406_v47  ;;  %v4441_v61 = vsel %vm539_vm0, %v4431_v27, 0.0  ;;  %v4403_v47 = vld [vmem:[%s5995_s29] sm:$0x1] }
 0x236   : >> { %4400 = vst.msk [vmem:[%s7270_s19 + $0x28] sm:$0xff] %vm539_vm0, %v4390_v48  ;;  %v4389_v29 = vadd.f32 %v4366_v50, %v4269_v54  ;;  %v4439_v40 = vsel %vm539_vm0, %v4430_v58, 0.0  ;;  %v4272_v28 = vadd.f32 %v5483_v17, %v4151_v56  ;;  %v4433_v60 = vmul.f32 %v4390_v48, %v4390_v48  ;;  %v4376_v23 = vpop.f32.mrf.mxu0 }
 0x237   : >> { %v4256_v46 = vpop.f32.mrf.mxu1  ;;  %v4440_v15 = vadd.f32 %v4439_v40, %v4438_v10  ;;  %v4410_v18 = vadd.f32 %v4409_v51, %v4408_v5  ;;  %v4413_v37 = vsel %vm539_vm0, %v4390_v48, 0.0 }
 0x238   : >> { %4399 = vst.msk [vmem:[%s7270_s19 + $0x20] sm:$0xff] %vm539_vm0, %v4389_v29  ;;  %v4411_v57 = vsel %vm539_vm0, %v4389_v29, 0.0  ;;  %v4432_v22 = vmul.f32 %v4389_v29, %v4389_v29  ;;  %v4392_v0 = vadd.f32 %v5497_v1, %v4272_v28  ;;  %v4271_v12 = vadd.f32 %v4256_v46, %v4150_v38 }
 0x239   : >> { %v4412_v16 = vadd.f32 %v4411_v57, %v4410_v18  ;;  %v4442_v26 = vadd.f32 %v4441_v61, %v4440_v15  ;;  %v4445_v21 = vsel %vm539_vm0, %v4433_v60, 0.0 }
 0x23a   : >> { %v4443_v13 = vsel %vm539_vm0, %v4432_v22, 0.0  ;;  %4402 = vst.msk [vmem:[%s7270_s19 + $0x38] sm:$0xff] %vm539_vm0, %v4392_v0  ;;  %v4391_v8 = vadd.f32 %v4376_v23, %v4271_v12  ;;  %v4435_v44 = vmul.f32 %v4392_v0, %v4392_v0  ;;  %v4417_v41 = vsel %vm539_vm0, %v4392_v0, 0.0 }
 0x23b   : >> { %v4444_v11 = vadd.f32 %v4443_v13, %v4442_v26  ;;  %v4414_v20 = vadd.f32 %v4413_v37, %v4412_v16 }
 0x23c   : >> { %4401 = vst.msk [vmem:[%s7270_s19 + $0x30] sm:$0xff] %vm539_vm0, %v4391_v8  ;;  %v4415_v30 = vsel %vm539_vm0, %v4391_v8, 0.0  ;;  %v4434_v19 = vmul.f32 %v4391_v8, %v4391_v8  ;;  %v4449_v36 = vsel %vm539_vm0, %v4435_v44, 0.0 }
 0x23d   : >> { %v4416_v62 = vadd.f32 %v4415_v30, %v4414_v20  ;;  %v4446_v63 = vadd.f32 %v4445_v21, %v4444_v11 }
 0x23e   : >> { %v4447_v35 = vsel %vm539_vm0, %v4434_v19, 0.0 }
 0x23f   : >> { %v4418_v53 = vadd.f32 %v4417_v41, %v4416_v62  ;;  %v4448_v7 = vadd.f32 %v4447_v35, %v4446_v63 }
 0x241   : >> { %v4419_v39 = vrot.slane %v4418_v53, 4  ;;  %v4450_v31 = vadd.f32 %v4449_v36, %v4448_v7 }
 0x243   : >> { %v4420_v43 = vadd.f32 %v4419_v39, %v4418_v53  ;;  %v4451_v9 = vrot.slane %v4450_v31, 4 }
 0x245   : >> { %v4421_v52 = vrot.slane %v4420_v43, 2  ;;  %v4452_v45 = vadd.f32 %v4451_v9, %v4450_v31 }
 0x247   : >> { %v4422_v25 = vadd.f32 %v4421_v52, %v4420_v43  ;;  %v4453_v4 = vrot.slane %v4452_v45, 2 }
 0x249   : >> { %v4423_v33 = vrot.slane %v4422_v25, 1  ;;  %v4454_v55 = vadd.f32 %v4453_v4, %v4452_v45 }
 0x24b   : >> { %v4424_v14 = vadd.f32 %v4423_v33, %v4422_v25  ;;  %v4455_v59 = vrot.slane %v4454_v55, 1 }
 0x24d   : >> { %v4425_v34 = vadd.f32 %v4424_v14, %v4403_v47  ;;  %v4456_v42 = vadd.f32 %v4455_v59, %v4454_v55  ;;  %813 = sbr.rel (!%p811_p4) target bundleno = 148 (0x94), region = 128 }
 0x24f   : >> { %4426 = vst.msk [vmem:[%s5995_s29] sm:$0x1] %vm806_vm2, %v4425_v34  ;;  %v4457_v2 = vadd.f32 %v4456_v42, %v4427_v32 }
 0x251   : >> { %4458 = vst.msk [vmem:[%s6021_s16] sm:$0x1] %vm806_vm2, %v4457_v2 }
 0x252 PF: > { %s17_s21 = sadd.s32 1, %s5527_s21  }
 0x253   : > { %p14_p5 = scmp.ge.s32.totalorder %s17_s21, 4  }
 0x255   :  { %16 = sbr.rel (!%p14_p5) target bundleno = 1 (0x1), region = 139 }

// kernel: basic_block_forward.3
= control target key start
LH: loop header
LB: loop body
LE: loop exit
PB: predicated region body
PF: predicated region fallthrough
CT: control target
= control target key end

     0   :  { %s5857_s27 = smov 0   ;;  %s7661_s0 = inlined_call_operand.vmem [shape: f32[2,8,8,8,4], index: 0, kind: input, shape index: {}]   ;;  %s7662_s1 = inlined_call_operand.vmem [shape: f32[27,4,8], index: 1, kind: input, shape index: {}]   ;;  %s7663_s2 = inlined_call_operand.vmem [shape: f32[4,8], index: 2, kind: input, shape index: {}]   ;;  %s7664_s3 = inlined_call_operand.vmem [shape: f32[2,8,8,8,8], index: 3, kind: output, shape index: {0}]   ;;  %s7665_s4 = inlined_call_operand.vmem [shape: f32[2,1,8], index: 4, kind: output, shape index: {1}]   ;;  %s7666_s5 = inlined_call_operand.vmem [shape: f32[2,1,8], index: 5, kind: output, shape index: {2}]   ;;  %s7667_s6 = inlined_call_operand.vmem [shape: f32[2,8,8,8,8], index: 6, kind: output, shape index: {3}]   ;;  %s7668_s7 = inlined_call_operand.vmem [shape: f32[2,1,8], index: 7, kind: output, shape index: {4}]   ;;  %s7669_s8 = inlined_call_operand.vmem [shape: f32[2,1,8], index: 8, kind: output, shape index: {5}]  }
   0x1 LB: > { %s4799_s28 = sadd.s32 4294967295, %s5805_s27   ;;  %p4803_p0 = scmp.ge.s32.totalorder %s5805_s27, 1  ;;  %s5805_s27 = sphi %s5857_s27, %s19_s27  }
   0x2   : > { %p273_p1 = scmp.lt.s32.totalorder %s5805_s27, 3 }
   0x4   : > { %p274_p2 = pnand %p4803_p0, %p273_p1 }
   0x5   : > { %p5867_p3 = scmp.lt.s32.totalorder (!%p274_p2), %s4799_s28, 1 }
   0x6   : > { %277 = sbr.rel (%p274_p2) target bundleno = 598 (0x256), region = 32 }
   0xb   : > { %vm415_vm0 = vcmask 31744   ;;  %vm417_vm1 = vcmask 25600   ;;  %v5811_v0 = vmov 0.0   ;;  %s7684_s28 = smov (!%p5867_p3, %s4799_s28), 1  ;;  %vm682_vm2 = vcmask 57344  }
   0xc   : > { %439 = vst.msk [vmem:[#allocation2 + $0xb0] sm:$0xff] %vm415_vm0, %v5811_v0  ;;  %416 = vst.msk [vmem:[#allocation2] sm:$0xff] %vm415_vm0, %v5811_v0  ;;  %s6275_s30 = sshll.u32 %s7684_s28, 9  ;;  %s6280_s11 = scalar_lea.vmem %s7665_s4, %s7684_s28 }
   0xd   : > { %419 = vst.msk [vmem:[#allocation2 + $0x10] sm:$0xff] %vm415_vm0, %v5811_v0  ;;  %421 = vst.msk [vmem:[#allocation2 + $0x20] sm:$0xff] %vm415_vm0, %v5811_v0  ;;  %s6286_s14 = scalar_lea.vmem %s7661_s0, %s6275_s30  ;;  %s333_s17 = scalar_lea.vmem %s7664_s3, %s6275_s30 }
   0xe   : > { %423 = vst.msk [vmem:[#allocation2 + $0x30] sm:$0xff] %vm415_vm0, %v5811_v0  ;;  %425 = vst.msk [vmem:[#allocation2 + $0x40] sm:$0xff] %vm415_vm0, %v5811_v0  ;;  %s344_s20 = scalar_lea.vmem %s7667_s6, %s6275_s30  ;;  %v351_v1 = vld [vmem:[%s6286_s14] sm:$0xff]  ;;  %v352_v2 = vld [vmem:[%s6286_s14 + $0x8] sm:$0xff]  ;;  %s6305_s23 = scalar_lea.vmem %s7666_s5, %s7684_s28 }
   0xf   : > { %427 = vst.msk [vmem:[#allocation2 + $0x50] sm:$0xff] %vm415_vm0, %v5811_v0  ;;  %429 = vst.msk [vmem:[#allocation2 + $0x60] sm:$0xff] %vm415_vm0, %v5811_v0  ;;  %v353_v3 = vld [vmem:[%s6286_s14 + $0x10] sm:$0xff]  ;;  %v354_v4 = vld [vmem:[%s6286_s14 + $0x18] sm:$0xff]  ;;  %s6319_s26 = scalar_lea.vmem %s7668_s7, %s7684_s28  ;;  %s6324_s10 = scalar_lea.vmem %s7669_s8, %s7684_s28 }
  0x10   : > { %431 = vst.msk [vmem:[#allocation2 + $0x70] sm:$0xff] %vm415_vm0, %v5811_v0  ;;  %433 = vst.msk [vmem:[#allocation2 + $0x80] sm:$0xff] %vm415_vm0, %v5811_v0  ;;  %v355_v5 = vld [vmem:[%s6286_s14 + $0x20] sm:$0xff]  ;;  %v356_v6 = vld [vmem:[%s6286_s14 + $0x28] sm:$0xff]  ;;  %s6451_s28 = smov 0  }
  0x11   : > { %435 = vst.msk [vmem:[#allocation2 + $0x90] sm:$0xff] %vm415_vm0, %v5811_v0  ;;  %437 = vst.msk [vmem:[#allocation2 + $0xa0] sm:$0xff] %vm415_vm0, %v5811_v0  ;;  %v357_v7 = vld [vmem:[%s6286_s14 + $0x30] sm:$0xff]  ;;  %v358_v8 = vld [vmem:[%s6286_s14 + $0x38] sm:$0xff] }
  0x12   : > { %441 = vst.msk [vmem:[#allocation2 + $0xc0] sm:$0xff] %vm415_vm0, %v5811_v0  ;;  %443 = vst.msk [vmem:[#allocation2 + $0xd0] sm:$0xff] %vm415_vm0, %v5811_v0  ;;  %v359_v9 = vld [vmem:[%s6286_s14 + $0x40] sm:$0xff]  ;;  %v360_v10 = vld [vmem:[%s6286_s14 + $0x48] sm:$0xff] }
  0x13   : > { %445 = vst.msk [vmem:[#allocation2 + $0xe0] sm:$0xff] %vm415_vm0, %v5811_v0  ;;  %447 = vst.msk [vmem:[#allocation2 + $0xf0] sm:$0xff] %vm415_vm0, %v5811_v0  ;;  %v361_v11 = vld [vmem:[%s6286_s14 + $0x50] sm:$0xff]  ;;  %v362_v12 = vld [vmem:[%s6286_s14 + $0x58] sm:$0xff] }
  0x14   : > { %449 = vst.msk [vmem:[#allocation2 + $0x100] sm:$0xff] %vm415_vm0, %v5811_v0  ;;  %451 = vst.msk [vmem:[#allocation2 + $0x110] sm:$0xff] %vm415_vm0, %v5811_v0  ;;  %v363_v13 = vld [vmem:[%s6286_s14 + $0x60] sm:$0xff]  ;;  %v364_v14 = vld [vmem:[%s6286_s14 + $0x68] sm:$0xff] }
  0x15   : > { %453 = vst.msk [vmem:[#allocation2 + $0x120] sm:$0xff] %vm415_vm0, %v5811_v0  ;;  %455 = vst.msk [vmem:[#allocation2 + $0x130] sm:$0xff] %vm415_vm0, %v5811_v0  ;;  %v365_v15 = vld [vmem:[%s6286_s14 + $0x70] sm:$0xff]  ;;  %v366_v16 = vld [vmem:[%s6286_s14 + $0x78] sm:$0xff] }
  0x16   : > { %457 = vst.msk [vmem:[#allocation2 + $0x140] sm:$0xff] %vm415_vm0, %v5811_v0  ;;  %459 = vst.msk [vmem:[#allocation2 + $0x150] sm:$0xff] %vm415_vm0, %v5811_v0  ;;  %v367_v17 = vld [vmem:[%s6286_s14 + $0x80] sm:$0xff]  ;;  %v368_v18 = vld [vmem:[%s6286_s14 + $0x88] sm:$0xff] }
  0x17   : > { %461 = vst.msk [vmem:[#allocation2 + $0x160] sm:$0xff] %vm415_vm0, %v5811_v0  ;;  %463 = vst.msk [vmem:[#allocation2 + $0x170] sm:$0xff] %vm415_vm0, %v5811_v0  ;;  %v369_v19 = vld [vmem:[%s6286_s14 + $0x90] sm:$0xff]  ;;  %v370_v20 = vld [vmem:[%s6286_s14 + $0x98] sm:$0xff] }
  0x18   : > { %465 = vst.msk [vmem:[#allocation2 + $0x180] sm:$0xff] %vm415_vm0, %v5811_v0  ;;  %467 = vst.msk [vmem:[#allocation2 + $0x190] sm:$0xff] %vm415_vm0, %v5811_v0  ;;  %v371_v21 = vld [vmem:[%s6286_s14 + $0xa0] sm:$0xff]  ;;  %v372_v22 = vld [vmem:[%s6286_s14 + $0xa8] sm:$0xff] }
  0x19   : > { %469 = vst.msk [vmem:[#allocation2 + $0x1a0] sm:$0xff] %vm415_vm0, %v5811_v0  ;;  %471 = vst.msk [vmem:[#allocation2 + $0x1b0] sm:$0xff] %vm415_vm0, %v5811_v0  ;;  %v373_v23 = vld [vmem:[%s6286_s14 + $0xb0] sm:$0xff]  ;;  %v374_v24 = vld [vmem:[%s6286_s14 + $0xb8] sm:$0xff] }
  0x1a   : > { %473 = vst.msk [vmem:[#allocation2 + $0x1c0] sm:$0xff] %vm415_vm0, %v5811_v0  ;;  %475 = vst.msk [vmem:[#allocation2 + $0x1d0] sm:$0xff] %vm415_vm0, %v5811_v0  ;;  %v375_v25 = vld [vmem:[%s6286_s14 + $0xc0] sm:$0xff]  ;;  %v376_v26 = vld [vmem:[%s6286_s14 + $0xc8] sm:$0xff] }
  0x1b   : > { %477 = vst.msk [vmem:[#allocation2 + $0x1e0] sm:$0xff] %vm415_vm0, %v5811_v0  ;;  %479 = vst.msk [vmem:[#allocation2 + $0x1f0] sm:$0xff] %vm415_vm0, %v5811_v0  ;;  %v377_v27 = vld [vmem:[%s6286_s14 + $0xd0] sm:$0xff]  ;;  %v378_v28 = vld [vmem:[%s6286_s14 + $0xd8] sm:$0xff] }
  0x1c   : > { %481 = vst.msk [vmem:[#allocation2 + $0x200] sm:$0xff] %vm415_vm0, %v5811_v0  ;;  %483 = vst.msk [vmem:[#allocation2 + $0x210] sm:$0xff] %vm415_vm0, %v5811_v0  ;;  %v379_v29 = vld [vmem:[%s6286_s14 + $0xe0] sm:$0xff]  ;;  %v380_v30 = vld [vmem:[%s6286_s14 + $0xe8] sm:$0xff] }
  0x1d   : > { %485 = vst.msk [vmem:[#allocation2 + $0x220] sm:$0xff] %vm415_vm0, %v5811_v0  ;;  %487 = vst.msk [vmem:[#allocation2 + $0x230] sm:$0xff] %vm415_vm0, %v5811_v0  ;;  %v381_v31 = vld [vmem:[%s6286_s14 + $0xf0] sm:$0xff]  ;;  %v382_v32 = vld [vmem:[%s6286_s14 + $0xf8] sm:$0xff] }
  0x1e   : > { %489 = vst.msk [vmem:[#allocation2 + $0x240] sm:$0xff] %vm415_vm0, %v5811_v0  ;;  %491 = vst.msk [vmem:[#allocation2 + $0x250] sm:$0xff] %vm415_vm0, %v5811_v0  ;;  %v383_v33 = vld [vmem:[%s6286_s14 + $0x100] sm:$0xff]  ;;  %v384_v34 = vld [vmem:[%s6286_s14 + $0x108] sm:$0xff] }
  0x1f   : > { %493 = vst.msk [vmem:[#allocation2 + $0x260] sm:$0xff] %vm415_vm0, %v5811_v0  ;;  %495 = vst.msk [vmem:[#allocation2 + $0x270] sm:$0xff] %vm415_vm0, %v5811_v0  ;;  %v385_v35 = vld [vmem:[%s6286_s14 + $0x110] sm:$0xff]  ;;  %v386_v36 = vld [vmem:[%s6286_s14 + $0x118] sm:$0xff] }
  0x20   : > { %497 = vst.msk [vmem:[#allocation2 + $0x280] sm:$0xff] %vm415_vm0, %v5811_v0  ;;  %499 = vst.msk [vmem:[#allocation2 + $0x290] sm:$0xff] %vm415_vm0, %v5811_v0  ;;  %v387_v37 = vld [vmem:[%s6286_s14 + $0x120] sm:$0xff]  ;;  %v388_v38 = vld [vmem:[%s6286_s14 + $0x128] sm:$0xff] }
  0x21   : > { %501 = vst.msk [vmem:[#allocation2 + $0x2a0] sm:$0xff] %vm415_vm0, %v5811_v0  ;;  %503 = vst.msk [vmem:[#allocation2 + $0x2b0] sm:$0xff] %vm415_vm0, %v5811_v0  ;;  %v389_v39 = vld [vmem:[%s6286_s14 + $0x130] sm:$0xff]  ;;  %v390_v40 = vld [vmem:[%s6286_s14 + $0x138] sm:$0xff] }
  0x22   : > { %505 = vst.msk [vmem:[#allocation2 + $0x2c0] sm:$0xff] %vm415_vm0, %v5811_v0  ;;  %507 = vst.msk [vmem:[#allocation2 + $0x2d0] sm:$0xff] %vm415_vm0, %v5811_v0  ;;  %v391_v41 = vld [vmem:[%s6286_s14 + $0x140] sm:$0xff]  ;;  %v392_v42 = vld [vmem:[%s6286_s14 + $0x148] sm:$0xff] }
  0x23   : > { %509 = vst.msk [vmem:[#allocation2 + $0x2e0] sm:$0xff] %vm415_vm0, %v5811_v0  ;;  %511 = vst.msk [vmem:[#allocation2 + $0x2f0] sm:$0xff] %vm415_vm0, %v5811_v0  ;;  %v393_v43 = vld [vmem:[%s6286_s14 + $0x150] sm:$0xff]  ;;  %v394_v44 = vld [vmem:[%s6286_s14 + $0x158] sm:$0xff] }
  0x24   : > { %513 = vst.msk [vmem:[#allocation2 + $0x300] sm:$0xff] %vm415_vm0, %v5811_v0  ;;  %515 = vst.msk [vmem:[#allocation2 + $0x310] sm:$0xff] %vm415_vm0, %v5811_v0  ;;  %v395_v45 = vld [vmem:[%s6286_s14 + $0x160] sm:$0xff]  ;;  %v396_v46 = vld [vmem:[%s6286_s14 + $0x168] sm:$0xff] }
  0x25   : > { %517 = vst.msk [vmem:[#allocation2 + $0x320] sm:$0xff] %vm415_vm0, %v5811_v0  ;;  %519 = vst.msk [vmem:[#allocation2 + $0x330] sm:$0xff] %vm415_vm0, %v5811_v0  ;;  %v397_v47 = vld [vmem:[%s6286_s14 + $0x170] sm:$0xff]  ;;  %v398_v48 = vld [vmem:[%s6286_s14 + $0x178] sm:$0xff] }
  0x26   : > { %521 = vst.msk [vmem:[#allocation2 + $0x340] sm:$0xff] %vm415_vm0, %v5811_v0  ;;  %523 = vst.msk [vmem:[#allocation2 + $0x350] sm:$0xff] %vm415_vm0, %v5811_v0  ;;  %v399_v49 = vld [vmem:[%s6286_s14 + $0x180] sm:$0xff]  ;;  %v400_v50 = vld [vmem:[%s6286_s14 + $0x188] sm:$0xff] }
  0x27   : > { %525 = vst.msk [vmem:[#allocation2 + $0x360] sm:$0xff] %vm415_vm0, %v5811_v0  ;;  %527 = vst.msk [vmem:[#allocation2 + $0x370] sm:$0xff] %vm415_vm0, %v5811_v0  ;;  %v401_v51 = vld [vmem:[%s6286_s14 + $0x190] sm:$0xff]  ;;  %v402_v52 = vld [vmem:[%s6286_s14 + $0x198] sm:$0xff] }
  0x28   : > { %529 = vst.msk [vmem:[#allocation2 + $0x380] sm:$0xff] %vm415_vm0, %v5811_v0  ;;  %531 = vst.msk [vmem:[#allocation2 + $0x390] sm:$0xff] %vm415_vm0, %v5811_v0  ;;  %v403_v53 = vld [vmem:[%s6286_s14 + $0x1a0] sm:$0xff]  ;;  %v404_v54 = vld [vmem:[%s6286_s14 + $0x1a8] sm:$0xff] }
  0x29   : > { %533 = vst.msk [vmem:[#allocation2 + $0x3a0] sm:$0xff] %vm415_vm0, %v5811_v0  ;;  %535 = vst.msk [vmem:[#allocation2 + $0x3b0] sm:$0xff] %vm415_vm0, %v5811_v0  ;;  %v405_v55 = vld [vmem:[%s6286_s14 + $0x1b0] sm:$0xff]  ;;  %v406_v56 = vld [vmem:[%s6286_s14 + $0x1b8] sm:$0xff] }
  0x2a   : > { %537 = vst.msk [vmem:[#allocation2 + $0x3c0] sm:$0xff] %vm415_vm0, %v5811_v0  ;;  %539 = vst.msk [vmem:[#allocation2 + $0x3d0] sm:$0xff] %vm415_vm0, %v5811_v0  ;;  %v407_v57 = vld [vmem:[%s6286_s14 + $0x1c0] sm:$0xff]  ;;  %v408_v58 = vld [vmem:[%s6286_s14 + $0x1c8] sm:$0xff] }
  0x2b   : > { %541 = vst.msk [vmem:[#allocation2 + $0x3e0] sm:$0xff] %vm415_vm0, %v5811_v0  ;;  %543 = vst.msk [vmem:[#allocation2 + $0x3f0] sm:$0xff] %vm415_vm0, %v5811_v0  ;;  %v409_v59 = vld [vmem:[%s6286_s14 + $0x1d0] sm:$0xff]  ;;  %v410_v60 = vld [vmem:[%s6286_s14 + $0x1d8] sm:$0xff] }
  0x2c   : > { %545 = vst.msk [vmem:[#allocation2 + $0x400] sm:$0xff] %vm415_vm0, %v5811_v0  ;;  %547 = vst.msk [vmem:[#allocation2 + $0x410] sm:$0xff] %vm415_vm0, %v5811_v0  ;;  %v411_v61 = vld [vmem:[%s6286_s14 + $0x1e0] sm:$0xff]  ;;  %v412_v62 = vld [vmem:[%s6286_s14 + $0x1e8] sm:$0xff] }
  0x2d   : > { %549 = vst.msk [vmem:[#allocation2 + $0x420] sm:$0xff] %vm415_vm0, %v5811_v0  ;;  %551 = vst.msk [vmem:[#allocation2 + $0x430] sm:$0xff] %vm415_vm0, %v5811_v0  ;;  %v413_v63 = vld [vmem:[%s6286_s14 + $0x1f0] sm:$0xff] }
  0x2e   : > { %553 = vst.msk [vmem:[#allocation2 + $0x440] sm:$0xff] %vm415_vm0, %v5811_v0  ;;  %555 = vst.msk [vmem:[#allocation2 + $0x450] sm:$0xff] %vm415_vm0, %v5811_v0 }
  0x2f   : > { %557 = vst.msk [vmem:[#allocation2 + $0x460] sm:$0xff] %vm415_vm0, %v5811_v0  ;;  %559 = vst.msk [vmem:[#allocation2 + $0x470] sm:$0xff] %vm415_vm0, %v5811_v0 }
  0x30   : > { %561 = vst.msk [vmem:[#allocation2 + $0x480] sm:$0xff] %vm415_vm0, %v5811_v0  ;;  %563 = vst.msk [vmem:[#allocation2 + $0x490] sm:$0xff] %vm415_vm0, %v5811_v0 }
  0x31   : > { %565 = vst.msk [vmem:[#allocation2 + $0x4a0] sm:$0xff] %vm415_vm0, %v5811_v0  ;;  %567 = vst.msk [vmem:[#allocation2 + $0x4b0] sm:$0xff] %vm415_vm0, %v5811_v0 }
  0x32   : > { %569 = vst.msk [vmem:[#allocation2 + $0x4c0] sm:$0xff] %vm415_vm0, %v5811_v0  ;;  %571 = vst.msk [vmem:[#allocation2 + $0x4d0] sm:$0xff] %vm415_vm0, %v5811_v0 }
  0x33   : > { %573 = vst.msk [vmem:[#allocation2 + $0x4e0] sm:$0xff] %vm415_vm0, %v5811_v0  ;;  %575 = vst.msk [vmem:[#allocation2 + $0x4f0] sm:$0xff] %vm415_vm0, %v5811_v0 }
  0x34   : > { %577 = vst.msk [vmem:[#allocation2 + $0x500] sm:$0xff] %vm415_vm0, %v5811_v0  ;;  %579 = vst.msk [vmem:[#allocation2 + $0x510] sm:$0xff] %vm415_vm0, %v5811_v0 }
  0x35   : > { %581 = vst.msk [vmem:[#allocation2 + $0x520] sm:$0xff] %vm415_vm0, %v5811_v0  ;;  %583 = vst.msk [vmem:[#allocation2 + $0x530] sm:$0xff] %vm415_vm0, %v5811_v0 }
  0x36   : > { %585 = vst.msk [vmem:[#allocation2 + $0x540] sm:$0xff] %vm415_vm0, %v5811_v0  ;;  %587 = vst.msk [vmem:[#allocation2 + $0x550] sm:$0xff] %vm415_vm0, %v5811_v0 }
  0x37   : > { %589 = vst.msk [vmem:[#allocation2 + $0x560] sm:$0xff] %vm415_vm0, %v5811_v0  ;;  %591 = vst.msk [vmem:[#allocation2 + $0x570] sm:$0xff] %vm415_vm0, %v5811_v0 }
  0x38   : > { %593 = vst.msk [vmem:[#allocation2 + $0x580] sm:$0xff] %vm415_vm0, %v5811_v0  ;;  %595 = vst.msk [vmem:[#allocation2 + $0x590] sm:$0xff] %vm415_vm0, %v5811_v0 }
  0x39   : > { %597 = vst.msk [vmem:[#allocation2 + $0x5a0] sm:$0xff] %vm415_vm0, %v5811_v0  ;;  %599 = vst.msk [vmem:[#allocation2 + $0x5b0] sm:$0xff] %vm415_vm0, %v5811_v0 }
  0x3a   : > { %601 = vst.msk [vmem:[#allocation2 + $0x5c0] sm:$0xff] %vm415_vm0, %v5811_v0  ;;  %603 = vst.msk [vmem:[#allocation2 + $0x5d0] sm:$0xff] %vm415_vm0, %v5811_v0 }
  0x3b   : > { %605 = vst.msk [vmem:[#allocation2 + $0x5e0] sm:$0xff] %vm415_vm0, %v5811_v0  ;;  %607 = vst.msk [vmem:[#allocation2 + $0x5f0] sm:$0xff] %vm415_vm0, %v5811_v0 }
  0x3c   : > { %609 = vst.msk [vmem:[#allocation2 + $0x600] sm:$0xff] %vm415_vm0, %v5811_v0  ;;  %611 = vst.msk [vmem:[#allocation2 + $0x610] sm:$0xff] %vm415_vm0, %v5811_v0 }
  0x3d   : > { %613 = vst.msk [vmem:[#allocation2 + $0x620] sm:$0xff] %vm415_vm0, %v5811_v0  ;;  %615 = vst.msk [vmem:[#allocation2 + $0x630] sm:$0xff] %vm415_vm0, %v5811_v0 }
  0x3e   : > { %440 = vst.msk [vmem:[#allocation2 + $0xb8] sm:$0x3] %vm417_vm1, %v5811_v0  ;;  %418 = vst.msk [vmem:[#allocation2 + $0x8] sm:$0x3] %vm417_vm1, %v5811_v0 }
  0x3f   : > { %420 = vst.msk [vmem:[#allocation2 + $0x18] sm:$0x3] %vm417_vm1, %v5811_v0  ;;  %422 = vst.msk [vmem:[#allocation2 + $0x28] sm:$0x3] %vm417_vm1, %v5811_v0 }
  0x40   : > { %424 = vst.msk [vmem:[#allocation2 + $0x38] sm:$0x3] %vm417_vm1, %v5811_v0  ;;  %426 = vst.msk [vmem:[#allocation2 + $0x48] sm:$0x3] %vm417_vm1, %v5811_v0 }
  0x41   : > { %428 = vst.msk [vmem:[#allocation2 + $0x58] sm:$0x3] %vm417_vm1, %v5811_v0  ;;  %430 = vst.msk [vmem:[#allocation2 + $0x68] sm:$0x3] %vm417_vm1, %v5811_v0 }
  0x42   : > { %432 = vst.msk [vmem:[#allocation2 + $0x78] sm:$0x3] %vm417_vm1, %v5811_v0  ;;  %434 = vst.msk [vmem:[#allocation2 + $0x88] sm:$0x3] %vm417_vm1, %v5811_v0 }
  0x43   : > { %436 = vst.msk [vmem:[#allocation2 + $0x98] sm:$0x3] %vm417_vm1, %v5811_v0  ;;  %438 = vst.msk [vmem:[#allocation2 + $0xa8] sm:$0x3] %vm417_vm1, %v5811_v0 }
  0x44   : > { %442 = vst.msk [vmem:[#allocation2 + $0xc8] sm:$0x3] %vm417_vm1, %v5811_v0  ;;  %444 = vst.msk [vmem:[#allocation2 + $0xd8] sm:$0x3] %vm417_vm1, %v5811_v0 }
  0x45   : > { %446 = vst.msk [vmem:[#allocation2 + $0xe8] sm:$0x3] %vm417_vm1, %v5811_v0  ;;  %448 = vst.msk [vmem:[#allocation2 + $0xf8] sm:$0x3] %vm417_vm1, %v5811_v0 }
  0x46   : > { %450 = vst.msk [vmem:[#allocation2 + $0x108] sm:$0x3] %vm417_vm1, %v5811_v0  ;;  %452 = vst.msk [vmem:[#allocation2 + $0x118] sm:$0x3] %vm417_vm1, %v5811_v0 }
  0x47   : > { %454 = vst.msk [vmem:[#allocation2 + $0x128] sm:$0x3] %vm417_vm1, %v5811_v0  ;;  %456 = vst.msk [vmem:[#allocation2 + $0x138] sm:$0x3] %vm417_vm1, %v5811_v0 }
  0x48   : > { %458 = vst.msk [vmem:[#allocation2 + $0x148] sm:$0x3] %vm417_vm1, %v5811_v0  ;;  %460 = vst.msk [vmem:[#allocation2 + $0x158] sm:$0x3] %vm417_vm1, %v5811_v0 }
  0x49   : > { %462 = vst.msk [vmem:[#allocation2 + $0x168] sm:$0x3] %vm417_vm1, %v5811_v0  ;;  %464 = vst.msk [vmem:[#allocation2 + $0x178] sm:$0x3] %vm417_vm1, %v5811_v0 }
  0x4a   : > { %466 = vst.msk [vmem:[#allocation2 + $0x188] sm:$0x3] %vm417_vm1, %v5811_v0  ;;  %468 = vst.msk [vmem:[#allocation2 + $0x198] sm:$0x3] %vm417_vm1, %v5811_v0 }
  0x4b   : > { %470 = vst.msk [vmem:[#allocation2 + $0x1a8] sm:$0x3] %vm417_vm1, %v5811_v0  ;;  %472 = vst.msk [vmem:[#allocation2 + $0x1b8] sm:$0x3] %vm417_vm1, %v5811_v0 }
  0x4c   : > { %474 = vst.msk [vmem:[#allocation2 + $0x1c8] sm:$0x3] %vm417_vm1, %v5811_v0  ;;  %476 = vst.msk [vmem:[#allocation2 + $0x1d8] sm:$0x3] %vm417_vm1, %v5811_v0 }
  0x4d   : > { %478 = vst.msk [vmem:[#allocation2 + $0x1e8] sm:$0x3] %vm417_vm1, %v5811_v0  ;;  %480 = vst.msk [vmem:[#allocation2 + $0x1f8] sm:$0x3] %vm417_vm1, %v5811_v0 }
  0x4e   : > { %482 = vst.msk [vmem:[#allocation2 + $0x208] sm:$0x3] %vm417_vm1, %v5811_v0  ;;  %484 = vst.msk [vmem:[#allocation2 + $0x218] sm:$0x3] %vm417_vm1, %v5811_v0 }
  0x4f   : > { %486 = vst.msk [vmem:[#allocation2 + $0x228] sm:$0x3] %vm417_vm1, %v5811_v0  ;;  %488 = vst.msk [vmem:[#allocation2 + $0x238] sm:$0x3] %vm417_vm1, %v5811_v0 }
  0x50   : > { %490 = vst.msk [vmem:[#allocation2 + $0x248] sm:$0x3] %vm417_vm1, %v5811_v0  ;;  %492 = vst.msk [vmem:[#allocation2 + $0x258] sm:$0x3] %vm417_vm1, %v5811_v0 }
  0x51   : > { %494 = vst.msk [vmem:[#allocation2 + $0x268] sm:$0x3] %vm417_vm1, %v5811_v0  ;;  %496 = vst.msk [vmem:[#allocation2 + $0x278] sm:$0x3] %vm417_vm1, %v5811_v0 }
  0x52   : > { %498 = vst.msk [vmem:[#allocation2 + $0x288] sm:$0x3] %vm417_vm1, %v5811_v0  ;;  %500 = vst.msk [vmem:[#allocation2 + $0x298] sm:$0x3] %vm417_vm1, %v5811_v0 }
  0x53   : > { %502 = vst.msk [vmem:[#allocation2 + $0x2a8] sm:$0x3] %vm417_vm1, %v5811_v0  ;;  %504 = vst.msk [vmem:[#allocation2 + $0x2b8] sm:$0x3] %vm417_vm1, %v5811_v0 }
  0x54   : > { %506 = vst.msk [vmem:[#allocation2 + $0x2c8] sm:$0x3] %vm417_vm1, %v5811_v0  ;;  %508 = vst.msk [vmem:[#allocation2 + $0x2d8] sm:$0x3] %vm417_vm1, %v5811_v0 }
  0x55   : > { %510 = vst.msk [vmem:[#allocation2 + $0x2e8] sm:$0x3] %vm417_vm1, %v5811_v0  ;;  %512 = vst.msk [vmem:[#allocation2 + $0x2f8] sm:$0x3] %vm417_vm1, %v5811_v0 }
  0x56   : > { %514 = vst.msk [vmem:[#allocation2 + $0x308] sm:$0x3] %vm417_vm1, %v5811_v0  ;;  %516 = vst.msk [vmem:[#allocation2 + $0x318] sm:$0x3] %vm417_vm1, %v5811_v0 }
  0x57   : > { %518 = vst.msk [vmem:[#allocation2 + $0x328] sm:$0x3] %vm417_vm1, %v5811_v0  ;;  %520 = vst.msk [vmem:[#allocation2 + $0x338] sm:$0x3] %vm417_vm1, %v5811_v0 }
  0x58   : > { %522 = vst.msk [vmem:[#allocation2 + $0x348] sm:$0x3] %vm417_vm1, %v5811_v0  ;;  %524 = vst.msk [vmem:[#allocation2 + $0x358] sm:$0x3] %vm417_vm1, %v5811_v0 }
  0x59   : > { %526 = vst.msk [vmem:[#allocation2 + $0x368] sm:$0x3] %vm417_vm1, %v5811_v0  ;;  %528 = vst.msk [vmem:[#allocation2 + $0x378] sm:$0x3] %vm417_vm1, %v5811_v0 }
  0x5a   : > { %530 = vst.msk [vmem:[#allocation2 + $0x388] sm:$0x3] %vm417_vm1, %v5811_v0  ;;  %532 = vst.msk [vmem:[#allocation2 + $0x398] sm:$0x3] %vm417_vm1, %v5811_v0 }
  0x5b   : > { %534 = vst.msk [vmem:[#allocation2 + $0x3a8] sm:$0x3] %vm417_vm1, %v5811_v0  ;;  %536 = vst.msk [vmem:[#allocation2 + $0x3b8] sm:$0x3] %vm417_vm1, %v5811_v0 }
  0x5c   : > { %538 = vst.msk [vmem:[#allocation2 + $0x3c8] sm:$0x3] %vm417_vm1, %v5811_v0  ;;  %540 = vst.msk [vmem:[#allocation2 + $0x3d8] sm:$0x3] %vm417_vm1, %v5811_v0 }
  0x5d   : > { %542 = vst.msk [vmem:[#allocation2 + $0x3e8] sm:$0x3] %vm417_vm1, %v5811_v0  ;;  %544 = vst.msk [vmem:[#allocation2 + $0x3f8] sm:$0x3] %vm417_vm1, %v5811_v0 }
  0x5e   : > { %546 = vst.msk [vmem:[#allocation2 + $0x408] sm:$0x3] %vm417_vm1, %v5811_v0  ;;  %548 = vst.msk [vmem:[#allocation2 + $0x418] sm:$0x3] %vm417_vm1, %v5811_v0 }
  0x5f   : > { %550 = vst.msk [vmem:[#allocation2 + $0x428] sm:$0x3] %vm417_vm1, %v5811_v0  ;;  %552 = vst.msk [vmem:[#allocation2 + $0x438] sm:$0x3] %vm417_vm1, %v5811_v0 }
  0x60   : > { %554 = vst.msk [vmem:[#allocation2 + $0x448] sm:$0x3] %vm417_vm1, %v5811_v0  ;;  %556 = vst.msk [vmem:[#allocation2 + $0x458] sm:$0x3] %vm417_vm1, %v5811_v0 }
  0x61   : > { %558 = vst.msk [vmem:[#allocation2 + $0x468] sm:$0x3] %vm417_vm1, %v5811_v0  ;;  %560 = vst.msk [vmem:[#allocation2 + $0x478] sm:$0x3] %vm417_vm1, %v5811_v0 }
  0x62   : > { %562 = vst.msk [vmem:[#allocation2 + $0x488] sm:$0x3] %vm417_vm1, %v5811_v0  ;;  %564 = vst.msk [vmem:[#allocation2 + $0x498] sm:$0x3] %vm417_vm1, %v5811_v0 }
  0x63   : > { %566 = vst.msk [vmem:[#allocation2 + $0x4a8] sm:$0x3] %vm417_vm1, %v5811_v0  ;;  %568 = vst.msk [vmem:[#allocation2 + $0x4b8] sm:$0x3] %vm417_vm1, %v5811_v0 }
  0x64   : > { %570 = vst.msk [vmem:[#allocation2 + $0x4c8] sm:$0x3] %vm417_vm1, %v5811_v0  ;;  %572 = vst.msk [vmem:[#allocation2 + $0x4d8] sm:$0x3] %vm417_vm1, %v5811_v0 }
  0x65   : > { %574 = vst.msk [vmem:[#allocation2 + $0x4e8] sm:$0x3] %vm417_vm1, %v5811_v0  ;;  %576 = vst.msk [vmem:[#allocation2 + $0x4f8] sm:$0x3] %vm417_vm1, %v5811_v0 }
  0x66   : > { %578 = vst.msk [vmem:[#allocation2 + $0x508] sm:$0x3] %vm417_vm1, %v5811_v0  ;;  %580 = vst.msk [vmem:[#allocation2 + $0x518] sm:$0x3] %vm417_vm1, %v5811_v0 }
  0x67   : > { %582 = vst.msk [vmem:[#allocation2 + $0x528] sm:$0x3] %vm417_vm1, %v5811_v0  ;;  %584 = vst.msk [vmem:[#allocation2 + $0x538] sm:$0x3] %vm417_vm1, %v5811_v0 }
  0x68   : > { %586 = vst.msk [vmem:[#allocation2 + $0x548] sm:$0x3] %vm417_vm1, %v5811_v0  ;;  %588 = vst.msk [vmem:[#allocation2 + $0x558] sm:$0x3] %vm417_vm1, %v5811_v0 }
  0x69   : > { %590 = vst.msk [vmem:[#allocation2 + $0x568] sm:$0x3] %vm417_vm1, %v5811_v0  ;;  %592 = vst.msk [vmem:[#allocation2 + $0x578] sm:$0x3] %vm417_vm1, %v5811_v0 }
  0x6a   : > { %594 = vst.msk [vmem:[#allocation2 + $0x588] sm:$0x3] %vm417_vm1, %v5811_v0  ;;  %596 = vst.msk [vmem:[#allocation2 + $0x598] sm:$0x3] %vm417_vm1, %v5811_v0 }
  0x6b   : > { %598 = vst.msk [vmem:[#allocation2 + $0x5a8] sm:$0x3] %vm417_vm1, %v5811_v0  ;;  %600 = vst.msk [vmem:[#allocation2 + $0x5b8] sm:$0x3] %vm417_vm1, %v5811_v0 }
  0x6c   : > { %602 = vst.msk [vmem:[#allocation2 + $0x5c8] sm:$0x3] %vm417_vm1, %v5811_v0  ;;  %604 = vst.msk [vmem:[#allocation2 + $0x5d8] sm:$0x3] %vm417_vm1, %v5811_v0 }
  0x6d   : > { %606 = vst.msk [vmem:[#allocation2 + $0x5e8] sm:$0x3] %vm417_vm1, %v5811_v0  ;;  %608 = vst.msk [vmem:[#allocation2 + $0x5f8] sm:$0x3] %vm417_vm1, %v5811_v0 }
  0x6e   : > { %610 = vst.msk [vmem:[#allocation2 + $0x608] sm:$0x3] %vm417_vm1, %v5811_v0  ;;  %612 = vst.msk [vmem:[#allocation2 + $0x618] sm:$0x3] %vm417_vm1, %v5811_v0 }
  0x6f   : > { %614 = vst.msk [vmem:[#allocation2 + $0x628] sm:$0x3] %vm417_vm1, %v5811_v0  ;;  %616 = vst.msk [vmem:[#allocation2 + $0x638] sm:$0x3] %vm417_vm1, %v5811_v0 }
  0x70   : > { %683 = vst.msk [vmem:[%s6280_s11] sm:$0x1] %vm682_vm2, %v5811_v0  ;;  %684 = vst.msk [vmem:[%s6305_s23] sm:$0x1] %vm682_vm2, %v5811_v0 }
  0x71   : > { %618 = vst.msk [vmem:[#allocation2 + $0xb1] sm:$0xff] %vm415_vm0, %v351_v1  ;;  %619 = vst.msk [vmem:[#allocation2 + $0xc1] sm:$0xff] %vm415_vm0, %v352_v2 }
  0x72   : > { %620 = vst.msk [vmem:[#allocation2 + $0xd1] sm:$0xff] %vm415_vm0, %v353_v3  ;;  %621 = vst.msk [vmem:[#allocation2 + $0xe1] sm:$0xff] %vm415_vm0, %v354_v4 }
  0x73   : > { %622 = vst.msk [vmem:[#allocation2 + $0xf1] sm:$0xff] %vm415_vm0, %v355_v5  ;;  %623 = vst.msk [vmem:[#allocation2 + $0x101] sm:$0xff] %vm415_vm0, %v356_v6 }
  0x74   : > { %685 = vst.msk [vmem:[%s6319_s26] sm:$0x1] %vm682_vm2, %v5811_v0  ;;  %686 = vst.msk [vmem:[%s6324_s10] sm:$0x1] %vm682_vm2, %v5811_v0  ;;  %v414_v0 = vld [vmem:[%s6286_s14 + $0x1f8] sm:$0xff] }
  0x75   : > { %624 = vst.msk [vmem:[#allocation2 + $0x111] sm:$0xff] %vm415_vm0, %v357_v7  ;;  %625 = vst.msk [vmem:[#allocation2 + $0x121] sm:$0xff] %vm415_vm0, %v358_v8 }
  0x76   : > { %626 = vst.msk [vmem:[#allocation2 + $0x151] sm:$0xff] %vm415_vm0, %v359_v9  ;;  %627 = vst.msk [vmem:[#allocation2 + $0x161] sm:$0xff] %vm415_vm0, %v360_v10 }
  0x77   : > { %628 = vst.msk [vmem:[#allocation2 + $0x171] sm:$0xff] %vm415_vm0, %v361_v11  ;;  %629 = vst.msk [vmem:[#allocation2 + $0x181] sm:$0xff] %vm415_vm0, %v362_v12 }
  0x78   : > { %630 = vst.msk [vmem:[#allocation2 + $0x191] sm:$0xff] %vm415_vm0, %v363_v13  ;;  %631 = vst.msk [vmem:[#allocation2 + $0x1a1] sm:$0xff] %vm415_vm0, %v364_v14 }
  0x79   : > { %632 = vst.msk [vmem:[#allocation2 + $0x1b1] sm:$0xff] %vm415_vm0, %v365_v15  ;;  %633 = vst.msk [vmem:[#allocation2 + $0x1c1] sm:$0xff] %vm415_vm0, %v366_v16 }
  0x7a   : > { %634 = vst.msk [vmem:[#allocation2 + $0x1f1] sm:$0xff] %vm415_vm0, %v367_v17  ;;  %635 = vst.msk [vmem:[#allocation2 + $0x201] sm:$0xff] %vm415_vm0, %v368_v18 }
  0x7b   : > { %636 = vst.msk [vmem:[#allocation2 + $0x211] sm:$0xff] %vm415_vm0, %v369_v19  ;;  %637 = vst.msk [vmem:[#allocation2 + $0x221] sm:$0xff] %vm415_vm0, %v370_v20 }
  0x7c   : > { %638 = vst.msk [vmem:[#allocation2 + $0x231] sm:$0xff] %vm415_vm0, %v371_v21  ;;  %639 = vst.msk [vmem:[#allocation2 + $0x241] sm:$0xff] %vm415_vm0, %v372_v22 }
  0x7d   : > { %640 = vst.msk [vmem:[#allocation2 + $0x251] sm:$0xff] %vm415_vm0, %v373_v23  ;;  %641 = vst.msk [vmem:[#allocation2 + $0x261] sm:$0xff] %vm415_vm0, %v374_v24 }
  0x7e   : > { %642 = vst.msk [vmem:[#allocation2 + $0x291] sm:$0xff] %vm415_vm0, %v375_v25  ;;  %643 = vst.msk [vmem:[#allocation2 + $0x2a1] sm:$0xff] %vm415_vm0, %v376_v26 }
  0x7f   : > { %644 = vst.msk [vmem:[#allocation2 + $0x2b1] sm:$0xff] %vm415_vm0, %v377_v27  ;;  %645 = vst.msk [vmem:[#allocation2 + $0x2c1] sm:$0xff] %vm415_vm0, %v378_v28 }
  0x80   : > { %646 = vst.msk [vmem:[#allocation2 + $0x2d1] sm:$0xff] %vm415_vm0, %v379_v29  ;;  %647 = vst.msk [vmem:[#allocation2 + $0x2e1] sm:$0xff] %vm415_vm0, %v380_v30 }
  0x81   : > { %648 = vst.msk [vmem:[#allocation2 + $0x2f1] sm:$0xff] %vm415_vm0, %v381_v31  ;;  %649 = vst.msk [vmem:[#allocation2 + $0x301] sm:$0xff] %vm415_vm0, %v382_v32 }
  0x82   : > { %650 = vst.msk [vmem:[#allocation2 + $0x331] sm:$0xff] %vm415_vm0, %v383_v33  ;;  %651 = vst.msk [vmem:[#allocation2 + $0x341] sm:$0xff] %vm415_vm0, %v384_v34 }
  0x83   : > { %652 = vst.msk [vmem:[#allocation2 + $0x351] sm:$0xff] %vm415_vm0, %v385_v35  ;;  %653 = vst.msk [vmem:[#allocation2 + $0x361] sm:$0xff] %vm415_vm0, %v386_v36 }
  0x84   : > { %654 = vst.msk [vmem:[#allocation2 + $0x371] sm:$0xff] %vm415_vm0, %v387_v37  ;;  %655 = vst.msk [vmem:[#allocation2 + $0x381] sm:$0xff] %vm415_vm0, %v388_v38 }
  0x85   : > { %656 = vst.msk [vmem:[#allocation2 + $0x391] sm:$0xff] %vm415_vm0, %v389_v39  ;;  %657 = vst.msk [vmem:[#allocation2 + $0x3a1] sm:$0xff] %vm415_vm0, %v390_v40 }
  0x86   : > { %658 = vst.msk [vmem:[#allocation2 + $0x3d1] sm:$0xff] %vm415_vm0, %v391_v41  ;;  %659 = vst.msk [vmem:[#allocation2 + $0x3e1] sm:$0xff] %vm415_vm0, %v392_v42 }
  0x87   : > { %660 = vst.msk [vmem:[#allocation2 + $0x3f1] sm:$0xff] %vm415_vm0, %v393_v43  ;;  %661 = vst.msk [vmem:[#allocation2 + $0x401] sm:$0xff] %vm415_vm0, %v394_v44 }
  0x88   : > { %662 = vst.msk [vmem:[#allocation2 + $0x411] sm:$0xff] %vm415_vm0, %v395_v45  ;;  %663 = vst.msk [vmem:[#allocation2 + $0x421] sm:$0xff] %vm415_vm0, %v396_v46 }
  0x89   : > { %664 = vst.msk [vmem:[#allocation2 + $0x431] sm:$0xff] %vm415_vm0, %v397_v47  ;;  %665 = vst.msk [vmem:[#allocation2 + $0x441] sm:$0xff] %vm415_vm0, %v398_v48 }
  0x8a   : > { %666 = vst.msk [vmem:[#allocation2 + $0x471] sm:$0xff] %vm415_vm0, %v399_v49  ;;  %667 = vst.msk [vmem:[#allocation2 + $0x481] sm:$0xff] %vm415_vm0, %v400_v50 }
  0x8b   : > { %668 = vst.msk [vmem:[#allocation2 + $0x491] sm:$0xff] %vm415_vm0, %v401_v51  ;;  %669 = vst.msk [vmem:[#allocation2 + $0x4a1] sm:$0xff] %vm415_vm0, %v402_v52 }
  0x8c   : > { %670 = vst.msk [vmem:[#allocation2 + $0x4b1] sm:$0xff] %vm415_vm0, %v403_v53  ;;  %671 = vst.msk [vmem:[#allocation2 + $0x4c1] sm:$0xff] %vm415_vm0, %v404_v54 }
  0x8d   : > { %672 = vst.msk [vmem:[#allocation2 + $0x4d1] sm:$0xff] %vm415_vm0, %v405_v55  ;;  %673 = vst.msk [vmem:[#allocation2 + $0x4e1] sm:$0xff] %vm415_vm0, %v406_v56 }
  0x8e   : > { %674 = vst.msk [vmem:[#allocation2 + $0x511] sm:$0xff] %vm415_vm0, %v407_v57  ;;  %675 = vst.msk [vmem:[#allocation2 + $0x521] sm:$0xff] %vm415_vm0, %v408_v58 }
  0x8f   : > { %676 = vst.msk [vmem:[#allocation2 + $0x531] sm:$0xff] %vm415_vm0, %v409_v59  ;;  %677 = vst.msk [vmem:[#allocation2 + $0x541] sm:$0xff] %vm415_vm0, %v410_v60 }
  0x90   : > { %678 = vst.msk [vmem:[#allocation2 + $0x551] sm:$0xff] %vm415_vm0, %v411_v61  ;;  %679 = vst.msk [vmem:[#allocation2 + $0x561] sm:$0xff] %vm415_vm0, %v412_v62 }
  0x91   : > { %680 = vst.msk [vmem:[#allocation2 + $0x571] sm:$0xff] %vm415_vm0, %v413_v63  ;;  %681 = vst.msk [vmem:[#allocation2 + $0x581] sm:$0xff] %vm415_vm0, %v414_v0 }
  0x92 LB: >> { %v715_v1 = vld [vmem:[%s7662_s1] sm:$0xf]  ;;  %vm775_vm3 = vcmask 1043456   ;;  %v4810_v2 = vld [vmem:[%s7662_s1 + $0x4] sm:$0xf]  ;;  %s693_s22 = smul.u32 160, %s5809_s28  ;;  %s5809_s28 = sphi %s6451_s28, %s692_s28  }
  0x93   : >> { %5400 = vmatprep.subr.msk.mxu1 %vm775_vm3, %v715_v1  ;;  %5386 = vmatprep.subr.msk.mxu0 %vm775_vm3, %v4810_v2  ;;  %v4829_v3 = vld [vmem:[%s7662_s1 + $0x8] sm:$0xf]  ;;  %v4839_v4 = vld [vmem:[%s7662_s1 + $0xc] sm:$0xf]  ;;  %vm732_vm4 = vcmask 1046528   ;;  %vm1008_vm5 = vcmask 1045504  }
  0x94   : >> { %5401 = vmatpush3.msk.msra.mxu1 %vm775_vm3, %v715_v1  ;;  %5387 = vmatpush3.msk.msra.mxu0 %vm775_vm3, %v4810_v2  ;;  %s6475_s24 = scalar_lea.vmem [#allocation2], %s693_s22  ;;  %v6496_v11 = vld [vmem:[%s7662_s1 + $0x14] sm:$0xf]  ;;  %v4849_v31 = vld [vmem:[%s7662_s1 + $0x10] sm:$0xf]  ;;  %vm3239_vm6 = vcmask 64512  }
  0x95   : >> { %5414 = vmatprep.subr.msk.mxu0 %vm775_vm3, %v4829_v3  ;;  %5428 = vmatprep.subr.msk.mxu1 %vm775_vm3, %v4839_v4  ;;  %v4879_v54 = vld [vmem:[%s7662_s1 + $0x1c] sm:$0xf]  ;;  %v4869_v61 = vld [vmem:[%s7662_s1 + $0x18] sm:$0xf] }
  0x98   : >> { %v6478_v5 = vld [vmem:[%s6475_s24] sm:$0xff]  ;;  %v6481_v6 = vld [vmem:[%s6475_s24 + $0x10] sm:$0xff]  ;;  %v6484_v7 = vld [vmem:[%s6475_s24 + $0x8] sm:$0x3] }
  0x99   : >> { %v733_v8 = vrot.slane %v6478_v5, 1  ;;  %5402 = vmatprep.mubr.msk.f32.mxu1 %vm415_vm0, %v6478_v5  ;;  %v734_v9 = vrot.slane %v6484_v7, 1  ;;  %v6491_v10 = vld [vmem:[%s6475_s24 + $0x18] sm:$0x3]  ;;  %v736_v12 = vrot.slane %v6481_v6, 1  ;;  %v6503_v14 = vld [vmem:[%s6475_s24 + $0x20] sm:$0xff] }
  0x9a   : >> { %5403 = vmatmul.mubr.msk.f32.vlgmr.msra.gmra.mxu1 %vm415_vm0, %v6481_v6  ;;  %v737_v13 = vrot.slane %v6491_v10, 1  ;;  %v6506_v15 = vld [vmem:[%s6475_s24 + $0x30] sm:$0xff]  ;;  %v6509_v16 = vld [vmem:[%s6475_s24 + $0x40] sm:$0xff]  ;;  %v6516_v18 = vld [vmem:[%s6475_s24 + $0x28] sm:$0x3]  ;;  %v739_v19 = vrot.slane %v6503_v14, 1 }
  0x9b   : >> { %v735_v17 = vsel %vm732_vm4, %v733_v8, %v734_v9  ;;  %5405 = vmatprep.mubr.msk.f32.mxu1 %vm415_vm0, %v6503_v14  ;;  %5429 = vmatpush3.msk.msra.mxu1 %vm775_vm3, %v4839_v4  ;;  %v6520_v20 = vld [vmem:[%s6475_s24 + $0x38] sm:$0x3]  ;;  %v742_v21 = vrot.slane %v6506_v15, 1  ;;  %v740_v23 = vrot.slane %v6516_v18, 1  ;;  %v6530_v25 = vld [vmem:[%s6475_s24 + $0x50] sm:$0xff]  ;;  %v745_v27 = vrot.slane %v6509_v16, 1 }
  0x9c   : >> { %5388 = vmatprep.mubr.msk.f32.mxu0 %vm415_vm0, %v735_v17  ;;  %v6525_v22 = vsel %vm732_vm4, %v736_v12, %v737_v13  ;;  %v743_v24 = vrot.slane %v6520_v20, 1  ;;  %v6533_v26 = vld [vmem:[%s6475_s24 + $0x48] sm:$0x3]  ;;  %5456 = vmatprep.subr.msk.mxu1 %vm775_vm3, %v6496_v11  ;;  %v6542_v29 = vld [vmem:[%s6475_s24 + $0x58] sm:$0x3]  ;;  %v6545_v30 = vld [vmem:[%s6475_s24 + $0x60] sm:$0xff] }
  0x9d   : >> { %5389 = vmatmul.mubr.msk.f32.vlgmr.msra.gmra.mxu0 %vm415_vm0, %v6525_v22  ;;  %v746_v28 = vrot.slane %v6533_v26, 1  ;;  %v6554_v32 = vsel %vm732_vm4, %v739_v19, %v740_v23  ;;  %v748_v34 = vrot.slane %v6530_v25, 1  ;;  %v749_v35 = vrot.slane %v6542_v29, 1  ;;  %v6562_v36 = vld [vmem:[%s6475_s24 + $0x68] sm:$0x3]  ;;  %v6572_v38 = vld [vmem:[%s6475_s24 + $0x70] sm:$0xff] }
  0x9e   : >> { %5415 = vmatpush3.msk.msra.mxu0 %vm775_vm3, %v4829_v3  ;;  %5406 = vmatmul.mubr.msk.f32.gmra.mxu1 %vm415_vm0, %v6506_v15  ;;  %v6557_v33 = vsel %vm732_vm4, %v742_v21, %v743_v24  ;;  %v751_v39 = vrot.slane %v6545_v30, 1  ;;  %v752_v40 = vrot.slane %v6562_v36, 1  ;;  %v6577_v41 = vld [vmem:[%s6475_s24 + $0x78] sm:$0x3]  ;;  %v754_v43 = vrot.slane %v6572_v38, 1  ;;  %v6742_v23 = vld [vmem:[%s6475_s24 + $0x90] sm:$0xff] }
  0x9f   : >> { %5391 = vmatprep.mubr.msk.f32.mxu0 %vm415_vm0, %v6554_v32  ;;  %5408 = vmatprep.mubr.msk.f32.mxu1 %vm415_vm0, %v6509_v16  ;;  %v6569_v37 = vsel %vm732_vm4, %v745_v27, %v746_v28  ;;  %v6587_v42 = vsel %vm732_vm4, %v748_v34, %v749_v35  ;;  %v755_v44 = vrot.slane %v6577_v41, 1  ;;  %v1009_v45 = vrot.slane %v6478_v5, 2  ;;  %v4889_v12 = vld [vmem:[%s7662_s1 + $0x20] sm:$0xf]  ;;  %v6745_v24 = vld [vmem:[%s6475_s24 + $0x98] sm:$0x3] }
  0xa0   : >> { %5442 = vmatprep.subr.msk.mxu0 %vm775_vm3, %v4849_v31  ;;  %v6595_v46 = vsel %vm732_vm4, %v751_v39, %v752_v40  ;;  %v1010_v47 = vrot.slane %v6484_v7, 2  ;;  %v1012_v48 = vrot.slane %v6481_v6, 2  ;;  %v1013_v49 = vrot.slane %v6491_v10, 2  ;;  %v711_v7 = vld [vmem:[%s6475_s24 + $0x80] sm:$0xff]  ;;  %v6821_v34 = vld [vmem:[%s6475_s24 + $0xf0] sm:$0xff] }
  0xa1   : >> { %5392 = vmatmul.mubr.msk.f32.gmra.mxu0 %vm415_vm0, %v6557_v33  ;;  %v6607_v50 = vsel %vm732_vm4, %v754_v43, %v755_v44  ;;  %v1015_v52 = vrot.slane %v6503_v14, 2  ;;  %v1016_v53 = vrot.slane %v6516_v18, 2  ;;  %v1018_v56 = vrot.slane %v6506_v15, 2  ;;  %v4919_v10 = vld [vmem:[%s7662_s1 + $0x24] sm:$0xf] }
  0xa2   : >> { %5409 = vmatmul.mubr.msk.f32.gmra.mxu1 %vm415_vm0, %v6530_v25  ;;  %5394 = vmatprep.mubr.msk.f32.mxu0 %vm415_vm0, %v6569_v37  ;;  %v1011_v51 = vsel %vm1008_vm5, %v1009_v45, %v1010_v47  ;;  %v1014_v55 = vsel %vm1008_vm5, %v1012_v48, %v1013_v49  ;;  %v1019_v57 = vrot.slane %v6520_v20, 2  ;;  %v1021_v58 = vrot.slane %v6509_v16, 2  ;;  %v4899_v27 = vld [vmem:[%s6475_s24 + $0xa0] sm:$0xff]  ;;  %v4902_v35 = vld [vmem:[%s6475_s24 + $0xb8] sm:$0x3]  ;;  %v6842_v45 = vld [vmem:[%s6475_s24 + $0x110] sm:$0xff] }
  0xa3   : >> { %5411 = vmatprep.mubr.msk.f32.mxu1 %vm415_vm0, %v6545_v30  ;;  %v1022_v59 = vrot.slane %v6533_v26, 2  ;;  %v6632_v60 = vsel %vm1008_vm5, %v1015_v52, %v1016_v53  ;;  %v1024_v63 = vrot.slane %v6530_v25, 2  ;;  %v1025_v0 = vrot.slane %v6542_v29, 2  ;;  %v4929_v26 = vld [vmem:[%s7662_s1 + $0x28] sm:$0xf]  ;;  %v6781_v28 = vld [vmem:[%s6475_s24 + $0xc0] sm:$0xff] }
  0xa4   : >> { %v6643_v62 = vsel %vm1008_vm5, %v1018_v56, %v1019_v57  ;;  %v1027_v2 = vrot.slane %v6545_v30, 2  ;;  %v1028_v3 = vrot.slane %v6562_v36, 2  ;;  %v1030_v5 = vrot.slane %v6572_v38, 2  ;;  %v6788_v29 = vld [vmem:[%s7662_s1 + $0x34] sm:$0xf] }
  0xa5   : >> { %5395 = vmatmul.mubr.msk.f32.gmra.mxu0 %vm415_vm0, %v6587_v42  ;;  %v6652_v1 = vsel %vm1008_vm5, %v1021_v58, %v1022_v59  ;;  %v6664_v4 = vsel %vm1008_vm5, %v1024_v63, %v1025_v0  ;;  %v1412_v13 = vrot.slane %v711_v7, 2  ;;  %v1289_v18 = vrot.slane %v711_v7, 1  ;;  %v4904_v39 = vld [vmem:[%s6475_s24 + $0xc8] sm:$0x3] }
  0xa6   : >> { %5412 = vmatmul.mubr.msk.f32.gmra.mxu1 %vm415_vm0, %v6572_v38  ;;  %5397 = vmatprep.mubr.msk.f32.mxu0 %vm415_vm0, %v6595_v46  ;;  %v6672_v8 = vsel %vm1008_vm5, %v1027_v2, %v1028_v3  ;;  %v2234_v36 = vrot.slane %v4899_v27, 2  ;;  %v2238_v43 = vrot.slane %v4902_v35, 2  ;;  %v2076_v44 = vrot.slane %v4899_v27, 1  ;;  %v4912_v3 = vld [vmem:[%s6475_s24 + $0x108] sm:$0x3] }
  0xa7   : >> { %5430 = vmatprep.mubr.msk.f32.mxu1 %vm415_vm0, %v6481_v6  ;;  %v1031_v6 = vrot.slane %v6577_v41, 2  ;;  %v1780_v41 = vrot.slane %v6742_v23, 2  ;;  %v2240_v47 = vrot.slane %v6781_v28, 2  ;;  %v2241_v48 = vrot.slane %v4904_v39, 2 }
  0xa9   : >> { %5398 = vmatmul.mubr.msk.f32.gmra.mxu0 %vm415_vm0, %v6607_v50  ;;  %v6680_v9 = vsel %vm1008_vm5, %v1030_v5, %v1031_v6  ;;  %v6862_v57 = vsel %vm1008_vm5, %v2240_v47, %v2241_v48  ;;  %v2249_v6 = vrot.slane %v6821_v34, 2  ;;  %v4918_v47 = vld [vmem:[%s6475_s24 + $0x138] sm:$0x3]  ;;  %v5049_v48 = vld [vmem:[%s7662_s1 + $0x4c] sm:$0xf] }
  0xaa   : >> { %5431 = vmatmul.mubr.msk.f32.vlgmr.msra.gmra.mxu1 %vm415_vm0, %v6503_v14  ;;  %5416 = vmatprep.mubr.msk.f32.mxu0 %vm415_vm0, %v1011_v51  ;;  %v4908_v51 = vld [vmem:[%s6475_s24 + $0xe8] sm:$0x3] }
  0xab   : >> { %5433 = vmatprep.mubr.msk.f32.mxu1 %vm415_vm0, %v6506_v15  ;;  %5457 = vmatpush3.msk.msra.mxu1 %vm775_vm3, %v6496_v11  ;;  %v712_v11 = vld [vmem:[%s6475_s24 + $0x88] sm:$0x3]  ;;  %v2247_v0 = vrot.slane %v4908_v51, 2 }
  0xac   : >> { %5484 = vmatprep.subr.msk.mxu1 %vm775_vm3, %v4879_v54  ;;  %v1413_v17 = vrot.slane %v712_v11, 2  ;;  %v1290_v19 = vrot.slane %v712_v11, 1 }
  0xad   : >> { %5417 = vmatmul.mubr.msk.f32.vlgmr.msra.gmra.mxu0 %vm415_vm0, %v1014_v55 }
  0xae   : >> { %5443 = vmatpush3.msk.msra.mxu0 %vm775_vm3, %v4849_v31  ;;  %5434 = vmatmul.mubr.msk.f32.gmra.mxu1 %vm415_vm0, %v6509_v16  ;;  %v6719_v20 = vsel %vm1008_vm5, %v1412_v13, %v1413_v17  ;;  %v1291_v21 = vsel %vm732_vm4, %v1289_v18, %v1290_v19  ;;  %v6801_v31 = vld [vmem:[%s6475_s24 + $0xe0] sm:$0xff]  ;;  %v2253_v17 = vrot.slane %v4912_v3, 2  ;;  %v4914_v18 = vld [vmem:[%s6475_s24 + $0x118] sm:$0x3] }
  0xaf   : >> { %5419 = vmatprep.mubr.msk.f32.mxu0 %vm415_vm0, %v6632_v60  ;;  %5436 = vmatprep.mubr.msk.f32.mxu1 %vm415_vm0, %v6530_v25  ;;  %v2246_v63 = vrot.slane %v6801_v31, 2 }
  0xb0   : >> { %5470 = vmatprep.subr.msk.mxu0 %vm775_vm3, %v4869_v61 }
  0xb1   : >> { %5420 = vmatmul.mubr.msk.f32.gmra.mxu0 %vm415_vm0, %v6643_v62 }
  0xb2   : >> { %5437 = vmatmul.mubr.msk.f32.gmra.mxu1 %vm415_vm0, %v6545_v30  ;;  %5422 = vmatprep.mubr.msk.f32.mxu0 %vm415_vm0, %v6652_v1 }
  0xb3   : >> { %5439 = vmatprep.mubr.msk.f32.mxu1 %vm415_vm0, %v6572_v38 }
  0xb5   : >> { %5423 = vmatmul.mubr.msk.f32.gmra.mxu0 %vm415_vm0, %v6664_v4 }
  0xb6   : >> { %5440 = vmatmul.mubr.msk.f32.gmra.mxu1 %vm415_vm0, %v711_v7  ;;  %5425 = vmatprep.mubr.msk.f32.mxu0 %vm415_vm0, %v6672_v8 }
  0xb7   : >> { %5458 = vmatprep.mubr.msk.f32.mxu1 %vm415_vm0, %v1014_v55  ;;  %v2080_v55 = vrot.slane %v4902_v35, 1 }
  0xb9   : >> { %5426 = vmatmul.mubr.msk.f32.gmra.mxu0 %vm415_vm0, %v6680_v9 }
  0xba   : >> { %5459 = vmatmul.mubr.msk.f32.vlgmr.msra.gmra.mxu1 %vm415_vm0, %v6632_v60  ;;  %5444 = vmatprep.mubr.msk.f32.mxu0 %vm415_vm0, %v6525_v22  ;;  %v4939_v22 = vld [vmem:[%s7662_s1 + $0x2c] sm:$0xf] }
  0xbb   : >> { %5461 = vmatprep.mubr.msk.f32.mxu1 %vm415_vm0, %v6643_v62  ;;  %5485 = vmatpush3.msk.msra.mxu1 %vm775_vm3, %v4879_v54 }
  0xbc   : >> { %5512 = vmatprep.subr.msk.mxu1 %vm775_vm3, %v4919_v10 }
  0xbd   : >> { %5445 = vmatmul.mubr.msk.f32.vlgmr.msra.gmra.mxu0 %vm415_vm0, %v6554_v32 }
  0xbe   : >> { %5471 = vmatpush3.msk.msra.mxu0 %vm775_vm3, %v4869_v61  ;;  %5462 = vmatmul.mubr.msk.f32.gmra.mxu1 %vm415_vm0, %v6652_v1  ;;  %v2082_v61 = vrot.slane %v6781_v28, 1 }
  0xbf   : >> { %5447 = vmatprep.mubr.msk.f32.mxu0 %vm415_vm0, %v6557_v33  ;;  %5464 = vmatprep.mubr.msk.f32.mxu1 %vm415_vm0, %v6664_v4 }
  0xc0   : >> { %5498 = vmatprep.subr.msk.mxu0 %vm775_vm3, %v4889_v12 }
  0xc1   : >> { %5448 = vmatmul.mubr.msk.f32.gmra.mxu0 %vm415_vm0, %v6569_v37 }
  0xc2   : >> { %5465 = vmatmul.mubr.msk.f32.gmra.mxu1 %vm415_vm0, %v6672_v8  ;;  %5450 = vmatprep.mubr.msk.f32.mxu0 %vm415_vm0, %v6587_v42 }
  0xc3   : >> { %5467 = vmatprep.mubr.msk.f32.mxu1 %vm415_vm0, %v6680_v9 }
  0xc5   : >> { %5451 = vmatmul.mubr.msk.f32.gmra.mxu0 %vm415_vm0, %v6595_v46 }
  0xc6   : >> { %5468 = vmatmul.mubr.msk.f32.gmra.mxu1 %vm415_vm0, %v6719_v20  ;;  %5453 = vmatprep.mubr.msk.f32.mxu0 %vm415_vm0, %v6607_v50 }
  0xc7   : >> { %5486 = vmatprep.mubr.msk.f32.mxu1 %vm415_vm0, %v6554_v32  ;;  %v4900_v32 = vld [vmem:[%s6475_s24 + $0xa8] sm:$0x3] }
  0xc9   : >> { %5454 = vmatmul.mubr.msk.f32.gmra.mxu0 %vm415_vm0, %v1291_v21 }
  0xca   : >> { %5487 = vmatmul.mubr.msk.f32.vlgmr.msra.gmra.mxu1 %vm415_vm0, %v6557_v33  ;;  %5472 = vmatprep.mubr.msk.f32.mxu0 %vm415_vm0, %v6503_v14  ;;  %v1657_v14 = vrot.slane %v6742_v23, 1  ;;  %v6811_v33 = vld [vmem:[%s7662_s1 + $0x30] sm:$0xf] }
  0xcb   : >> { %5489 = vmatprep.mubr.msk.f32.mxu1 %vm415_vm0, %v6569_v37  ;;  %5513 = vmatpush3.msk.msra.mxu1 %vm775_vm3, %v4919_v10  ;;  %v6825_v37 = vld [vmem:[%s6475_s24 + $0x100] sm:$0xff]  ;;  %v2089_v10 = vrot.slane %v4908_v51, 1 }
  0xcc   : >> { %5540 = vmatprep.subr.msk.mxu1 %vm775_vm3, %v4939_v22  ;;  %v2252_v13 = vrot.slane %v6825_v37, 2 }
  0xcd   : >> { %5473 = vmatmul.mubr.msk.f32.vlgmr.msra.gmra.mxu0 %vm415_vm0, %v6506_v15  ;;  %v1658_v15 = vrot.slane %v6745_v24, 1 }
  0xce   : >> { %5499 = vmatpush3.msk.msra.mxu0 %vm775_vm3, %v4889_v12  ;;  %5490 = vmatmul.mubr.msk.f32.gmra.mxu1 %vm415_vm0, %v6587_v42  ;;  %v1781_v42 = vrot.slane %v6745_v24, 2  ;;  %v6893_v12 = vsel %vm1008_vm5, %v2246_v63, %v2247_v0  ;;  %v2255_v24 = vrot.slane %v6842_v45, 2  ;;  %v7126_v63 = vld [vmem:[%s6475_s24 + $0x190] sm:$0xff] }
  0xcf   : >> { %5475 = vmatprep.mubr.msk.f32.mxu0 %vm415_vm0, %v6509_v16  ;;  %5492 = vmatprep.mubr.msk.f32.mxu1 %vm415_vm0, %v6595_v46  ;;  %v1659_v16 = vsel %vm732_vm4, %v1657_v14, %v1658_v15  ;;  %v2077_v46 = vrot.slane %v4900_v32, 1  ;;  %v2256_v14 = vrot.slane %v4914_v18, 2  ;;  %v2094_v15 = vrot.slane %v6825_v37, 1 }
  0xd0   : >> { %5526 = vmatprep.subr.msk.mxu0 %vm775_vm3, %v4929_v26  ;;  %v1782_v53 = vsel %vm1008_vm5, %v1780_v41, %v1781_v42  ;;  %v4916_v41 = vld [vmem:[%s6475_s24 + $0x128] sm:$0x3]  ;;  %v4989_v42 = vld [vmem:[%s7662_s1 + $0x40] sm:$0xf] }
  0xd1   : >> { %5476 = vmatmul.mubr.msk.f32.gmra.mxu0 %vm415_vm0, %v6530_v25  ;;  %v6778_v25 = vld [vmem:[%s6475_s24 + $0xb0] sm:$0xff]  ;;  %v2078_v56 = vsel %vm732_vm4, %v2076_v44, %v2077_v46  ;;  %v6940_v35 = vsel %vm1008_vm5, %v2255_v24, %v2256_v14  ;;  %v5039_v46 = vld [vmem:[%s7662_s1 + $0x48] sm:$0xf] }
  0xd2   : >> { %5493 = vmatmul.mubr.msk.f32.gmra.mxu1 %vm415_vm0, %v6607_v50  ;;  %5478 = vmatprep.mubr.msk.f32.mxu0 %vm415_vm0, %v6545_v30  ;;  %v6797_v30 = vld [vmem:[%s6475_s24 + $0xd0] sm:$0xff]  ;;  %v2237_v40 = vrot.slane %v6778_v25, 2  ;;  %v4906_v50 = vld [vmem:[%s6475_s24 + $0xd8] sm:$0x3]  ;;  %v2079_v52 = vrot.slane %v6778_v25, 1 }
  0xd3   : >> { %5495 = vmatprep.mubr.msk.f32.mxu1 %vm415_vm0, %v1291_v21  ;;  %v2243_v58 = vrot.slane %v6797_v30, 2  ;;  %v2244_v59 = vrot.slane %v4906_v50, 2  ;;  %v2086_v2 = vrot.slane %v4906_v50, 1  ;;  %v3006_v50 = vrot.slane %v4918_v47, 2 }
  0xd4   : >> { %v6857_v54 = vsel %vm1008_vm5, %v2237_v40, %v2238_v43  ;;  %v6878_v5 = vsel %vm732_vm4, %v2079_v52, %v2080_v55  ;;  %v4915_v40 = vld [vmem:[%s6475_s24 + $0x120] sm:$0xff]  ;;  %v2515_v43 = vrot.slane %v4916_v41, 1  ;;  %v2883_v52 = vrot.slane %v4918_v47, 1 }
  0xd5   : >> { %5479 = vmatmul.mubr.msk.f32.gmra.mxu0 %vm415_vm0, %v6572_v38  ;;  %v2235_v38 = vrot.slane %v4900_v32, 2  ;;  %v2097_v32 = vrot.slane %v6842_v45, 1 }
  0xd6   : >> { %5496 = vmatmul.mubr.msk.f32.gmra.mxu1 %vm415_vm0, %v1659_v16  ;;  %5481 = vmatprep.mubr.msk.f32.mxu0 %vm415_vm0, %v711_v7  ;;  %v2095_v16 = vrot.slane %v4912_v3, 1  ;;  %v5022_v3 = vld [vmem:[%s6475_s24 + $0x158] sm:$0x3] }
  0xd7   : >> { %5514 = vmatprep.mubr.msk.f32.mxu1 %vm415_vm0, %v4899_v27  ;;  %v2236_v49 = vsel %vm1008_vm5, %v2234_v36, %v2235_v38  ;;  %v6924_v27 = vsel %vm1008_vm5, %v2252_v13, %v2253_v17  ;;  %v5026_v13 = vld [vmem:[%s6475_s24 + $0x178] sm:$0x3] }
  0xd8   : >> { %v6943_v36 = vsel %vm732_vm4, %v2094_v15, %v2095_v16  ;;  %v3645_v14 = vrot.slane %v5026_v13, 2 }
  0xd9   : >> { %5482 = vmatmul.mubr.msk.f32.gmra.mxu0 %vm415_vm0, %v6742_v23 }
  0xda   : >> { %5515 = vmatmul.mubr.msk.f32.vlgmr.msra.gmra.mxu1 %vm415_vm0, %v6778_v25  ;;  %5500 = vmatprep.mubr.msk.f32.mxu0 %vm415_vm0, %v6632_v60  ;;  %v4910_v60 = vld [vmem:[%s6475_s24 + $0xf8] sm:$0x3] }
  0xdb   : >> { %5517 = vmatprep.mubr.msk.f32.mxu1 %vm415_vm0, %v6781_v28  ;;  %5541 = vmatpush3.msk.msra.mxu1 %vm775_vm3, %v4939_v22  ;;  %v2250_v7 = vrot.slane %v4910_v60, 2  ;;  %v2091_v22 = vrot.slane %v6821_v34, 1  ;;  %v2092_v23 = vrot.slane %v4910_v60, 1  ;;  %v7107_v60 = vld [vmem:[%s6475_s24 + $0x180] sm:$0xff] }
  0xdc   : >> { %5568 = vmatprep.subr.msk.mxu1 %vm775_vm3, %v6788_v29  ;;  %v3647_v15 = vrot.slane %v7107_v60, 2 }
  0xdd   : >> { %5501 = vmatmul.mubr.msk.f32.vlgmr.msra.gmra.mxu0 %vm415_vm0, %v6643_v62  ;;  %v2083_v62 = vrot.slane %v4904_v39, 1  ;;  %v6911_v21 = vsel %vm1008_vm5, %v2249_v6, %v2250_v7  ;;  %v4999_v39 = vld [vmem:[%s7662_s1 + $0x44] sm:$0xf]  ;;  %v7145_v7 = vld [vmem:[%s6475_s24 + $0x1b0] sm:$0xff] }
  0xde   : >> { %5527 = vmatpush3.msk.msra.mxu0 %vm775_vm3, %v4929_v26  ;;  %5518 = vmatmul.mubr.msk.f32.gmra.mxu1 %vm415_vm0, %v6797_v30 }
  0xdf   : >> { %5503 = vmatprep.mubr.msk.f32.mxu0 %vm415_vm0, %v6652_v1  ;;  %5520 = vmatprep.mubr.msk.f32.mxu1 %vm415_vm0, %v6801_v31  ;;  %v2085_v1 = vrot.slane %v6797_v30, 1  ;;  %v6890_v11 = vsel %vm732_vm4, %v2082_v61, %v2083_v62  ;;  %v5020_v61 = vld [vmem:[%s6475_s24 + $0x148] sm:$0x3]  ;;  %v7116_v62 = vld [vmem:[%s7662_s1 + $0x54] sm:$0xf] }
  0xe0   : >> { %5554 = vmatprep.subr.msk.mxu0 %vm775_vm3, %v6811_v33 }
  0xe1   : >> { %5504 = vmatmul.mubr.msk.f32.gmra.mxu0 %vm415_vm0, %v6664_v4  ;;  %v4979_v4 = vld [vmem:[%s7662_s1 + $0x3c] sm:$0xf]  ;;  %v6901_v19 = vsel %vm732_vm4, %v2085_v1, %v2086_v2  ;;  %v7129_v1 = vld [vmem:[%s6475_s24 + $0x1a0] sm:$0xff]  ;;  %v3636_v2 = vrot.slane %v5020_v61, 2 }
  0xe2   : >> { %5521 = vmatmul.mubr.msk.f32.gmra.mxu1 %vm415_vm0, %v6821_v34  ;;  %5506 = vmatprep.mubr.msk.f32.mxu0 %vm415_vm0, %v6672_v8  ;;  %v6884_v8 = vsel %vm1008_vm5, %v2243_v58, %v2244_v59  ;;  %v5079_v58 = vld [vmem:[%s7662_s1 + $0x58] sm:$0xf]  ;;  %v7103_v59 = vld [vmem:[%s6475_s24 + $0x170] sm:$0xff]  ;;  %v3495_v47 = vrot.slane %v7129_v1, 1 }
  0xe3   : >> { %5523 = vmatprep.mubr.msk.f32.mxu1 %vm415_vm0, %v6825_v37 }
  0xe5   : >> { %5507 = vmatmul.mubr.msk.f32.gmra.mxu0 %vm415_vm0, %v6680_v9  ;;  %v2088_v9 = vrot.slane %v6801_v31, 1 }
  0xe6   : >> { %5524 = vmatmul.mubr.msk.f32.gmra.mxu1 %vm415_vm0, %v6842_v45  ;;  %5509 = vmatprep.mubr.msk.f32.mxu0 %vm415_vm0, %v6719_v20  ;;  %v4969_v20 = vld [vmem:[%s7662_s1 + $0x38] sm:$0xf] }
  0xe7   : >> { %5542 = vmatprep.mubr.msk.f32.mxu1 %vm415_vm0, %v2236_v49  ;;  %v6920_v26 = vsel %vm732_vm4, %v2088_v9, %v2089_v10  ;;  %v3639_v9 = vrot.slane %v5022_v3, 2 }
  0xe9   : >> { %5510 = vmatmul.mubr.msk.f32.gmra.mxu0 %vm415_vm0, %v1782_v53 }
  0xea   : >> { %5543 = vmatmul.mubr.msk.f32.vlgmr.msra.gmra.mxu1 %vm415_vm0, %v6857_v54  ;;  %5528 = vmatprep.mubr.msk.f32.mxu0 %vm415_vm0, %v2078_v56  ;;  %v7087_v56 = vld [vmem:[%s6475_s24 + $0x150] sm:$0xff] }
  0xeb   : >> { %5545 = vmatprep.mubr.msk.f32.mxu1 %vm415_vm0, %v6862_v57  ;;  %5569 = vmatpush3.msk.msra.mxu1 %vm775_vm3, %v6788_v29  ;;  %v6934_v29 = vsel %vm732_vm4, %v2091_v22, %v2092_v23  ;;  %v3638_v6 = vrot.slane %v7087_v56, 2  ;;  %v3480_v17 = vrot.slane %v7087_v56, 1 }
  0xec   : >> { %5596 = vmatprep.subr.msk.mxu1 %vm775_vm3, %v4979_v4 }
  0xed   : >> { %5529 = vmatmul.mubr.msk.f32.vlgmr.msra.gmra.mxu0 %vm415_vm0, %v6878_v5 }
  0xee   : >> { %5555 = vmatpush3.msk.msra.mxu0 %vm775_vm3, %v6811_v33  ;;  %5546 = vmatmul.mubr.msk.f32.gmra.mxu1 %vm415_vm0, %v6884_v8  ;;  %v2098_v33 = vrot.slane %v4914_v18, 1  ;;  %v3481_v18 = vrot.slane %v5022_v3, 1  ;;  %v5036_v3 = vld [vmem:[%s6475_s24 + $0x1c8] sm:$0x3] }
  0xef   : >> { %5531 = vmatprep.mubr.msk.f32.mxu0 %vm415_vm0, %v6890_v11  ;;  %5548 = vmatprep.mubr.msk.f32.mxu1 %vm415_vm0, %v6893_v12 }
  0xf0   : >> { %5582 = vmatprep.subr.msk.mxu0 %vm775_vm3, %v4969_v20  ;;  %v6952_v38 = vsel %vm732_vm4, %v2097_v32, %v2098_v33  ;;  %v3482_v32 = vsel %vm732_vm4, %v3480_v17, %v3481_v18  ;;  %v3486_v33 = vrot.slane %v7103_v59, 1 }
  0xf1   : >> { %5532 = vmatmul.mubr.msk.f32.gmra.mxu0 %vm415_vm0, %v6901_v19 }
  0xf2   : >> { %5549 = vmatmul.mubr.msk.f32.gmra.mxu1 %vm415_vm0, %v6911_v21  ;;  %5534 = vmatprep.mubr.msk.f32.mxu0 %vm415_vm0, %v6920_v26 }
  0xf3   : >> { %5551 = vmatprep.mubr.msk.f32.mxu1 %vm415_vm0, %v6924_v27 }
  0xf5   : >> { %5535 = vmatmul.mubr.msk.f32.gmra.mxu0 %vm415_vm0, %v6934_v29 }
  0xf6   : >> { %5552 = vmatmul.mubr.msk.f32.gmra.mxu1 %vm415_vm0, %v6940_v35  ;;  %5537 = vmatprep.mubr.msk.f32.mxu0 %vm415_vm0, %v6943_v36 }
  0xf7   : >> { %5570 = vmatprep.mubr.msk.f32.mxu1 %vm415_vm0, %v6878_v5 }
  0xf9   : >> { %5538 = vmatmul.mubr.msk.f32.gmra.mxu0 %vm415_vm0, %v6952_v38 }
  0xfa   : >> { %5571 = vmatmul.mubr.msk.f32.vlgmr.msra.gmra.mxu1 %vm415_vm0, %v6890_v11  ;;  %5556 = vmatprep.mubr.msk.f32.mxu0 %vm415_vm0, %v6778_v25  ;;  %v2514_v25 = vrot.slane %v4915_v40, 1 }
  0xfb   : >> { %5573 = vmatprep.mubr.msk.f32.mxu1 %vm415_vm0, %v6901_v19  ;;  %5597 = vmatpush3.msk.msra.mxu1 %vm775_vm3, %v4979_v4  ;;  %v5024_v4 = vld [vmem:[%s6475_s24 + $0x168] sm:$0x3] }
  0xfc   : >> { %5624 = vmatprep.subr.msk.mxu1 %vm775_vm3, %v4999_v39  ;;  %v6993_v44 = vsel %vm732_vm4, %v2514_v25, %v2515_v43  ;;  %v3484_v23 = vrot.slane %v5024_v4, 1  ;;  %v5089_v43 = vld [vmem:[%s7662_s1 + $0x5c] sm:$0xf] }
  0xfd   : >> { %5557 = vmatmul.mubr.msk.f32.vlgmr.msra.gmra.mxu0 %vm415_vm0, %v6781_v28 }
  0xfe   : >> { %5583 = vmatpush3.msk.msra.mxu0 %vm775_vm3, %v4969_v20  ;;  %5574 = vmatmul.mubr.msk.f32.gmra.mxu1 %vm415_vm0, %v6920_v26 }
  0xff   : >> { %5559 = vmatprep.mubr.msk.f32.mxu0 %vm415_vm0, %v6797_v30  ;;  %5576 = vmatprep.mubr.msk.f32.mxu1 %vm415_vm0, %v6934_v29 }
 0x100   : >> { %5610 = vmatprep.subr.msk.mxu0 %vm775_vm3, %v4989_v42 }
 0x101   : >> { %5560 = vmatmul.mubr.msk.f32.gmra.mxu0 %vm415_vm0, %v6801_v31 }
 0x102   : >> { %5577 = vmatmul.mubr.msk.f32.gmra.mxu1 %vm415_vm0, %v6943_v36  ;;  %5562 = vmatprep.mubr.msk.f32.mxu0 %vm415_vm0, %v6821_v34 }
 0x103   : >> { %5579 = vmatprep.mubr.msk.f32.mxu1 %vm415_vm0, %v6952_v38 }
 0x105   : >> { %5563 = vmatmul.mubr.msk.f32.gmra.mxu0 %vm415_vm0, %v6825_v37 }
 0x106   : >> { %5580 = vmatmul.mubr.msk.f32.gmra.mxu1 %vm415_vm0, %v6993_v44  ;;  %5565 = vmatprep.mubr.msk.f32.mxu0 %vm415_vm0, %v6842_v45 }
 0x107   : >> { %5598 = vmatprep.mubr.msk.f32.mxu1 %vm415_vm0, %v6781_v28  ;;  %v3128_v28 = vld [vmem:[%s7663_s2] sm:$0xf] }
 0x109   : >> { %5566 = vmatmul.mubr.msk.f32.gmra.mxu0 %vm415_vm0, %v4915_v40 }
 0x10a   : >> { %5599 = vmatmul.mubr.msk.f32.vlgmr.msra.gmra.mxu1 %vm415_vm0, %v6797_v30  ;;  %5584 = vmatprep.mubr.msk.f32.mxu0 %vm415_vm0, %v6857_v54  ;;  %v2637_v30 = vrot.slane %v4915_v40, 2  ;;  %v5019_v54 = vld [vmem:[%s6475_s24 + $0x140] sm:$0xff] }
 0x10b   : >> { %5601 = vmatprep.mubr.msk.f32.mxu1 %vm415_vm0, %v6801_v31  ;;  %5625 = vmatpush3.msk.msra.mxu1 %vm775_vm3, %v4999_v39  ;;  %v2638_v31 = vrot.slane %v4916_v41, 2  ;;  %v3635_v0 = vrot.slane %v5019_v54, 2  ;;  %v3489_v39 = vrot.slane %v7107_v60, 1 }
 0x10c   : >> { %5652 = vmatprep.subr.msk.mxu1 %vm775_vm3, %v5039_v46 }
 0x10d   : >> { %5585 = vmatmul.mubr.msk.f32.vlgmr.msra.gmra.mxu0 %vm415_vm0, %v6862_v57  ;;  %v3637_v10 = vsel %vm1008_vm5, %v3635_v0, %v3636_v2  ;;  %v5119_v0 = vld [vmem:[%s7662_s1 + $0x68] sm:$0xf]  ;;  %v5109_v2 = vld [vmem:[%s7662_s1 + $0x64] sm:$0xf] }
 0x10e   : >> { %5611 = vmatpush3.msk.msra.mxu0 %vm775_vm3, %v4989_v42  ;;  %5602 = vmatmul.mubr.msk.f32.gmra.mxu1 %vm415_vm0, %v6821_v34  ;;  %v4917_v34 = vld [vmem:[%s6475_s24 + $0x130] sm:$0xff]  ;;  %v3650_v42 = vrot.slane %v7126_v63, 2 }
 0x10f   : >> { %5587 = vmatprep.mubr.msk.f32.mxu0 %vm415_vm0, %v6884_v8  ;;  %5604 = vmatprep.mubr.msk.f32.mxu1 %vm415_vm0, %v6825_v37  ;;  %v2639_v37 = vsel %vm1008_vm5, %v2637_v30, %v2638_v31  ;;  %v3005_v49 = vrot.slane %v4917_v34, 2  ;;  %v2882_v51 = vrot.slane %v4917_v34, 1  ;;  %v5034_v30 = vld [vmem:[%s6475_s24 + $0x1b8] sm:$0x3] }
 0x110   : >> { %5638 = vmatprep.subr.msk.mxu0 %vm775_vm3, %v3128_v28 }
 0x111   : >> { %5588 = vmatmul.mubr.msk.f32.gmra.mxu0 %vm415_vm0, %v6893_v12  ;;  %v3007_v53 = vsel %vm1008_vm5, %v3005_v49, %v3006_v50  ;;  %v2884_v55 = vsel %vm732_vm4, %v2882_v51, %v2883_v52  ;;  %v3656_v50 = vrot.slane %v7145_v7, 2  ;;  %v3657_v51 = vrot.slane %v5034_v30, 2 }
 0x112   : >> { %5605 = vmatmul.mubr.msk.f32.gmra.mxu1 %vm415_vm0, %v6842_v45  ;;  %5590 = vmatprep.mubr.msk.f32.mxu0 %vm415_vm0, %v6911_v21  ;;  %v5059_v45 = vld [vmem:[%s7662_s1 + $0x50] sm:$0xf] }
 0x113   : >> { %5607 = vmatprep.mubr.msk.f32.mxu1 %vm415_vm0, %v4915_v40 }
 0x115   : >> { %5591 = vmatmul.mubr.msk.f32.gmra.mxu0 %vm415_vm0, %v6924_v27 }
 0x116   : >> { %5608 = vmatmul.mubr.msk.f32.gmra.mxu1 %vm415_vm0, %v4917_v34  ;;  %5593 = vmatprep.mubr.msk.f32.mxu0 %vm415_vm0, %v6940_v35  ;;  %v3492_v34 = vrot.slane %v7126_v63, 1 }
 0x117   : >> { %5626 = vmatprep.mubr.msk.f32.mxu1 %vm415_vm0, %v6862_v57  ;;  %v7090_v57 = vld [vmem:[%s6475_s24 + $0x160] sm:$0xff] }
 0x118   : >> { %v3483_v22 = vrot.slane %v7090_v57, 1 }
 0x119   : >> { %5594 = vmatmul.mubr.msk.f32.gmra.mxu0 %vm415_vm0, %v2639_v37 }
 0x11a   : >> { %5627 = vmatmul.mubr.msk.f32.vlgmr.msra.gmra.mxu1 %vm415_vm0, %v6884_v8  ;;  %5612 = vmatprep.mubr.msk.f32.mxu0 %vm415_vm0, %v6890_v11  ;;  %v3478_v8 = vrot.slane %v5020_v61, 1  ;;  %v7242_v61 = vsel %vm1008_vm5, %v3656_v50, %v3657_v51 }
 0x11b   : >> { %5629 = vmatprep.mubr.msk.f32.mxu1 %vm415_vm0, %v6893_v12  ;;  %5653 = vmatpush3.msk.msra.mxu1 %vm775_vm3, %v5039_v46  ;;  %v3642_v12 = vrot.slane %v5024_v4, 2  ;;  %v3653_v46 = vrot.slane %v7129_v1, 2 }
 0x11c   : >> { %5680 = vmatprep.subr.msk.mxu1 %vm775_vm3, %v5059_v45 }
 0x11d   : >> { %5613 = vmatmul.mubr.msk.f32.vlgmr.msra.gmra.mxu0 %vm415_vm0, %v6901_v19 }
 0x11e   : >> { %5639 = vmatpush3.msk.msra.mxu0 %vm775_vm3, %v3128_v28  ;;  %5630 = vmatmul.mubr.msk.f32.gmra.mxu1 %vm415_vm0, %v6911_v21  ;;  %v7161_v21 = vsel %vm1008_vm5, %v3638_v6, %v3639_v9 }
 0x11f   : >> { %5615 = vmatprep.mubr.msk.f32.mxu0 %vm415_vm0, %v6920_v26  ;;  %5632 = vmatprep.mubr.msk.f32.mxu1 %vm415_vm0, %v6924_v27  ;;  %v5030_v27 = vld [vmem:[%s6475_s24 + $0x198] sm:$0x3] }
 0x120   : >> { %5666 = vmatprep.subr.msk.mxu0 %vm775_vm3, %v5049_v48  ;;  %v3651_v25 = vrot.slane %v5030_v27, 2 }
 0x121   : >> { %5616 = vmatmul.mubr.msk.f32.gmra.mxu0 %vm415_vm0, %v6934_v29 }
 0x122   : >> { %5633 = vmatmul.mubr.msk.f32.gmra.mxu1 %vm415_vm0, %v6940_v35  ;;  %5618 = vmatprep.mubr.msk.f32.mxu0 %vm415_vm0, %v6943_v36  ;;  %v3487_v35 = vrot.slane %v5026_v13, 1  ;;  %v7220_v49 = vsel %vm1008_vm5, %v3650_v42, %v3651_v25 }
 0x123   : >> { %5635 = vmatprep.mubr.msk.f32.mxu1 %vm415_vm0, %v2639_v37  ;;  %v3493_v37 = vrot.slane %v5030_v27, 1 }
 0x124   : >> { %v7207_v31 = vsel %vm732_vm4, %v3486_v33, %v3487_v35 }
 0x125   : >> { %5619 = vmatmul.mubr.msk.f32.gmra.mxu0 %vm415_vm0, %v6952_v38 }
 0x126   : >> { %5636 = vmatmul.mubr.msk.f32.gmra.mxu1 %vm415_vm0, %v3007_v53  ;;  %5621 = vmatprep.mubr.msk.f32.mxu0 %vm415_vm0, %v6993_v44  ;;  %v7231_v53 = vsel %vm732_vm4, %v3492_v34, %v3493_v37 }
 0x127   : >> { %5654 = vmatprep.mubr.msk.f32.mxu1 %vm415_vm0, %v5019_v54 }
 0x129   : >> { %5622 = vmatmul.mubr.msk.f32.gmra.mxu0 %vm415_vm0, %v2884_v55  ;;  %v3499_v55 = vrot.slane %v5034_v30, 1 }
 0x12a   : >> { %5655 = vmatmul.mubr.msk.f32.vlgmr.msra.gmra.mxu1 %vm415_vm0, %v7087_v56  ;;  %5640 = vmatprep.mubr.msk.f32.mxu0 %vm415_vm0, %v6878_v5  ;;  %v3477_v5 = vrot.slane %v5019_v54, 1  ;;  %v3498_v54 = vrot.slane %v7145_v7, 1 }
 0x12b   : >> { %5657 = vmatprep.mubr.msk.f32.mxu1 %vm415_vm0, %v7090_v57  ;;  %5681 = vmatpush3.msk.msra.mxu1 %vm775_vm3, %v5059_v45 }
 0x12c   : >> { %5708 = vmatprep.subr.msk.mxu1 %vm775_vm3, %v5079_v58  ;;  %v3479_v20 = vsel %vm732_vm4, %v3477_v5, %v3478_v8  ;;  %v3916_v5 = vrot.slane %v5036_v3, 1 }
 0x12d   : >> { %5641 = vmatmul.mubr.msk.f32.vlgmr.msra.gmra.mxu0 %vm415_vm0, %v6890_v11  ;;  %v3641_v11 = vrot.slane %v7090_v57, 2 }
 0x12e   : >> { %5667 = vmatpush3.msk.msra.mxu0 %vm775_vm3, %v5049_v48  ;;  %5658 = vmatmul.mubr.msk.f32.gmra.mxu1 %vm415_vm0, %v7103_v59 }
 0x12f   : >> { %5643 = vmatprep.mubr.msk.f32.mxu0 %vm415_vm0, %v6901_v19  ;;  %5660 = vmatprep.mubr.msk.f32.mxu1 %vm415_vm0, %v7107_v60  ;;  %v5028_v19 = vld [vmem:[%s6475_s24 + $0x188] sm:$0x3]  ;;  %v7165_v24 = vsel %vm1008_vm5, %v3641_v11, %v3642_v12 }
 0x130   : >> { %5694 = vmatprep.subr.msk.mxu0 %vm775_vm3, %v7116_v62  ;;  %v3648_v16 = vrot.slane %v5028_v19, 2  ;;  %v3490_v40 = vrot.slane %v5028_v19, 1 }
 0x131   : >> { %5644 = vmatmul.mubr.msk.f32.gmra.mxu0 %vm415_vm0, %v6920_v26  ;;  %v3644_v26 = vrot.slane %v7103_v59, 2 }
 0x132   : >> { %5661 = vmatmul.mubr.msk.f32.gmra.mxu1 %vm415_vm0, %v7126_v63  ;;  %5646 = vmatprep.mubr.msk.f32.mxu0 %vm415_vm0, %v6934_v29  ;;  %v5099_v29 = vld [vmem:[%s7662_s1 + $0x60] sm:$0xf]  ;;  %v7213_v45 = vsel %vm732_vm4, %v3489_v39, %v3490_v40 }
 0x133   : >> { %5663 = vmatprep.mubr.msk.f32.mxu1 %vm415_vm0, %v7129_v1  ;;  %v7189_v41 = vsel %vm1008_vm5, %v3644_v26, %v3645_v14 }
 0x135   : >> { %5647 = vmatmul.mubr.msk.f32.gmra.mxu0 %vm415_vm0, %v6943_v36  ;;  %v5032_v36 = vld [vmem:[%s6475_s24 + $0x1a8] sm:$0x3] }
 0x136   : >> { %5664 = vmatmul.mubr.msk.f32.gmra.mxu1 %vm415_vm0, %v7145_v7  ;;  %5649 = vmatprep.mubr.msk.f32.mxu0 %vm415_vm0, %v6952_v38  ;;  %v7183_v38 = vsel %vm732_vm4, %v3483_v22, %v3484_v23  ;;  %v3654_v28 = vrot.slane %v5032_v36, 2  ;;  %v3496_v48 = vrot.slane %v5032_v36, 1 }
 0x137   : >> { %5682 = vmatprep.mubr.msk.f32.mxu1 %vm415_vm0, %v3637_v10 }
 0x138   : >> { %v7226_v52 = vsel %vm1008_vm5, %v3653_v46, %v3654_v28 }
 0x139   : >> { %5650 = vmatmul.mubr.msk.f32.gmra.mxu0 %vm415_vm0, %v6993_v44  ;;  %v7198_v44 = vsel %vm1008_vm5, %v3647_v15, %v3648_v16 }
 0x13a   : >> { %5668 = vmatprep.mubr.msk.f32.mxu0 %vm415_vm0, %v3479_v20  ;;  %5683 = vmatmul.mubr.msk.f32.vlgmr.msra.gmra.mxu1 %vm415_vm0, %v7161_v21  ;;  %v4039_v20 = vrot.slane %v5036_v3, 2 }
 0x13b   : >> { %5709 = vmatpush3.msk.msra.mxu1 %vm775_vm3, %v5079_v58  ;;  %5685 = vmatprep.mubr.msk.f32.mxu1 %vm415_vm0, %v7165_v24  ;;  %v7237_v58 = vsel %vm732_vm4, %v3495_v47, %v3496_v48 }
 0x13c   : >> { %5736 = vmatprep.subr.msk.mxu1 %vm775_vm3, %v5099_v29 }
 0x13d   : >> { %5669 = vmatmul.mubr.msk.f32.vlgmr.msra.gmra.mxu0 %vm415_vm0, %v3482_v32 }
 0x13e   : >> { %5695 = vmatpush3.msk.msra.mxu0 %vm775_vm3, %v7116_v62  ;;  %5671 = vmatprep.mubr.msk.f32.mxu0 %vm415_vm0, %v7183_v38  ;;  %v7249_v62 = vsel %vm732_vm4, %v3498_v54, %v3499_v55 }
 0x13f   : >> { %5686 = vmatmul.mubr.msk.f32.gmra.mxu1 %vm415_vm0, %v7189_v41  ;;  %5722 = vmatprep.subr.msk.mxu0 %vm775_vm3, %v5089_v43 }
 0x140   : >> { %5688 = vmatprep.mubr.msk.f32.mxu1 %vm415_vm0, %v7198_v44 }
 0x141   : >> { %5672 = vmatmul.mubr.msk.f32.gmra.mxu0 %vm415_vm0, %v7207_v31 }
 0x142   : >> { %5674 = vmatprep.mubr.msk.f32.mxu0 %vm415_vm0, %v7213_v45 }
 0x143   : >> { %5689 = vmatmul.mubr.msk.f32.gmra.mxu1 %vm415_vm0, %v7220_v49 }
 0x144   : >> { %5691 = vmatprep.mubr.msk.f32.mxu1 %vm415_vm0, %v7226_v52 }
 0x145   : >> { %5675 = vmatmul.mubr.msk.f32.gmra.mxu0 %vm415_vm0, %v7231_v53 }
 0x146   : >> { %5677 = vmatprep.mubr.msk.f32.mxu0 %vm415_vm0, %v7237_v58 }
 0x147   : >> { %5692 = vmatmul.mubr.msk.f32.gmra.mxu1 %vm415_vm0, %v7242_v61 }
 0x148   : >> { %5710 = vmatprep.mubr.msk.f32.mxu1 %vm415_vm0, %v3482_v32 }
 0x149   : >> { %5678 = vmatmul.mubr.msk.f32.gmra.mxu0 %vm415_vm0, %v7249_v62 }
 0x14a   : >> { %5696 = vmatprep.mubr.msk.f32.mxu0 %vm415_vm0, %v7087_v56  ;;  %v5035_v56 = vld [vmem:[%s6475_s24 + $0x1c0] sm:$0xff] }
 0x14b   : >> { %5711 = vmatmul.mubr.msk.f32.vlgmr.msra.gmra.mxu1 %vm415_vm0, %v7183_v38  ;;  %v3915_v4 = vrot.slane %v5035_v56, 1  ;;  %v4038_v19 = vrot.slane %v5035_v56, 2 }
 0x14c   : >> { %5737 = vmatpush3.msk.msra.mxu1 %vm775_vm3, %v5099_v29  ;;  %5713 = vmatprep.mubr.msk.f32.mxu1 %vm415_vm0, %v7207_v31 }
 0x14d   : >> { %5697 = vmatmul.mubr.msk.f32.vlgmr.msra.gmra.mxu0 %vm415_vm0, %v7090_v57  ;;  %5764 = vmatprep.subr.msk.mxu1 %vm775_vm3, %v5119_v0  ;;  %v7291_v6 = vsel %vm732_vm4, %v3915_v4, %v3916_v5  ;;  %v4040_v15 = vsel %vm1008_vm5, %v4038_v19, %v4039_v20 }
 0x14e   : >> { %5723 = vmatpush3.msk.msra.mxu0 %vm775_vm3, %v5089_v43  ;;  %5699 = vmatprep.mubr.msk.f32.mxu0 %vm415_vm0, %v7103_v59 }
 0x14f   : >> { %5714 = vmatmul.mubr.msk.f32.gmra.mxu1 %vm415_vm0, %v7213_v45  ;;  %5750 = vmatprep.subr.msk.mxu0 %vm775_vm3, %v5109_v2 }
 0x150   : >> { %5716 = vmatprep.mubr.msk.f32.mxu1 %vm415_vm0, %v7231_v53 }
 0x151   : >> { %5700 = vmatmul.mubr.msk.f32.gmra.mxu0 %vm415_vm0, %v7107_v60 }
 0x152   : >> { %5702 = vmatprep.mubr.msk.f32.mxu0 %vm415_vm0, %v7126_v63 }
 0x153   : >> { %5717 = vmatmul.mubr.msk.f32.gmra.mxu1 %vm415_vm0, %v7237_v58 }
 0x154   : >> { %5719 = vmatprep.mubr.msk.f32.mxu1 %vm415_vm0, %v7249_v62 }
 0x155   : >> { %5703 = vmatmul.mubr.msk.f32.gmra.mxu0 %vm415_vm0, %v7129_v1 }
 0x156   : >> { %5705 = vmatprep.mubr.msk.f32.mxu0 %vm415_vm0, %v7145_v7 }
 0x157   : >> { %5720 = vmatmul.mubr.msk.f32.gmra.mxu1 %vm415_vm0, %v7291_v6 }
 0x158   : >> { %5738 = vmatprep.mubr.msk.f32.mxu1 %vm415_vm0, %v7090_v57 }
 0x159   : >> { %5706 = vmatmul.mubr.msk.f32.gmra.mxu0 %vm415_vm0, %v5035_v56 }
 0x15a   : >> { %v5404_v8 = vpop.f32.mrf.mxu1  ;;  %5724 = vmatprep.mubr.msk.f32.mxu0 %vm415_vm0, %v7161_v21 }
 0x15b   : >> { %5739 = vmatmul.mubr.msk.f32.vlgmr.msra.gmra.mxu1 %vm415_vm0, %v7103_v59 }
 0x15c   : >> { %v969_v9 = vpop.f32.mrf.mxu1  ;;  %5765 = vmatpush3.msk.msra.mxu1 %vm775_vm3, %v5119_v0  ;;  %5741 = vmatprep.mubr.msk.f32.mxu1 %vm415_vm0, %v7107_v60 }
 0x15d   : >> { %v5390_v10 = vpop.f32.mrf.mxu0  ;;  %5725 = vmatmul.mubr.msk.f32.vlgmr.msra.gmra.mxu0 %vm415_vm0, %v7165_v24 }
 0x15e   : >> { %v975_v57 = vadd.f32 %v5404_v8, %v5390_v10  ;;  %5751 = vmatpush3.msk.msra.mxu0 %vm775_vm3, %v5109_v2  ;;  %v5407_v11 = vpop.f32.mrf.mxu1  ;;  %5727 = vmatprep.mubr.msk.f32.mxu0 %vm415_vm0, %v7189_v41 }
 0x15f   : >> { %v845_v12 = vpop.f32.mrf.mxu0  ;;  %5742 = vmatmul.mubr.msk.f32.gmra.mxu1 %vm415_vm0, %v7126_v63 }
 0x160   : >> { %v970_v59 = vadd.f32 %v969_v9, %v845_v12  ;;  %v979_v13 = vpop.f32.mrf.mxu1  ;;  %5744 = vmatprep.mubr.msk.f32.mxu1 %vm415_vm0, %v7129_v1  ;;  %v5037_v1 = vld [vmem:[%s6475_s24 + $0x1d0] sm:$0xff] }
 0x161   : >> { %v5393_v60 = vpop.f32.mrf.mxu0  ;;  %5728 = vmatmul.mubr.msk.f32.gmra.mxu0 %vm415_vm0, %v7198_v44 }
 0x162   : >> { %v985_v17 = vadd.f32 %v5407_v11, %v5393_v60  ;;  %v5410_v18 = vpop.f32.mrf.mxu1  ;;  %5730 = vmatprep.mubr.msk.f32.mxu0 %vm415_vm0, %v7220_v49 }
 0x163   : >> { %v855_v21 = vpop.f32.mrf.mxu0  ;;  %5745 = vmatmul.mubr.msk.f32.gmra.mxu1 %vm415_vm0, %v7145_v7 }
 0x164   : >> { %v980_v63 = vadd.f32 %v979_v13, %v855_v21  ;;  %v989_v22 = vpop.f32.mrf.mxu1  ;;  %5747 = vmatprep.mubr.msk.f32.mxu1 %vm415_vm0, %v5035_v56 }
 0x165   : >> { %v5396_v23 = vpop.f32.mrf.mxu0  ;;  %5731 = vmatmul.mubr.msk.f32.gmra.mxu0 %vm415_vm0, %v7226_v52 }
 0x166   : >> { %v995_v26 = vadd.f32 %v5410_v18, %v5396_v23  ;;  %v5413_v14 = vpop.f32.mrf.mxu1  ;;  %5733 = vmatprep.mubr.msk.f32.mxu0 %vm415_vm0, %v7242_v61 }
 0x167   : >> { %v865_v16 = vpop.f32.mrf.mxu0  ;;  %5748 = vmatmul.mubr.msk.f32.gmra.mxu1 %vm415_vm0, %v5037_v1 }
 0x168   : >> { %v990_v7 = vadd.f32 %v989_v22, %v865_v16  ;;  %v999_v27 = vpop.f32.mrf.mxu1  ;;  %5766 = vmatprep.mubr.msk.f32.mxu1 %vm415_vm0, %v7165_v24  ;;  %v5038_v24 = vld [vmem:[%s6475_s24 + $0x1d8] sm:$0x3]  ;;  %s5018_s24 = sshll.u32 %s5809_s28, 6  ;;  %s692_s28 = sadd.s32 1, %s5809_s28  }
 0x169   : >> { %v5399_v29 = vpop.f32.mrf.mxu0  ;;  %5734 = vmatmul.mubr.msk.f32.gmra.mxu0 %vm415_vm0, %v4040_v15  ;;  %s7423_s9 = scalar_lea.vmem %s344_s20, %s5018_s24  ;;  %s7606_s15 = scalar_lea.vmem %s333_s17, %s5018_s24 }
 0x16a   : >> { %v1005_v32 = vadd.f32 %v5413_v14, %v5399_v29  ;;  %v5432_v33 = vpop.f32.mrf.mxu1  ;;  %5752 = vmatprep.mubr.msk.f32.mxu0 %vm415_vm0, %v7183_v38  ;;  %p689_p4 = scmp.ge.s32.totalorder %s692_s28, 8  }
 0x16b   : >> { %v875_v35 = vpop.f32.mrf.mxu0  ;;  %5767 = vmatmul.mubr.msk.f32.vlgmr.msra.gmra.mxu1 %vm415_vm0, %v7189_v41  ;;  %v4406_v41 = vrot.slane %v5037_v1, 2 }
 0x16c   : >> { %v1000_v36 = vadd.f32 %v999_v27, %v875_v35  ;;  %v1241_v39 = vpop.f32.mrf.mxu1  ;;  %5769 = vmatprep.mubr.msk.f32.mxu1 %vm415_vm0, %v7198_v44  ;;  %v4407_v44 = vrot.slane %v5038_v24, 2 }
 0x16d   : >> { %v5418_v40 = vpop.f32.mrf.mxu0  ;;  %5753 = vmatmul.mubr.msk.f32.vlgmr.msra.gmra.mxu0 %vm415_vm0, %v7207_v31  ;;  %v4283_v31 = vrot.slane %v5037_v1, 1 }
 0x16e   : >> { %v1160_v42 = vadd.f32 %v5418_v40, %v975_v57  ;;  %v5435_v25 = vpop.f32.mrf.mxu1  ;;  %5755 = vmatprep.mubr.msk.f32.mxu0 %vm415_vm0, %v7213_v45  ;;  %v4284_v45 = vrot.slane %v5038_v24, 1  ;;  %v4408_v51 = vsel %vm1008_vm5, %v4406_v41, %v4407_v44 }
 0x16f   : >> { %v1120_v38 = vpop.f32.mrf.mxu0  ;;  %5770 = vmatmul.mubr.msk.f32.gmra.mxu1 %vm415_vm0, %v7220_v49 }
 0x170   : >> { %v1159_v43 = vadd.f32 %v1120_v38, %v970_v59  ;;  %v1251_v46 = vpop.f32.mrf.mxu1  ;;  %5772 = vmatprep.mubr.msk.f32.mxu1 %vm415_vm0, %v7226_v52  ;;  %v1281_v28 = vadd.f32 %v5432_v33, %v1160_v42 }
 0x171   : >> { %v5421_v30 = vpop.f32.mrf.mxu0  ;;  %5756 = vmatmul.mubr.msk.f32.gmra.mxu0 %vm415_vm0, %v7231_v53 }
 0x172   : >> { %v1162_v34 = vadd.f32 %v5421_v30, %v985_v17  ;;  %v5438_v37 = vpop.f32.mrf.mxu1  ;;  %5758 = vmatprep.mubr.msk.f32.mxu0 %vm415_vm0, %v7237_v58  ;;  %v1280_v47 = vadd.f32 %v1241_v39, %v1159_v43  ;;  %v4285_v58 = vsel %vm732_vm4, %v4283_v31, %v4284_v45 }
 0x173   : >> { %v1130_v48 = vpop.f32.mrf.mxu0  ;;  %5773 = vmatmul.mubr.msk.f32.gmra.mxu1 %vm415_vm0, %v7242_v61 }
 0x174   : >> { %v1161_v49 = vadd.f32 %v1130_v48, %v980_v63  ;;  %v1261_v50 = vpop.f32.mrf.mxu1  ;;  %5775 = vmatprep.mubr.msk.f32.mxu1 %vm415_vm0, %v4040_v15  ;;  %v1283_v52 = vadd.f32 %v5435_v25, %v1162_v34 }
 0x175   : >> { %v5424_v53 = vpop.f32.mrf.mxu0  ;;  %5759 = vmatmul.mubr.msk.f32.gmra.mxu0 %vm415_vm0, %v7249_v62 }
 0x176   : >> { %v1164_v54 = vadd.f32 %v5424_v53, %v995_v26  ;;  %v5441_v55 = vpop.f32.mrf.mxu1  ;;  %5761 = vmatprep.mubr.msk.f32.mxu0 %vm415_vm0, %v7291_v6  ;;  %v1282_v0 = vadd.f32 %v1251_v46, %v1161_v49 }
 0x177   : >> { %v1140_v61 = vpop.f32.mrf.mxu0  ;;  %5776 = vmatmul.mubr.msk.f32.gmra.mxu1 %vm415_vm0, %v4408_v51 }
 0x178   : >> { %v1163_v2 = vadd.f32 %v1140_v61, %v990_v7  ;;  %v1271_v56 = vpop.f32.mrf.mxu1  ;;  %v1285_v3 = vadd.f32 %v5438_v37, %v1164_v54 }
 0x179   : >> { %v5427_v4 = vpop.f32.mrf.mxu0  ;;  %5762 = vmatmul.mubr.msk.f32.gmra.mxu0 %vm415_vm0, %v4285_v58 }
 0x17a   : >> { %v1166_v5 = vadd.f32 %v5427_v4, %v1005_v32  ;;  %v5460_v8 = vpop.f32.mrf.mxu1  ;;  %v1284_v62 = vadd.f32 %v1261_v50, %v1163_v2 }
 0x17b   : >> { %v1150_v9 = vpop.f32.mrf.mxu0 }
 0x17c   : >> { %v1165_v10 = vadd.f32 %v1150_v9, %v1000_v36  ;;  %v1488_v57 = vpop.f32.mrf.mxu1  ;;  %v1287_v11 = vadd.f32 %v5441_v55, %v1166_v5 }
 0x17d   : >> { %v5446_v6 = vpop.f32.mrf.mxu0 }
 0x17e   : >> { %v1405_v12 = vadd.f32 %v5446_v6, %v1281_v28  ;;  %v5463_v59 = vpop.f32.mrf.mxu1  ;;  %v1286_v13 = vadd.f32 %v1271_v56, %v1165_v10 }
 0x17f   : >> { %v1365_v60 = vpop.f32.mrf.mxu0 }
 0x180   : >> { %v1404_v17 = vadd.f32 %v1365_v60, %v1280_v47  ;;  %v1498_v18 = vpop.f32.mrf.mxu1  ;;  %v1528_v19 = vadd.f32 %v5460_v8, %v1405_v12 }
 0x181   : >> { %v5449_v20 = vpop.f32.mrf.mxu0 }
 0x182   : >> { %v1407_v21 = vadd.f32 %v5449_v20, %v1283_v52  ;;  %v5466_v63 = vpop.f32.mrf.mxu1  ;;  %v1527_v22 = vadd.f32 %v1488_v57, %v1404_v17 }
 0x183   : >> { %v1375_v1 = vpop.f32.mrf.mxu0 }
 0x184   : >> { %v1406_v23 = vadd.f32 %v1375_v1, %v1282_v0  ;;  %v1508_v26 = vpop.f32.mrf.mxu1  ;;  %v1530_v14 = vadd.f32 %v5463_v59, %v1407_v21 }
 0x185   : >> { %v5452_v15 = vpop.f32.mrf.mxu0 }
 0x186   : >> { %v1409_v16 = vadd.f32 %v5452_v15, %v1285_v3  ;;  %v5469_v7 = vpop.f32.mrf.mxu1  ;;  %v1529_v27 = vadd.f32 %v1498_v18, %v1406_v23 }
 0x187   : >> { %v1385_v29 = vpop.f32.mrf.mxu0 }
 0x188   : >> { %v1408_v32 = vadd.f32 %v1385_v29, %v1284_v62  ;;  %v1518_v33 = vpop.f32.mrf.mxu1  ;;  %v1532_v35 = vadd.f32 %v5466_v63, %v1409_v16 }
 0x189   : >> { %v5455_v36 = vpop.f32.mrf.mxu0 }
 0x18a   : >> { %v1411_v39 = vadd.f32 %v5455_v36, %v1287_v11  ;;  %v5488_v40 = vpop.f32.mrf.mxu1  ;;  %v1531_v24 = vadd.f32 %v1508_v26, %v1408_v32 }
 0x18b   : >> { %v1395_v42 = vpop.f32.mrf.mxu0 }
 0x18c   : >> { %v1410_v25 = vadd.f32 %v1395_v42, %v1286_v13  ;;  %v1733_v38 = vpop.f32.mrf.mxu1  ;;  %v1534_v41 = vadd.f32 %v5469_v7, %v1411_v39 }
 0x18d   : >> { %v5474_v43 = vpop.f32.mrf.mxu0 }
 0x18e   : >> { %v1649_v46 = vadd.f32 %v5474_v43, %v1528_v19  ;;  %v5491_v44 = vpop.f32.mrf.mxu1  ;;  %v1533_v28 = vadd.f32 %v1518_v33, %v1410_v25 }
 0x18f   : >> { %v1609_v30 = vpop.f32.mrf.mxu0 }
 0x190   : >> { %v1648_v31 = vadd.f32 %v1609_v30, %v1527_v22  ;;  %v1743_v34 = vpop.f32.mrf.mxu1  ;;  %v1773_v37 = vadd.f32 %v5488_v40, %v1649_v46 }
 0x191   : >> { %v5477_v45 = vpop.f32.mrf.mxu0 }
 0x192   : >> { %v1651_v47 = vadd.f32 %v5477_v45, %v1530_v14  ;;  %v5494_v48 = vpop.f32.mrf.mxu1  ;;  %v1772_v49 = vadd.f32 %v1733_v38, %v1648_v31 }
 0x193   : >> { %v1619_v50 = vpop.f32.mrf.mxu0 }
 0x194   : >> { %v1650_v51 = vadd.f32 %v1619_v50, %v1529_v27  ;;  %v1753_v52 = vpop.f32.mrf.mxu1  ;;  %v1775_v53 = vadd.f32 %v5491_v44, %v1651_v47 }
 0x195   : >> { %v5480_v54 = vpop.f32.mrf.mxu0 }
 0x196   : >> { %v1653_v55 = vadd.f32 %v5480_v54, %v1532_v35  ;;  %v5497_v58 = vpop.f32.mrf.mxu1  ;;  %v1774_v0 = vadd.f32 %v1743_v34, %v1650_v51 }
 0x197   : >> { %v1629_v61 = vpop.f32.mrf.mxu0 }
 0x198   : >> { %v1652_v2 = vadd.f32 %v1629_v61, %v1531_v24  ;;  %v1763_v56 = vpop.f32.mrf.mxu1  ;;  %v1777_v3 = vadd.f32 %v5494_v48, %v1653_v55 }
 0x199   : >> { %v5483_v4 = vpop.f32.mrf.mxu0 }
 0x19a   : >> { %v1655_v5 = vadd.f32 %v5483_v4, %v1534_v41  ;;  %v5516_v8 = vpop.f32.mrf.mxu1  ;;  %v1776_v62 = vadd.f32 %v1753_v52, %v1652_v2 }
 0x19b   : >> { %v1639_v9 = vpop.f32.mrf.mxu0 }
 0x19c   : >> { %v1654_v10 = vadd.f32 %v1639_v9, %v1533_v28  ;;  %v2021_v57 = vpop.f32.mrf.mxu1  ;;  %v1779_v11 = vadd.f32 %v5497_v58, %v1655_v5 }
 0x19d   : >> { %v5502_v6 = vpop.f32.mrf.mxu0 }
 0x19e   : >> { %v1896_v12 = vadd.f32 %v5502_v6, %v1773_v37  ;;  %v5519_v59 = vpop.f32.mrf.mxu1  ;;  %v1778_v13 = vadd.f32 %v1763_v56, %v1654_v10 }
 0x19f   : >> { %v1856_v60 = vpop.f32.mrf.mxu0 }
 0x1a0   : >> { %v1895_v17 = vadd.f32 %v1856_v60, %v1772_v49  ;;  %v2031_v18 = vpop.f32.mrf.mxu1  ;;  %v2061_v19 = vadd.f32 %v5516_v8, %v1896_v12 }
 0x1a1   : >> { %v5505_v20 = vpop.f32.mrf.mxu0 }
 0x1a2   : >> { %v1898_v21 = vadd.f32 %v5505_v20, %v1775_v53  ;;  %v5522_v63 = vpop.f32.mrf.mxu1  ;;  %v2060_v22 = vadd.f32 %v2021_v57, %v1895_v17 }
 0x1a3   : >> { %v1866_v1 = vpop.f32.mrf.mxu0 }
 0x1a4   : >> { %v1897_v23 = vadd.f32 %v1866_v1, %v1774_v0  ;;  %v2041_v26 = vpop.f32.mrf.mxu1  ;;  %v2063_v14 = vadd.f32 %v5519_v59, %v1898_v21 }
 0x1a5   : >> { %v5508_v15 = vpop.f32.mrf.mxu0 }
 0x1a6   : >> { %v1900_v16 = vadd.f32 %v5508_v15, %v1777_v3  ;;  %v5525_v7 = vpop.f32.mrf.mxu1  ;;  %v2062_v27 = vadd.f32 %v2031_v18, %v1897_v23 }
 0x1a7   : >> { %v1876_v29 = vpop.f32.mrf.mxu0 }
 0x1a8   : >> { %v1899_v32 = vadd.f32 %v1876_v29, %v1776_v62  ;;  %v2051_v33 = vpop.f32.mrf.mxu1  ;;  %v2065_v35 = vadd.f32 %v5522_v63, %v1900_v16 }
 0x1a9   : >> { %v5511_v36 = vpop.f32.mrf.mxu0 }
 0x1aa   : >> { %v1902_v39 = vadd.f32 %v5511_v36, %v1779_v11  ;;  %v5544_v40 = vpop.f32.mrf.mxu1  ;;  %v2064_v24 = vadd.f32 %v2041_v26, %v1899_v32 }
 0x1ab   : >> { %v1886_v42 = vpop.f32.mrf.mxu0 }
 0x1ac   : >> { %v1901_v25 = vadd.f32 %v1886_v42, %v1778_v13  ;;  %v2345_v38 = vpop.f32.mrf.mxu1  ;;  %v2067_v41 = vadd.f32 %v5525_v7, %v1902_v39 }
 0x1ad   : >> { %v5530_v43 = vpop.f32.mrf.mxu0 }
 0x1ae   : >> { %v2227_v46 = vadd.f32 %v5530_v43, %v2061_v19  ;;  %v5547_v44 = vpop.f32.mrf.mxu1  ;;  %v2066_v28 = vadd.f32 %v2051_v33, %v1901_v25 }
 0x1af   : >> { %v2187_v30 = vpop.f32.mrf.mxu0 }
 0x1b0   : >> { %v2226_v31 = vadd.f32 %v2187_v30, %v2060_v22  ;;  %v2355_v34 = vpop.f32.mrf.mxu1  ;;  %v2385_v37 = vadd.f32 %v5544_v40, %v2227_v46 }
 0x1b1   : >> { %v5533_v45 = vpop.f32.mrf.mxu0 }
 0x1b2   : >> { %v2229_v47 = vadd.f32 %v5533_v45, %v2063_v14  ;;  %v5550_v48 = vpop.f32.mrf.mxu1  ;;  %v2384_v49 = vadd.f32 %v2345_v38, %v2226_v31 }
 0x1b3   : >> { %v2197_v50 = vpop.f32.mrf.mxu0 }
 0x1b4   : >> { %v2228_v51 = vadd.f32 %v2197_v50, %v2062_v27  ;;  %v2365_v52 = vpop.f32.mrf.mxu1  ;;  %v2387_v53 = vadd.f32 %v5547_v44, %v2229_v47 }
 0x1b5   : >> { %v5536_v54 = vpop.f32.mrf.mxu0 }
 0x1b6   : >> { %v2231_v55 = vadd.f32 %v5536_v54, %v2065_v35  ;;  %v5553_v58 = vpop.f32.mrf.mxu1  ;;  %v2386_v0 = vadd.f32 %v2355_v34, %v2228_v51 }
 0x1b7   : >> { %v2207_v61 = vpop.f32.mrf.mxu0 }
 0x1b8   : >> { %v2230_v2 = vadd.f32 %v2207_v61, %v2064_v24  ;;  %v2375_v56 = vpop.f32.mrf.mxu1  ;;  %v2389_v3 = vadd.f32 %v5550_v48, %v2231_v55 }
 0x1b9   : >> { %v5539_v4 = vpop.f32.mrf.mxu0 }
 0x1ba   : >> { %v2233_v5 = vadd.f32 %v5539_v4, %v2067_v41  ;;  %v5572_v8 = vpop.f32.mrf.mxu1  ;;  %v2388_v62 = vadd.f32 %v2365_v52, %v2230_v2 }
 0x1bb   : >> { %v2217_v9 = vpop.f32.mrf.mxu0 }
 0x1bc   : >> { %v2232_v10 = vadd.f32 %v2217_v9, %v2066_v28  ;;  %v2590_v57 = vpop.f32.mrf.mxu1  ;;  %v2391_v11 = vadd.f32 %v5553_v58, %v2233_v5 }
 0x1bd   : >> { %v5558_v6 = vpop.f32.mrf.mxu0 }
 0x1be   : >> { %v2506_v12 = vadd.f32 %v5558_v6, %v2385_v37  ;;  %v5575_v59 = vpop.f32.mrf.mxu1  ;;  %v2390_v13 = vadd.f32 %v2375_v56, %v2232_v10 }
 0x1bf   : >> { %v2466_v60 = vpop.f32.mrf.mxu0 }
 0x1c0   : >> { %v2505_v17 = vadd.f32 %v2466_v60, %v2384_v49  ;;  %v2600_v18 = vpop.f32.mrf.mxu1  ;;  %v2630_v19 = vadd.f32 %v5572_v8, %v2506_v12 }
 0x1c1   : >> { %v5561_v20 = vpop.f32.mrf.mxu0 }
 0x1c2   : >> { %v2508_v21 = vadd.f32 %v5561_v20, %v2387_v53  ;;  %v5578_v63 = vpop.f32.mrf.mxu1  ;;  %v2629_v22 = vadd.f32 %v2590_v57, %v2505_v17 }
 0x1c3   : >> { %v2476_v1 = vpop.f32.mrf.mxu0 }
 0x1c4   : >> { %v2507_v23 = vadd.f32 %v2476_v1, %v2386_v0  ;;  %v2610_v26 = vpop.f32.mrf.mxu1  ;;  %v2632_v14 = vadd.f32 %v5575_v59, %v2508_v21 }
 0x1c5   : >> { %v5564_v15 = vpop.f32.mrf.mxu0 }
 0x1c6   : >> { %v2510_v16 = vadd.f32 %v5564_v15, %v2389_v3  ;;  %v5581_v7 = vpop.f32.mrf.mxu1  ;;  %v2631_v27 = vadd.f32 %v2600_v18, %v2507_v23 }
 0x1c7   : >> { %v2486_v29 = vpop.f32.mrf.mxu0 }
 0x1c8   : >> { %v2509_v32 = vadd.f32 %v2486_v29, %v2388_v62  ;;  %v2620_v33 = vpop.f32.mrf.mxu1  ;;  %v2634_v35 = vadd.f32 %v5578_v63, %v2510_v16 }
 0x1c9   : >> { %v5567_v36 = vpop.f32.mrf.mxu0 }
 0x1ca   : >> { %v2512_v39 = vadd.f32 %v5567_v36, %v2391_v11  ;;  %v5600_v40 = vpop.f32.mrf.mxu1  ;;  %v2633_v24 = vadd.f32 %v2610_v26, %v2509_v32 }
 0x1cb   : >> { %v2496_v42 = vpop.f32.mrf.mxu0 }
 0x1cc   : >> { %v2511_v25 = vadd.f32 %v2496_v42, %v2390_v13  ;;  %v2834_v38 = vpop.f32.mrf.mxu1  ;;  %v2636_v41 = vadd.f32 %v5581_v7, %v2512_v39 }
 0x1cd   : >> { %v5586_v43 = vpop.f32.mrf.mxu0 }
 0x1ce   : >> { %v2753_v46 = vadd.f32 %v5586_v43, %v2630_v19  ;;  %v5603_v44 = vpop.f32.mrf.mxu1  ;;  %v2635_v28 = vadd.f32 %v2620_v33, %v2511_v25 }
 0x1cf   : >> { %v2713_v30 = vpop.f32.mrf.mxu0 }
 0x1d0   : >> { %v2752_v31 = vadd.f32 %v2713_v30, %v2629_v22  ;;  %v2844_v34 = vpop.f32.mrf.mxu1  ;;  %v7365_v37 = vadd.f32 %v5600_v40, %v2753_v46 }
 0x1d1   : >> { %v5589_v45 = vpop.f32.mrf.mxu0 }
 0x1d2   : >> { %v2755_v47 = vadd.f32 %v5589_v45, %v2632_v14  ;;  %v5606_v48 = vpop.f32.mrf.mxu1  ;;  %v7367_v49 = vadd.f32 %v2834_v38, %v2752_v31 }
 0x1d3   : >> { %v2723_v50 = vpop.f32.mrf.mxu0 }
 0x1d4   : >> { %v2754_v51 = vadd.f32 %v2723_v50, %v2631_v27  ;;  %v2854_v52 = vpop.f32.mrf.mxu1  ;;  %v7369_v53 = vadd.f32 %v5603_v44, %v2755_v47 }
 0x1d5   : >> { %v5592_v54 = vpop.f32.mrf.mxu0 }
 0x1d6   : >> { %v2757_v55 = vadd.f32 %v5592_v54, %v2634_v35  ;;  %v5609_v58 = vpop.f32.mrf.mxu1  ;;  %v7371_v0 = vadd.f32 %v2844_v34, %v2754_v51 }
 0x1d7   : >> { %v2733_v61 = vpop.f32.mrf.mxu0 }
 0x1d8   : >> { %v2756_v2 = vadd.f32 %v2733_v61, %v2633_v24  ;;  %v2864_v56 = vpop.f32.mrf.mxu1  ;;  %v7373_v3 = vadd.f32 %v5606_v48, %v2757_v55 }
 0x1d9   : >> { %v5595_v4 = vpop.f32.mrf.mxu0 }
 0x1da   : >> { %v2759_v5 = vadd.f32 %v5595_v4, %v2636_v41  ;;  %v7375_v8 = vpop.f32.mrf.mxu1  ;;  %v7377_v62 = vadd.f32 %v2854_v52, %v2756_v2 }
 0x1db   : >> { %v2743_v9 = vpop.f32.mrf.mxu0 }
 0x1dc   : >> { %v2758_v10 = vadd.f32 %v2743_v9, %v2635_v28  ;;  %v7379_v57 = vpop.f32.mrf.mxu1  ;;  %v7381_v11 = vadd.f32 %v5609_v58, %v2759_v5 }
 0x1dd   : >> { %v7383_v6 = vpop.f32.mrf.mxu0 }
 0x1de   : >> { %v7385_v12 = vpop.f32.mrf.mxu1  ;;  %v7387_v59 = vadd.f32 %v2864_v56, %v2758_v10 }
 0x1df   : >> { %v7389_v13 = vpop.f32.mrf.mxu0 }
 0x1e0   : >> { %v7391_v60 = vpop.f32.mrf.mxu1 }
 0x1e1   : >> { %v7393_v17 = vpop.f32.mrf.mxu0 }
 0x1e2   : >> { %v7395_v18 = vpop.f32.mrf.mxu1 }
 0x1e3   : >> { %v7397_v19 = vpop.f32.mrf.mxu0 }
 0x1e4   : >> { %v7399_v20 = vpop.f32.mrf.mxu1 }
 0x1e5   : >> { %v7401_v21 = vpop.f32.mrf.mxu0 }
 0x1e6   : >> { %v7403_v63 = vpop.f32.mrf.mxu1 }
 0x1e7   : >> { %v7405_v22 = vpop.f32.mrf.mxu0 }
 0x1e8   : >> { %v7407_v1 = vpop.f32.mrf.mxu1 }
 0x1e9   : >> { %v7410_v23 = vpop.f32.mrf.mxu0 }
 0x1ea   : >> { %v7412_v26 = vpop.f32.mrf.mxu1 }
 0x1eb   : >> { %v7414_v14 = vpop.f32.mrf.mxu0 }
 0x1ec   : >> { %v7425_v15 = vpop.f32.mrf.mxu1 }
 0x1ed   : >> { %v5642_v16 = vpop.f32.mrf.mxu0 }
 0x1ee   : >> { %3241 = vst.msk [vmem:[%s7423_s9 + $0x8] sm:$0xff] %vm3239_vm6, %v5642_v16  ;;  %v7429_v7 = vpop.f32.mrf.mxu1  ;;  %v3274_v29 = vmul.f32 %v5642_v16, %v5642_v16  ;;  %v3250_v39 = vsel %vm3239_vm6, %v5642_v16, 0.0 }
 0x1ef   : >> { %v3198_v27 = vpop.f32.mrf.mxu0 }
 0x1f0   : >> { %3240 = vst.msk [vmem:[%s7423_s9] sm:$0xff] %vm3239_vm6, %v3198_v27  ;;  %v3249_v32 = vsel %vm3239_vm6, %v3198_v27, 0.0  ;;  %v3273_v33 = vmul.f32 %v3198_v27, %v3198_v27  ;;  %v7434_v35 = vpop.f32.mrf.mxu1  ;;  %v3282_v38 = vsel %vm3239_vm6, %v3274_v29, 0.0 }
 0x1f1   : >> { %v5645_v36 = vpop.f32.mrf.mxu0  ;;  %v3251_v42 = vadd.f32 %v3250_v39, %v3249_v32 }
 0x1f2   : >> { %v3281_v40 = vsel %vm3239_vm6, %v3273_v33, 0.0  ;;  %3243 = vst.msk [vmem:[%s7423_s9 + $0x18] sm:$0xff] %vm3239_vm6, %v5645_v36  ;;  %v7440_v24 = vpop.f32.mrf.mxu1  ;;  %v3276_v41 = vmul.f32 %v5645_v36, %v5645_v36  ;;  %v3254_v34 = vsel %vm3239_vm6, %v5645_v36, 0.0 }
 0x1f3   : >> { %v3208_v25 = vpop.f32.mrf.mxu0  ;;  %v3283_v28 = vadd.f32 %v3282_v38, %v3281_v40 }
 0x1f4   : >> { %3242 = vst.msk [vmem:[%s7423_s9 + $0x10] sm:$0xff] %vm3239_vm6, %v3208_v25  ;;  %v3252_v43 = vsel %vm3239_vm6, %v3208_v25, 0.0  ;;  %v3275_v46 = vmul.f32 %v3208_v25, %v3208_v25  ;;  %v7446_v44 = vpop.f32.mrf.mxu1  ;;  %v3286_v52 = vsel %vm3239_vm6, %v3276_v41, 0.0 }
 0x1f5   : >> { %v3253_v30 = vadd.f32 %v3252_v43, %v3251_v42  ;;  %v5648_v31 = vpop.f32.mrf.mxu0 }
 0x1f6   : >> { %v3284_v45 = vsel %vm3239_vm6, %v3275_v46, 0.0  ;;  %3245 = vst.msk [vmem:[%s7423_s9 + $0x28] sm:$0xff] %vm3239_vm6, %v5648_v31  ;;  %v7452_v47 = vpop.f32.mrf.mxu1  ;;  %v3278_v54 = vmul.f32 %v5648_v31, %v5648_v31  ;;  %v3258_v5 = vsel %vm3239_vm6, %v5648_v31, 0.0 }
 0x1f7   : >> { %v3285_v48 = vadd.f32 %v3284_v45, %v3283_v28  ;;  %v3218_v50 = vpop.f32.mrf.mxu0  ;;  %v3255_v51 = vadd.f32 %v3254_v34, %v3253_v30 }
 0x1f8   : >> { %3244 = vst.msk [vmem:[%s7423_s9 + $0x20] sm:$0xff] %vm3239_vm6, %v3218_v50  ;;  %v3256_v55 = vsel %vm3239_vm6, %v3218_v50, 0.0  ;;  %v3277_v58 = vmul.f32 %v3218_v50, %v3218_v50  ;;  %v7458_v61 = vpop.f32.mrf.mxu1  ;;  %v3290_v32 = vsel %vm3239_vm6, %v3278_v54, 0.0 }
 0x1f9   : >> { %v3257_v2 = vadd.f32 %v3256_v55, %v3255_v51  ;;  %v3287_v56 = vadd.f32 %v3286_v52, %v3285_v48  ;;  %v5651_v4 = vpop.f32.mrf.mxu0 }
 0x1fa   : >> { %v3288_v9 = vsel %vm3239_vm6, %v3277_v58, 0.0  ;;  %3247 = vst.msk [vmem:[%s7423_s9 + $0x38] sm:$0xff] %vm3239_vm6, %v5651_v4  ;;  %v7464_v10 = vpop.f32.mrf.mxu1  ;;  %v3280_v33 = vmul.f32 %v5651_v4, %v5651_v4  ;;  %v3262_v41 = vsel %vm3239_vm6, %v5651_v4, 0.0 }
 0x1fb   : >> { %v3289_v16 = vadd.f32 %v3288_v9, %v3287_v56  ;;  %v3228_v27 = vpop.f32.mrf.mxu0  ;;  %v3259_v29 = vadd.f32 %v3258_v5, %v3257_v2 }
 0x1fc   : >> { %3246 = vst.msk [vmem:[%s7423_s9 + $0x30] sm:$0xff] %vm3239_vm6, %v3228_v27  ;;  %v3260_v36 = vsel %vm3239_vm6, %v3228_v27, 0.0  ;;  %v3279_v39 = vmul.f32 %v3228_v27, %v3228_v27  ;;  %v7470_v40 = vpop.f32.mrf.mxu1  ;;  %v3294_v34 = vsel %vm3239_vm6, %v3280_v33, 0.0 }
 0x1fd   : >> { %v3261_v42 = vadd.f32 %v3260_v36, %v3259_v29  ;;  %v3291_v25 = vadd.f32 %v3290_v32, %v3289_v16  ;;  %v7472_v38 = vpop.f32.mrf.mxu0 }
 0x1fe   : >> { %v3292_v43 = vsel %vm3239_vm6, %v3279_v39, 0.0 }
 0x1ff   : >> { %v3263_v46 = vadd.f32 %v3262_v41, %v3261_v42  ;;  %v3293_v28 = vadd.f32 %v3292_v43, %v3291_v25  ;;  %v7476_v30 = vpop.f32.mrf.mxu0  ;;  %v7478_v31 = vpop.f32.mrf.mxu1  ;;  %v3248_v42 = vld [vmem:[%s6319_s26] sm:$0x1] }
 0x201   : >> { %v3264_v45 = vrot.slane %v3263_v46, 4  ;;  %v3295_v48 = vadd.f32 %v3294_v34, %v3293_v28  ;;  %v7481_v50 = vpop.f32.mrf.mxu0  ;;  %v7483_v51 = vpop.f32.mrf.mxu1  ;;  %v3272_v28 = vld [vmem:[%s6324_s10] sm:$0x1] }
 0x203   : >> { %v3265_v52 = vadd.f32 %v3264_v45, %v3263_v46  ;;  %v3296_v54 = vrot.slane %v3295_v48, 4  ;;  %v7485_v55 = vpop.f32.mrf.mxu0  ;;  %v7487_v58 = vpop.f32.mrf.mxu1 }
 0x205   : >> { %v3266_v2 = vrot.slane %v3265_v52, 2  ;;  %v3297_v56 = vadd.f32 %v3296_v54, %v3295_v48  ;;  %v7489_v4 = vpop.f32.mrf.mxu0  ;;  %v7491_v5 = vpop.f32.mrf.mxu1 }
 0x207   : >> { %v3267_v9 = vadd.f32 %v3266_v2, %v3265_v52  ;;  %v3298_v16 = vrot.slane %v3297_v56, 2  ;;  %v7493_v27 = vpop.f32.mrf.mxu0  ;;  %v7495_v29 = vpop.f32.mrf.mxu1 }
 0x209   : >> { %v3268_v32 = vrot.slane %v3267_v9, 1  ;;  %v3299_v33 = vadd.f32 %v3298_v16, %v3297_v56  ;;  %v7497_v36 = vpop.f32.mrf.mxu0  ;;  %v7499_v39 = vpop.f32.mrf.mxu1 }
 0x20a   : >> { %7671 = vst [vmem:[#allocation3_spill] sm:$0xff] %v7499_v39 }
 0x20b   : >> { %v3269_v25 = vadd.f32 %v3268_v32, %v3267_v9  ;;  %v3300_v41 = vrot.slane %v3299_v33, 1  ;;  %v7502_v43 = vpop.f32.mrf.mxu0  ;;  %v7504_v46 = vpop.f32.mrf.mxu1 }
 0x20d   : >> { %v3270_v34 = vadd.f32 %v3269_v25, %v3248_v42  ;;  %v3301_v45 = vadd.f32 %v3300_v41, %v3299_v33  ;;  %v5698_v48 = vpop.f32.mrf.mxu0  ;;  %v7507_v52 = vpop.f32.mrf.mxu1  ;;  %v2998_v33 = vadd.f32 %v7383_v6, %v7365_v37  ;;  %v2997_v41 = vadd.f32 %v7389_v13, %v7367_v49 }
 0x20e   : >> { %v2999_v49 = vadd.f32 %v7397_v19, %v7371_v0  ;;  %v3002_v13 = vadd.f32 %v7401_v21, %v7373_v3 }
 0x20f   : >> { %3271 = vst.msk [vmem:[%s6319_s26] sm:$0x1] %vm682_vm2, %v3270_v34  ;;  %v3302_v54 = vadd.f32 %v3301_v45, %v3272_v28  ;;  %v3867_v2 = vpop.f32.mrf.mxu0  ;;  %v7511_v56 = vpop.f32.mrf.mxu1  ;;  %v3000_v45 = vadd.f32 %v7393_v17, %v7369_v53  ;;  %v3120_v6 = vadd.f32 %v7379_v57, %v2997_v41  ;;  %v3001_v57 = vadd.f32 %v7405_v22, %v7377_v62 }
 0x210   : >> { %v3122_v3 = vadd.f32 %v7391_v60, %v2999_v49  ;;  %v3125_v19 = vadd.f32 %v7395_v18, %v3002_v13 }
 0x211   : >> { %3303 = vst.msk [vmem:[%s6324_s10] sm:$0x1] %vm682_vm2, %v3302_v54  ;;  %v5701_v9 = vpop.f32.mrf.mxu0  ;;  %v7515_v16 = vpop.f32.mrf.mxu1  ;;  %v3121_v54 = vadd.f32 %v7375_v8, %v2998_v33  ;;  %v3461_v53 = vadd.f32 %v7425_v15, %v3120_v6  ;;  %v3123_v8 = vadd.f32 %v7385_v12, %v3000_v45  ;;  %v3124_v60 = vadd.f32 %v7399_v20, %v3001_v57 }
 0x212   : >> { %7672 = vst [vmem:[#allocation4_spill] sm:$0xff] %v7515_v16  ;;  %v3463_v62 = vadd.f32 %v7434_v35, %v3122_v3  ;;  %v3466_v22 = vadd.f32 %v7440_v24, %v3125_v19 }
 0x213   : >> { %v7517_v32 = vpop.f32.mrf.mxu0  ;;  %v7519_v39 = vpop.f32.mrf.mxu1  ;;  %v3462_v37 = vadd.f32 %v7412_v26, %v3121_v54  ;;  %v3464_v26 = vadd.f32 %v7429_v7, %v3123_v8  ;;  %v3627_v0 = vadd.f32 %v7476_v30, %v3461_v53  ;;  %v3465_v35 = vadd.f32 %v7446_v44, %v3124_v60 }
 0x214   : >> { %7673 = vst [vmem:[#allocation5_spill] sm:$0xff] %v7519_v39  ;;  %v3632_v54 = vadd.f32 %v7489_v4, %v3466_v22 }
 0x215   : >> { %v5704_v42 = vpop.f32.mrf.mxu0  ;;  %v7523_v25 = vpop.f32.mrf.mxu1  ;;  %v3628_v17 = vadd.f32 %v7472_v38, %v3462_v37  ;;  %v3630_v15 = vadd.f32 %v7481_v50, %v3464_v26  ;;  %v3004_v38 = vadd.f32 %v7410_v23, %v7381_v11  ;;  %v3785_v18 = vadd.f32 %v7470_v40, %v3627_v0 }
 0x216   : >> { %7674 = vst [vmem:[#allocation6_spill] sm:$0xff] %v7523_v25  ;;  %v3629_v50 = vadd.f32 %v7485_v55, %v3463_v62  ;;  %v3631_v40 = vadd.f32 %v7493_v27, %v3465_v35  ;;  %v3790_v44 = vadd.f32 %v7487_v58, %v3632_v54 }
 0x217   : >> { %v7527_v28 = vpop.f32.mrf.mxu0  ;;  %v7529_v34 = vpop.f32.mrf.mxu1  ;;  %v3786_v12 = vadd.f32 %v7464_v10, %v3628_v17  ;;  %v3003_v10 = vadd.f32 %v7414_v14, %v7387_v59  ;;  %v3788_v24 = vadd.f32 %v7478_v31, %v3630_v15  ;;  %v3906_v37 = vadd.f32 %v3867_v2, %v3785_v18 }
 0x218   : >> { %7675 = vst [vmem:[#allocation7_spill] sm:$0xff] %v7529_v34  ;;  %v3127_v6 = vadd.f32 %v7403_v63, %v3004_v38 }
 0x219   : >> { %v7534_v16 = vpop.f32.mrf.mxu0  ;;  %v7536_v39 = vpop.f32.mrf.mxu1  ;;  %v3907_v45 = vadd.f32 %v5698_v48, %v3786_v12  ;;  %v3909_v14 = vadd.f32 %v5701_v9, %v3788_v24  ;;  %v3126_v4 = vadd.f32 %v7407_v1, %v3003_v10  ;;  %v3787_v48 = vadd.f32 %v7483_v51, %v3629_v50  ;;  %v7679_v12 = vld [vmem:[#allocation3_spill] sm:$0xff] }
 0x21a   : >> { %7676 = vst [vmem:[#allocation8_spill] sm:$0xff] %v7536_v39  ;;  %v3468_v55 = vadd.f32 %v7452_v47, %v3127_v6  ;;  %v4030_v63 = vadd.f32 %v7507_v52, %v3906_v37  ;;  %v3911_v9 = vadd.f32 %v5704_v42, %v3790_v44  ;;  %v3789_v1 = vadd.f32 %v7491_v5, %v3631_v40  ;;  %v7677_v42 = vld [vmem:[#allocation4_spill] sm:$0xff] }
 0x21b   : >> { %v7544_v34 = vpop.f32.mrf.mxu0  ;;  %v5740_v25 = vpop.f32.mrf.mxu1  ;;  %v4031_v59 = vadd.f32 %v7504_v46, %v3907_v45  ;;  %v3467_v53 = vadd.f32 %v7458_v61, %v3126_v4  ;;  %v3908_v46 = vadd.f32 %v7517_v32, %v3787_v48  ;;  %v4033_v51 = vadd.f32 %v7511_v56, %v3909_v14  ;;  %v7678_v0 = vld [vmem:[#allocation5_spill] sm:$0xff] }
 0x21c   : >> { %v3634_v27 = vadd.f32 %v7497_v36, %v3468_v55  ;;  %v3910_v61 = vadd.f32 %v7527_v28, %v3789_v1  ;;  %v4035_v3 = vadd.f32 %v7678_v0, %v3911_v9 }
 0x21d   : >> { %v5726_v33 = vpop.f32.mrf.mxu0  ;;  %v4235_v39 = vpop.f32.mrf.mxu1  ;;  %v3633_v17 = vadd.f32 %v7502_v43, %v3467_v53  ;;  %v4032_v26 = vadd.f32 %v7677_v42, %v3908_v46  ;;  %v7680_v28 = vld [vmem:[#allocation6_spill] sm:$0xff] }
 0x21e   : >> { %v4154_v13 = vadd.f32 %v5726_v33, %v4031_v59  ;;  %v3792_v32 = vadd.f32 %v7495_v29, %v3634_v27  ;;  %v4034_v22 = vadd.f32 %v7680_v28, %v3910_v61 }
 0x21f   : >> { %v4114_v21 = vpop.f32.mrf.mxu0  ;;  %v7555_v41 = vpop.f32.mrf.mxu1  ;;  %v3791_v43 = vadd.f32 %v7679_v12, %v3633_v17  ;;  %v7681_v35 = vld [vmem:[#allocation7_spill] sm:$0xff] }
 0x220   : >> { %v4153_v58 = vadd.f32 %v4114_v21, %v4030_v63  ;;  %v4275_v36 = vadd.f32 %v5740_v25, %v4154_v13  ;;  %v3913_v15 = vadd.f32 %v7534_v16, %v3792_v32 }
 0x221   : >> { %v5729_v7 = vpop.f32.mrf.mxu0  ;;  %v7563_v30 = vpop.f32.mrf.mxu1  ;;  %v3912_v16 = vadd.f32 %v7544_v34, %v3791_v43  ;;  %v7682_v55 = vld [vmem:[#allocation8_spill] sm:$0xff] }
 0x222   : >> { %v4156_v33 = vadd.f32 %v5729_v7, %v4033_v51  ;;  %v4274_v56 = vadd.f32 %v4235_v39, %v4153_v58  ;;  %v4037_v24 = vadd.f32 %v7681_v35, %v3913_v15 }
 0x223   : >> { %v4124_v11 = vpop.f32.mrf.mxu0  ;;  %v5746_v23 = vpop.f32.mrf.mxu1  ;;  %v4036_v4 = vadd.f32 %v7682_v55, %v3912_v16 }
 0x224   : >> { %v4155_v38 = vadd.f32 %v4124_v11, %v4032_v26  ;;  %v4277_v39 = vadd.f32 %v7555_v41, %v4156_v33 }
 0x225   : >> { %v5732_v20 = vpop.f32.mrf.mxu0  ;;  %v7574_v49 = vpop.f32.mrf.mxu1 }
 0x226   : >> { %v4158_v62 = vadd.f32 %v5732_v20, %v4035_v3  ;;  %v4276_v37 = vadd.f32 %v7563_v30, %v4155_v38 }
 0x227   : >> { %v4134_v31 = vpop.f32.mrf.mxu0  ;;  %v7582_v2 = vpop.f32.mrf.mxu1 }
 0x228   : >> { %v4157_v10 = vadd.f32 %v4134_v31, %v4034_v22  ;;  %v4279_v6 = vadd.f32 %v5746_v23, %v4158_v62 }
 0x229   : >> { %v5735_v47 = vpop.f32.mrf.mxu0  ;;  %v7588_v8 = vpop.f32.mrf.mxu1 }
 0x22a   : >> { %v4160_v48 = vadd.f32 %v5735_v47, %v4037_v24  ;;  %v4278_v30 = vadd.f32 %v7574_v49, %v4157_v10 }
 0x22b   : >> { %v4144_v57 = vpop.f32.mrf.mxu0  ;;  %v5768_v52 = vpop.f32.mrf.mxu1 }
 0x22c   : >> { %v4159_v46 = vadd.f32 %v4144_v57, %v4036_v4 }
 0x22d   : >> { %v5754_v5 = vpop.f32.mrf.mxu0  ;;  %v4482_v19 = vpop.f32.mrf.mxu1 }
 0x22e   : >> { %v4399_v21 = vadd.f32 %v5754_v5, %v4275_v36  ;;  %v4280_v42 = vadd.f32 %v7588_v8, %v4159_v46 }
 0x22f   : >> { %v4359_v29 = vpop.f32.mrf.mxu0  ;;  %v5771_v25 = vpop.f32.mrf.mxu1 }
 0x230   : >> { %v4522_v7 = vadd.f32 %v5768_v52, %v4399_v21  ;;  %v4398_v60 = vadd.f32 %v4359_v29, %v4274_v56  ;;  %v4281_v52 = vadd.f32 %v7582_v2, %v4160_v48 }
 0x231   : >> { %v5757_v18 = vpop.f32.mrf.mxu0  ;;  %v4492_v45 = vpop.f32.mrf.mxu1 }
 0x232   : >> { %4531 = vst.msk [vmem:[%s7606_s15 + $0x8] sm:$0xff] %vm3239_vm6, %v4522_v7  ;;  %v4564_v50 = vmul.f32 %v4522_v7, %v4522_v7  ;;  %v4521_v54 = vadd.f32 %v4482_v19, %v4398_v60  ;;  %v4401_v11 = vadd.f32 %v5757_v18, %v4277_v39  ;;  %v4540_v40 = vsel %vm3239_vm6, %v4522_v7, 0.0 }
 0x233   : >> { %v4369_v41 = vpop.f32.mrf.mxu0  ;;  %v5774_v20 = vpop.f32.mrf.mxu1 }
 0x234   : >> { %4530 = vst.msk [vmem:[%s7606_s15] sm:$0xff] %vm3239_vm6, %v4521_v54  ;;  %v4539_v34 = vsel %vm3239_vm6, %v4521_v54, 0.0  ;;  %v4563_v59 = vmul.f32 %v4521_v54, %v4521_v54  ;;  %v4524_v14 = vadd.f32 %v5771_v25, %v4401_v11  ;;  %v4400_v31 = vadd.f32 %v4369_v41, %v4276_v37 }
 0x235   : >> { %v4541_v44 = vadd.f32 %v4540_v40, %v4539_v34  ;;  %v5760_v63 = vpop.f32.mrf.mxu0  ;;  %v4572_v23 = vsel %vm3239_vm6, %v4564_v50, 0.0  ;;  %v4502_v27 = vpop.f32.mrf.mxu1 }
 0x236   : >> { %v4571_v13 = vsel %vm3239_vm6, %v4563_v59, 0.0  ;;  %4533 = vst.msk [vmem:[%s7606_s15 + $0x18] sm:$0xff] %vm3239_vm6, %v4524_v14  ;;  %v4403_v53 = vadd.f32 %v5760_v63, %v4279_v6  ;;  %v4523_v1 = vadd.f32 %v4492_v45, %v4400_v31  ;;  %v4566_v47 = vmul.f32 %v4524_v14, %v4524_v14 }
 0x237   : >> { %v4573_v9 = vadd.f32 %v4572_v23, %v4571_v13  ;;  %v4379_v51 = vpop.f32.mrf.mxu0  ;;  %v5777_v57 = vpop.f32.mrf.mxu1  ;;  %v4544_v26 = vsel %vm3239_vm6, %v4524_v14, 0.0 }
 0x238   : >> { %v4526_v58 = vadd.f32 %v5774_v20, %v4403_v53  ;;  %v4402_v17 = vadd.f32 %v4379_v51, %v4278_v30  ;;  %4532 = vst.msk [vmem:[%s7606_s15 + $0x10] sm:$0xff] %vm3239_vm6, %v4523_v1  ;;  %v4542_v49 = vsel %vm3239_vm6, %v4523_v1, 0.0  ;;  %v4565_v61 = vmul.f32 %v4523_v1, %v4523_v1  ;;  %v4562_v30 = vld [vmem:[%s6305_s23] sm:$0x1] }
 0x239   : >> { %v5763_v36 = vpop.f32.mrf.mxu0  ;;  %v4543_v33 = vadd.f32 %v4542_v49, %v4541_v44  ;;  %v4576_v5 = vsel %vm3239_vm6, %v4566_v47, 0.0  ;;  %v4512_v29 = vpop.f32.mrf.mxu1  ;;  %v4538_v44 = vld [vmem:[%s6280_s11] sm:$0x1] }
 0x23a   : >> { %4535 = vst.msk [vmem:[%s7606_s15 + $0x28] sm:$0xff] %vm3239_vm6, %v4526_v58  ;;  %v4525_v32 = vadd.f32 %v4502_v27, %v4402_v17  ;;  %v4574_v0 = vsel %vm3239_vm6, %v4565_v61, 0.0  ;;  %v4405_v3 = vadd.f32 %v5763_v36, %v4281_v52  ;;  %v4568_v12 = vmul.f32 %v4526_v58, %v4526_v58 }
 0x23b   : >> { %v4389_v2 = vpop.f32.mrf.mxu0  ;;  %v4575_v19 = vadd.f32 %v4574_v0, %v4573_v9  ;;  %v4545_v56 = vadd.f32 %v4544_v26, %v4543_v33  ;;  %v4548_v25 = vsel %vm3239_vm6, %v4526_v58, 0.0 }
 0x23c   : >> { %4534 = vst.msk [vmem:[%s7606_s15 + $0x20] sm:$0xff] %vm3239_vm6, %v4525_v32  ;;  %v4546_v21 = vsel %vm3239_vm6, %v4525_v32, 0.0  ;;  %v4567_v43 = vmul.f32 %v4525_v32, %v4525_v32  ;;  %v4528_v15 = vadd.f32 %v5777_v57, %v4405_v3  ;;  %v4404_v8 = vadd.f32 %v4389_v2, %v4280_v42 }
 0x23d   : >> { %v4547_v38 = vadd.f32 %v4546_v21, %v4545_v56  ;;  %v4577_v62 = vadd.f32 %v4576_v5, %v4575_v19  ;;  %v4580_v60 = vsel %vm3239_vm6, %v4568_v12, 0.0 }
 0x23e   : >> { %v4578_v28 = vsel %vm3239_vm6, %v4567_v43, 0.0  ;;  %4537 = vst.msk [vmem:[%s7606_s15 + $0x38] sm:$0xff] %vm3239_vm6, %v4528_v15  ;;  %v4527_v22 = vadd.f32 %v4512_v29, %v4404_v8  ;;  %v4570_v16 = vmul.f32 %v4528_v15, %v4528_v15  ;;  %v4552_v54 = vsel %vm3239_vm6, %v4528_v15, 0.0 }
 0x23f   : >> { %v4579_v39 = vadd.f32 %v4578_v28, %v4577_v62  ;;  %v4549_v7 = vadd.f32 %v4548_v25, %v4547_v38 }
 0x240   : >> { %4536 = vst.msk [vmem:[%s7606_s15 + $0x30] sm:$0xff] %vm3239_vm6, %v4527_v22  ;;  %v4550_v18 = vsel %vm3239_vm6, %v4527_v22, 0.0  ;;  %v4569_v45 = vmul.f32 %v4527_v22, %v4527_v22  ;;  %v4584_v37 = vsel %vm3239_vm6, %v4570_v16, 0.0 }
 0x241   : >> { %v4551_v10 = vadd.f32 %v4550_v18, %v4549_v7  ;;  %v4581_v50 = vadd.f32 %v4580_v60, %v4579_v39 }
 0x242   : >> { %v4582_v11 = vsel %vm3239_vm6, %v4569_v45, 0.0 }
 0x243   : >> { %v4553_v35 = vadd.f32 %v4552_v54, %v4551_v10  ;;  %v4583_v24 = vadd.f32 %v4582_v11, %v4581_v50 }
 0x245   : >> { %v4554_v6 = vrot.slane %v4553_v35, 4  ;;  %v4585_v41 = vadd.f32 %v4584_v37, %v4583_v24 }
 0x247   : >> { %v4555_v20 = vadd.f32 %v4554_v6, %v4553_v35  ;;  %v4586_v40 = vrot.slane %v4585_v41, 4 }
 0x249   : >> { %v4556_v34 = vrot.slane %v4555_v20, 2  ;;  %v4587_v59 = vadd.f32 %v4586_v40, %v4585_v41 }
 0x24b   : >> { %v4557_v14 = vadd.f32 %v4556_v34, %v4555_v20  ;;  %v4588_v55 = vrot.slane %v4587_v59, 2 }
 0x24d   : >> { %v4558_v4 = vrot.slane %v4557_v14, 1  ;;  %v4589_v48 = vadd.f32 %v4588_v55, %v4587_v59 }
 0x24f   : >> { %v4559_v31 = vadd.f32 %v4558_v4, %v4557_v14  ;;  %v4590_v63 = vrot.slane %v4589_v48, 1 }
 0x251   : >> { %v4560_v23 = vadd.f32 %v4559_v31, %v4538_v44  ;;  %v4591_v13 = vadd.f32 %v4590_v63, %v4589_v48  ;;  %691 = sbr.rel (!%p689_p4) target bundleno = 146 (0x92), region = 161 }
 0x253   : >> { %4561 = vst.msk [vmem:[%s6280_s11] sm:$0x1] %vm682_vm2, %v4560_v23  ;;  %v4592_v53 = vadd.f32 %v4591_v13, %v4562_v30 }
 0x255   : >> { %4593 = vst.msk [vmem:[%s6305_s23] sm:$0x1] %vm682_vm2, %v4592_v53 }
 0x256 PF: > { %s19_s27 = sadd.s32 1, %s5805_s27  }
 0x257   : > { %p16_p5 = scmp.ge.s32.totalorder %s19_s27, 4  }
 0x259   :  { %18 = sbr.rel (!%p16_p5) target bundleno = 1 (0x1), region = 172 }

</bundles_post_ra>
